<compile_context>
chip_gen: v7x
topology: tpu7x:2x2x1
jax: 0.10.0
libtpu: 0.0.40
codegen_flags: <defaults>
</compile_context>

<pallas_src>
import jax
import jax.numpy as jnp
from jax.experimental import pallas as pl
from jax.experimental.pallas import tpu as pltpu


def _round_up(x, m):
    return (x + m - 1) // m * m


def _res_double_conv_kernel(xs_ref, mask_ref, w1_ref, b1_ref, w2_ref, b2_ref,
                            w11_ref, b11_ref, out_ref):
    """One (batch element, row strip) per grid step.  All spatial slabs are flat 2-D.

    xs_ref  : (1, 1, (hs+4)*wp, ci) bf16  padded input slab (row i, col j holds
              x[strip_row0 - 2 + i, j - 1], zeros outside the image).
    mask_ref: (1, (hs+2)*wp, 1)     bf16  1.0 where the conv1 output is a real pixel.
    w1_ref  : (3, ci, 3*co)         bf16  conv1 weights, BN1 folded, dx-concatenated.
    b1_ref  : (1, co)               f32
    w2_ref  : (3, co, 3*co)         bf16  conv2 weights, BN2 folded, dx-concatenated.
    b2_ref  : (1, co)               f32
    w11_ref : (ci, co)              bf16  residual 1x1 conv weights.
    b11_ref : (1, co)               f32
    out_ref : (1, 1, hs*wp, co)     bf16  output slab (cols >= W sliced off outside).
    """
    hs_wp = out_ref.shape[2]
    co = out_ref.shape[3]
    r_in_wp = xs_ref.shape[2]
    r1_wp = mask_ref.shape[1]
    wp = (r_in_wp - r1_wp) // 2          # slab width
    hs = hs_wp // wp                     # strip height
    r1 = hs + 2                          # conv1 output rows (strip + 1 halo each side)

    xs = xs_ref[0, 0]                    # ((hs+4)*wp, ci) bf16, resident value

    def shift_rows(a, d):
        # y[p, :] = a[(p + d) % n, :].  Wrapped rows only land in masked (conv1) or
        # junk (sliced-off) columns, so a plain rotate is safe.  XLU sublane rotate.
        if d == 0:
            return a
        n = a.shape[0]
        return pltpu.roll(a, (-d) % n, 0)

    def conv3x3(src, w_ref, rows_out, base_shift):
        # src: (rows_src*wp, C).  w_ref[dy] = [w[dy,0] | w[dy,1] | w[dy,2]] : (C, 3*co).
        # One MXU matmul per dy, summed BEFORE the dx split so only one rotate per dx
        # is needed (3 per conv instead of 9; one of them is a no-op).
        msum = None
        for dy in range(3):
            lhs = src[dy * wp:(dy + rows_out) * wp]          # aligned leading slice
            m = jnp.dot(lhs, w_ref[dy], preferred_element_type=jnp.float32)
            msum = m if msum is None else msum + m
        acc = None
        for dx in range(3):
            part = shift_rows(msum[:, dx * co:(dx + 1) * co], base_shift + dx)
            acc = part if acc is None else acc + part
        return acc

    # ---- conv1 (+ folded BN1) over hs+2 rows, ReLU, validity mask ----
    acc1 = conv3x3(xs, w1_ref, r1, -1)
    y1 = (jnp.maximum(acc1 + b1_ref[...], 0.0) * mask_ref[0]).astype(jnp.bfloat16)

    # ---- conv2 (+ folded BN2) over the hs strip rows, ReLU ----
    y2 = jnp.maximum(conv3x3(y1, w2_ref, hs, 0) + b2_ref[...], 0.0)

    # ---- residual 1x1 conv: reuse the center rows of the resident input slab ----
    res = jnp.dot(xs[2 * wp:(2 + hs) * wp], w11_ref[...],
                  preferred_element_type=jnp.float32)

    out = y2 + shift_rows(res, 1) + b11_ref[...]
    out_ref[0, 0] = out.astype(out_ref.dtype)


def _vmem_budgets():
    """(per-step scratch budget, Mosaic vmem_limit_bytes) per TPU generation."""
    kind = ""
    try:
        kind = jax.devices()[0].device_kind.lower()
    except Exception:
        pass
    if any(v in kind for v in ("v4", "v5", "v6")):       # 128 MiB VMEM parts
        return 48 * 2 ** 20, 100 * 2 ** 20
    return 24 * 2 ** 20, 48 * 2 ** 20                    # v7x (64 MiB / TC) & unknown


def _pick_strip_rows(H, wp, ci, co, budget, hs_cap):
    """Largest strip height whose per-step VMEM footprint stays under `budget`.
    Non-divisor heights are allowed (ragged last strip handled by the mask)."""
    const_bytes = (3 * ci * 3 * co + 3 * co * 3 * co + ci * co) * 2 + 3 * 8 * co * 4
    for hs in range(max(1, min(H, hs_cap)), 0, -1):
        r_in, r1 = hs + 4, hs + 2
        est = (2 * r_in * wp * ci * 2            # input slab bf16, double buffered
               + 2 * hs * wp * co * 2            # output slab bf16, double buffered
               + 2 * r1 * wp * 128 * 2           # mask, lane-padded to 128, double buf.
               + const_bytes                     # single-buffered weights / biases
               + r1 * wp * 4 * co * 4            # conv1 msum + acc (f32)
               + r1 * wp * co * 2                # y1 (bf16)
               + hs * wp * 5 * co * 4)           # conv2 msum + acc + residual (f32)
        if est <= budget:
            return hs
    return 1


def res_double_conv(x_nchw, params, eps=1e-5):
    N, Cin, H, W = x_nchw.shape
    Cout = params["w1"].shape[0]

    ci = _round_up(Cin, 128)                 # lane-dense channel padding
    co = _round_up(Cout, 128)
    wp = _round_up(W + 2, 16)                # slab width (left pad + W + right pad)
    assert wp >= W + 2                       # rotate wrap-around safety

    budget, vmem_limit = _vmem_budgets()
    # keep >= 2 parallel grid steps for batch 1 (both v7x TensorCores busy)
    hs_cap = H if (N >= 2 or H <= 1) else max(1, (H + 1) // 2)
    hs = _pick_strip_rows(H, wp, ci, co, budget, hs_cap)
    S = -(-H // hs)                          # ragged last strip allowed
    r_in, r1 = hs + 4, hs + 2
    f32 = jnp.float32

    # ---- fold BatchNorm (eval mode) into the conv weights / biases ----
    s1 = params["bn1_gamma"] / jnp.sqrt(params["bn1_var"] + eps)
    t1 = params["bn1_beta"] - params["bn1_mean"] * s1
    s2 = params["bn2_gamma"] / jnp.sqrt(params["bn2_var"] + eps)
    t2 = params["bn2_beta"] - params["bn2_mean"] * s2
    w1 = params["w1"] * s1[:, None, None, None]       # OIHW, per-out-channel scale
    w2 = params["w2"] * s2[:, None, None, None]
    b1 = params["b1"] * s1 + t1
    b2 = params["b2"] * s2 + t2

    def prep3x3(w, cin_p):
        w = jnp.transpose(w, (2, 3, 1, 0))             # OIHW -> HWIO
        w = jnp.pad(w, ((0, 0), (0, 0),
                        (0, cin_p - w.shape[2]), (0, co - w.shape[3])))
        # concat the 3 dx taps along the output axis: (3, Cin_p, 3*Co)
        return jnp.concatenate([w[:, 0], w[:, 1], w[:, 2]], axis=-1).astype(jnp.bfloat16)

    w1cat = prep3x3(w1, ci)
    w2cat = prep3x3(w2, co)
    w11 = jnp.transpose(params["w1x1"][:, :, 0, 0], (1, 0))          # (Cin, Cout)
    w11 = jnp.pad(w11, ((0, ci - Cin), (0, co - Cout))).astype(jnp.bfloat16)

    def vec(v):
        return jnp.pad(v.astype(f32), (0, co - Cout)).reshape(1, co)

    b1v, b2v, b11v = vec(b1), vec(b2), vec(params["b1x1"])

    # ---- input: NCHW -> NHWC, cast to bf16 FIRST, pad, overlapping row strips ----
    x = jnp.transpose(x_nchw, (0, 2, 3, 1)).astype(jnp.bfloat16)
    x = jnp.pad(x, ((0, 0), (2, S * hs - H + 2), (1, wp - W - 1), (0, ci - Cin)))
    xs = jnp.stack([x[:, s * hs:s * hs + r_in] for s in range(S)], axis=1)
    xs = xs.reshape(N, S, r_in * wp, ci)               # (N, S, (hs+4)*wp, ci) bf16

    # per-strip validity mask for the conv1 output (bf16; kills pad cols / halo rows
    # outside the image and the ragged last-strip rows beyond H)
    g = jnp.arange(S)[:, None, None] * hs - 1 + jnp.arange(r1)[None, :, None]
    j = jnp.arange(wp)[None, None, :]
    mask = ((g >= 0) & (g < H) & (j >= 1) & (j <= W))
    mask = mask.reshape(S, r1 * wp, 1).astype(jnp.bfloat16)

    cost = pl.CostEstimate(
        flops=int(2 * N * H * W * Cout * (9 * Cin + 9 * Cout + Cin)),
        transcendentals=0,
        bytes_accessed=int(xs.size * 2 + mask.size * 2 + w1cat.size * 2
                           + w2cat.size * 2 + w11.size * 2
                           + N * S * hs * wp * co * 2))

    def const_spec(shape):
        nd = len(shape)
        try:    # single-buffer the never-changing operands (weights / biases)
            return pl.BlockSpec(shape, lambda *_: (0,) * nd,
                                pipeline_mode=pl.Buffered(1))
        except (TypeError, AttributeError):
            return pl.BlockSpec(shape, lambda *_: (0,) * nd)

    out = pl.pallas_call(
        _res_double_conv_kernel,
        out_shape=jax.ShapeDtypeStruct((N, S, hs * wp, co), jnp.bfloat16),
        grid_spec=pltpu.PrefetchScalarGridSpec(
            num_scalar_prefetch=0,
            grid=(N, S),
            in_specs=[
                pl.BlockSpec((1, 1, r_in * wp, ci), lambda n, s: (n, s, 0, 0)),
                pl.BlockSpec((1, r1 * wp, 1), lambda n, s: (s, 0, 0)),
                const_spec((3, ci, 3 * co)),
                const_spec((1, co)),
                const_spec((3, co, 3 * co)),
                const_spec((1, co)),
                const_spec((ci, co)),
                const_spec((1, co)),
            ],
            out_specs=pl.BlockSpec((1, 1, hs * wp, co), lambda n, s: (n, s, 0, 0)),
        ),
        compiler_params=pltpu.CompilerParams(
            dimension_semantics=("parallel", "parallel"),
            vmem_limit_bytes=vmem_limit),
        cost_estimate=cost,
    )(xs, mask, w1cat, b1v, w2cat, b2v, w11, b11v)

    # slab -> (N, H, W, Cout) -> NCHW  (drop junk columns / padded channels / rows)
    out = out.reshape(N, S * hs, wp, co)[:, :H, :W, :Cout]
    return jnp.transpose(out, (0, 3, 1, 2)).astype(f32)


def reference(x, params, eps=1e-5):
    """Pure-JAX NCHW reference (same eval-mode BN semantics), full f32 precision."""
    def conv(x, w, b, pad):
        y = jax.lax.conv_general_dilated(
            x, w, (1, 1), [(pad, pad), (pad, pad)],
            dimension_numbers=("NCHW", "OIHW", "NCHW"),
            precision=jax.lax.Precision.HIGHEST)
        return y + b.reshape(1, -1, 1, 1)

    def bn(y, g, be, m, v):
        r = lambda a: a.reshape(1, -1, 1, 1)
        return (y - r(m)) / jnp.sqrt(r(v) + eps) * r(g) + r(be)

    y = conv(x, params["w1"], params["b1"], 1)
    y = jax.nn.relu(bn(y, params["bn1_gamma"], params["bn1_beta"],
                       params["bn1_mean"], params["bn1_var"]))
    y = conv(y, params["w2"], params["b2"], 1)
    y = jax.nn.relu(bn(y, params["bn2_gamma"], params["bn2_beta"],
                       params["bn2_mean"], params["bn2_var"]))
    x1 = conv(x, params["w1x1"], params["b1x1"], 0)
    return x1 + y


def init_params(key, in_channels, out_channels):
    ks = jax.random.split(key, 10)
    u = lambda k, shape, bound: jax.random.uniform(k, shape, jnp.float32,
                                                   -bound, bound)
    k3_in = 1.0 / (in_channels * 9) ** 0.5
    k3_out = 1.0 / (out_channels * 9) ** 0.5
    k1 = 1.0 / in_channels ** 0.5
    return {
        "w1": u(ks[0], (out_channels, in_channels, 3, 3), k3_in),
        "b1": u(ks[1], (out_channels,), k3_in),
        "w2": u(ks[2], (out_channels, out_channels, 3, 3), k3_out),
        "b2": u(ks[3], (out_channels,), k3_out),
        "w1x1": u(ks[4], (out_channels, in_channels, 1, 1), k1),
        "b1x1": u(ks[5], (out_channels,), k1),
        "bn1_gamma": 1.0 + 0.1 * jax.random.normal(ks[6], (out_channels,)),
        "bn1_beta": 0.1 * jax.random.normal(ks[7], (out_channels,)),
        "bn1_mean": 0.05 * jax.random.normal(ks[8], (out_channels,)),
        "bn1_var": 1.0 + 0.1 * jax.random.uniform(ks[9], (out_channels,)),
        "bn2_gamma": jnp.ones((out_channels,), jnp.float32),
        "bn2_beta": jnp.zeros((out_channels,), jnp.float32),
        "bn2_mean": jnp.zeros((out_channels,), jnp.float32),
        "bn2_var": jnp.ones((out_channels,), jnp.float32),
    }


if __name__ == "__main__":
    key = jax.random.PRNGKey(0)
    kx, kp = jax.random.split(key)

    N, Cin, Cout, H, W = 2, 4, 8, 16, 16
    x = jax.random.normal(kx, (N, Cin, H, W), jnp.float32)
    params = init_params(kp, Cin, Cout)

    out = jax.block_until_ready(jax.jit(res_double_conv)(x, params))
    ref = jax.block_until_ready(reference(x, params))

    assert out.shape == (N, Cout, H, W), out.shape
    err = float(jnp.max(jnp.abs(out - ref)))
    tol = 3e-2 * (1.0 + float(jnp.max(jnp.abs(ref))))   # bf16 operands/output, f32 acc
    assert err < tol, (err, tol)
    print("KERNEL_OK")
</pallas_src>

<mosaic_0001>
module attributes {stable_mosaic.version = 11 : i64} {
  func.func @_res_double_conv_kernel(%arg0: i32, %arg1: i32, %arg2: memref<1x1x640x128xbf16, #tpu.memory_space<vmem>>, %arg3: memref<1x576x1xbf16, #tpu.memory_space<vmem>>, %arg4: memref<3x128x384xbf16, #tpu.memory_space<vmem>>, %arg5: memref<1x128xf32, #tpu.memory_space<vmem>>, %arg6: memref<3x128x384xbf16, #tpu.memory_space<vmem>>, %arg7: memref<1x128xf32, #tpu.memory_space<vmem>>, %arg8: memref<128x128xbf16, #tpu.memory_space<vmem>>, %arg9: memref<1x128xf32, #tpu.memory_space<vmem>>, %arg10: memref<1x1x512x128xbf16, #tpu.memory_space<vmem>>) attributes {dimension_semantics = [#tpu.dimension_semantics<parallel>, #tpu.dimension_semantics<parallel>], iteration_bounds = array<i64: 2, 1>, scalar_prefetch = 0 : i64, scratch_operands = 0 : i64, tpu.core_type = #tpu.core_type<tc>, window_params = [{transform_indices = @transform_0, window_bounds = array<i64: 1, 1, 640, 128>}, {transform_indices = @transform_1, window_bounds = array<i64: 1, 576, 1>}, {pipeline_mode = #tpu.pipeline_mode<synchronous>, transform_indices = @transform_2, window_bounds = array<i64: 3, 128, 384>}, {pipeline_mode = #tpu.pipeline_mode<synchronous>, transform_indices = @transform_3, window_bounds = array<i64: 1, 128>}, {pipeline_mode = #tpu.pipeline_mode<synchronous>, transform_indices = @transform_4, window_bounds = array<i64: 3, 128, 384>}, {pipeline_mode = #tpu.pipeline_mode<synchronous>, transform_indices = @transform_5, window_bounds = array<i64: 1, 128>}, {pipeline_mode = #tpu.pipeline_mode<synchronous>, transform_indices = @transform_6, window_bounds = array<i64: 128, 128>}, {pipeline_mode = #tpu.pipeline_mode<synchronous>, transform_indices = @transform_7, window_bounds = array<i64: 1, 128>}, {transform_indices = @transform_8, window_bounds = array<i64: 1, 1, 512, 128>}]} {
    %c0 = arith.constant 0 : index
    %c0_0 = arith.constant 0 : index
    %c0_1 = arith.constant 0 : index
    %c0_2 = arith.constant 0 : index
    %0 = vector.load %arg2[%c0, %c0_0, %c0_1, %c0_2] : memref<1x1x640x128xbf16, #tpu.memory_space<vmem>>, vector<1x1x640x128xbf16>
    %1 = vector.shape_cast %0 : vector<1x1x640x128xbf16> to vector<640x128xbf16>
    %2 = vector.extract_strided_slice %1 {offsets = [0, 0], sizes = [576, 128], strides = [1, 1]} : vector<640x128xbf16> to vector<576x128xbf16>
    %c0_3 = arith.constant 0 : index
    %c0_4 = arith.constant 0 : index
    %c0_5 = arith.constant 0 : index
    %3 = vector.load %arg4[%c0_3, %c0_4, %c0_5] : memref<3x128x384xbf16, #tpu.memory_space<vmem>>, vector<1x128x384xbf16>
    %4 = vector.shape_cast %3 : vector<1x128x384xbf16> to vector<128x384xbf16>
    %cst = arith.constant dense<0.000000e+00> : vector<576x384xf32>
    %5 = tpu.matmul %2, %4, %cst {dimension_numbers = #tpu.dot_dimension_numbers<[1], [0], [0], [1], [0, 0, 1, 1], [], []>} : vector<576x128xbf16>, vector<128x384xbf16>, vector<576x384xf32> -> vector<576x384xf32>
    %6 = vector.extract_strided_slice %1 {offsets = [32, 0], sizes = [576, 128], strides = [1, 1]} : vector<640x128xbf16> to vector<576x128xbf16>
    %c1 = arith.constant 1 : index
    %c0_6 = arith.constant 0 : index
    %c0_7 = arith.constant 0 : index
    %7 = vector.load %arg4[%c1, %c0_6, %c0_7] : memref<3x128x384xbf16, #tpu.memory_space<vmem>>, vector<1x128x384xbf16>
    %8 = vector.shape_cast %7 : vector<1x128x384xbf16> to vector<128x384xbf16>
    %cst_8 = arith.constant dense<0.000000e+00> : vector<576x384xf32>
    %9 = tpu.matmul %6, %8, %cst_8 {dimension_numbers = #tpu.dot_dimension_numbers<[1], [0], [0], [1], [0, 0, 1, 1], [], []>} : vector<576x128xbf16>, vector<128x384xbf16>, vector<576x384xf32> -> vector<576x384xf32>
    %10 = arith.addf %5, %9 : vector<576x384xf32>
    %11 = vector.extract_strided_slice %1 {offsets = [64, 0], sizes = [576, 128], strides = [1, 1]} : vector<640x128xbf16> to vector<576x128xbf16>
    %c2 = arith.constant 2 : index
    %c0_9 = arith.constant 0 : index
    %c0_10 = arith.constant 0 : index
    %12 = vector.load %arg4[%c2, %c0_9, %c0_10] : memref<3x128x384xbf16, #tpu.memory_space<vmem>>, vector<1x128x384xbf16>
    %13 = vector.shape_cast %12 : vector<1x128x384xbf16> to vector<128x384xbf16>
    %cst_11 = arith.constant dense<0.000000e+00> : vector<576x384xf32>
    %14 = tpu.matmul %11, %13, %cst_11 {dimension_numbers = #tpu.dot_dimension_numbers<[1], [0], [0], [1], [0, 0, 1, 1], [], []>} : vector<576x128xbf16>, vector<128x384xbf16>, vector<576x384xf32> -> vector<576x384xf32>
    %15 = arith.addf %10, %14 : vector<576x384xf32>
    %16 = vector.extract_strided_slice %15 {offsets = [0, 0], sizes = [576, 128], strides = [1, 1]} : vector<576x384xf32> to vector<576x128xf32>
    %c1_i32 = arith.constant 1 : i32
    %17 = tpu.dynamic_rotate %16 by %c1_i32 dim 0 : vector<576x128xf32>, i32 -> vector<576x128xf32>
    %18 = vector.extract_strided_slice %15 {offsets = [0, 128], sizes = [576, 128], strides = [1, 1]} : vector<576x384xf32> to vector<576x128xf32>
    %19 = arith.addf %17, %18 : vector<576x128xf32>
    %20 = vector.extract_strided_slice %15 {offsets = [0, 256], sizes = [576, 128], strides = [1, 1]} : vector<576x384xf32> to vector<576x128xf32>
    %c575_i32 = arith.constant 575 : i32
    %21 = tpu.dynamic_rotate %20 by %c575_i32 dim 0 : vector<576x128xf32>, i32 -> vector<576x128xf32>
    %22 = arith.addf %19, %21 : vector<576x128xf32>
    %c0_12 = arith.constant 0 : index
    %c0_13 = arith.constant 0 : index
    %23 = vector.load %arg5[%c0_12, %c0_13] : memref<1x128xf32, #tpu.memory_space<vmem>>, vector<1x128xf32>
    %24 = vector.broadcast %23 : vector<1x128xf32> to vector<576x128xf32>
    %25 = arith.addf %22, %24 : vector<576x128xf32>
    %cst_14 = arith.constant 0.000000e+00 : f32
    %26 = vector.broadcast %cst_14 : f32 to vector<576x128xf32>
    %27 = arith.maximumf %25, %26 : vector<576x128xf32>
    %c0_15 = arith.constant 0 : index
    %c0_16 = arith.constant 0 : index
    %c0_17 = arith.constant 0 : index
    %28 = vector.load %arg3[%c0_15, %c0_16, %c0_17] : memref<1x576x1xbf16, #tpu.memory_space<vmem>>, vector<1x576x1xbf16>
    %29 = vector.shape_cast %28 : vector<1x576x1xbf16> to vector<576x1xbf16>
    %30 = arith.extf %29 : vector<576x1xbf16> to vector<576x1xf32>
    %31 = vector.broadcast %30 : vector<576x1xf32> to vector<576x128xf32>
    %32 = arith.mulf %27, %31 : vector<576x128xf32>
    %33 = arith.truncf %32 : vector<576x128xf32> to vector<576x128xbf16>
    %34 = vector.extract_strided_slice %33 {offsets = [0, 0], sizes = [512, 128], strides = [1, 1]} : vector<576x128xbf16> to vector<512x128xbf16>
    %c0_18 = arith.constant 0 : index
    %c0_19 = arith.constant 0 : index
    %c0_20 = arith.constant 0 : index
    %35 = vector.load %arg6[%c0_18, %c0_19, %c0_20] : memref<3x128x384xbf16, #tpu.memory_space<vmem>>, vector<1x128x384xbf16>
    %36 = vector.shape_cast %35 : vector<1x128x384xbf16> to vector<128x384xbf16>
    %cst_21 = arith.constant dense<0.000000e+00> : vector<512x384xf32>
    %37 = tpu.matmul %34, %36, %cst_21 {dimension_numbers = #tpu.dot_dimension_numbers<[1], [0], [0], [1], [0, 0, 1, 1], [], []>} : vector<512x128xbf16>, vector<128x384xbf16>, vector<512x384xf32> -> vector<512x384xf32>
    %38 = vector.extract_strided_slice %33 {offsets = [32, 0], sizes = [512, 128], strides = [1, 1]} : vector<576x128xbf16> to vector<512x128xbf16>
    %c1_22 = arith.constant 1 : index
    %c0_23 = arith.constant 0 : index
    %c0_24 = arith.constant 0 : index
    %39 = vector.load %arg6[%c1_22, %c0_23, %c0_24] : memref<3x128x384xbf16, #tpu.memory_space<vmem>>, vector<1x128x384xbf16>
    %40 = vector.shape_cast %39 : vector<1x128x384xbf16> to vector<128x384xbf16>
    %cst_25 = arith.constant dense<0.000000e+00> : vector<512x384xf32>
    %41 = tpu.matmul %38, %40, %cst_25 {dimension_numbers = #tpu.dot_dimension_numbers<[1], [0], [0], [1], [0, 0, 1, 1], [], []>} : vector<512x128xbf16>, vector<128x384xbf16>, vector<512x384xf32> -> vector<512x384xf32>
    %42 = arith.addf %37, %41 : vector<512x384xf32>
    %43 = vector.extract_strided_slice %33 {offsets = [64, 0], sizes = [512, 128], strides = [1, 1]} : vector<576x128xbf16> to vector<512x128xbf16>
    %c2_26 = arith.constant 2 : index
    %c0_27 = arith.constant 0 : index
    %c0_28 = arith.constant 0 : index
    %44 = vector.load %arg6[%c2_26, %c0_27, %c0_28] : memref<3x128x384xbf16, #tpu.memory_space<vmem>>, vector<1x128x384xbf16>
    %45 = vector.shape_cast %44 : vector<1x128x384xbf16> to vector<128x384xbf16>
    %cst_29 = arith.constant dense<0.000000e+00> : vector<512x384xf32>
    %46 = tpu.matmul %43, %45, %cst_29 {dimension_numbers = #tpu.dot_dimension_numbers<[1], [0], [0], [1], [0, 0, 1, 1], [], []>} : vector<512x128xbf16>, vector<128x384xbf16>, vector<512x384xf32> -> vector<512x384xf32>
    %47 = arith.addf %42, %46 : vector<512x384xf32>
    %48 = vector.extract_strided_slice %47 {offsets = [0, 0], sizes = [512, 128], strides = [1, 1]} : vector<512x384xf32> to vector<512x128xf32>
    %49 = vector.extract_strided_slice %47 {offsets = [0, 128], sizes = [512, 128], strides = [1, 1]} : vector<512x384xf32> to vector<512x128xf32>
    %c511_i32 = arith.constant 511 : i32
    %50 = tpu.dynamic_rotate %49 by %c511_i32 dim 0 : vector<512x128xf32>, i32 -> vector<512x128xf32>
    %51 = arith.addf %48, %50 : vector<512x128xf32>
    %52 = vector.extract_strided_slice %47 {offsets = [0, 256], sizes = [512, 128], strides = [1, 1]} : vector<512x384xf32> to vector<512x128xf32>
    %c510_i32 = arith.constant 510 : i32
    %53 = tpu.dynamic_rotate %52 by %c510_i32 dim 0 : vector<512x128xf32>, i32 -> vector<512x128xf32>
    %54 = arith.addf %51, %53 : vector<512x128xf32>
    %c0_30 = arith.constant 0 : index
    %c0_31 = arith.constant 0 : index
    %55 = vector.load %arg7[%c0_30, %c0_31] : memref<1x128xf32, #tpu.memory_space<vmem>>, vector<1x128xf32>
    %56 = vector.broadcast %55 : vector<1x128xf32> to vector<512x128xf32>
    %57 = arith.addf %54, %56 : vector<512x128xf32>
    %cst_32 = arith.constant 0.000000e+00 : f32
    %58 = vector.broadcast %cst_32 : f32 to vector<512x128xf32>
    %59 = arith.maximumf %57, %58 : vector<512x128xf32>
    %60 = vector.extract_strided_slice %1 {offsets = [64, 0], sizes = [512, 128], strides = [1, 1]} : vector<640x128xbf16> to vector<512x128xbf16>
    %c0_33 = arith.constant 0 : index
    %c0_34 = arith.constant 0 : index
    %61 = vector.load %arg8[%c0_33, %c0_34] : memref<128x128xbf16, #tpu.memory_space<vmem>>, vector<128x128xbf16>
    %cst_35 = arith.constant dense<0.000000e+00> : vector<512x128xf32>
    %62 = tpu.matmul %60, %61, %cst_35 {dimension_numbers = #tpu.dot_dimension_numbers<[1], [0], [0], [1], [0, 0, 1, 1], [], []>} : vector<512x128xbf16>, vector<128x128xbf16>, vector<512x128xf32> -> vector<512x128xf32>
    %c511_i32_36 = arith.constant 511 : i32
    %63 = tpu.dynamic_rotate %62 by %c511_i32_36 dim 0 : vector<512x128xf32>, i32 -> vector<512x128xf32>
    %64 = arith.addf %59, %63 : vector<512x128xf32>
    %c0_37 = arith.constant 0 : index
    %c0_38 = arith.constant 0 : index
    %65 = vector.load %arg9[%c0_37, %c0_38] : memref<1x128xf32, #tpu.memory_space<vmem>>, vector<1x128xf32>
    %66 = vector.broadcast %65 : vector<1x128xf32> to vector<512x128xf32>
    %67 = arith.addf %64, %66 : vector<512x128xf32>
    %68 = arith.truncf %67 : vector<512x128xf32> to vector<512x128xbf16>
    %c0_39 = arith.constant 0 : index
    %c0_40 = arith.constant 0 : index
    %c0_41 = arith.constant 0 : index
    %c0_42 = arith.constant 0 : index
    %69 = vector.load %arg10[%c0_39, %c0_40, %c0_41, %c0_42] : memref<1x1x512x128xbf16, #tpu.memory_space<vmem>>, vector<1x1x512x128xbf16>
    %70 = vector.shape_cast %69 : vector<1x1x512x128xbf16> to vector<512x128xbf16>
    %71 = vector.shape_cast %68 : vector<512x128xbf16> to vector<1x1x512x128xbf16>
    tpu.vector_store %arg10[%c0_39, %c0_40, %c0_41, %c0_42], %71 {strides = array<i32>} : memref<1x1x512x128xbf16, #tpu.memory_space<vmem>>, vector<1x1x512x128xbf16>,
    return
  }
  func.func @transform_0(%arg0: i32, %arg1: i32) -> (i32, i32, i32, i32) {
    %c0_i32 = arith.constant 0 : i32
    %c0_i32_0 = arith.constant 0 : i32
    %c0_i32_1 = arith.constant 0 : i32
    return %arg0, %arg1, %c0_i32, %c0_i32_0 : i32, i32, i32, i32
  }
  func.func @transform_1(%arg0: i32, %arg1: i32) -> (i32, i32, i32) {
    %c0_i32 = arith.constant 0 : i32
    %c0_i32_0 = arith.constant 0 : i32
    %c0_i32_1 = arith.constant 0 : i32
    return %arg1, %c0_i32, %c0_i32_0 : i32, i32, i32
  }
  func.func @transform_2(%arg0: i32, %arg1: i32) -> (i32, i32, i32) {
    %c0_i32 = arith.constant 0 : i32
    %c0_i32_0 = arith.constant 0 : i32
    %c0_i32_1 = arith.constant 0 : i32
    %c0_i32_2 = arith.constant 0 : i32
    return %c0_i32, %c0_i32_0, %c0_i32_1 : i32, i32, i32
  }
  func.func @transform_3(%arg0: i32, %arg1: i32) -> (i32, i32) {
    %c0_i32 = arith.constant 0 : i32
    %c0_i32_0 = arith.constant 0 : i32
    %c0_i32_1 = arith.constant 0 : i32
    return %c0_i32, %c0_i32_0 : i32, i32
  }
  func.func @transform_4(%arg0: i32, %arg1: i32) -> (i32, i32, i32) {
    %c0_i32 = arith.constant 0 : i32
    %c0_i32_0 = arith.constant 0 : i32
    %c0_i32_1 = arith.constant 0 : i32
    %c0_i32_2 = arith.constant 0 : i32
    return %c0_i32, %c0_i32_0, %c0_i32_1 : i32, i32, i32
  }
  func.func @transform_5(%arg0: i32, %arg1: i32) -> (i32, i32) {
    %c0_i32 = arith.constant 0 : i32
    %c0_i32_0 = arith.constant 0 : i32
    %c0_i32_1 = arith.constant 0 : i32
    return %c0_i32, %c0_i32_0 : i32, i32
  }
  func.func @transform_6(%arg0: i32, %arg1: i32) -> (i32, i32) {
    %c0_i32 = arith.constant 0 : i32
    %c0_i32_0 = arith.constant 0 : i32
    %c0_i32_1 = arith.constant 0 : i32
    return %c0_i32, %c0_i32_0 : i32, i32
  }
  func.func @transform_7(%arg0: i32, %arg1: i32) -> (i32, i32) {
    %c0_i32 = arith.constant 0 : i32
    %c0_i32_0 = arith.constant 0 : i32
    %c0_i32_1 = arith.constant 0 : i32
    return %c0_i32, %c0_i32_0 : i32, i32
  }
  func.func @transform_8(%arg0: i32, %arg1: i32) -> (i32, i32, i32, i32) {
    %c0_i32 = arith.constant 0 : i32
    %c0_i32_0 = arith.constant 0 : i32
    %c0_i32_1 = arith.constant 0 : i32
    return %arg0, %arg1, %c0_i32, %c0_i32_0 : i32, i32, i32, i32
  }
}

</mosaic_0001>

<bundles_post_ra>
// kernel: res_double_conv.1
= control target key start
LH: loop header
LB: loop body
LE: loop exit
PB: predicated region body
PF: predicated region fallthrough
CT: control target
= control target key end

     0   :  { %s12020_s27 = smov 0   ;;  %s12022_s28 = smov 0   ;;  %s15778_s0 = inlined_call_operand.vmem [shape: bf16[2,1,640,128], index: 0, kind: input, shape index: {}]   ;;  %s15779_s1 = inlined_call_operand.vmem [shape: bf16[1,576,1], index: 1, kind: input, shape index: {}]   ;;  %s15780_s2 = inlined_call_operand.vmem [shape: bf16[3,128,384], index: 2, kind: input, shape index: {}]   ;;  %s15781_s3 = inlined_call_operand.vmem [shape: f32[1,128], index: 3, kind: input, shape index: {}]   ;;  %s15782_s4 = inlined_call_operand.vmem [shape: bf16[3,128,384], index: 4, kind: input, shape index: {}]   ;;  %s15783_s5 = inlined_call_operand.vmem [shape: f32[1,128], index: 5, kind: input, shape index: {}]   ;;  %s15784_s6 = inlined_call_operand.vmem [shape: bf16[128,128], index: 6, kind: input, shape index: {}]   ;;  %s15785_s7 = inlined_call_operand.vmem [shape: f32[1,128], index: 7, kind: input, shape index: {}]   ;;  %s15786_s8 = inlined_call_operand.vmem [shape: bf16[2,1,512,128], index: 8, kind: output, shape index: {}]  }
   0x1   :  { %s12024_s29 = smov 0  }
   0x2 LB: > { %s30_s30 = sadd.s32 1, %s11968_s28  ;;  %p8891_p0 = scmp.ge.s32.totalorder %s11972_s29, 1  ;;  %s11972_s29 = sphi %s12024_s29, %s18_s29   ;;  %s11968_s28 = sphi %s12022_s28, %s16347_s28   ;;  %s11964_s27 = sphi %s12020_s27, %s16346_s27  }
   0x3   : > { %p32_p1 = scmp.ge.s32.totalorder %s30_s30, 2  ;;  %p292_p2 = scmp.lt.s32.totalorder %s11972_s29, 3 }
   0x5   : > { %s16349_s30 = smov (%p32_p1, %s30_s30), 0  ;;  %p293_p3 = pnand %p8891_p0, %p292_p2 }
   0x7   : > { %296 = sbr.rel (%p293_p3) target bundleno = 2166 (0x876), region = 52 }
   0xe   : > { %v11635_v0 = vld [vmem:[%s15780_s2 + $0xc4] ss:$12 sps:$4 sm:$0xff]   ;;  %v12046_v1 = vld [vmem:[%s15780_s2 + $0xc8] ss:$12 sps:$4 sm:$0xff]   ;;  %v15789_v2 = vmov 0   ;;  %p339_p4 = scmp.lt.s32.totalorder %s11964_s27, 1 }
   0xf   : > { %884 = vmatprep.mubr.bf16.mxu0 %v15789_v2  ;;  %11453 = vset.pattern.permute.xlu0 %v15789_v2  ;;  %v11638_v3 = vld [vmem:[%s15780_s2 + $0xc0] ss:$12 sps:$4 sm:$0xff]   ;;  %v11639_v4 = vld [vmem:[%s15780_s2 + $0xdc] ss:$12 sps:$4 sm:$0xff]   ;;  %v11642_v6 = vld [vmem:[%s15780_s2 + $0xd8] ss:$12 sps:$4 sm:$0xff]  }
  0x10   : > { %852 = vmatprep.subr.bf16.mxu0 %v11635_v0  ;;  %11464 = vset.pattern.permute.xlu1 %v15789_v2  ;;  %v12063_v5 = vld [vmem:[%s15780_s2 + $0xe0] ss:$12 sps:$4 sm:$0xff]   ;;  %v12075_v8 = vld [vmem:[%s15780_s2 + $0xf8] ss:$12 sps:$4 sm:$0xff]   ;;  %v11646_v9 = vld [vmem:[%s15780_s2 + $0xf0] ss:$12 sps:$4 sm:$0xff]  }
  0x11   : > { %10595 = vmatprep.subr.bf16.mxu1 %v12046_v1  ;;  %853 = vmatpush1.bf16.msra.mxu0 %v11638_v3  ;;  %v11643_v7 = vld [vmem:[%s15780_s2 + $0xf4] ss:$12 sps:$4 sm:$0xff]   ;;  %s16351_s27 = smov (!%p339_p4, %s11964_s27), 1  ;;  %v11647_v10 = vld [vmem:[%s15780_s2 + $0x10c] ss:$12 sps:$4 sm:$0xff]  }
  0x12   : > { %10603 = vmatpush3.bf16.msra.mxu1 %v12046_v1  ;;  %854 = vmatprep.subr.bf16.mxu0 %v11639_v4  ;;  %v12091_v11 = vld [vmem:[%s15780_s2 + $0x110] ss:$12 sps:$4 sm:$0xff]   ;;  %v11650_v12 = vld [vmem:[%s15780_s2 + $0x108] ss:$12 sps:$4 sm:$0xff]   ;;  %s11427_s15 = smul.u32 320, %s16351_s27  ;;  %s9284_s20 = sshll.u32 %s16351_s27, 8 }
  0x13   : > { %10596 = vmatprep.subr.bf16.mxu1 %v12063_v5  ;;  %v11651_v13 = vld [vmem:[%s15780_s2 + $0x124] ss:$12 sps:$4 sm:$0xff]   ;;  %v12105_v14 = vld [vmem:[%s15780_s2 + $0x128] ss:$12 sps:$4 sm:$0xff]   ;;  %v11654_v15 = vld [vmem:[%s15780_s2 + $0x120] ss:$12 sps:$4 sm:$0xff]   ;;  %s15387_s22 = scalar_lea.vmem %s15786_s8, %s9284_s20 }
  0x14   : > { %v11655_v16 = vld [vmem:[%s15780_s2 + $0x13c] ss:$12 sps:$4 sm:$0xff]   ;;  %s12117_s26 = scalar_lea.vmem %s15778_s0, %s11427_s15  ;;  %v12123_v17 = vld [vmem:[%s15780_s2 + $0x140] ss:$12 sps:$4 sm:$0xff]   ;;  %v11658_v18 = vld [vmem:[%s15780_s2 + $0x138] ss:$12 sps:$4 sm:$0xff]  }
  0x15   : > { %855 = vmatpush1.bf16.msra.mxu0 %v11642_v6  ;;  %v12129_v19 = vld [vmem:[%s12117_s26 + $0x60] sm:$0xff]   ;;  %v11662_v22 = vld [vmem:[%s15780_s2 + $0x150] ss:$12 sps:$4 sm:$0xff]   ;;  %v11663_v23 = vld [vmem:[%s15780_s2 + $0x16c] ss:$12 sps:$4 sm:$0xff]  }
  0x16   : > { %10604 = vmatpush3.bf16.msra.mxu1 %v12063_v5  ;;  %856 = vmatprep.subr.bf16.mxu0 %v11643_v7  ;;  %v11659_v20 = vld [vmem:[%s15780_s2 + $0x154] ss:$12 sps:$4 sm:$0xff]   ;;  %v12139_v21 = vld [vmem:[%s15780_s2 + $0x158] ss:$12 sps:$4 sm:$0xff]   ;;  %v12153_v24 = vld [vmem:[%s15780_s2 + $0x170] ss:$12 sps:$4 sm:$0xff]  }
  0x17   : > { %10597 = vmatprep.subr.bf16.mxu1 %v12075_v8  ;;  %10047 = vmatprep.mubr.bf16.mxu1 %v12129_v19  ;;  %v11666_v25 = vld [vmem:[%s15780_s2 + $0x168] ss:$12 sps:$4 sm:$0xff]   ;;  %v12178_v29 = vld [vmem:[%s12117_s26 + $0x18] sm:$0xff]   ;;  %v12184_v31 = vld [vmem:[%s12117_s26 + $0x80] sm:$0xff]  }
  0x18   : > { %v12161_v26 = vld [vmem:[%s12117_s26 + $0x10] sm:$0xff]   ;;  %v12164_v27 = vld [vmem:[%s12117_s26 + $0x68] sm:$0xff]   ;;  %v12181_v30 = vld [vmem:[%s12117_s26 + $0x78] sm:$0xff]  }
  0x19   : > { %857 = vmatpush1.bf16.msra.mxu0 %v11646_v9  ;;  %v12169_v28 = vld [vmem:[%s12117_s26 + $0x70] sm:$0xff]   ;;  %v12194_v32 = vld [vmem:[%s12117_s26 + $0x20] sm:$0xff]   ;;  %v12198_v33 = vld [vmem:[%s12117_s26 + $0x88] sm:$0xff]  }
  0x1a   : > { %10605 = vmatpush3.bf16.msra.mxu1 %v12075_v8  ;;  %858 = vmatprep.subr.bf16.mxu0 %v11647_v10  ;;  %v12201_v34 = vld [vmem:[%s12117_s26 + $0x90] sm:$0xff]   ;;  %v11698_v36 = vld [vmem:[%s15780_s2 + $0x20] ss:$12 sps:$4 sm:$0xff]   ;;  %v12221_v38 = vld [vmem:[%s12117_s26 + $0x98] sm:$0xff]  }
  0x1b   : > { %10598 = vmatprep.subr.bf16.mxu1 %v12091_v11  ;;  %v11697_v35 = vld [vmem:[%s15780_s2 + $0x8] ss:$12 sps:$4 sm:$0xff]   ;;  %v12224_v39 = vld [vmem:[%s12117_s26 + $0xa0] sm:$0xff]   ;;  %v11702_v41 = vld [vmem:[%s15780_s2 + $0x50] ss:$12 sps:$4 sm:$0xff]  }
  0x1c   : > { %v12217_v37 = vld [vmem:[%s12117_s26 + $0x28] sm:$0xff]   ;;  %v11701_v40 = vld [vmem:[%s15780_s2 + $0x38] ss:$12 sps:$4 sm:$0xff]   ;;  %v12239_v42 = vld [vmem:[%s12117_s26 + $0x30] sm:$0xff]  }
  0x1d   : > { %859 = vmatpush1.bf16.msra.mxu0 %v11650_v12  ;;  %v12243_v43 = vld [vmem:[%s12117_s26 + $0xa8] sm:$0xff]   ;;  %v12247_v44 = vld [vmem:[%s12117_s26 + $0xb0] sm:$0xff]   ;;  %v12261_v47 = vld [vmem:[%s12117_s26 + $0x38] sm:$0xff]  }
  0x1e   : > { %10606 = vmatpush3.bf16.msra.mxu1 %v12091_v11  ;;  %860 = vmatprep.subr.bf16.mxu0 %v11651_v13  ;;  %v11705_v45 = vld [vmem:[%s15780_s2 + $0x68] ss:$12 sps:$4 sm:$0xff]   ;;  %v11706_v46 = vld [vmem:[%s15780_s2 + $0x80] ss:$12 sps:$4 sm:$0xff]   ;;  %v12264_v48 = vld [vmem:[%s12117_s26 + $0xb8] sm:$0xff]  }
  0x1f   : > { %10599 = vmatprep.subr.bf16.mxu1 %v12105_v14  ;;  %v12267_v49 = vld [vmem:[%s12117_s26 + $0xc0] sm:$0xff]   ;;  %v11710_v51 = vld [vmem:[%s15780_s2 + $0xb0] ss:$12 sps:$4 sm:$0xff]   ;;  %v12283_v53 = vld [vmem:[%s12117_s26 + $0xc8] sm:$0xff]  }
  0x20   : > { %v11709_v50 = vld [vmem:[%s15780_s2 + $0x98] ss:$12 sps:$4 sm:$0xff]   ;;  %v12286_v54 = vld [vmem:[%s12117_s26 + $0xd0] sm:$0xff]   ;;  %v12293_v55 = vld [vmem:[%s12117_s26 + $0x48] sm:$0xff]  }
  0x21   : > { %861 = vmatpush1.bf16.msra.mxu0 %v11654_v15  ;;  %v12280_v52 = vld [vmem:[%s12117_s26 + $0x40] sm:$0xff]   ;;  %v12296_v56 = vld [vmem:[%s12117_s26 + $0xd8] sm:$0xff]   ;;  %v12306_v58 = vld [vmem:[%s12117_s26 + $0x50] sm:$0xff]  }
  0x22   : > { %10607 = vmatpush3.bf16.msra.mxu1 %v12105_v14  ;;  %862 = vmatprep.subr.bf16.mxu0 %v11655_v16  ;;  %v12299_v57 = vld [vmem:[%s12117_s26 + $0xe0] sm:$0xff]   ;;  %v12309_v59 = vld [vmem:[%s12117_s26 + $0xe8] sm:$0xff]   ;;  %v12312_v60 = vld [vmem:[%s12117_s26 + $0xf0] sm:$0xff]  }
  0x23   : > { %10600 = vmatprep.subr.bf16.mxu1 %v12123_v17  ;;  %v12319_v61 = vld [vmem:[%s12117_s26 + $0x58] sm:$0xff]   ;;  %v12325_v63 = vld [vmem:[%s12117_s26 + $0x100] sm:$0xff]   ;;  %v12332_v0 = vld [vmem:[%s12117_s26 + $0x108] sm:$0xff]  }
  0x24   : > { %v12322_v62 = vld [vmem:[%s12117_s26 + $0xf8] sm:$0xff]   ;;  %v12345_v4 = vld [vmem:[%s12117_s26 + $0x120] sm:$0xff]   ;;  %v12355_v6 = vld [vmem:[%s12117_s26 + $0x128] sm:$0xff]  }
  0x25   : > { %863 = vmatpush1.bf16.msra.mxu0 %v11658_v18  ;;  %v12342_v3 = vld [vmem:[%s12117_s26 + $0x118] sm:$0xff]   ;;  %v12358_v7 = vld [vmem:[%s12117_s26] sm:$0xff]   ;;  %v11717_v12 = vld [vmem:[%s15780_s2 + $0x1e8] ss:$12 sps:$4 sm:$0xff]  }
  0x26   : > { %10608 = vmatpush3.bf16.msra.mxu1 %v12123_v17  ;;  %864 = vmatprep.subr.bf16.mxu0 %v11659_v20  ;;  %v11714_v9 = vld [vmem:[%s15780_s2 + $0x1a0] ss:$12 sps:$4 sm:$0xff]   ;;  %v11715_v10 = vld [vmem:[%s15780_s2 + $0x1b8] ss:$12 sps:$4 sm:$0xff]   ;;  %v11720_v15 = vld [vmem:[%s15780_s2 + $0x230] ss:$12 sps:$4 sm:$0xff]  }
  0x27   : > { %10601 = vmatprep.subr.bf16.mxu1 %v12139_v21  ;;  %v11718_v13 = vld [vmem:[%s15780_s2 + $0x200] ss:$12 sps:$4 sm:$0xff]   ;;  %v11723_v16 = vld [vmem:[%s15780_s2 + $0x4] ss:$12 sps:$4 sm:$0xff]  }
  0x28   : > { %v11721_v18 = vld [vmem:[%s15780_s2] ss:$12 sps:$4 sm:$0xff]   ;;  %v11724_v20 = vld [vmem:[%s15780_s2 + $0x18] ss:$12 sps:$4 sm:$0xff]  }
  0x29   : > { %865 = vmatpush1.bf16.msra.mxu0 %v11662_v22  ;;  %v11727_v22 = vld [vmem:[%s15780_s2 + $0x30] ss:$12 sps:$4 sm:$0xff]  }
  0x2a   : > { %10609 = vmatpush3.bf16.msra.mxu1 %v12139_v21  ;;  %866 = vmatprep.subr.bf16.mxu0 %v11663_v23  ;;  %v11732_v23 = vld [vmem:[%s15780_s2 + $0x4c] ss:$12 sps:$4 sm:$0xff]  }
  0x2b   : > { %10602 = vmatprep.subr.bf16.mxu1 %v12153_v24 }
  0x2d   : > { %867 = vmatpush1.bf16.msra.mxu0 %v11666_v25  ;;  %v11735_v25 = vld [vmem:[%s15780_s2 + $0x64] ss:$12 sps:$4 sm:$0xff]  }
  0x2e   : > { %10610 = vmatpush3.bf16.msra.mxu1 %v12153_v24  ;;  %10011 = vmatprep.subr.bf16.mxu0 %v12046_v1 }
  0x2f   : > { %10099 = vmatprep.subr.bf16.mxu1 %v11697_v35 }
  0x30   : > { %885 = vmatmul.mubr.bf16.vlgmr.msra.gmra.mrb[0].mxu0 %v12161_v26 }
  0x31   : > { %10048 = vmatmul.mubr.bf16.vlgmr.msra.gmra.mrb[0].mxu1 %v12164_v27  ;;  %10012 = vmatpush3.bf16.msra.mxu0 %v12046_v1  ;;  %v12335_v1 = vld [vmem:[%s12117_s26 + $0x110] sm:$0xff]  }
  0x32   : > { %894 = vmatprep.mubr.bf16.mxu0 %v15789_v2  ;;  %10051 = vmatprep.mubr.bf16.mxu1 %v12169_v28 }
  0x33   : > { %10013 = vmatprep.subr.bf16.mxu0 %v12063_v5  ;;  %10100 = vmatpush3.bf16.msra.mxu1 %v11697_v35  ;;  %v11750_v35 = vld [vmem:[%s15780_s2 + $0x19c] ss:$12 sps:$4 sm:$0xff]  }
  0x34   : > { %10101 = vmatprep.subr.bf16.mxu1 %v11698_v36 }
  0x35   : > { %10014 = vmatpush3.bf16.msra.mxu0 %v12063_v5  ;;  %v11713_v5 = vld [vmem:[%s15780_s2 + $0x188] ss:$12 sps:$4 sm:$0xff]  }
  0x36   : > { %10015 = vmatprep.subr.bf16.mxu0 %v12075_v8 }
  0x37   : > { %10102 = vmatpush3.bf16.msra.mxu1 %v11698_v36  ;;  %v11748_v36 = vld [vmem:[%s15780_s2 + $0x198] ss:$12 sps:$4 sm:$0xff]  }
  0x38   : > { %895 = vmatmul.mubr.bf16.gmra.mrb[4].mxu0 %v12178_v29  ;;  %10103 = vmatprep.subr.bf16.mxu1 %v11701_v40 }
  0x39   : > { %10052 = vmatmul.mubr.bf16.gmra.mrb[4].mxu1 %v12181_v30  ;;  %904 = vmatprep.mubr.bf16.mxu0 %v15789_v2 }
  0x3a   : > { %10055 = vmatprep.mubr.bf16.mxu1 %v12184_v31  ;;  %10016 = vmatpush3.bf16.msra.mxu0 %v12075_v8  ;;  %v12365_v8 = vld [vmem:[%s12117_s26 + $0x8] sm:$0xff]  }
  0x3b   : > { %10017 = vmatprep.subr.bf16.mxu0 %v12091_v11  ;;  %10104 = vmatpush3.bf16.msra.mxu1 %v11701_v40  ;;  %v11758_v40 = vld [vmem:[%s15780_s2 + $0x1cc] ss:$12 sps:$4 sm:$0xff]  }
  0x3c   : > { %10105 = vmatprep.subr.bf16.mxu1 %v11702_v41 }
  0x3e   : > { %10018 = vmatpush3.bf16.msra.mxu0 %v12091_v11  ;;  %v11716_v11 = vld [vmem:[%s15780_s2 + $0x1d0] ss:$12 sps:$4 sm:$0xff]  }
  0x3f   : > { %10019 = vmatprep.subr.bf16.mxu0 %v12105_v14  ;;  %10106 = vmatpush3.bf16.msra.mxu1 %v11702_v41  ;;  %v11756_v41 = vld [vmem:[%s15780_s2 + $0x1c8] ss:$12 sps:$4 sm:$0xff]  }
  0x40   : > { %905 = vmatmul.mubr.bf16.gmra.mrb[8].mxu0 %v12194_v32  ;;  %10107 = vmatprep.subr.bf16.mxu1 %v11705_v45 }
  0x41   : > { %10056 = vmatmul.mubr.bf16.gmra.mrb[8].mxu1 %v12198_v33  ;;  %914 = vmatprep.mubr.bf16.mxu0 %v15789_v2 }
  0x42   : > { %10059 = vmatprep.mubr.bf16.mxu1 %v12201_v34  ;;  %10020 = vmatpush3.bf16.msra.mxu0 %v12105_v14  ;;  %v11719_v14 = vld [vmem:[%s15780_s2 + $0x218] ss:$12 sps:$4 sm:$0xff]  }
  0x43   : > { %10021 = vmatprep.subr.bf16.mxu0 %v12123_v17  ;;  %10108 = vmatpush3.bf16.msra.mxu1 %v11705_v45  ;;  %v11761_v45 = vld [vmem:[%s15780_s2 + $0x1e4] ss:$12 sps:$4 sm:$0xff]  }
  0x44   : > { %10109 = vmatprep.subr.bf16.mxu1 %v11706_v46 }
  0x46   : > { %10022 = vmatpush3.bf16.msra.mxu0 %v12123_v17  ;;  %v12479_v17 = vld [vmem:[%s12117_s26 + $0x60] sm:$0xff]  }
  0x47   : > { %10023 = vmatprep.subr.bf16.mxu0 %v12139_v21  ;;  %10110 = vmatpush3.bf16.msra.mxu1 %v11706_v46  ;;  %v11877_v46 = vld [vmem:[%s12117_s26 + $0x18] sm:$0xff]  }
  0x48   : > { %915 = vmatmul.mubr.bf16.gmra.mrb[12].mxu0 %v12217_v37  ;;  %10111 = vmatprep.subr.bf16.mxu1 %v11709_v50 }
  0x49   : > { %10060 = vmatmul.mubr.bf16.gmra.mrb[12].mxu1 %v12221_v38  ;;  %924 = vmatprep.mubr.bf16.mxu0 %v15789_v2 }
  0x4a   : > { %10063 = vmatprep.mubr.bf16.mxu1 %v12224_v39  ;;  %10024 = vmatpush3.bf16.msra.mxu0 %v12139_v21  ;;  %v11729_v21 = vld [vmem:[%s15780_s2 + $0x34] ss:$12 sps:$4 sm:$0xff]  }
  0x4b   : > { %10025 = vmatprep.subr.bf16.mxu0 %v12153_v24  ;;  %10112 = vmatpush3.bf16.msra.mxu1 %v11709_v50  ;;  %v11752_v50 = vld [vmem:[%s12117_s26 + $0x138] sm:$0xff]  }
  0x4c   : > { %10113 = vmatprep.subr.bf16.mxu1 %v11710_v51 }
  0x4e   : > { %10026 = vmatpush3.bf16.msra.mxu0 %v12153_v24  ;;  %v11730_v24 = vld [vmem:[%s15780_s2 + $0x48] ss:$12 sps:$4 sm:$0xff]  }
  0x4f   : > { %10114 = vmatpush3.bf16.msra.mxu1 %v11710_v51  ;;  %1706 = vmatprep.subr.bf16.mxu0 %v11723_v16  ;;  %v11762_v51 = vld [vmem:[%s15780_s2 + $0x1f8] ss:$12 sps:$4 sm:$0xff]  }
  0x50   : > { %925 = vmatmul.mubr.bf16.gmra.mrb[16].mxu0 %v12239_v42  ;;  %10187 = vmatprep.subr.bf16.mxu1 %v11713_v5 }
  0x51   : > { %10064 = vmatmul.mubr.bf16.gmra.mrb[16].mxu1 %v12243_v43  ;;  %934 = vmatprep.mubr.bf16.mxu0 %v15789_v2 }
  0x52   : > { %10067 = vmatprep.mubr.bf16.mxu1 %v12247_v44 }
  0x58   : > { %935 = vmatmul.mubr.bf16.gmra.mrb[20].mxu0 %v12261_v47 }
  0x59   : > { %10068 = vmatmul.mubr.bf16.gmra.mrb[20].mxu1 %v12264_v48  ;;  %944 = vmatprep.mubr.bf16.mxu0 %v15789_v2 }
  0x5a   : > { %10071 = vmatprep.mubr.bf16.mxu1 %v12267_v49 }
  0x60   : > { %945 = vmatmul.mubr.bf16.gmra.mrb[24].mxu0 %v12280_v52 }
  0x61   : > { %10072 = vmatmul.mubr.bf16.gmra.mrb[24].mxu1 %v12283_v53  ;;  %954 = vmatprep.mubr.bf16.mxu0 %v15789_v2 }
  0x62   : > { %10075 = vmatprep.mubr.bf16.mxu1 %v12286_v54 }
  0x68   : > { %955 = vmatmul.mubr.bf16.gmra.mrb[28].mxu0 %v12293_v55 }
  0x69   : > { %10076 = vmatmul.mubr.bf16.gmra.mrb[28].mxu1 %v12296_v56  ;;  %964 = vmatprep.mubr.bf16.mxu0 %v15789_v2 }
  0x6a   : > { %10079 = vmatprep.mubr.bf16.mxu1 %v12299_v57 }
  0x70   : > { %965 = vmatmul.mubr.bf16.gmra.mrb[32].mxu0 %v12306_v58 }
  0x71   : > { %10080 = vmatmul.mubr.bf16.gmra.mrb[32].mxu1 %v12309_v59  ;;  %974 = vmatprep.mubr.bf16.mxu0 %v15789_v2 }
  0x72   : > { %10083 = vmatprep.mubr.bf16.mxu1 %v12312_v60 }
  0x78   : > { %975 = vmatmul.mubr.bf16.gmra.mrb[36].mxu0 %v12319_v61 }
  0x79   : > { %10084 = vmatmul.mubr.bf16.gmra.mrb[36].mxu1 %v12322_v62  ;;  %984 = vmatprep.mubr.bf16.mxu0 %v15789_v2 }
  0x7a   : > { %10087 = vmatprep.mubr.bf16.mxu1 %v12325_v63 }
  0x80   : > { %985 = vmatmul.mubr.bf16.gmra.mrb[40].mxu0 %v12129_v19 }
  0x81   : > { %10088 = vmatmul.mubr.bf16.gmra.mrb[40].mxu1 %v12332_v0  ;;  %994 = vmatprep.mubr.bf16.mxu0 %v15789_v2 }
  0x82   : > { %10091 = vmatprep.mubr.bf16.mxu1 %v12335_v1 }
  0x88   : > { %995 = vmatmul.mubr.bf16.gmra.mrb[44].mxu0 %v12164_v27 }
  0x89   : > { %10092 = vmatmul.mubr.bf16.gmra.mrb[44].mxu1 %v12342_v3  ;;  %1004 = vmatprep.mubr.bf16.mxu0 %v15789_v2 }
  0x8a   : > { %10095 = vmatprep.mubr.bf16.mxu1 %v12345_v4 }
  0x90   : > { %1005 = vmatmul.mubr.bf16.gmra.mrb[48].mxu0 %v12169_v28 }
  0x91   : > { %10096 = vmatmul.mubr.bf16.gmra.mrb[48].mxu1 %v12355_v6  ;;  %1014 = vmatprep.mubr.bf16.mxu0 %v15789_v2 }
  0x92   : > { %10115 = vmatprep.mubr.bf16.mxu1 %v12358_v7 }
  0x98   : > { %1015 = vmatmul.mubr.bf16.gmra.mrb[52].mxu0 %v12181_v30 }
  0x99   : > { %10116 = vmatmul.mubr.bf16.vlgmr.msra.gmra.mrb[52].mxu1 %v12365_v8  ;;  %1024 = vmatprep.mubr.bf16.mxu0 %v15789_v2 }
  0x9a   : > { %10119 = vmatprep.mubr.bf16.mxu1 %v12161_v26  ;;  %10188 = vmatpush3.bf16.msra.mxu1 %v11713_v5 }
  0x9b   : > { %10189 = vmatprep.subr.bf16.mxu1 %v11714_v9 }
  0x9e   : > { %10190 = vmatpush3.bf16.msra.mxu1 %v11714_v9  ;;  %v12688_v9 = vld [vmem:[%s12117_s26 + $0x98] sm:$0xff]  }
  0x9f   : > { %10191 = vmatprep.subr.bf16.mxu1 %v11715_v10 }
  0xa0   : > { %1025 = vmatmul.mubr.bf16.gmra.mrb[56].mxu0 %v12184_v31 }
  0xa1   : > { %10120 = vmatmul.mubr.bf16.gmra.mrb[56].mxu1 %v12178_v29  ;;  %1034 = vmatprep.mubr.bf16.mxu0 %v15789_v2 }
  0xa2   : > { %10123 = vmatprep.mubr.bf16.mxu1 %v12194_v32  ;;  %10192 = vmatpush3.bf16.msra.mxu1 %v11715_v10 }
  0xa3   : > { %10193 = vmatprep.subr.bf16.mxu1 %v11716_v11 }
  0xa6   : > { %10194 = vmatpush3.bf16.msra.mxu1 %v11716_v11 }
  0xa7   : > { %10195 = vmatprep.subr.bf16.mxu1 %v11717_v12 }
  0xa8   : > { %1035 = vmatmul.mubr.bf16.gmra.mrb[60].mxu0 %v12198_v33 }
  0xa9   : > { %10124 = vmatmul.mubr.bf16.gmra.mrb[60].mxu1 %v12217_v37  ;;  %1044 = vmatprep.mubr.bf16.mxu0 %v15789_v2 }
  0xaa   : > { %10127 = vmatprep.mubr.bf16.mxu1 %v12239_v42  ;;  %10196 = vmatpush3.bf16.msra.mxu1 %v11717_v12 }
  0xab   : > { %10197 = vmatprep.subr.bf16.mxu1 %v11718_v13 }
  0xae   : > { %10198 = vmatpush3.bf16.msra.mxu1 %v11718_v13 }
  0xaf   : > { %10199 = vmatprep.subr.bf16.mxu1 %v11719_v14 }
  0xb0   : > { %1045 = vmatmul.mubr.bf16.gmra.mrb[64].mxu0 %v12201_v34 }
  0xb1   : > { %10128 = vmatmul.mubr.bf16.gmra.mrb[64].mxu1 %v12261_v47  ;;  %1054 = vmatprep.mubr.bf16.mxu0 %v15789_v2 }
  0xb2   : > { %10131 = vmatprep.mubr.bf16.mxu1 %v12280_v52  ;;  %10200 = vmatpush3.bf16.msra.mxu1 %v11719_v14  ;;  %v12701_v14 = vld [vmem:[%s12117_s26 + $0xa0] sm:$0xff]  }
  0xb3   : > { %10201 = vmatprep.subr.bf16.mxu1 %v11720_v15 }
  0xb6   : > { %10202 = vmatpush3.bf16.msra.mxu1 %v11720_v15 }
  0xb8   : > { %1055 = vmatmul.mubr.bf16.gmra.mrb[68].mxu0 %v12221_v38 }
  0xb9   : > { %10132 = vmatmul.mubr.bf16.gmra.mrb[68].mxu1 %v12293_v55  ;;  %1064 = vmatprep.mubr.bf16.mxu0 %v15789_v2 }
  0xba   : > { %10135 = vmatprep.mubr.bf16.mxu1 %v12306_v58 }
  0xc0   : > { %1065 = vmatmul.mubr.bf16.gmra.mrb[72].mxu0 %v12224_v39 }
  0xc1   : > { %10136 = vmatmul.mubr.bf16.gmra.mrb[0].mxu1 %v12319_v61  ;;  %1074 = vmatprep.mubr.bf16.mxu0 %v15789_v2 }
  0xc2   : > { %10139 = vmatprep.mubr.bf16.mxu1 %v12129_v19  ;;  %v11726_v19 = vld [vmem:[%s15780_s2 + $0x1c] ss:$12 sps:$4 sm:$0xff]  }
  0xc8   : > { %1075 = vmatmul.mubr.bf16.gmra.mrb[76].mxu0 %v12243_v43 }
  0xc9   : > { %10140 = vmatmul.mubr.bf16.gmra.mrb[4].mxu1 %v12164_v27  ;;  %1084 = vmatprep.mubr.bf16.mxu0 %v15789_v2 }
  0xca   : > { %10143 = vmatprep.mubr.bf16.mxu1 %v12169_v28 }
  0xd0   : > { %1085 = vmatmul.mubr.bf16.gmra.mrb[80].mxu0 %v12247_v44 }
  0xd1   : > { %10144 = vmatmul.mubr.bf16.gmra.mrb[8].mxu1 %v12181_v30  ;;  %1094 = vmatprep.mubr.bf16.mxu0 %v15789_v2 }
  0xd2   : > { %10147 = vmatprep.mubr.bf16.mxu1 %v12184_v31 }
  0xd8   : > { %1095 = vmatmul.mubr.bf16.gmra.mrb[84].mxu0 %v12264_v48 }
  0xd9   : > { %10148 = vmatmul.mubr.bf16.gmra.mrb[12].mxu1 %v12198_v33  ;;  %1104 = vmatprep.mubr.bf16.mxu0 %v15789_v2 }
  0xda   : > { %10151 = vmatprep.mubr.bf16.mxu1 %v12201_v34 }
  0xe0   : > { %1105 = vmatmul.mubr.bf16.gmra.mrb[88].mxu0 %v12267_v49 }
  0xe1   : > { %10152 = vmatmul.mubr.bf16.gmra.mrb[16].mxu1 %v12221_v38  ;;  %1114 = vmatprep.mubr.bf16.mxu0 %v15789_v2 }
  0xe2   : > { %10155 = vmatprep.mubr.bf16.mxu1 %v12224_v39 }
  0xe8   : > { %1115 = vmatmul.mubr.bf16.gmra.mrb[92].mxu0 %v12283_v53 }
  0xe9   : > { %10156 = vmatmul.mubr.bf16.gmra.mrb[20].mxu1 %v12243_v43  ;;  %1124 = vmatprep.mubr.bf16.mxu0 %v15789_v2 }
  0xea   : > { %10159 = vmatprep.mubr.bf16.mxu1 %v12247_v44 }
  0xf0   : > { %1125 = vmatmul.mubr.bf16.gmra.mrb[96].mxu0 %v12286_v54 }
  0xf1   : > { %10160 = vmatmul.mubr.bf16.gmra.mrb[24].mxu1 %v12264_v48  ;;  %1134 = vmatprep.mubr.bf16.mxu0 %v15789_v2 }
  0xf2   : > { %10163 = vmatprep.mubr.bf16.mxu1 %v12267_v49 }
  0xf8   : > { %1135 = vmatmul.mubr.bf16.gmra.mrb[100].mxu0 %v12296_v56 }
  0xf9   : > { %10164 = vmatmul.mubr.bf16.gmra.mrb[28].mxu1 %v12283_v53  ;;  %1144 = vmatprep.mubr.bf16.mxu0 %v15789_v2 }
  0xfa   : > { %10167 = vmatprep.mubr.bf16.mxu1 %v12286_v54 }
 0x100   : > { %1145 = vmatmul.mubr.bf16.gmra.mrb[104].mxu0 %v12299_v57 }
 0x101   : > { %10168 = vmatmul.mubr.bf16.gmra.mrb[32].mxu1 %v12296_v56  ;;  %1154 = vmatprep.mubr.bf16.mxu0 %v15789_v2 }
 0x102   : > { %10171 = vmatprep.mubr.bf16.mxu1 %v12299_v57 }
 0x108   : > { %1155 = vmatmul.mubr.bf16.gmra.mrb[108].mxu0 %v12309_v59 }
 0x109   : > { %10172 = vmatmul.mubr.bf16.gmra.mrb[36].mxu1 %v12309_v59  ;;  %1164 = vmatprep.mubr.bf16.mxu0 %v15789_v2 }
 0x10a   : > { %10175 = vmatprep.mubr.bf16.mxu1 %v12312_v60 }
 0x110   : > { %1165 = vmatmul.mubr.bf16.gmra.mrb[112].mxu0 %v12312_v60 }
 0x111   : > { %10176 = vmatmul.mubr.bf16.gmra.mrb[40].mxu1 %v12322_v62  ;;  %1174 = vmatprep.mubr.bf16.mxu0 %v15789_v2 }
 0x112   : > { %10179 = vmatprep.mubr.bf16.mxu1 %v12325_v63 }
 0x118   : > { %1175 = vmatmul.mubr.bf16.gmra.mrb[116].mxu0 %v12322_v62 }
 0x119   : > { %10180 = vmatmul.mubr.bf16.gmra.mrb[44].mxu1 %v12332_v0  ;;  %1184 = vmatprep.mubr.bf16.mxu0 %v15789_v2 }
 0x11a   : > { %10183 = vmatprep.mubr.bf16.mxu1 %v12335_v1 }
 0x120   : > { %1185 = vmatmul.mubr.bf16.gmra.mrb[120].mxu0 %v12325_v63 }
 0x121   : > { %10184 = vmatmul.mubr.bf16.gmra.mrb[48].mxu1 %v12342_v3  ;;  %1194 = vmatprep.mubr.bf16.mxu0 %v15789_v2 }
 0x122   : > { %10203 = vmatprep.mubr.bf16.mxu1 %v12194_v32 }
 0x128   : > { %1195 = vmatmul.mubr.bf16.gmra.mrb[124].mxu0 %v12332_v0 }
 0x129   : > { %10204 = vmatmul.mubr.bf16.vlgmr.msra.gmra.mrb[52].mxu1 %v12217_v37  ;;  %1204 = vmatprep.mubr.bf16.mxu0 %v15789_v2 }
 0x12a   : > { %10207 = vmatprep.mubr.bf16.mxu1 %v12239_v42 }
 0x130   : > { %1205 = vmatmul.mubr.bf16.gmra.mrb[128].mxu0 %v12335_v1 }
 0x131   : > { %10208 = vmatmul.mubr.bf16.gmra.mrb[56].mxu1 %v12261_v47  ;;  %1214 = vmatprep.mubr.bf16.mxu0 %v15789_v2 }
 0x132   : > { %10211 = vmatprep.mubr.bf16.mxu1 %v12280_v52 }
 0x138   : > { %1215 = vmatmul.mubr.bf16.gmra.mrb[132].mxu0 %v12342_v3 }
 0x139   : > { %10212 = vmatmul.mubr.bf16.gmra.mrb[60].mxu1 %v12293_v55  ;;  %1224 = vmatprep.mubr.bf16.mxu0 %v15789_v2 }
 0x13a   : > { %10215 = vmatprep.mubr.bf16.mxu1 %v12306_v58 }
 0x140   : > { %1225 = vmatmul.mubr.bf16.gmra.mrb[136].mxu0 %v12345_v4 }
 0x141   : > { %10216 = vmatmul.mubr.bf16.gmra.mrb[64].mxu1 %v12319_v61  ;;  %1234 = vmatprep.mubr.bf16.mxu0 %v15789_v2 }
 0x142   : > { %10219 = vmatprep.mubr.bf16.mxu1 %v12479_v17 }
 0x148   : > { %1235 = vmatmul.mubr.bf16.gmra.mrb[140].mxu0 %v12355_v6 }
 0x149   : > { %10220 = vmatmul.mubr.bf16.gmra.mrb[68].mxu1 %v12164_v27  ;;  %10027 = vmatprep.mubr.bf16.mxu0 %v12161_v26  ;;  %v11733_v26 = vld [vmem:[%s15780_s2 + $0x60] ss:$12 sps:$4 sm:$0xff]   ;;  %v11738_v27 = vld [vmem:[%s15780_s2 + $0x7c] ss:$12 sps:$4 sm:$0xff]  }
 0x14a   : > { %10223 = vmatprep.mubr.bf16.mxu1 %v12169_v28  ;;  %v11736_v28 = vld [vmem:[%s15780_s2 + $0x78] ss:$12 sps:$4 sm:$0xff]  }
 0x150   : > { %10028 = vmatmul.mubr.bf16.vlgmr.msra.gmra.mrb[144].mxu0 %v12178_v29  ;;  %v11741_v29 = vld [vmem:[%s15780_s2 + $0x94] ss:$12 sps:$4 sm:$0xff]  }
 0x151   : > { %10224 = vmatmul.mubr.bf16.gmra.mrb[0].mxu1 %v12181_v30  ;;  %1707 = vmatpush1.bf16.msra.mxu0 %v11721_v18  ;;  %v11739_v30 = vld [vmem:[%s15780_s2 + $0x90] ss:$12 sps:$4 sm:$0xff]  }
 0x152   : > { %10031 = vmatprep.mubr.bf16.mxu0 %v12194_v32  ;;  %1708 = vmatprep.subr.bf16.mxu0 %v11726_v19  ;;  %v11742_v32 = vld [vmem:[%s15780_s2 + $0xa8] ss:$12 sps:$4 sm:$0xff]   ;;  %v3595_v19 = vlaneseq }
 0x153   : > { %10227 = vmatprep.mubr.bf16.mxu1 %v12184_v31  ;;  %v11744_v31 = vld [vmem:[%s15780_s2 + $0xac] ss:$12 sps:$4 sm:$0xff]  }
 0x155   : > { %1709 = vmatpush1.bf16.msra.mxu0 %v11724_v20  ;;  %v11887_v20 = vld [vmem:[%s12117_s26 + $0xa8] sm:$0xff]  }
 0x156   : > { %1710 = vmatprep.subr.bf16.mxu0 %v11729_v21 }
 0x158   : > { %10032 = vmatmul.mubr.bf16.gmra.mrb[148].mxu0 %v12217_v37 }
 0x159   : > { %10228 = vmatmul.mubr.bf16.gmra.mrb[4].mxu1 %v12198_v33  ;;  %1711 = vmatpush1.bf16.msra.mxu0 %v11727_v22  ;;  %v11747_v33 = vld [vmem:[%s15780_s2 + $0x184] ss:$12 sps:$4 sm:$0xff]   ;;  %v12715_v22 = vshrl.u32 %v3595_v19, 7 }
 0x15a   : > { %10035 = vmatprep.mubr.bf16.mxu0 %v12239_v42  ;;  %1712 = vmatprep.subr.bf16.mxu0 %v11732_v23 }
 0x15b   : > { %10231 = vmatprep.mubr.bf16.mxu1 %v12201_v34  ;;  %v11745_v34 = vld [vmem:[%s15780_s2 + $0x180] ss:$12 sps:$4 sm:$0xff]   ;;  %vm3814_vm0 = vcmp.lt.s32.totalorder %v12715_v22, 7  ;;  %vm3597_vm1 = vcmp.lt.s32.totalorder %v12715_v22, 1  ;;  %vm7578_vm2 = vcmp.lt.s32.totalorder %v12715_v22, 6 }
 0x15d   : > { %1713 = vmatpush1.bf16.msra.mxu0 %v11730_v24 }
 0x15e   : > { %1714 = vmatprep.subr.bf16.mxu0 %v11735_v25 }
 0x160   : > { %10036 = vmatmul.mubr.bf16.gmra.mrb[152].mxu0 %v12261_v47 }
 0x161   : > { %10232 = vmatmul.mubr.bf16.gmra.mrb[8].mxu1 %v12221_v38  ;;  %1715 = vmatpush1.bf16.msra.mxu0 %v11733_v26  ;;  %v11755_v38 = vld [vmem:[%s15780_s2 + $0x1b4] ss:$12 sps:$4 sm:$0xff]  }
 0x162   : > { %10039 = vmatprep.mubr.bf16.mxu0 %v12280_v52  ;;  %10235 = vmatprep.mubr.bf16.mxu1 %v12224_v39  ;;  %v11753_v39 = vld [vmem:[%s15780_s2 + $0x1b0] ss:$12 sps:$4 sm:$0xff]  }
 0x163   : > { %1716 = vmatprep.subr.bf16.mxu0 %v11738_v27 }
 0x165   : > { %1717 = vmatpush1.bf16.msra.mxu0 %v11736_v28 }
 0x166   : > { %1718 = vmatprep.subr.bf16.mxu0 %v11741_v29 }
 0x168   : > { %10040 = vmatmul.mubr.bf16.gmra.mrb[156].mxu0 %v12293_v55 }
 0x169   : > { %10236 = vmatmul.mubr.bf16.gmra.mrb[12].mxu1 %v12243_v43  ;;  %10043 = vmatprep.mubr.bf16.mxu0 %v12306_v58  ;;  %v11876_v43 = vld [vmem:[%s12117_s26 + $0x10] sm:$0xff]  }
 0x16a   : > { %1719 = vmatpush1.bf16.msra.mxu0 %v11739_v30  ;;  %10239 = vmatprep.mubr.bf16.mxu1 %v12247_v44  ;;  %v11759_v44 = vld [vmem:[%s15780_s2 + $0x1e0] ss:$12 sps:$4 sm:$0xff]  }
 0x16b   : > { %1720 = vmatprep.subr.bf16.mxu0 %v11744_v31 }
 0x16e   : > { %1721 = vmatpush1.bf16.msra.mxu0 %v11742_v32 }
 0x16f   : > { %2593 = vmatprep.subr.bf16.mxu0 %v11747_v33 }
 0x170   : > { %10044 = vmatmul.mubr.bf16.gmra.mrb[160].mxu0 %v12319_v61 }
 0x171   : > { %10240 = vmatmul.mubr.bf16.gmra.mrb[16].mxu1 %v12264_v48  ;;  %1738 = vmatprep.mubr.bf16.mxu0 %v15789_v2  ;;  %v12598_v48 = vld [vmem:[%s12117_s26 + $0x20] sm:$0xff]  }
 0x172   : > { %10243 = vmatprep.mubr.bf16.mxu1 %v12267_v49  ;;  %v11751_v49 = vld [vmem:[%s12117_s26 + $0x130] sm:$0xff]  }
 0x178   : > { %1739 = vmatmul.mubr.bf16.vlgmr.msra.gmra.mrb[0].mxu0 %v12358_v7 }
 0x179   : > { %10244 = vmatmul.mubr.bf16.gmra.mrb[20].mxu1 %v12283_v53  ;;  %2594 = vmatpush1.bf16.msra.mxu0 %v11745_v34  ;;  %v12643_v53 = vld [vmem:[%s12117_s26 + $0x70] sm:$0xff]  }
 0x17a   : > { %1748 = vmatprep.mubr.bf16.mxu0 %v15789_v2  ;;  %10247 = vmatprep.mubr.bf16.mxu1 %v12286_v54  ;;  %v12648_v54 = vld [vmem:[%s12117_s26 + $0x78] sm:$0xff]  }
 0x17b   : > { %2595 = vmatprep.subr.bf16.mxu0 %v11750_v35 }
 0x17d   : > { %2596 = vmatpush1.bf16.msra.mxu0 %v11748_v36 }
 0x17e   : > { %2597 = vmatprep.subr.bf16.mxu0 %v11755_v38 }
 0x180   : > { %1749 = vmatmul.mubr.bf16.gmra.mrb[4].mxu0 %v12365_v8 }
 0x181   : > { %10248 = vmatmul.mubr.bf16.gmra.mrb[24].mxu1 %v12296_v56  ;;  %1758 = vmatprep.mubr.bf16.mxu0 %v15789_v2  ;;  %v11770_v56 = vld [vmem:[%s15780_s2 + $0x22c] ss:$12 sps:$4 sm:$0xff]  }
 0x182   : > { %10251 = vmatprep.mubr.bf16.mxu1 %v12299_v57  ;;  %2598 = vmatpush1.bf16.msra.mxu0 %v11753_v39  ;;  %v12659_v57 = vld [vmem:[%s12117_s26 + $0x80] sm:$0xff]  }
 0x183   : > { %2599 = vmatprep.subr.bf16.mxu0 %v11758_v40 }
 0x186   : > { %2600 = vmatpush1.bf16.msra.mxu0 %v11756_v41  ;;  %v12726_v41 = vld [vmem:[%s12117_s26 + $0xb0] sm:$0xff]  }
 0x187   : > { %2601 = vmatprep.subr.bf16.mxu0 %v11761_v45 }
 0x188   : > { %1759 = vmatmul.mubr.bf16.gmra.mrb[8].mxu0 %v11876_v43 }
 0x189   : > { %10252 = vmatmul.mubr.bf16.gmra.mrb[28].mxu1 %v12309_v59  ;;  %1768 = vmatprep.mubr.bf16.mxu0 %v15789_v2 }
 0x18a   : > { %10255 = vmatprep.mubr.bf16.mxu1 %v12312_v60  ;;  %2602 = vmatpush1.bf16.msra.mxu0 %v11759_v44 }
 0x190   : > { %1769 = vmatmul.mubr.bf16.gmra.mrb[12].mxu0 %v11877_v46 }
 0x191   : > { %10256 = vmatmul.mubr.bf16.gmra.mrb[32].mxu1 %v12322_v62  ;;  %1778 = vmatprep.mubr.bf16.mxu0 %v15789_v2  ;;  %v12664_v62 = vld [vmem:[%s12117_s26 + $0x88] sm:$0xff]  }
 0x192   : > { %10259 = vmatprep.mubr.bf16.mxu1 %v12325_v63 }
 0x198   : > { %1779 = vmatmul.mubr.bf16.gmra.mrb[16].mxu0 %v12598_v48 }
 0x199   : > { %10260 = vmatmul.mubr.bf16.gmra.mrb[36].mxu1 %v12332_v0  ;;  %1788 = vmatprep.mubr.bf16.mxu0 %v15789_v2 }
 0x19a   : > { %10263 = vmatprep.mubr.bf16.mxu1 %v12335_v1 }
 0x1a0   : > { %1789 = vmatmul.mubr.bf16.gmra.mrb[20].mxu0 %v12217_v37  ;;  %v11764_v37 = vld [vmem:[%s15780_s2 + $0x1fc] ss:$12 sps:$4 sm:$0xff]  }
 0x1a1   : > { %10264 = vmatmul.mubr.bf16.gmra.mrb[40].mxu1 %v12342_v3  ;;  %1798 = vmatprep.mubr.bf16.mxu0 %v15789_v2 }
 0x1a2   : > { %10267 = vmatprep.mubr.bf16.mxu1 %v12345_v4  ;;  %2603 = vmatprep.subr.bf16.mxu0 %v11764_v37  ;;  %v12675_v4 = vld [vmem:[%s12117_s26 + $0x90] sm:$0xff]  }
 0x1a3   : > { %2604 = vmatpush1.bf16.msra.mxu0 %v11762_v51 }
 0x1a8   : > { %1799 = vmatmul.mubr.bf16.gmra.mrb[24].mxu0 %v12239_v42  ;;  %v11765_v42 = vld [vmem:[%s15780_s2 + $0x210] ss:$12 sps:$4 sm:$0xff]  }
 0x1a9   : > { %10268 = vmatmul.mubr.bf16.gmra.mrb[44].mxu1 %v12355_v6  ;;  %1808 = vmatprep.mubr.bf16.mxu0 %v15789_v2 }
 0x1aa   : > { %10271 = vmatprep.mubr.bf16.mxu1 %v11751_v49 }
 0x1b0   : > { %1809 = vmatmul.mubr.bf16.gmra.mrb[28].mxu0 %v12261_v47  ;;  %v11767_v47 = vld [vmem:[%s15780_s2 + $0x214] ss:$12 sps:$4 sm:$0xff]  }
 0x1b1   : > { %10272 = vmatmul.mubr.bf16.gmra.mrb[48].mxu1 %v11752_v50  ;;  %1818 = vmatprep.mubr.bf16.mxu0 %v15789_v2 }
 0x1b2   : > { %2605 = vmatprep.subr.bf16.mxu0 %v11767_v47 }
 0x1b3   : > { %2606 = vmatpush1.bf16.msra.mxu0 %v11765_v42 }
 0x1b4   : > { %2607 = vmatprep.subr.bf16.mxu0 %v11770_v56 }
 0x1b8   : > { %1819 = vmatmul.mubr.bf16.gmra.mrb[32].mxu0 %v12280_v52  ;;  %v12638_v52 = vld [vmem:[%s12117_s26 + $0x68] sm:$0xff]  }
 0x1b9   : > { %1828 = vmatprep.mubr.bf16.mxu0 %v15789_v2 }
 0x1c0   : > { %1829 = vmatmul.mubr.bf16.gmra.mrb[36].mxu0 %v12293_v55  ;;  %v11768_v55 = vld [vmem:[%s15780_s2 + $0x228] ss:$12 sps:$4 sm:$0xff]  }
 0x1c1   : > { %1838 = vmatprep.mubr.bf16.mxu0 %v15789_v2  ;;  %2608 = vmatpush1.bf16.msra.mxu0 %v11768_v55 }
 0x1c8   : > { %1839 = vmatmul.mubr.bf16.gmra.mrb[40].mxu0 %v12306_v58 }
 0x1c9   : > { %1848 = vmatprep.mubr.bf16.mxu0 %v15789_v2 }
 0x1d0   : > { %1849 = vmatmul.mubr.bf16.gmra.mrb[44].mxu0 %v12319_v61 }
 0x1d1   : > { %1858 = vmatprep.mubr.bf16.mxu0 %v15789_v2 }
 0x1d8   : > { %1859 = vmatmul.mubr.bf16.gmra.mrb[48].mxu0 %v12479_v17 }
 0x1d9   : > { %1868 = vmatprep.mubr.bf16.mxu0 %v15789_v2 }
 0x1e0   : > { %1869 = vmatmul.mubr.bf16.gmra.mrb[52].mxu0 %v12638_v52 }
 0x1e1   : > { %1878 = vmatprep.mubr.bf16.mxu0 %v15789_v2 }
 0x1e8   : > { %1879 = vmatmul.mubr.bf16.gmra.mrb[56].mxu0 %v12643_v53 }
 0x1e9   : > { %1888 = vmatprep.mubr.bf16.mxu0 %v15789_v2 }
 0x1f0   : > { %1889 = vmatmul.mubr.bf16.gmra.mrb[60].mxu0 %v12648_v54 }
 0x1f1   : > { %1898 = vmatprep.mubr.bf16.mxu0 %v15789_v2 }
 0x1f8   : > { %1899 = vmatmul.mubr.bf16.gmra.mrb[64].mxu0 %v12659_v57 }
 0x1f9   : > { %1908 = vmatprep.mubr.bf16.mxu0 %v15789_v2 }
 0x1fc   : > { %v10205_v58 = vpop.f32.mrb[52].mxu1 }
 0x1fd   : > { %v3020_v59 = vpop.f32.mrb[53].mxu1 }
 0x1fe   : > { %v10206_v60 = vpop.f32.mrb[54].mxu1 }
 0x1ff   : > { %v3023_v61 = vpop.f32.mrb[55].mxu1 }
 0x200   : > { %1909 = vmatmul.mubr.bf16.gmra.mrb[68].mxu0 %v12664_v62 }
 0x201   : > { %1918 = vmatprep.mubr.bf16.mxu0 %v15789_v2 }
 0x204   : > { %v10209_v63 = vpop.f32.mrb[56].mxu1 }
 0x205   : > { %v12668_v0 = vpop.f32.mrb[57].mxu1 }
 0x206   : > { %v12670_v1 = vpop.f32.mrb[58].mxu1 }
 0x207   : > { %v12672_v3 = vpop.f32.mrb[59].mxu1 }
 0x208   : > { %1919 = vmatmul.mubr.bf16.gmra.mrb[72].mxu0 %v12675_v4 }
 0x209   : > { %1928 = vmatprep.mubr.bf16.mxu0 %v15789_v2 }
 0x20c   : > { %v12679_v5 = vpop.f32.mrb[60].mxu1 }
 0x20d   : > { %v12681_v6 = vpop.f32.mrb[61].mxu1 }
 0x20e   : > { %v12683_v7 = vpop.f32.mrb[62].mxu1 }
 0x20f   : > { %v12685_v8 = vpop.f32.mrb[63].mxu1 }
 0x210   : > { %1929 = vmatmul.mubr.bf16.gmra.mrb[76].mxu0 %v12688_v9 }
 0x211   : > { %1938 = vmatprep.mubr.bf16.mxu0 %v15789_v2 }
 0x214   : > { %v12692_v10 = vpop.f32.mrb[64].mxu1 }
 0x215   : > { %v12694_v11 = vpop.f32.mrb[65].mxu1 }
 0x216   : > { %v12696_v12 = vpop.f32.mrb[66].mxu1 }
 0x217   : > { %v12698_v13 = vpop.f32.mrb[67].mxu1 }
 0x218   : > { %1939 = vmatmul.mubr.bf16.gmra.mrb[80].mxu0 %v12701_v14 }
 0x219   : > { %1948 = vmatprep.mubr.bf16.mxu0 %v15789_v2 }
 0x21c   : > { %v12705_v15 = vpop.f32.mrb[68].mxu1 }
 0x21d   : > { %v12707_v16 = vpop.f32.mrb[69].mxu1 }
 0x21e   : > { %v12709_v17 = vpop.f32.mrb[70].mxu1 }
 0x21f   : > { %v12711_v18 = vpop.f32.mrb[71].mxu1 }
 0x220   : > { %1949 = vmatmul.mubr.bf16.gmra.mrb[84].mxu0 %v11887_v20 }
 0x221   : > { %1958 = vmatprep.mubr.bf16.mxu0 %v15789_v2 }
 0x223   : > { %v10029_v21 = vpop.f32.mrb[144].mxu0 }
 0x224   : > { %v10225_v23 = vpop.f32.mrb[0].mxu1  ;;  %v10611_v24 = vadd.f32 %v10205_v58, %v10029_v21  ;;  %v1279_v25 = vpop.f32.mrb[145].mxu0 }
 0x225   : > { %v3764_v26 = vrot.slane %v10225_v23, 1  ;;  %v12717_v27 = vpop.f32.mrb[1].mxu1  ;;  %v12719_v28 = vadd.f32 %v3020_v59, %v1279_v25  ;;  %v10030_v29 = vpop.f32.mrb[146].mxu0 }
 0x226   : > { %v10226_v30 = vpop.f32.mrb[2].mxu1  ;;  %v10613_v31 = vadd.f32 %v10206_v60, %v10030_v29  ;;  %v1282_v32 = vpop.f32.mrb[147].mxu0  ;;  %v15788_v36 = vrot.slane %v12717_v27, 1  ;;  %v3744_v39 = vrot.slane %v10611_v24, 1 }
 0x227   : > { %15819 = vst [vmem:[#allocation2_spill] sm:$0xff] %v12719_v28  ;;  %v3765_v33 = vrot.slane %v10226_v30, 1  ;;  %v3103_v34 = vpop.f32.mrb[3].mxu1  ;;  %v12721_v35 = vadd.f32 %v3023_v61, %v1282_v32 }
 0x228   : > { %v3763_v38 = vrot.slane %v3103_v34, 1  ;;  %v3745_v40 = vrot.slane %v10613_v31, 1  ;;  %1959 = vmatmul.mubr.bf16.gmra.mrb[88].mxu0 %v12726_v41  ;;  %v12763_v31 = vld [vmem:[%s12117_s26 + $0xb8] sm:$0xff]  }
 0x229   : > { %15820 = vst [vmem:[#allocation3_spill] sm:$0xff] %v12721_v35  ;;  %v12731_v43 = vsel %vm3814_vm0, %v3764_v26, %v3765_v33  ;;  %v15787_v44 = vrot.slane %v12721_v35, 1  ;;  %1968 = vmatprep.mubr.bf16.mxu0 %v15789_v2 }
 0x22a   : > { %15821 = vst [vmem:[#allocation4_spill] sm:$0xff] %v12731_v43  ;;  %v12737_v45 = vsel %vm3814_vm0, %v3763_v38, %v3764_v26  ;;  %v12743_v46 = vsel %vm3814_vm0, %v15788_v36, %v3763_v38  ;;  %v12747_v49 = vsel %vm3814_vm0, %v3744_v39, %v3745_v40 }
 0x22b   : > { %15822 = vst [vmem:[#allocation5_spill] sm:$0xff] %v12737_v45  ;;  %15823 = vst [vmem:[#allocation6_spill] sm:$0xff] %v12743_v46  ;;  %v10033_v50 = vpop.f32.mrb[148].mxu0  ;;  %v12753_v37 = vsel %vm3814_vm0, %v15787_v44, %v3744_v39 }
 0x22c   : > { %v10229_v51 = vpop.f32.mrb[4].mxu1  ;;  %v10615_v42 = vadd.f32 %v10209_v63, %v10033_v50  ;;  %v1295_v47 = vpop.f32.mrb[149].mxu0 }
 0x22d   : > { %v3768_v55 = vrot.slane %v10229_v51, 1  ;;  %v3116_v56 = vpop.f32.mrb[5].mxu1  ;;  %v10616_v58 = vadd.f32 %v12668_v0, %v1295_v47  ;;  %v10034_v59 = vpop.f32.mrb[150].mxu0 }
 0x22e   : > { %v3766_v60 = vrot.slane %v3116_v56, 1  ;;  %v10230_v61 = vpop.f32.mrb[6].mxu1  ;;  %v10617_v19 = vadd.f32 %v12670_v1, %v10034_v59  ;;  %v1298_v20 = vpop.f32.mrb[151].mxu0  ;;  %v3748_v29 = vrot.slane %v10615_v42, 1  ;;  %v9654_v1 = vld [vmem:[%s15779_s1 + $0x10] sm:$0xff]  }
 0x22f   : > { %v3769_v21 = vrot.slane %v10230_v61, 1  ;;  %v3119_v23 = vpop.f32.mrb[7].mxu1  ;;  %v3746_v24 = vrot.slane %v10616_v58, 1  ;;  %v10618_v25 = vadd.f32 %v12672_v3, %v1298_v20  ;;  %v9359_v34 = vunpack.c.l.bf16 %v9654_v1 }
 0x230   : > { %v12760_v63 = vsel %vm3814_vm0, %v3765_v33, %v3766_v60  ;;  %v3767_v26 = vrot.slane %v3119_v23, 1  ;;  %v3749_v30 = vrot.slane %v10617_v19, 1  ;;  %1969 = vmatmul.mubr.bf16.gmra.mrb[92].mxu0 %v12763_v31  ;;  %v9360_v38 = vunpack.c.h.bf16 %v9654_v1 }
 0x231   : > { %15824 = vst [vmem:[#allocation7_spill] sm:$0xff] %v12760_v63  ;;  %v12768_v0 = vsel %vm3814_vm0, %v3768_v55, %v3769_v21  ;;  %v3747_v3 = vrot.slane %v10618_v25, 1  ;;  %1978 = vmatprep.mubr.bf16.mxu0 %v15789_v2  ;;  %v12784_v39 = vsel %vm3814_vm0, %v3745_v40, %v3746_v24 }
 0x232   : > { %15825 = vst [vmem:[#allocation8_spill] sm:$0xff] %v12768_v0  ;;  %v12776_v32 = vsel %vm3814_vm0, %v3767_v26, %v3768_v55  ;;  %v12780_v33 = vsel %vm3814_vm0, %v3766_v60, %v3767_v26  ;;  %v12788_v50 = vsel %vm3814_vm0, %v3748_v29, %v3749_v30  ;;  %v11454_v60 = vpack.i.bf16 %v9360_v38, %v9359_v34 }
 0x233   : > { %15826 = vst [vmem:[#allocation9_spill] sm:$0xff] %v12776_v32  ;;  %15827 = vst [vmem:[#allocation10_spill] sm:$0xff] %v12780_v33  ;;  %v10037_v51 = vpop.f32.mrb[152].mxu0  ;;  %v12792_v47 = vsel %vm3814_vm0, %v3746_v24, %v3747_v3  ;;  %v12796_v55 = vsel %vm3814_vm0, %v3747_v3, %v3748_v29  ;;  %v9673_v33 = vld [vmem:[%s15779_s1 + $0xa8] sm:$0xff]  }
 0x234   : > { %15828 = vst [vmem:[#allocation11_spill] sm:$0xff] %v12788_v50  ;;  %v10233_v42 = vpop.f32.mrb[8].mxu1  ;;  %15829 = vst [vmem:[#allocation12_spill] sm:$0xff] %v12792_v47  ;;  %v10619_v56 = vadd.f32 %v12679_v5, %v10037_v51  ;;  %v1311_v58 = vpop.f32.mrb[153].mxu0  ;;  %11455 = vperm.xlu0 %11453, %v11454_v60   ;;  %v9655_v5 = vld [vmem:[%s15779_s1 + $0x18] sm:$0xff]   ;;  %v9435_v43 = vunpack.c.l.bf16 %v9673_v33  ;;  %v9436_v45 = vunpack.c.h.bf16 %v9673_v33 }
 0x235   : > { %15830 = vst [vmem:[#allocation13_spill] sm:$0xff] %v12796_v55  ;;  %v3772_v59 = vrot.slane %v10233_v42, 1  ;;  %v3132_v40 = vpop.f32.mrb[9].mxu1  ;;  %v10620_v61 = vadd.f32 %v12681_v6, %v1311_v58  ;;  %v10038_v19 = vpop.f32.mrb[154].mxu0  ;;  %v9364_v58 = vunpack.c.h.bf16 %v9655_v5  ;;  %v9675_v33 = vld [vmem:[%s15779_s1 + $0xb8] sm:$0xff]  }
 0x236   : > { %v3770_v20 = vrot.slane %v3132_v40, 1  ;;  %v10234_v23 = vpop.f32.mrb[10].mxu1  ;;  %v3752_v25 = vrot.slane %v10619_v56, 1  ;;  %v12801_v24 = vadd.f32 %v12683_v7, %v10038_v19  ;;  %v1314_v26 = vpop.f32.mrb[155].mxu0  ;;  %v12813_v7 = vld [vmem:[%s12117_s26 + $0xc0] sm:$0xff]   ;;  %v9363_v56 = vunpack.c.l.bf16 %v9655_v5 }
 0x237   : > { %v3773_v1 = vrot.slane %v10234_v23, 1  ;;  %v3135_v29 = vpop.f32.mrb[11].mxu1  ;;  %v3750_v3 = vrot.slane %v10620_v61, 1  ;;  %v10622_v34 = vadd.f32 %v12685_v8, %v1314_v26  ;;  %v9656_v8 = vld [vmem:[%s15779_s1 + $0x20] sm:$0xff]  }
 0x238   : > { %v12809_v6 = vsel %vm3814_vm0, %v3769_v21, %v3770_v20  ;;  %v3771_v38 = vrot.slane %v3135_v29, 1  ;;  %v3753_v51 = vrot.slane %v12801_v24, 1  ;;  %1979 = vmatmul.mubr.bf16.gmra.mrb[96].mxu0 %v12813_v7  ;;  %v9658_v21 = vld [vmem:[%s15779_s1 + $0x30] sm:$0xff]   ;;  %v11459_v24 = vpack.i.bf16 %v9364_v58, %v9363_v56 }
 0x239   : > { %15831 = vst [vmem:[#allocation14_spill] sm:$0xff] %v12809_v6  ;;  %v12818_v42 = vsel %vm3814_vm0, %v3772_v59, %v3773_v1  ;;  %v12828_v40 = vsel %vm3814_vm0, %v3749_v30, %v3750_v3  ;;  %v3751_v60 = vrot.slane %v10622_v34, 1  ;;  %1988 = vmatprep.mubr.bf16.mxu0 %v15789_v2  ;;  %v9367_v26 = vunpack.c.l.bf16 %v9656_v8 }
 0x23a   : > { %15832 = vst [vmem:[#allocation15_spill] sm:$0xff] %v12818_v42  ;;  %15833 = vst [vmem:[#allocation16_spill] sm:$0xff] %v12828_v40  ;;  %v12833_v61 = vsel %vm3814_vm0, %v3771_v38, %v3772_v59  ;;  %v12837_v19 = vsel %vm3814_vm0, %v3770_v20, %v3771_v38  ;;  %v12841_v23 = vsel %vm3814_vm0, %v3752_v25, %v3753_v51  ;;  %v9368_v29 = vunpack.c.h.bf16 %v9656_v8 }
 0x23b   : > { %15834 = vst [vmem:[#allocation17_spill] sm:$0xff] %v12833_v61  ;;  %15835 = vst [vmem:[#allocation18_spill] sm:$0xff] %v12837_v19  ;;  %v12845_v30 = vsel %vm3814_vm0, %v3751_v60, %v3752_v25  ;;  %v12849_v5 = vsel %vm3814_vm0, %v3750_v3, %v3751_v60  ;;  %v10041_v59 = vpop.f32.mrb[156].mxu0  ;;  %v9375_v44 = vunpack.c.l.bf16 %v9658_v21  ;;  %v9376_v20 = vunpack.c.h.bf16 %v9658_v21  ;;  %11460 = vperm.xlu0 %11453, %v11459_v24   ;;  %v9657_v25 = vld [vmem:[%s15779_s1 + $0x28] sm:$0xff]  }
 0x23c   : > { %15836 = vst [vmem:[#allocation19_spill] sm:$0xff] %v12841_v23  ;;  %15837 = vst [vmem:[#allocation20_spill] sm:$0xff] %v12845_v30  ;;  %v10237_v34 = vpop.f32.mrb[12].mxu1  ;;  %v10623_v38 = vadd.f32 %v12692_v10, %v10041_v59  ;;  %v1327_v36 = vpop.f32.mrb[157].mxu0  ;;  %v11465_v56 = vpack.i.bf16 %v9368_v29, %v9367_v26  ;;  %v9371_v21 = vunpack.c.l.bf16 %v9657_v25  ;;  %v9372_v29 = vunpack.c.h.bf16 %v9657_v25  ;;  %v9685_v30 = vld [vmem:[%s15779_s1 + $0x108] sm:$0xff]  }
 0x23d   : > { %15838 = vst [vmem:[#allocation21_spill] sm:$0xff] %v12849_v5  ;;  %v3776_v2 = vrot.slane %v10237_v34, 1  ;;  %v3148_v35 = vpop.f32.mrb[13].mxu1  ;;  %v10624_v58 = vadd.f32 %v12694_v11, %v1327_v36  ;;  %v10042_v8 = vpop.f32.mrb[158].mxu0  ;;  %v11475_v28 = vpack.i.bf16 %v9376_v20, %v9375_v44  ;;  %v9660_v11 = vld [vmem:[%s15779_s1 + $0x40] sm:$0xff]   ;;  %v12872_v20 = vld [vmem:[%s12117_s26 + $0xc8] sm:$0xff]   ;;  %v9483_v40 = vunpack.c.l.bf16 %v9685_v30 }
 0x23e   : > { %v3774_v3 = vrot.slane %v3148_v35, 1  ;;  %v12856_v60 = vpop.f32.mrb[14].mxu1  ;;  %v3756_v42 = vrot.slane %v10623_v38, 1  ;;  %v12859_v10 = vadd.f32 %v12696_v12, %v10042_v8  ;;  %v1330_v59 = vpop.f32.mrb[159].mxu0  ;;  %11466 = vperm.xlu1 %11464, %v11465_v56   ;;  %v11470_v56 = vpack.i.bf16 %v9372_v29, %v9371_v21 }
 0x23f   : > { %v3777_v24 = vrot.slane %v12856_v60, 1  ;;  %v3151_v26 = vpop.f32.mrb[15].mxu1  ;;  %v3754_v35 = vrot.slane %v10624_v58, 1  ;;  %v10626_v36 = vadd.f32 %v12698_v13, %v1330_v59  ;;  %11476 = vperm.xlu0 %11453, %v11475_v28   ;;  %v9383_v25 = vunpack.c.l.bf16 %v9660_v11  ;;  %v9659_v13 = vld [vmem:[%s15779_s1 + $0x38] sm:$0xff]  }
 0x240   : > { %v12868_v44 = vsel %vm3814_vm0, %v3773_v1, %v3774_v3  ;;  %v3775_v34 = vrot.slane %v3151_v26, 1  ;;  %v15792_v12 = vrot.slane %v12859_v10, 1  ;;  %1989 = vmatmul.mubr.bf16.gmra.mrb[100].mxu0 %v12872_v20  ;;  %v9662_v1 = vld [vmem:[%s15779_s1 + $0x50] sm:$0xff]   ;;  %v15842_v60 = vmov 0  }
 0x241   : > { %15839 = vst [vmem:[#allocation22_spill] sm:$0xff] %v12868_v44  ;;  %v12877_v38 = vsel %vm3814_vm0, %v3776_v2, %v3777_v24  ;;  %v12887_v58 = vsel %vm3814_vm0, %v3753_v51, %v3754_v35  ;;  %v3755_v8 = vrot.slane %v10626_v36, 1  ;;  %1998 = vmatprep.mubr.bf16.mxu0 %v15842_v60  ;;  %v9384_v51 = vunpack.c.h.bf16 %v9660_v11 }
 0x242   : > { %15840 = vst [vmem:[#allocation23_spill] sm:$0xff] %v12877_v38  ;;  %15841 = vst [vmem:[#allocation24_spill] sm:$0xff] %v12887_v58  ;;  %v12892_v28 = vsel %vm3814_vm0, %v3775_v34, %v3776_v2  ;;  %v12896_v21 = vsel %vm3814_vm0, %v3774_v3, %v3775_v34  ;;  %v12902_v59 = vsel %vm3814_vm0, %v3756_v42, %v15792_v12  ;;  %11471 = vperm.xlu1 %11464, %v11470_v56  }
 0x243   : > { %15843 = vst [vmem:[#allocation25_spill] sm:$0xff] %v12892_v28  ;;  %15844 = vst [vmem:[#allocation26_spill] sm:$0xff] %v12896_v21  ;;  %v9379_v26 = vunpack.c.l.bf16 %v9659_v13  ;;  %v9380_v29 = vunpack.c.h.bf16 %v9659_v13  ;;  %v12906_v36 = vsel %vm3814_vm0, %v3755_v8, %v3756_v42  ;;  %v12910_v2 = vsel %vm3814_vm0, %v3754_v35, %v3755_v8  ;;  %v10045_v3 = vpop.f32.mrb[160].mxu0  ;;  %v9661_v42 = vld [vmem:[%s15779_s1 + $0x48] sm:$0xff]  }
 0x244   : > { %15845 = vst [vmem:[#allocation27_spill] sm:$0xff] %v12902_v59  ;;  %15846 = vst [vmem:[#allocation28_spill] sm:$0xff] %v12906_v36  ;;  %v10241_v34 = vpop.f32.mrb[16].mxu1  ;;  %v9391_v38 = vunpack.c.l.bf16 %v9662_v1  ;;  %v9392_v28 = vunpack.c.h.bf16 %v9662_v1  ;;  %v10627_v21 = vadd.f32 %v12705_v15, %v10045_v3  ;;  %v1343_v12 = vpop.f32.mrb[161].mxu0  ;;  %v11485_v11 = vpack.i.bf16 %v9384_v51, %v9383_v25  ;;  %v9664_v51 = vld [vmem:[%s15779_s1 + $0x60] sm:$0xff]   ;;  %v9681_v59 = vld [vmem:[%s15779_s1 + $0xe8] sm:$0xff]  }
 0x245   : > { %15847 = vst [vmem:[#allocation29_spill] sm:$0xff] %v12910_v2  ;;  %v3780_v44 = vrot.slane %v10241_v34, 1  ;;  %v3164_v56 = vpop.f32.mrb[17].mxu1  ;;  %v11480_v61 = vpack.i.bf16 %v9380_v29, %v9379_v26  ;;  %v10628_v13 = vadd.f32 %v12707_v16, %v1343_v12  ;;  %v10046_v19 = vpop.f32.mrb[162].mxu0  ;;  %v9387_v0 = vunpack.c.l.bf16 %v9661_v42 }
 0x246   : > { %v3778_v35 = vrot.slane %v3164_v56, 1  ;;  %v10242_v8 = vpop.f32.mrb[18].mxu1  ;;  %v11495_v6 = vpack.i.bf16 %v9392_v28, %v9391_v38  ;;  %v3760_v1 = vrot.slane %v10627_v21, 1  ;;  %v10629_v15 = vadd.f32 %v12709_v17, %v10046_v19  ;;  %v1346_v3 = vpop.f32.mrb[163].mxu0  ;;  %11486 = vperm.xlu0 %11453, %v11485_v11   ;;  %v12927_v17 = vld [vmem:[%s12117_s26 + $0xd0] sm:$0xff]  }
 0x247   : > { %v3781_v34 = vrot.slane %v10242_v8, 1  ;;  %v3167_v32 = vpop.f32.mrb[19].mxu1  ;;  %11481 = vperm.xlu1 %11464, %v11480_v61   ;;  %v9388_v25 = vunpack.c.h.bf16 %v9661_v42  ;;  %v3758_v16 = vrot.slane %v10628_v13, 1  ;;  %v10630_v12 = vadd.f32 %v12711_v18, %v1346_v3  ;;  %v9663_v18 = vld [vmem:[%s15779_s1 + $0x58] sm:$0xff]  }
 0x248   : > { %v12924_v38 = vsel %vm3814_vm0, %v3777_v24, %v3778_v35  ;;  %v3779_v28 = vrot.slane %v3167_v32, 1  ;;  %v3761_v21 = vrot.slane %v10629_v15, 1  ;;  %1999 = vmatmul.mubr.bf16.gmra.mrb[104].mxu0 %v12927_v17  ;;  %v9399_v26 = vunpack.c.l.bf16 %v9664_v51  ;;  %v9666_v24 = vld [vmem:[%s15779_s1 + $0x70] sm:$0xff]  }
 0x249   : > { %15848 = vst [vmem:[#allocation30_spill] sm:$0xff] %v12924_v38  ;;  %v12932_v61 = vsel %vm3814_vm0, %v3780_v44, %v3781_v34  ;;  %v11490_v19 = vpack.i.bf16 %v9388_v25, %v9387_v0  ;;  %v3759_v32 = vrot.slane %v10630_v12, 1  ;;  %2008 = vmatprep.mubr.bf16.mxu0 %v15842_v60  ;;  %v9400_v0 = vunpack.c.h.bf16 %v9664_v51 }
 0x24a   : > { %15849 = vst [vmem:[#allocation31_spill] sm:$0xff] %v12932_v61  ;;  %v12943_v29 = vsel %vm3814_vm0, %v3779_v28, %v3780_v44  ;;  %v12947_v56 = vsel %vm3814_vm0, %v3778_v35, %v3779_v28  ;;  %v15852_v11 = vrot.slane %v12717_v27, 1  ;;  %11496 = vperm.xlu0 %11453, %v11495_v6   ;;  %v9395_v13 = vunpack.c.l.bf16 %v9663_v18  ;;  %v9665_v28 = vld [vmem:[%s15779_s1 + $0x68] sm:$0xff]  }
 0x24b   : > { %15850 = vst [vmem:[#allocation32_spill] sm:$0xff] %v12943_v29  ;;  %15851 = vst [vmem:[#allocation33_spill] sm:$0xff] %v12947_v56  ;;  %11491 = vperm.xlu1 %11464, %v11490_v19   ;;  %v9396_v8 = vunpack.c.h.bf16 %v9663_v18  ;;  %v9407_v15 = vunpack.c.l.bf16 %v9666_v24  ;;  %v11505_v44 = vpack.i.bf16 %v9400_v0, %v9399_v26  ;;  %v9408_v25 = vunpack.c.h.bf16 %v9666_v24 }
 0x24c   : > { %v12953_v42 = vsel %vm3814_vm0, %v3761_v21, %v15852_v11  ;;  %v12955_v3 = vpop.f32.mrb[20].mxu1  ;;  %v15854_v12 = vrot.slane %v12859_v10, 1  ;;  %v12965_v27 = vsel %vm3814_vm0, %v3758_v16, %v3759_v32  ;;  %v12974_v19 = vsel %vm3814_vm0, %v3759_v32, %v3760_v1  ;;  %v9668_v32 = vld [vmem:[%s15779_s1 + $0x80] sm:$0xff]  }
 0x24d   : > { %15853 = vst [vmem:[#allocation34_spill] sm:$0xff] %v12953_v42  ;;  %15856 = vst [vmem:[#allocation36_spill] sm:$0xff] %v12965_v27  ;;  %v12967_v51 = vpop.f32.mrb[21].mxu1  ;;  %v11500_v6 = vpack.i.bf16 %v9396_v8, %v9395_v13  ;;  %v12978_v10 = vsel %vm3814_vm0, %v3760_v1, %v3761_v21  ;;  %v9403_v18 = vunpack.c.l.bf16 %v9665_v28  ;;  %v9404_v24 = vunpack.c.h.bf16 %v9665_v28  ;;  %v12995_v8 = vld [vmem:[%s12117_s26 + $0xd8] sm:$0xff]   ;;  %v9677_v42 = vld [vmem:[%s15779_s1 + $0xc8] sm:$0xff]  }
 0x24e   : > { %v12961_v35 = vsel %vm3814_vm0, %v15854_v12, %v3758_v16  ;;  %15857 = vst [vmem:[#allocation37_spill] sm:$0xff] %v12974_v19  ;;  %15858 = vst [vmem:[#allocation38_spill] sm:$0xff] %v12978_v10  ;;  %v15793_v26 = vrot.slane %v12967_v51, 1  ;;  %v12981_v16 = vpop.f32.mrb[22].mxu1  ;;  %11506 = vperm.xlu0 %11453, %v11505_v44   ;;  %v11515_v11 = vpack.i.bf16 %v9408_v25, %v9407_v15  ;;  %v9415_v13 = vunpack.c.l.bf16 %v9668_v32  ;;  %v9667_v15 = vld [vmem:[%s15779_s1 + $0x78] sm:$0xff]   ;;  %v9670_v44 = vld [vmem:[%s15779_s1 + $0x90] sm:$0xff]  }
 0x24f   : > { %15855 = vst [vmem:[#allocation35_spill] sm:$0xff] %v12961_v35  ;;  %v12983_v0 = vpop.f32.mrb[23].mxu1  ;;  %11501 = vperm.xlu1 %11464, %v11500_v6   ;;  %v11510_v21 = vpack.i.bf16 %v9404_v24, %v9403_v18  ;;  %v9416_v12 = vunpack.c.h.bf16 %v9668_v32  ;;  %v9411_v25 = vunpack.c.l.bf16 %v9667_v15  ;;  %v9423_v28 = vunpack.c.l.bf16 %v9670_v44 }
 0x250   : > { %v12992_v1 = vsel %vm3814_vm0, %v3781_v34, %v15793_v26  ;;  %2009 = vmatmul.mubr.bf16.gmra.mrb[108].mxu0 %v12995_v8  ;;  %v9412_v34 = vunpack.c.h.bf16 %v9667_v15  ;;  %v9424_v18 = vunpack.c.h.bf16 %v9670_v44  ;;  %v9451_v19 = vunpack.c.l.bf16 %v9677_v42 }
 0x251   : > { %15859 = vst [vmem:[#allocation39_spill] sm:$0xff] %v12992_v1  ;;  %2018 = vmatprep.mubr.bf16.mxu0 %v15842_v60  ;;  %v11525_v6 = vpack.i.bf16 %v9416_v12, %v9415_v13  ;;  %v9669_v1 = vld [vmem:[%s15779_s1 + $0x88] sm:$0xff]   ;;  %v9452_v27 = vunpack.c.h.bf16 %v9677_v42  ;;  %v9679_v42 = vld [vmem:[%s15779_s1 + $0xd8] sm:$0xff]   ;;  %v9467_v2 = vunpack.c.l.bf16 %v9681_v59  ;;  %v9468_v58 = vunpack.c.h.bf16 %v9681_v59 }
 0x252   : > { %11516 = vperm.xlu0 %11453, %v11515_v11   ;;  %v11520_v32 = vpack.i.bf16 %v9412_v34, %v9411_v25  ;;  %v9419_v29 = vunpack.c.l.bf16 %v9669_v1  ;;  %v9420_v56 = vunpack.c.h.bf16 %v9669_v1  ;;  %v11535_v11 = vpack.i.bf16 %v9424_v18, %v9423_v28  ;;  %v13020_v25 = vld [vmem:[%s12117_s26 + $0xe0] sm:$0xff]   ;;  %v9671_v1 = vld [vmem:[%s15779_s1 + $0x98] sm:$0xff]   ;;  %v9674_v34 = vld [vmem:[%s15779_s1 + $0xb0] sm:$0xff]  }
 0x253   : > { %11511 = vperm.xlu1 %11464, %v11510_v21   ;;  %v9672_v21 = vld [vmem:[%s15779_s1 + $0xa0] sm:$0xff]   ;;  %v9428_v28 = vunpack.c.h.bf16 %v9671_v1  ;;  %v9440_v18 = vunpack.c.h.bf16 %v9674_v34  ;;  %v9683_v59 = vld [vmem:[%s15779_s1 + $0xf8] sm:$0xff]   ;;  %v9484_v50 = vunpack.c.h.bf16 %v9685_v30 }
 0x254   : > { %v13005_v24 = vpop.f32.mrb[24].mxu1  ;;  %v11530_v13 = vpack.i.bf16 %v9420_v56, %v9419_v29  ;;  %v9431_v12 = vunpack.c.l.bf16 %v9672_v21  ;;  %v9432_v44 = vunpack.c.h.bf16 %v9672_v21  ;;  %v9439_v56 = vunpack.c.l.bf16 %v9674_v34 }
 0x255   : > { %v13007_v26 = vpop.f32.mrb[25].mxu1 }
 0x256   : > { %v13012_v61 = vpop.f32.mrb[26].mxu1  ;;  %11526 = vperm.xlu0 %11453, %v11525_v6   ;;  %v9427_v6 = vunpack.c.l.bf16 %v9671_v1  ;;  %v11545_v29 = vpack.i.bf16 %v9432_v44, %v9431_v12  ;;  %v11550_v12 = vpack.i.bf16 %v9436_v45, %v9435_v43  ;;  %v3786_v55 = vrot.slane %v13007_v26, 1 }
 0x257   : > { %v13014_v15 = vpop.f32.mrb[27].mxu1  ;;  %11521 = vperm.xlu1 %11464, %v11520_v32  }
 0x258   : > { %2019 = vmatmul.mubr.bf16.gmra.mrb[112].mxu0 %v13020_v25  ;;  %v11540_v21 = vpack.i.bf16 %v9428_v28, %v9427_v6  ;;  %v13045_v6 = vld [vmem:[%s12117_s26 + $0xe8] sm:$0xff]   ;;  %v9678_v28 = vld [vmem:[%s15779_s1 + $0xd0] sm:$0xff]  }
 0x259   : > { %2028 = vmatprep.mubr.bf16.mxu0 %v15842_v60  ;;  %v9455_v45 = vunpack.c.l.bf16 %v9678_v28 }
 0x25a   : > { %11536 = vperm.xlu0 %11453, %v11535_v11   ;;  %v11555_v11 = vpack.i.bf16 %v9440_v18, %v9439_v56  ;;  %v9444_v56 = vunpack.c.h.bf16 %v9675_v33  ;;  %v9456_v18 = vunpack.c.h.bf16 %v9678_v28 }
 0x25b   : > { %11531 = vperm.xlu1 %11464, %v11530_v13   ;;  %v9676_v13 = vld [vmem:[%s15779_s1 + $0xc0] sm:$0xff]  }
 0x25c   : > { %v13030_v32 = vpop.f32.mrb[28].mxu1  ;;  %v9447_v44 = vunpack.c.l.bf16 %v9676_v13  ;;  %v9448_v34 = vunpack.c.h.bf16 %v9676_v13 }
 0x25d   : > { %v13032_v38 = vpop.f32.mrb[29].mxu1 }
 0x25e   : > { %v13037_v63 = vpop.f32.mrb[30].mxu1  ;;  %11546 = vperm.xlu0 %11453, %v11545_v29   ;;  %v9443_v29 = vunpack.c.l.bf16 %v9675_v33  ;;  %v11565_v43 = vpack.i.bf16 %v9448_v34, %v9447_v44  ;;  %v11570_v44 = vpack.i.bf16 %v9452_v27, %v9451_v19 }
 0x25f   : > { %v13039_v1 = vpop.f32.mrb[31].mxu1  ;;  %11541 = vperm.xlu1 %11464, %v11540_v21  }
 0x260   : > { %2029 = vmatmul.mubr.bf16.gmra.mrb[116].mxu0 %v13045_v6  ;;  %v11560_v13 = vpack.i.bf16 %v9444_v56, %v9443_v29  ;;  %v13070_v29 = vld [vmem:[%s12117_s26 + $0xf0] sm:$0xff]  }
 0x261   : > { %2038 = vmatprep.mubr.bf16.mxu0 %v15842_v60  ;;  %v9682_v56 = vld [vmem:[%s15779_s1 + $0xf0] sm:$0xff]  }
 0x262   : > { %11556 = vperm.xlu0 %11453, %v11555_v11   ;;  %v11575_v11 = vpack.i.bf16 %v9456_v18, %v9455_v45  ;;  %v9460_v45 = vunpack.c.h.bf16 %v9679_v42  ;;  %v9471_v19 = vunpack.c.l.bf16 %v9682_v56  ;;  %v9472_v18 = vunpack.c.h.bf16 %v9682_v56 }
 0x263   : > { %11551 = vperm.xlu1 %11464, %v11550_v12   ;;  %v9680_v12 = vld [vmem:[%s15779_s1 + $0xe0] sm:$0xff]  }
 0x264   : > { %v13055_v21 = vpop.f32.mrb[32].mxu1  ;;  %v9463_v34 = vunpack.c.l.bf16 %v9680_v12  ;;  %v9464_v28 = vunpack.c.h.bf16 %v9680_v12 }
 0x265   : > { %v13057_v46 = vpop.f32.mrb[33].mxu1 }
 0x266   : > { %v13062_v10 = vpop.f32.mrb[34].mxu1  ;;  %11566 = vperm.xlu0 %11453, %v11565_v43   ;;  %v9459_v43 = vunpack.c.l.bf16 %v9679_v42  ;;  %v11585_v27 = vpack.i.bf16 %v9464_v28, %v9463_v34  ;;  %v11590_v34 = vpack.i.bf16 %v9468_v58, %v9467_v2 }
 0x267   : > { %v13064_v33 = vpop.f32.mrb[35].mxu1  ;;  %11561 = vperm.xlu1 %11464, %v11560_v13  }
 0x268   : > { %2039 = vmatmul.mubr.bf16.gmra.mrb[120].mxu0 %v13070_v29  ;;  %v11580_v12 = vpack.i.bf16 %v9460_v45, %v9459_v43  ;;  %v13095_v43 = vld [vmem:[%s12117_s26 + $0xf8] sm:$0xff]   ;;  %v9350_v45 = vld [vmem:[%s15779_s1] sm:$0xff]  }
 0x269   : > { %2048 = vmatprep.mubr.bf16.mxu0 %v15842_v60  ;;  %v9351_v2 = vunpack.c.l.bf16 %v9350_v45 }
 0x26a   : > { %11576 = vperm.xlu0 %11453, %v11575_v11   ;;  %v11595_v11 = vpack.i.bf16 %v9472_v18, %v9471_v19  ;;  %v9476_v19 = vunpack.c.h.bf16 %v9683_v59  ;;  %v9352_v18 = vunpack.c.h.bf16 %v9350_v45 }
 0x26b   : > { %11571 = vperm.xlu1 %11464, %v11570_v44   ;;  %v9684_v44 = vld [vmem:[%s15779_s1 + $0x100] sm:$0xff]  }
 0x26c   : > { %v13080_v13 = vpop.f32.mrb[36].mxu1  ;;  %v9479_v28 = vunpack.c.l.bf16 %v9684_v44  ;;  %v9480_v56 = vunpack.c.h.bf16 %v9684_v44 }
 0x26d   : > { %v13082_v35 = vpop.f32.mrb[37].mxu1 }
 0x26e   : > { %v13087_v36 = vpop.f32.mrb[38].mxu1  ;;  %11586 = vperm.xlu0 %11453, %v11585_v27   ;;  %v9475_v27 = vunpack.c.l.bf16 %v9683_v59  ;;  %v11605_v58 = vpack.i.bf16 %v9480_v56, %v9479_v28  ;;  %v13117_v28 = vld [vmem:[%s12117_s26 + $0x100] sm:$0xff]   ;;  %v9653_v56 = vld [vmem:[%s15779_s1 + $0x8] sm:$0xff]  }
 0x26f   : > { %v13089_v42 = vpop.f32.mrb[39].mxu1  ;;  %11581 = vperm.xlu1 %11464, %v11580_v12   ;;  %v9355_v45 = vunpack.c.l.bf16 %v9653_v56  ;;  %v9356_v30 = vunpack.c.h.bf16 %v9653_v56  ;;  %v13149_v56 = vld [vmem:[%s12117_s26 + $0x118] sm:$0xff]  }
 0x270   : > { %2049 = vmatmul.mubr.bf16.gmra.mrb[124].mxu0 %v13095_v43  ;;  %v11600_v44 = vpack.i.bf16 %v9476_v19, %v9475_v27  ;;  %15862 = vst [vmem:[#allocation42_spill] sm:$0xff] %v13149_v56 }
 0x271   : > { %2058 = vmatprep.mubr.bf16.mxu0 %v15842_v60  ;;  %v11620_v19 = vpack.i.bf16 %v9356_v30, %v9355_v45  ;;  %v11902_v45 = vld [vmem:[%s12117_s26 + $0x28] sm:$0xff]   ;;  %v3784_v30 = vrot.slane %v12955_v3, 1 }
 0x272   : > { %11596 = vperm.xlu0 %11453, %v11595_v11   ;;  %v11615_v11 = vpack.i.bf16 %v9352_v18, %v9351_v2  ;;  %v13133_v2 = vld [vmem:[%s12117_s26 + $0x108] sm:$0xff]  }
 0x273   : > { %11591 = vperm.xlu1 %11464, %v11590_v34   ;;  %v11610_v34 = vpack.i.bf16 %v9484_v50, %v9483_v40 }
 0x274   : > { %v13105_v12 = vpop.f32.mrb[40].mxu1 }
 0x275   : > { %v13107_v23 = vpop.f32.mrb[41].mxu1 }
 0x276   : > { %v13112_v5 = vpop.f32.mrb[42].mxu1  ;;  %11606 = vperm.xlu0 %11453, %v11605_v58  }
 0x277   : > { %v13114_v59 = vpop.f32.mrb[43].mxu1  ;;  %11601 = vperm.xlu1 %11464, %v11600_v44  }
 0x278   : > { %2059 = vmatmul.mubr.bf16.gmra.mrb[128].mxu0 %v13117_v28 }
 0x279   : > { %2068 = vmatprep.mubr.bf16.mxu0 %v15842_v60 }
 0x27a   : > { %11616 = vperm.xlu0 %11453, %v11615_v11  }
 0x27b   : > { %11611 = vperm.xlu1 %11464, %v11610_v34   ;;  %v13144_v34 = vld [vmem:[%s12117_s26 + $0x110] sm:$0xff]  }
 0x27c   : > { %v13124_v27 = vpop.f32.mrb[44].mxu1  ;;  %15861 = vst [vmem:[#allocation41_spill] sm:$0xff] %v13144_v34 }
 0x27d   : > { %v13126_v50 = vpop.f32.mrb[45].mxu1 }
 0x27e   : > { %v13128_v40 = vpop.f32.mrb[46].mxu1 }
 0x27f   : > { %v13130_v58 = vpop.f32.mrb[47].mxu1  ;;  %11621 = vperm.xlu1 %11464, %v11620_v19   ;;  %v3785_v19 = vrot.slane %v12981_v16, 1  ;;  %v3788_v16 = vrot.slane %v13005_v24, 1 }
 0x280   : > { %2069 = vmatmul.mubr.bf16.gmra.mrb[132].mxu0 %v13133_v2 }
 0x281   : > { %2078 = vmatprep.mubr.bf16.mxu0 %v15842_v60  ;;  %v13175_v3 = vsel %vm3814_vm0, %v3784_v30, %v3785_v19  ;;  %v13179_v26 = vsel %vm3814_vm0, %v3785_v19, %v3786_v55  ;;  %v3794_v19 = vrot.slane %v13057_v46, 1  ;;  %v3796_v46 = vrot.slane %v13055_v21, 1 }
 0x284   : > { %v13137_v18 = vpop.f32.mrb[48].mxu1 }
 0x285   : > { %v13139_v44 = vpop.f32.mrb[49].mxu1 }
 0x286   : > { %v13141_v11 = vpop.f32.mrb[50].mxu1 }
 0x287   : > { %15860 = vst [vmem:[#allocation40_spill] sm:$0xff] %v13141_v11 }
 0x288   : > { %2079 = vmatmul.mubr.bf16.gmra.mrb[136].mxu0 %v13144_v34  ;;  %v3783_v34 = vrot.slane %v12983_v0, 1  ;;  %v3787_v0 = vrot.slane %v13014_v15, 1  ;;  %v3793_v15 = vrot.slane %v13037_v63, 1 }
 0x289   : > { %2088 = vmatprep.mubr.bf16.mxu0 %v15842_v60 }
 0x28a   : > { %v13171_v47 = vsel %vm3814_vm0, %v3783_v34, %v3784_v30  ;;  %v13193_v30 = vsel %vm3814_vm0, %v3787_v0, %v3788_v16  ;;  %v13223_v63 = vsel %vm3814_vm0, %v3793_v15, %v3794_v19 }
 0x290   : > { %2089 = vmatmul.mubr.bf16.gmra.mrb[140].mxu0 %v13149_v56  ;;  %v11903_v56 = vld [vmem:[%s12117_s26 + $0x30] sm:$0xff]  }
 0x291   : > { %2625 = vmatprep.mubr.bf16.mxu0 %v15842_v60 }
 0x298   : > { %2626 = vmatmul.mubr.bf16.vlgmr.msra.gmra.mrb[0].mxu0 %v12598_v48  ;;  %v15863_v48 = vrot.slane %v12967_v51, 1  ;;  %v3789_v51 = vrot.slane %v13012_v61, 1 }
 0x299   : > { %2635 = vmatprep.mubr.bf16.mxu0 %v15842_v60 }
 0x29a   : > { %v13197_v24 = vsel %vm3814_vm0, %v3788_v16, %v3789_v51 }
 0x2a0   : > { %2636 = vmatmul.mubr.bf16.gmra.mrb[4].mxu0 %v11902_v45  ;;  %v13167_v45 = vsel %vm3814_vm0, %v15863_v48, %v3783_v34  ;;  %v11904_v48 = vld [vmem:[%s12117_s26 + $0x38] sm:$0xff]   ;;  %v13189_v34 = vsel %vm3814_vm0, %v3786_v55, %v3787_v0  ;;  %v3791_v55 = vrot.slane %v13039_v1, 1  ;;  %v3797_v1 = vrot.slane %v13062_v10, 1 }
 0x2a1   : > { %2645 = vmatprep.mubr.bf16.mxu0 %v15842_v60  ;;  %v3795_v0 = vrot.slane %v13064_v33, 1  ;;  %v3801_v33 = vrot.slane %v13087_v36, 1 }
 0x2a2   : > { %v13241_v21 = vsel %vm3814_vm0, %v3796_v46, %v3797_v1 }
 0x2a8   : > { %2646 = vmatmul.mubr.bf16.gmra.mrb[8].mxu0 %v11903_v56  ;;  %v3790_v56 = vrot.slane %v13032_v38, 1  ;;  %v3792_v38 = vrot.slane %v13030_v32, 1 }
 0x2a9   : > { %2655 = vmatprep.mubr.bf16.mxu0 %v15842_v60 }
 0x2aa   : > { %v13201_v61 = vsel %vm3814_vm0, %v3789_v51, %v3790_v56  ;;  %v13211_v16 = vsel %vm3814_vm0, %v3790_v56, %v3791_v55  ;;  %v13215_v51 = vsel %vm3814_vm0, %v3791_v55, %v3792_v38  ;;  %v13219_v32 = vsel %vm3814_vm0, %v3792_v38, %v3793_v15 }
 0x2ab   : > { %v3798_v56 = vrot.slane %v13082_v35, 1  ;;  %v13233_v38 = vsel %vm3814_vm0, %v3794_v19, %v3795_v0  ;;  %v13237_v15 = vsel %vm3814_vm0, %v3795_v0, %v3796_v46  ;;  %v3800_v35 = vrot.slane %v13080_v13, 1 }
 0x2ac   : > { %v3799_v55 = vrot.slane %v13089_v42, 1  ;;  %v3802_v19 = vrot.slane %v13107_v23, 1  ;;  %v3804_v23 = vrot.slane %v13105_v12, 1  ;;  %v3805_v42 = vrot.slane %v13112_v5, 1 }
 0x2ad   : > { %v13245_v10 = vsel %vm3814_vm0, %v3797_v1, %v3798_v56  ;;  %v13263_v13 = vsel %vm3814_vm0, %v3800_v35, %v3801_v33  ;;  %v3803_v0 = vrot.slane %v13114_v59, 1  ;;  %v3808_v59 = vrot.slane %v13124_v27, 1 }
 0x2ae   : > { %v13255_v46 = vsel %vm3814_vm0, %v3798_v56, %v3799_v55  ;;  %v13259_v1 = vsel %vm3814_vm0, %v3799_v55, %v3800_v35  ;;  %v13267_v36 = vsel %vm3814_vm0, %v3801_v33, %v3802_v19  ;;  %v3806_v56 = vrot.slane %v13126_v50, 1 }
 0x2af   : > { %v13277_v35 = vsel %vm3814_vm0, %v3802_v19, %v3803_v0  ;;  %v13281_v33 = vsel %vm3814_vm0, %v3803_v0, %v3804_v23  ;;  %v13285_v12 = vsel %vm3814_vm0, %v3804_v23, %v3805_v42  ;;  %v3809_v50 = vrot.slane %v13128_v40, 1  ;;  %v3295_v0 = vpop.f32.mrb[51].mxu1 }
 0x2b0   : > { %2656 = vmatmul.mubr.bf16.gmra.mrb[12].mxu0 %v11904_v48  ;;  %v11905_v48 = vld [vmem:[%s12117_s26 + $0x40] sm:$0xff]   ;;  %15864 = vst [vmem:[#allocation43_spill] sm:$0xff] %v13285_v12  ;;  %v13289_v5 = vsel %vm3814_vm0, %v3805_v42, %v3806_v56  ;;  %v3807_v55 = vrot.slane %v13130_v58, 1  ;;  %v3810_v19 = vrot.slane %v13139_v44, 1  ;;  %v3812_v58 = vrot.slane %v13137_v18, 1 }
 0x2b1   : > { %2665 = vmatprep.mubr.bf16.mxu0 %v15842_v60  ;;  %15865 = vst [vmem:[#allocation44_spill] sm:$0xff] %v13289_v5  ;;  %v13307_v27 = vsel %vm3814_vm0, %v3808_v59, %v3809_v50  ;;  %v3811_v44 = vrot.slane %v3295_v0, 1 }
 0x2b2   : > { %v13299_v23 = vsel %vm3814_vm0, %v3806_v56, %v3807_v55  ;;  %v13303_v42 = vsel %vm3814_vm0, %v3807_v55, %v3808_v59  ;;  %15868 = vst [vmem:[#allocation47_spill] sm:$0xff] %v13307_v27  ;;  %v13311_v40 = vsel %vm3814_vm0, %v3809_v50, %v3810_v19  ;;  %v11772_v50 = vld [vmem:[%s15782_s4 + $0xe0] ss:$12 sps:$4 sm:$0xff]   ;;  %v9686_v55 = vld [vmem:[%s15779_s1 + $0x110] sm:$0xff]  }
 0x2b3   : > { %15866 = vst [vmem:[#allocation45_spill] sm:$0xff] %v13299_v23  ;;  %15867 = vst [vmem:[#allocation46_spill] sm:$0xff] %v13303_v42  ;;  %v13319_v56 = vsel %vm3814_vm0, %v3810_v19, %v3811_v44  ;;  %v13323_v59 = vsel %vm3814_vm0, %v3811_v44, %v3812_v58  ;;  %v9487_v19 = vunpack.c.l.bf16 %v9686_v55  ;;  %v9488_v0 = vunpack.c.h.bf16 %v9686_v55  ;;  %v11777_v44 = vld [vmem:[%s15782_s4 + $0x158] ss:$12 sps:$4 sm:$0xff]  }
 0x2b4   : > { %15869 = vst [vmem:[#allocation48_spill] sm:$0xff] %v13311_v40  ;;  %15870 = vst [vmem:[#allocation49_spill] sm:$0xff] %v13319_v56 }
 0x2b5   : > { %15871 = vst [vmem:[#allocation50_spill] sm:$0xff] %v13323_v59 }
 0x2b8   : > { %2666 = vmatmul.mubr.bf16.gmra.mrb[16].mxu0 %v11905_v48  ;;  %v11906_v48 = vld [vmem:[%s12117_s26 + $0x48] sm:$0xff]  }
 0x2b9   : > { %2675 = vmatprep.mubr.bf16.mxu0 %v15842_v60 }
 0x2bd   : > { %v13381_v55 = vpop.permute.xlu1 %11466 }
 0x2c0   : > { %2676 = vmatmul.mubr.bf16.gmra.mrb[20].mxu0 %v11906_v48  ;;  %v11907_v48 = vld [vmem:[%s12117_s26 + $0x50] sm:$0xff]  }
 0x2c1   : > { %2685 = vmatprep.mubr.bf16.mxu0 %v15842_v60 }
 0x2c8   : > { %2686 = vmatmul.mubr.bf16.gmra.mrb[24].mxu0 %v11907_v48  ;;  %v11908_v48 = vld [vmem:[%s12117_s26 + $0x58] sm:$0xff]  }
 0x2c9   : > { %2695 = vmatprep.mubr.bf16.mxu0 %v15842_v60 }
 0x2d0   : > { %2696 = vmatmul.mubr.bf16.gmra.mrb[28].mxu0 %v11908_v48  ;;  %v11909_v48 = vld [vmem:[%s12117_s26 + $0x60] sm:$0xff]  }
 0x2d1   : > { %2705 = vmatprep.mubr.bf16.mxu0 %v15842_v60 }
 0x2d8   : > { %2706 = vmatmul.mubr.bf16.gmra.mrb[32].mxu0 %v11909_v48  ;;  %v15796_v48 = vrot.slane %v13141_v11, 1 }
 0x2d9   : > { %2715 = vmatprep.mubr.bf16.mxu0 %v15842_v60 }
 0x2da   : > { %v13329_v18 = vsel %vm3814_vm0, %v3812_v58, %v15796_v48  ;;  %v11625_v58 = vpack.i.bf16 %v9488_v0, %v9487_v19  ;;  %v11782_v19 = vld [vmem:[%s15782_s4 + $0xd8] ss:$12 sps:$4 sm:$0xff]   ;;  %v11910_v0 = vld [vmem:[%s12117_s26 + $0xa8] sm:$0xff]  }
 0x2db   : > { %15872 = vst [vmem:[#allocation51_spill] sm:$0xff] %v13329_v18 }
 0x2dc   : > { %11626 = vperm.xlu0 %11453, %v11625_v58   ;;  %v13393_v58 = vpop.permute.xlu1 %11471 }
 0x2e0   : > { %2716 = vmatmul.mubr.bf16.gmra.mrb[36].mxu0 %v12638_v52  ;;  %v11771_v52 = vld [vmem:[%s15782_s4 + $0xc8] ss:$12 sps:$4 sm:$0xff]  }
 0x2e1   : > { %2725 = vmatprep.mubr.bf16.mxu0 %v15842_v60  ;;  %10275 = vmatprep.subr.bf16.mxu1 %v11771_v52 }
 0x2e2   : > { %10276 = vmatpush3.bf16.msra.mxu1 %v11771_v52  ;;  %v11778_v52 = vld [vmem:[%s15782_s4 + $0x170] ss:$12 sps:$4 sm:$0xff]  }
 0x2e3   : > { %10277 = vmatprep.subr.bf16.mxu1 %v11772_v50 }
 0x2e6   : > { %10278 = vmatpush3.bf16.msra.mxu1 %v11772_v50 }
 0x2e8   : > { %2726 = vmatmul.mubr.bf16.gmra.mrb[40].mxu0 %v12643_v53  ;;  %v11773_v53 = vld [vmem:[%s15782_s4 + $0xf8] ss:$12 sps:$4 sm:$0xff]  }
 0x2e9   : > { %2735 = vmatprep.mubr.bf16.mxu0 %v15842_v60  ;;  %10279 = vmatprep.subr.bf16.mxu1 %v11773_v53 }
 0x2ea   : > { %10280 = vmatpush3.bf16.msra.mxu1 %v11773_v53 }
 0x2f0   : > { %2736 = vmatmul.mubr.bf16.gmra.mrb[44].mxu0 %v12648_v54  ;;  %v11774_v54 = vld [vmem:[%s15782_s4 + $0x110] ss:$12 sps:$4 sm:$0xff]  }
 0x2f1   : > { %2745 = vmatprep.mubr.bf16.mxu0 %v15842_v60  ;;  %10281 = vmatprep.subr.bf16.mxu1 %v11774_v54 }
 0x2f2   : > { %10282 = vmatpush3.bf16.msra.mxu1 %v11774_v54 }
 0x2f8   : > { %2746 = vmatmul.mubr.bf16.gmra.mrb[48].mxu0 %v12659_v57  ;;  %v11775_v57 = vld [vmem:[%s15782_s4 + $0x128] ss:$12 sps:$4 sm:$0xff]  }
 0x2f9   : > { %2755 = vmatprep.mubr.bf16.mxu0 %v15842_v60  ;;  %10283 = vmatprep.subr.bf16.mxu1 %v11775_v57 }
 0x2fa   : > { %10284 = vmatpush3.bf16.msra.mxu1 %v11775_v57  ;;  %v11781_v57 = vld [vmem:[%s15782_s4 + $0xc4] ss:$12 sps:$4 sm:$0xff]  }
 0x2fb   : > { %4915 = vmatprep.subr.bf16.mxu0 %v11781_v57 }
 0x300   : > { %2756 = vmatmul.mubr.bf16.gmra.mrb[52].mxu0 %v12664_v62  ;;  %v11776_v62 = vld [vmem:[%s15782_s4 + $0x140] ss:$12 sps:$4 sm:$0xff]  }
 0x301   : > { %2765 = vmatprep.mubr.bf16.mxu0 %v15842_v60  ;;  %10285 = vmatprep.subr.bf16.mxu1 %v11776_v62 }
 0x302   : > { %10286 = vmatpush3.bf16.msra.mxu1 %v11776_v62  ;;  %v11784_v62 = vld [vmem:[%s15782_s4 + $0xdc] ss:$12 sps:$4 sm:$0xff]  }
 0x303   : > { %10287 = vmatprep.subr.bf16.mxu1 %v11777_v44 }
 0x306   : > { %10288 = vmatpush3.bf16.msra.mxu1 %v11777_v44  ;;  %v11785_v44 = vld [vmem:[%s15782_s4 + $0xf0] ss:$12 sps:$4 sm:$0xff]  }
 0x307   : > { %10289 = vmatprep.subr.bf16.mxu1 %v11778_v52 }
 0x308   : > { %2766 = vmatmul.mubr.bf16.gmra.mrb[56].mxu0 %v12675_v4  ;;  %v9687_v4 = vld [vmem:[%s15779_s1 + $0x118] sm:$0xff]  }
 0x309   : > { %2775 = vmatprep.mubr.bf16.mxu0 %v15842_v60  ;;  %v9491_v50 = vunpack.c.l.bf16 %v9687_v4  ;;  %v9492_v53 = vunpack.c.h.bf16 %v9687_v4  ;;  %v11790_v4 = vld [vmem:[%s15782_s4 + $0x10c] ss:$12 sps:$4 sm:$0xff]  }
 0x30a   : > { %10290 = vmatpush3.bf16.msra.mxu1 %v11778_v52  ;;  %v11788_v52 = vld [vmem:[%s15782_s4 + $0x108] ss:$12 sps:$4 sm:$0xff]  }
 0x30b   : > { %v11630_v54 = vpack.i.bf16 %v9492_v53, %v9491_v50  ;;  %v13405_v50 = vpop.permute.xlu1 %11481  ;;  %v11793_v53 = vld [vmem:[%s15782_s4 + $0x124] ss:$12 sps:$4 sm:$0xff]  }
 0x30d   : > { %11631 = vperm.xlu1 %11464, %v11630_v54   ;;  %v11791_v54 = vld [vmem:[%s15782_s4 + $0x120] ss:$12 sps:$4 sm:$0xff]  }
 0x30f   : > { %v13415_v57 = vpop.permute.xlu1 %11491 }
 0x310   : > { %2776 = vmatmul.mubr.bf16.gmra.mrb[60].mxu0 %v12688_v9  ;;  %v11779_v9 = vld [vmem:[%s15782_s4 + $0xc0] ss:$12 sps:$4 sm:$0xff]  }
 0x311   : > { %2785 = vmatprep.mubr.bf16.mxu0 %v15842_v60  ;;  %4916 = vmatpush1.bf16.msra.mxu0 %v11779_v9  ;;  %v11796_v9 = vld [vmem:[%s15782_s4 + $0x13c] ss:$12 sps:$4 sm:$0xff]  }
 0x312   : > { %4917 = vmatprep.subr.bf16.mxu0 %v11784_v62  ;;  %v11799_v62 = vld [vmem:[%s15782_s4 + $0x154] ss:$12 sps:$4 sm:$0xff]  }
 0x315   : > { %4918 = vmatpush1.bf16.msra.mxu0 %v11782_v19  ;;  %v11797_v19 = vld [vmem:[%s15782_s4 + $0x150] ss:$12 sps:$4 sm:$0xff]  }
 0x318   : > { %2786 = vmatmul.mubr.bf16.gmra.mrb[64].mxu0 %v12701_v14  ;;  %v11787_v14 = vld [vmem:[%s15782_s4 + $0xf4] ss:$12 sps:$4 sm:$0xff]  }
 0x319   : > { %2795 = vmatprep.mubr.bf16.mxu0 %v15842_v60  ;;  %4919 = vmatprep.subr.bf16.mxu0 %v11787_v14  ;;  %v13431_v14 = vpop.permute.xlu1 %11501 }
 0x31a   : > { %4920 = vmatpush1.bf16.msra.mxu0 %v11785_v44 }
 0x31b   : > { %4921 = vmatprep.subr.bf16.mxu0 %v11790_v4 }
 0x31d   : > { %v13440_v44 = vpop.permute.xlu1 %11511 }
 0x31e   : > { %4922 = vmatpush1.bf16.msra.mxu0 %v11788_v52 }
 0x31f   : > { %4923 = vmatprep.subr.bf16.mxu0 %v11793_v53 }
 0x320   : > { %2796 = vmatmul.mubr.bf16.gmra.mrb[68].mxu0 %v11910_v0  ;;  %v11802_v0 = vld [vmem:[%s15782_s4 + $0x16c] ss:$12 sps:$4 sm:$0xff]  }
 0x321   : > { %2805 = vmatprep.mubr.bf16.mxu0 %v15842_v60  ;;  %v13443_v4 = vpop.permute.xlu1 %11521 }
 0x322   : > { %4924 = vmatpush1.bf16.msra.mxu0 %v11791_v54 }
 0x323   : > { %4925 = vmatprep.subr.bf16.mxu0 %v11796_v9 }
 0x325   : > { %v13447_v52 = vpop.permute.xlu1 %11531 }
 0x328   : > { %2806 = vmatmul.mubr.bf16.gmra.mrb[72].mxu0 %v12726_v41  ;;  %v11794_v41 = vld [vmem:[%s15782_s4 + $0x138] ss:$12 sps:$4 sm:$0xff]  }
 0x329   : > { %2815 = vmatprep.mubr.bf16.mxu0 %v15842_v60  ;;  %4926 = vmatpush1.bf16.msra.mxu0 %v11794_v41  ;;  %v13451_v53 = vpop.permute.xlu1 %11541 }
 0x32a   : > { %4927 = vmatprep.subr.bf16.mxu0 %v11799_v62 }
 0x32d   : > { %4928 = vmatpush1.bf16.msra.mxu0 %v11797_v19 }
 0x32e   : > { %4929 = vmatprep.subr.bf16.mxu0 %v11802_v0 }
 0x330   : > { %2816 = vmatmul.mubr.bf16.gmra.mrb[76].mxu0 %v12763_v31  ;;  %v11800_v31 = vld [vmem:[%s15782_s4 + $0x168] ss:$12 sps:$4 sm:$0xff]  }
 0x331   : > { %2825 = vmatprep.mubr.bf16.mxu0 %v15842_v60  ;;  %4930 = vmatpush1.bf16.msra.mxu0 %v11800_v31 }
 0x338   : > { %2826 = vmatmul.mubr.bf16.gmra.mrb[80].mxu0 %v12813_v7  ;;  %v13454_v7 = vpop.permute.xlu1 %11551 }
 0x339   : > { %2835 = vmatprep.mubr.bf16.mxu0 %v15842_v60 }
 0x33c   : > { %v13457_v54 = vpop.permute.xlu1 %11561 }
 0x340   : > { %2836 = vmatmul.mubr.bf16.gmra.mrb[84].mxu0 %v12872_v20  ;;  %v13461_v20 = vpop.permute.xlu1 %11571 }
 0x341   : > { %2845 = vmatprep.mubr.bf16.mxu0 %v15842_v60 }
 0x348   : > { %2846 = vmatmul.mubr.bf16.gmra.mrb[88].mxu0 %v12927_v17  ;;  %v13465_v17 = vpop.permute.xlu1 %11581 }
 0x349   : > { %2855 = vmatprep.mubr.bf16.mxu0 %v15842_v60 }
 0x350   : > { %2856 = vmatmul.mubr.bf16.gmra.mrb[92].mxu0 %v12995_v8  ;;  %v13468_v8 = vpop.permute.xlu1 %11591 }
 0x351   : > { %2865 = vmatprep.mubr.bf16.mxu0 %v15842_v60 }
 0x354   : > { %v13477_v0 = vpop.permute.xlu1 %11601 }
 0x355   : > { %15875 = vst [vmem:[#allocation54_spill] sm:$0xff] %v13477_v0 }
 0x358   : > { %2866 = vmatmul.mubr.bf16.gmra.mrb[96].mxu0 %v13020_v25 }
 0x359   : > { %2875 = vmatprep.mubr.bf16.mxu0 %v15842_v60 }
 0x360   : > { %2876 = vmatmul.mubr.bf16.gmra.mrb[100].mxu0 %v13045_v6 }
 0x361   : > { %2885 = vmatprep.mubr.bf16.mxu0 %v15842_v60 }
 0x368   : > { %2886 = vmatmul.mubr.bf16.gmra.mrb[104].mxu0 %v13070_v29 }
 0x369   : > { %2895 = vmatprep.mubr.bf16.mxu0 %v15842_v60 }
 0x36b   : > { %v13471_v9 = vpop.f32.mrb[0].mxu0 }
 0x36c   : > { %15873 = vst [vmem:[#allocation52_spill] sm:$0xff] %v13471_v9  ;;  %v13473_v41 = vpop.f32.mrb[1].mxu0  ;;  %v15799_v62 = vrot.slane %v13471_v9, 7 }
 0x36d   : > { %15874 = vst [vmem:[#allocation53_spill] sm:$0xff] %v13473_v41  ;;  %v2631_v25 = vpop.f32.mrb[2].mxu0 }
 0x36e   : > { %v3524_v6 = vrot.slane %v2631_v25, 7  ;;  %v2633_v19 = vpop.f32.mrb[3].mxu0  ;;  %v13488_v25 = vpop.permute.xlu1 %11611 }
 0x36f   : > { %15877 = vst [vmem:[#allocation56_spill] sm:$0xff] %v13488_v25 }
 0x370   : > { %v3668_v29 = vsel %vm3597_vm1, %v15799_v62, %v3524_v6  ;;  %2896 = vmatmul.mubr.bf16.gmra.mrb[108].mxu0 %v13095_v43 }
 0x371   : > { %v3671_v31 = vadd.f32 %v3668_v29, %v2633_v19  ;;  %2905 = vmatprep.mubr.bf16.mxu0 %v15842_v60 }
 0x372   : > { %v11622_v29 = vpop.permute.xlu1 %11621 }
 0x373   : > { %v13486_v48 = vadd.f32 %v12753_v37, %v3671_v31  ;;  %v2637_v11 = vpop.f32.mrb[4].mxu0  ;;  %v11624_v31 = vunpack.i.h.bf16 %v11622_v29 }
 0x374   : > { %v3525_v41 = vrot.slane %v2637_v11, 7  ;;  %v2639_v18 = vpop.f32.mrb[5].mxu0  ;;  %v13500_v11 = vld [vmem:[%s15781_s3] ss:$0 sm:$0xff] }
 0x375   : > { %15876 = vst [vmem:[#allocation55_spill] sm:$0xff] %v13486_v48  ;;  %v2641_v59 = vpop.f32.mrb[6].mxu0 }
 0x376   : > { %v3667_v9 = vsel %vm3597_vm1, %v3524_v6, %v3525_v41  ;;  %v3526_v56 = vrot.slane %v2641_v59, 7  ;;  %v2643_v40 = vpop.f32.mrb[7].mxu0 }
 0x377   : > { %v3672_v62 = vadd.f32 %v3667_v9, %v2639_v18 }
 0x378   : > { %v3666_v43 = vsel %vm3597_vm1, %v3525_v41, %v3526_v56  ;;  %2906 = vmatmul.mubr.bf16.gmra.mrb[112].mxu0 %v13117_v28  ;;  %v11623_v28 = vunpack.i.l.bf16 %v11622_v29 }
 0x379   : > { %v3889_v37 = vadd.f32 %v12747_v49, %v3672_v62  ;;  %v3673_v19 = vadd.f32 %v3666_v43, %v2643_v40  ;;  %2915 = vmatprep.mubr.bf16.mxu0 %v15842_v60 }
 0x37b   : > { %v3890_v59 = vadd.f32 %v12784_v39, %v3673_v19  ;;  %v2647_v6 = vpop.f32.mrb[8].mxu0  ;;  %v3968_v18 = vadd.f32 %v13500_v11, %v3889_v37 }
 0x37c   : > { %v3527_v9 = vrot.slane %v2647_v6, 7  ;;  %v2649_v41 = vpop.f32.mrb[9].mxu0  ;;  %v15878_v6 = vld [vmem:[#allocation12_spill] sm:$0xff] }
 0x37d   : > { %v3969_v49 = vadd.f32 %v13500_v11, %v3890_v59  ;;  %v4040_v40 = vmax.f32 %v3968_v18, 0.0  ;;  %v2651_v62 = vpop.f32.mrb[10].mxu0  ;;  %v15879_v18 = vld [vmem:[#allocation13_spill] sm:$0xff] }
 0x37e   : > { %v3665_v43 = vsel %vm3597_vm1, %v3526_v56, %v3527_v9  ;;  %v3528_v48 = vrot.slane %v2651_v62, 7  ;;  %v2653_v25 = vpop.f32.mrb[11].mxu0 }
 0x37f   : > { %v4041_v27 = vmax.f32 %v3969_v49, 0.0  ;;  %v3674_v42 = vadd.f32 %v3665_v43, %v2649_v41  ;;  %v4616_v37 = vmul.f32 %v11623_v28, %v4040_v40  ;;  %v11456_v41 = vpop.permute.xlu0 %11455 }
 0x380   : > { %v3664_v39 = vsel %vm3597_vm1, %v3527_v9, %v3528_v48  ;;  %2916 = vmatmul.mubr.bf16.gmra.mrb[116].mxu0 %v13133_v2  ;;  %v11458_v9 = vunpack.i.h.bf16 %v11456_v41  ;;  %v11457_v5 = vunpack.i.l.bf16 %v11456_v41 }
 0x381   : > { %v4617_v19 = vmul.f32 %v11624_v31, %v4041_v27  ;;  %v3891_v29 = vadd.f32 %v15878_v6, %v3674_v42  ;;  %v3675_v23 = vadd.f32 %v3664_v39, %v2653_v25  ;;  %2925 = vmatprep.mubr.bf16.mxu0 %v15842_v60 }
 0x383   : > { %v3970_v59 = vadd.f32 %v13500_v11, %v3891_v29  ;;  %v3892_v56 = vadd.f32 %v15879_v18, %v3675_v23  ;;  %v2657_v62 = vpop.f32.mrb[12].mxu0  ;;  %v13514_v0 = vpack.c.bf16 %v4617_v19, %v4616_v37  ;;  %v15881_v37 = vld [vmem:[#allocation41_spill] sm:$0xff]  ;;  %v15882_v19 = vld [vmem:[#allocation11_spill] sm:$0xff] }
 0x384   : > { %v3529_v49 = vrot.slane %v2657_v62, 7  ;;  %v2659_v43 = vpop.f32.mrb[13].mxu0  ;;  %v15883_v62 = vld [vmem:[#allocation16_spill] sm:$0xff] }
 0x385   : > { %15880 = vst [vmem:[#allocation12_spill] sm:$0xff] %v13514_v0  ;;  %v4042_v2 = vmax.f32 %v3970_v59, 0.0  ;;  %v3971_v27 = vadd.f32 %v13500_v11, %v3892_v56  ;;  %v2661_v31 = vpop.f32.mrb[14].mxu0 }
 0x386   : > { %v3663_v42 = vsel %vm3597_vm1, %v3528_v48, %v3529_v49  ;;  %v3530_v25 = vrot.slane %v2661_v31, 7  ;;  %v2663_v28 = vpop.f32.mrb[15].mxu0 }
 0x387   : > { %v4043_v40 = vmax.f32 %v3971_v27, 0.0  ;;  %v3676_v39 = vadd.f32 %v3663_v42, %v2659_v43  ;;  %v4618_v18 = vmul.f32 %v11457_v5, %v4042_v2  ;;  %v11461_v43 = vpop.permute.xlu0 %11460 }
 0x388   : > { %v3662_v23 = vsel %vm3597_vm1, %v3529_v49, %v3530_v25  ;;  %2926 = vmatmul.mubr.bf16.gmra.mrb[120].mxu0 %v15881_v37  ;;  %v11463_v49 = vunpack.i.h.bf16 %v11461_v43  ;;  %v11462_v0 = vunpack.i.l.bf16 %v11461_v43 }
 0x389   : > { %v3893_v6 = vadd.f32 %v15882_v19, %v3676_v39  ;;  %v3677_v29 = vadd.f32 %v3662_v23, %v2663_v28  ;;  %v4619_v59 = vmul.f32 %v11458_v9, %v4043_v40  ;;  %2935 = vmatprep.mubr.bf16.mxu0 %v15842_v60 }
 0x38b   : > { %v3972_v56 = vadd.f32 %v13500_v11, %v3893_v6  ;;  %v3894_v48 = vadd.f32 %v15883_v62, %v3677_v29  ;;  %v2667_v41 = vpop.f32.mrb[16].mxu0  ;;  %v13526_v31 = vpack.c.bf16 %v4619_v59, %v4618_v18  ;;  %v15884_v6 = vld [vmem:[#allocation42_spill] sm:$0xff]  ;;  %v15885_v59 = vld [vmem:[#allocation21_spill] sm:$0xff] }
 0x38c   : > { %v3531_v27 = vrot.slane %v2667_v41, 7  ;;  %v2669_v42 = vpop.f32.mrb[17].mxu0  ;;  %v15886_v41 = vld [vmem:[#allocation20_spill] sm:$0xff] }
 0x38d   : > { %v4044_v37 = vmax.f32 %v3972_v56, 0.0  ;;  %v3973_v39 = vadd.f32 %v13500_v11, %v3894_v48  ;;  %v2671_v28 = vpop.f32.mrb[18].mxu0  ;;  %10291 = vmatprep.mubr.bf16.mxu1 %v13526_v31 }
 0x38e   : > { %v3661_v5 = vsel %vm3597_vm1, %v3530_v25, %v3531_v27  ;;  %v3532_v9 = vrot.slane %v2671_v28, 7  ;;  %v2673_v2 = vpop.f32.mrb[19].mxu0 }
 0x38f   : > { %v4045_v40 = vmax.f32 %v3973_v39, 0.0  ;;  %v3678_v23 = vadd.f32 %v3661_v5, %v2669_v42  ;;  %v4620_v29 = vmul.f32 %v11462_v0, %v4044_v37  ;;  %v11468_v0 = vunpack.i.l.bf16 %v13381_v55 }
 0x390   : > { %v3660_v19 = vsel %vm3597_vm1, %v3531_v27, %v3532_v9  ;;  %2936 = vmatmul.mubr.bf16.gmra.mrb[124].mxu0 %v15884_v6  ;;  %v11469_v27 = vunpack.i.h.bf16 %v13381_v55 }
 0x391   : > { %v4621_v18 = vmul.f32 %v11463_v49, %v4045_v40  ;;  %v3895_v56 = vadd.f32 %v15885_v59, %v3678_v23  ;;  %v3679_v62 = vadd.f32 %v3660_v19, %v2673_v2  ;;  %2945 = vmatprep.mubr.bf16.mxu0 %v15842_v60 }
 0x393   : > { %v3974_v48 = vadd.f32 %v13500_v11, %v3895_v56  ;;  %v3896_v25 = vadd.f32 %v15886_v41, %v3679_v62  ;;  %v2677_v43 = vpop.f32.mrb[20].mxu0  ;;  %v13539_v39 = vpack.c.bf16 %v4621_v18, %v4620_v29  ;;  %v11911_v18 = vld [vmem:[%s12117_s26 + $0x120] sm:$0xff]   ;;  %v15888_v56 = vld [vmem:[#allocation19_spill] sm:$0xff] }
 0x394   : > { %v3533_v42 = vrot.slane %v2677_v43, 7  ;;  %v2679_v28 = vpop.f32.mrb[21].mxu0 }
 0x395   : > { %15887 = vst [vmem:[#allocation13_spill] sm:$0xff] %v13539_v39  ;;  %v4046_v49 = vmax.f32 %v3974_v48, 0.0  ;;  %v3975_v37 = vadd.f32 %v13500_v11, %v3896_v25  ;;  %v2681_v5 = vpop.f32.mrb[22].mxu0  ;;  %10292 = vmatmul.mubr.bf16.vlgmr.msra.gmra.mrb[72].mxu1 %v13539_v39  ;;  %v15889_v25 = vld [vmem:[#allocation24_spill] sm:$0xff] }
 0x396   : > { %v3659_v2 = vsel %vm3597_vm1, %v3532_v9, %v3533_v42  ;;  %v3534_v40 = vrot.slane %v2681_v5, 7  ;;  %v2683_v23 = vpop.f32.mrb[23].mxu0 }
 0x397   : > { %v4047_v19 = vmax.f32 %v3975_v37, 0.0  ;;  %v3680_v6 = vadd.f32 %v3659_v2, %v2679_v28  ;;  %v4622_v59 = vmul.f32 %v11468_v0, %v4046_v49  ;;  %v11473_v28 = vunpack.i.l.bf16 %v13393_v58 }
 0x398   : > { %v3658_v29 = vsel %vm3597_vm1, %v3533_v42, %v3534_v40  ;;  %2946 = vmatmul.mubr.bf16.gmra.mrb[128].mxu0 %v11911_v18  ;;  %v11474_v0 = vunpack.i.h.bf16 %v13393_v58  ;;  %v11805_v58 = vld [vmem:[%s15782_s4 + $0x4] ss:$12 sps:$4 sm:$0xff]  }
 0x399   : > { %v4623_v55 = vmul.f32 %v11469_v27, %v4047_v19  ;;  %v3897_v62 = vadd.f32 %v15888_v56, %v3680_v6  ;;  %v3681_v48 = vadd.f32 %v3658_v29, %v2683_v23  ;;  %2955 = vmatprep.mubr.bf16.mxu0 %v15842_v60  ;;  %5685 = vmatprep.subr.bf16.mxu1 %v11805_v58 }
 0x39b   : > { %v13552_v41 = vpack.c.bf16 %v4623_v55, %v4622_v59  ;;  %v3976_v9 = vadd.f32 %v13500_v11, %v3897_v62  ;;  %v3898_v43 = vadd.f32 %v15889_v25, %v3681_v48  ;;  %v2687_v37 = vpop.f32.mrb[24].mxu0  ;;  %v11803_v59 = vld [vmem:[%s15782_s4] ss:$12 sps:$4 sm:$0xff]  }
 0x39c   : > { %v3535_v5 = vrot.slane %v2687_v37, 7  ;;  %v2689_v42 = vpop.f32.mrb[25].mxu0  ;;  %v11912_v62 = vld [vmem:[%s12117_s26 + $0x128] sm:$0xff]   ;;  %5686 = vmatpush1.bf16.msra.mxu1 %v11803_v59 }
 0x39d   : > { %v4048_v27 = vmax.f32 %v3976_v9, 0.0  ;;  %v3977_v49 = vadd.f32 %v13500_v11, %v3898_v43  ;;  %v2691_v2 = vpop.f32.mrb[26].mxu0  ;;  %10295 = vmatprep.mubr.bf16.mxu1 %v13552_v41 }
 0x39e   : > { %v3657_v23 = vsel %vm3597_vm1, %v3534_v40, %v3535_v5  ;;  %v3536_v19 = vrot.slane %v2691_v2, 7  ;;  %v2693_v6 = vpop.f32.mrb[27].mxu0  ;;  %v15890_v40 = vld [vmem:[#allocation29_spill] sm:$0xff] }
 0x39f   : > { %v4049_v29 = vmax.f32 %v3977_v49, 0.0  ;;  %v3682_v18 = vadd.f32 %v3657_v23, %v2689_v42  ;;  %v4624_v55 = vmul.f32 %v11473_v28, %v4048_v27  ;;  %v15892_v42 = vld [vmem:[#allocation28_spill] sm:$0xff]  ;;  %v11477_v27 = vpop.permute.xlu0 %11476 }
 0x3a0   : > { %v3656_v56 = vsel %vm3597_vm1, %v3535_v5, %v3536_v19  ;;  %2956 = vmatmul.mubr.bf16.gmra.mrb[132].mxu0 %v11912_v62  ;;  %v11479_v23 = vunpack.i.h.bf16 %v11477_v27 }
 0x3a1   : > { %v4625_v48 = vmul.f32 %v11474_v0, %v4049_v29  ;;  %v3899_v9 = vadd.f32 %v15890_v40, %v3682_v18  ;;  %v3683_v25 = vadd.f32 %v3656_v56, %v2693_v6  ;;  %2965 = vmatprep.mubr.bf16.mxu0 %v15842_v60  ;;  %v11478_v0 = vunpack.i.l.bf16 %v11477_v27  ;;  %v11913_v40 = vld [vmem:[%s12117_s26 + $0x130] sm:$0xff]   ;;  %v15894_v27 = vld [vmem:[#allocation35_spill] sm:$0xff] }
 0x3a3   : > { %v13573_v43 = vpack.c.bf16 %v4625_v48, %v4624_v55  ;;  %v3978_v37 = vadd.f32 %v13500_v11, %v3899_v9  ;;  %v3900_v49 = vadd.f32 %v15892_v42, %v3683_v25  ;;  %v2697_v28 = vpop.f32.mrb[28].mxu0 }
 0x3a4   : > { %v3537_v5 = vrot.slane %v2697_v28, 7  ;;  %v2699_v2 = vpop.f32.mrb[29].mxu0 }
 0x3a5   : > { %15891 = vst [vmem:[#allocation41_spill] sm:$0xff] %v13573_v43  ;;  %v4050_v29 = vmax.f32 %v3978_v37, 0.0  ;;  %v3979_v6 = vadd.f32 %v13500_v11, %v3900_v49  ;;  %v2701_v18 = vpop.f32.mrb[30].mxu0  ;;  %10296 = vmatmul.mubr.bf16.gmra.mrb[76].mxu1 %v13573_v43  ;;  %v15893_v37 = vld [vmem:[#allocation27_spill] sm:$0xff] }
 0x3a6   : > { %v3655_v59 = vsel %vm3597_vm1, %v3536_v19, %v3537_v5  ;;  %v3538_v58 = vrot.slane %v2701_v18, 7  ;;  %v2703_v55 = vpop.f32.mrb[31].mxu0 }
 0x3a7   : > { %v4051_v56 = vmax.f32 %v3979_v6, 0.0  ;;  %v3684_v62 = vadd.f32 %v3655_v59, %v2699_v2  ;;  %v4626_v9 = vmul.f32 %v11478_v0, %v4050_v29  ;;  %v11483_v2 = vunpack.i.l.bf16 %v13405_v50 }
 0x3a8   : > { %v3654_v48 = vsel %vm3597_vm1, %v3537_v5, %v3538_v58  ;;  %2966 = vmatmul.mubr.bf16.gmra.mrb[136].mxu0 %v11913_v40  ;;  %v11484_v0 = vunpack.i.h.bf16 %v13405_v50  ;;  %v11808_v50 = vld [vmem:[%s15782_s4 + $0x1c] ss:$12 sps:$4 sm:$0xff]  }
 0x3a9   : > { %v4627_v25 = vmul.f32 %v11479_v23, %v4051_v56  ;;  %v3901_v42 = vadd.f32 %v15893_v37, %v3684_v62  ;;  %v3685_v49 = vadd.f32 %v3654_v48, %v2703_v55  ;;  %2975 = vmatprep.mubr.bf16.mxu0 %v15842_v60  ;;  %5687 = vmatprep.subr.bf16.mxu1 %v11808_v50 }
 0x3ab   : > { %v13586_v28 = vpack.c.bf16 %v4627_v25, %v4626_v9  ;;  %v3980_v19 = vadd.f32 %v13500_v11, %v3901_v42  ;;  %v3902_v18 = vadd.f32 %v15894_v27, %v3685_v49  ;;  %v2707_v6 = vpop.f32.mrb[32].mxu0  ;;  %v11806_v25 = vld [vmem:[%s15782_s4 + $0x18] ss:$12 sps:$4 sm:$0xff]  }
 0x3ac   : > { %v3539_v59 = vrot.slane %v2707_v6, 7  ;;  %v2709_v5 = vpop.f32.mrb[33].mxu0  ;;  %v11914_v49 = vld [vmem:[%s12117_s26 + $0x138] sm:$0xff]   ;;  %5688 = vmatpush1.bf16.msra.mxu1 %v11806_v25 }
 0x3ad   : > { %v4052_v23 = vmax.f32 %v3980_v19, 0.0  ;;  %v3981_v29 = vadd.f32 %v13500_v11, %v3902_v18  ;;  %v2711_v55 = vpop.f32.mrb[34].mxu0  ;;  %10299 = vmatprep.mubr.bf16.mxu1 %v13586_v28 }
 0x3ae   : > { %v3653_v56 = vsel %vm3597_vm1, %v3538_v58, %v3539_v59  ;;  %v3540_v62 = vrot.slane %v2711_v55, 7  ;;  %v2713_v48 = vpop.f32.mrb[35].mxu0  ;;  %v15895_v58 = vld [vmem:[#allocation36_spill] sm:$0xff] }
 0x3af   : > { %v4053_v40 = vmax.f32 %v3981_v29, 0.0  ;;  %v3686_v9 = vadd.f32 %v3653_v56, %v2709_v5  ;;  %v4628_v37 = vmul.f32 %v11483_v2, %v4052_v23  ;;  %v15897_v29 = vld [vmem:[#allocation37_spill] sm:$0xff]  ;;  %v11487_v23 = vpop.permute.xlu0 %11486 }
 0x3b0   : > { %v3652_v42 = vsel %vm3597_vm1, %v3539_v59, %v3540_v62  ;;  %2976 = vmatmul.mubr.bf16.gmra.mrb[140].mxu0 %v11914_v49  ;;  %v11489_v12 = vunpack.i.h.bf16 %v11487_v23  ;;  %v11488_v49 = vunpack.i.l.bf16 %v11487_v23 }
 0x3b1   : > { %v4629_v19 = vmul.f32 %v11484_v0, %v4053_v40  ;;  %v3903_v27 = vadd.f32 %v15895_v58, %v3686_v9  ;;  %v3687_v18 = vadd.f32 %v3652_v42, %v2713_v48  ;;  %4947 = vmatprep.mubr.bf16.mxu0 %v15842_v60 }
 0x3b3   : > { %v13607_v6 = vpack.c.bf16 %v4629_v19, %v4628_v37  ;;  %v3982_v5 = vadd.f32 %v13500_v11, %v3903_v27  ;;  %v3904_v55 = vadd.f32 %v15897_v29, %v3687_v18  ;;  %v2717_v2 = vpop.f32.mrb[36].mxu0  ;;  %v15898_v18 = vld [vmem:[#allocation38_spill] sm:$0xff] }
 0x3b4   : > { %v3541_v56 = vrot.slane %v2717_v2, 7  ;;  %v2719_v59 = vpop.f32.mrb[37].mxu0  ;;  %v15899_v2 = vld [vmem:[#allocation34_spill] sm:$0xff] }
 0x3b5   : > { %15896 = vst [vmem:[#allocation11_spill] sm:$0xff] %v13607_v6  ;;  %v4054_v0 = vmax.f32 %v3982_v5, 0.0  ;;  %v3983_v40 = vadd.f32 %v13500_v11, %v3904_v55  ;;  %v2721_v48 = vpop.f32.mrb[38].mxu0  ;;  %10300 = vmatmul.mubr.bf16.gmra.mrb[80].mxu1 %v13607_v6 }
 0x3b6   : > { %v3651_v9 = vsel %vm3597_vm1, %v3540_v62, %v3541_v56  ;;  %v3542_v25 = vrot.slane %v2721_v48, 7  ;;  %v2723_v50 = vpop.f32.mrb[39].mxu0 }
 0x3b7   : > { %v4055_v37 = vmax.f32 %v3983_v40, 0.0  ;;  %v3688_v42 = vadd.f32 %v3651_v9, %v2719_v59  ;;  %v4630_v58 = vmul.f32 %v11488_v49, %v4054_v0  ;;  %v11493_v59 = vunpack.i.l.bf16 %v13415_v57 }
 0x3b8   : > { %v3650_v19 = vsel %vm3597_vm1, %v3541_v56, %v3542_v25  ;;  %4948 = vmatmul.mubr.bf16.vlgmr.msra.gmra.mrb[164].mxu0 %v13526_v31  ;;  %v11494_v9 = vunpack.i.h.bf16 %v13415_v57  ;;  %v11811_v57 = vld [vmem:[%s15782_s4 + $0x34] ss:$12 sps:$4 sm:$0xff]  }
 0x3b9   : > { %v4631_v27 = vmul.f32 %v11489_v12, %v4055_v37  ;;  %v3905_v5 = vadd.f32 %v15898_v18, %v3688_v42  ;;  %v3689_v29 = vadd.f32 %v3650_v19, %v2723_v50  ;;  %4957 = vmatprep.mubr.bf16.mxu0 %v15842_v60  ;;  %5689 = vmatprep.subr.bf16.mxu1 %v11811_v57 }
 0x3bb   : > { %v13620_v55 = vpack.c.bf16 %v4631_v27, %v4630_v58  ;;  %v3984_v62 = vadd.f32 %v13500_v11, %v3905_v5  ;;  %v3906_v23 = vadd.f32 %v15899_v2, %v3689_v29  ;;  %v2727_v40 = vpop.f32.mrb[40].mxu0  ;;  %v11809_v27 = vld [vmem:[%s15782_s4 + $0x30] ss:$12 sps:$4 sm:$0xff]  }
 0x3bc   : > { %v3543_v48 = vrot.slane %v2727_v40, 7  ;;  %v2729_v56 = vpop.f32.mrb[41].mxu0  ;;  %5690 = vmatpush1.bf16.msra.mxu1 %v11809_v27 }
 0x3bd   : > { %v4056_v49 = vmax.f32 %v3984_v62, 0.0  ;;  %v3985_v12 = vadd.f32 %v13500_v11, %v3906_v23  ;;  %v2731_v0 = vpop.f32.mrb[42].mxu0  ;;  %10303 = vmatprep.mubr.bf16.mxu1 %v13620_v55 }
 0x3be   : > { %v3649_v50 = vsel %vm3597_vm1, %v3542_v25, %v3543_v48  ;;  %v3544_v37 = vrot.slane %v2731_v0, 7  ;;  %v2733_v42 = vpop.f32.mrb[43].mxu0  ;;  %v15900_v25 = vld [vmem:[#allocation6_spill] sm:$0xff] }
 0x3bf   : > { %v4057_v19 = vmax.f32 %v3985_v12, 0.0  ;;  %v3690_v58 = vadd.f32 %v3649_v50, %v2729_v56  ;;  %v4632_v18 = vmul.f32 %v11493_v59, %v4056_v49  ;;  %v15902_v56 = vld [vmem:[#allocation5_spill] sm:$0xff]  ;;  %v11497_v49 = vpop.permute.xlu0 %11496 }
 0x3c0   : > { %v3648_v5 = vsel %vm3597_vm1, %v3543_v48, %v3544_v37  ;;  %4958 = vmatmul.mubr.bf16.gmra.mrb[168].mxu0 %v13539_v39  ;;  %v11499_v50 = vunpack.i.h.bf16 %v11497_v49  ;;  %v11498_v39 = vunpack.i.l.bf16 %v11497_v49 }
 0x3c1   : > { %v4633_v29 = vmul.f32 %v11494_v9, %v4057_v19  ;;  %v3907_v62 = vadd.f32 %v15900_v25, %v3690_v58  ;;  %v3691_v2 = vadd.f32 %v3648_v5, %v2733_v42  ;;  %4967 = vmatprep.mubr.bf16.mxu0 %v15842_v60 }
 0x3c3   : > { %v13641_v23 = vpack.c.bf16 %v4633_v29, %v4632_v18  ;;  %v3986_v40 = vadd.f32 %v13500_v11, %v3907_v62  ;;  %v3908_v12 = vadd.f32 %v15902_v56, %v3691_v2  ;;  %v2737_v59 = vpop.f32.mrb[44].mxu0  ;;  %v15903_v2 = vld [vmem:[#allocation4_spill] sm:$0xff] }
 0x3c4   : > { %v3545_v0 = vrot.slane %v2737_v59, 7  ;;  %v2739_v48 = vpop.f32.mrb[45].mxu0  ;;  %v15904_v59 = vld [vmem:[#allocation7_spill] sm:$0xff] }
 0x3c5   : > { %15901 = vst [vmem:[#allocation16_spill] sm:$0xff] %v13641_v23  ;;  %v4058_v9 = vmax.f32 %v3986_v40, 0.0  ;;  %v3987_v19 = vadd.f32 %v13500_v11, %v3908_v12  ;;  %v2741_v42 = vpop.f32.mrb[46].mxu0  ;;  %10304 = vmatmul.mubr.bf16.gmra.mrb[84].mxu1 %v13641_v23 }
 0x3c6   : > { %v3647_v58 = vsel %vm3597_vm1, %v3544_v37, %v3545_v0  ;;  %v3546_v27 = vrot.slane %v2741_v42, 7  ;;  %v2743_v57 = vpop.f32.mrb[47].mxu0 }
 0x3c7   : > { %v4059_v18 = vmax.f32 %v3987_v19, 0.0  ;;  %v3692_v5 = vadd.f32 %v3647_v58, %v2739_v48  ;;  %v4634_v25 = vmul.f32 %v11498_v39, %v4058_v9  ;;  %v11503_v48 = vunpack.i.l.bf16 %v13431_v14 }
 0x3c8   : > { %v3646_v29 = vsel %vm3597_vm1, %v3545_v0, %v3546_v27  ;;  %4968 = vmatmul.mubr.bf16.gmra.mrb[172].mxu0 %v13552_v41  ;;  %v11504_v58 = vunpack.i.h.bf16 %v13431_v14  ;;  %v11814_v14 = vld [vmem:[%s15782_s4 + $0x4c] ss:$12 sps:$4 sm:$0xff]  }
 0x3c9   : > { %v4635_v62 = vmul.f32 %v11499_v50, %v4059_v18  ;;  %v3909_v40 = vadd.f32 %v15903_v2, %v3692_v5  ;;  %v3693_v56 = vadd.f32 %v3646_v29, %v2743_v57  ;;  %4977 = vmatprep.mubr.bf16.mxu0 %v15842_v60  ;;  %5691 = vmatprep.subr.bf16.mxu1 %v11814_v14 }
 0x3cb   : > { %v13654_v12 = vpack.c.bf16 %v4635_v62, %v4634_v25  ;;  %v3988_v37 = vadd.f32 %v13500_v11, %v3909_v40  ;;  %v3910_v49 = vadd.f32 %v15904_v59, %v3693_v56  ;;  %v2747_v19 = vpop.f32.mrb[48].mxu0  ;;  %v11812_v62 = vld [vmem:[%s15782_s4 + $0x48] ss:$12 sps:$4 sm:$0xff]  }
 0x3cc   : > { %v3547_v42 = vrot.slane %v2747_v19, 7  ;;  %v2749_v0 = vpop.f32.mrb[49].mxu0  ;;  %5692 = vmatpush1.bf16.msra.mxu1 %v11812_v62 }
 0x3cd   : > { %v4060_v39 = vmax.f32 %v3988_v37, 0.0  ;;  %v3989_v50 = vadd.f32 %v13500_v11, %v3910_v49  ;;  %v2751_v9 = vpop.f32.mrb[50].mxu0  ;;  %10307 = vmatprep.mubr.bf16.mxu1 %v13654_v12 }
 0x3ce   : > { %v3645_v57 = vsel %vm3597_vm1, %v3546_v27, %v3547_v42  ;;  %v3548_v18 = vrot.slane %v2751_v9, 7  ;;  %v2753_v5 = vpop.f32.mrb[51].mxu0  ;;  %v15905_v27 = vld [vmem:[#allocation10_spill] sm:$0xff] }
 0x3cf   : > { %v4061_v29 = vmax.f32 %v3989_v50, 0.0  ;;  %v3694_v25 = vadd.f32 %v3645_v57, %v2749_v0  ;;  %v4636_v2 = vmul.f32 %v11503_v48, %v4060_v39  ;;  %v15907_v0 = vld [vmem:[#allocation9_spill] sm:$0xff]  ;;  %v11507_v39 = vpop.permute.xlu0 %11506 }
 0x3d0   : > { %v3644_v40 = vsel %vm3597_vm1, %v3547_v42, %v3548_v18  ;;  %4978 = vmatmul.mubr.bf16.gmra.mrb[176].mxu0 %v13573_v43  ;;  %v11509_v57 = vunpack.i.h.bf16 %v11507_v39  ;;  %v11508_v43 = vunpack.i.l.bf16 %v11507_v39 }
 0x3d1   : > { %v4637_v56 = vmul.f32 %v11504_v58, %v4061_v29  ;;  %v3911_v37 = vadd.f32 %v15905_v27, %v3694_v25  ;;  %v3695_v59 = vadd.f32 %v3644_v40, %v2753_v5  ;;  %4987 = vmatprep.mubr.bf16.mxu0 %v15842_v60 }
 0x3d3   : > { %v13675_v49 = vpack.c.bf16 %v4637_v56, %v4636_v2  ;;  %v3990_v19 = vadd.f32 %v13500_v11, %v3911_v37  ;;  %v3912_v50 = vadd.f32 %v15907_v0, %v3695_v59  ;;  %v2757_v48 = vpop.f32.mrb[52].mxu0  ;;  %v15908_v59 = vld [vmem:[#allocation8_spill] sm:$0xff] }
 0x3d4   : > { %v3549_v9 = vrot.slane %v2757_v48, 7  ;;  %v2759_v42 = vpop.f32.mrb[53].mxu0  ;;  %v15909_v48 = vld [vmem:[#allocation14_spill] sm:$0xff] }
 0x3d5   : > { %15906 = vst [vmem:[#allocation42_spill] sm:$0xff] %v13675_v49  ;;  %v4062_v58 = vmax.f32 %v3990_v19, 0.0  ;;  %v3991_v29 = vadd.f32 %v13500_v11, %v3912_v50  ;;  %v2761_v5 = vpop.f32.mrb[54].mxu0  ;;  %10308 = vmatmul.mubr.bf16.gmra.mrb[88].mxu1 %v13675_v49 }
 0x3d6   : > { %v3643_v25 = vsel %vm3597_vm1, %v3548_v18, %v3549_v9  ;;  %v3550_v62 = vrot.slane %v2761_v5, 7  ;;  %v2763_v14 = vpop.f32.mrb[55].mxu0 }
 0x3d7   : > { %v4063_v2 = vmax.f32 %v3991_v29, 0.0  ;;  %v3696_v40 = vadd.f32 %v3643_v25, %v2759_v42  ;;  %v4638_v27 = vmul.f32 %v11508_v43, %v4062_v58  ;;  %v11513_v42 = vunpack.i.l.bf16 %v13440_v44 }
 0x3d8   : > { %v3642_v56 = vsel %vm3597_vm1, %v3549_v9, %v3550_v62  ;;  %4988 = vmatmul.mubr.bf16.gmra.mrb[180].mxu0 %v13586_v28  ;;  %v11514_v25 = vunpack.i.h.bf16 %v13440_v44  ;;  %v11817_v44 = vld [vmem:[%s15782_s4 + $0x64] ss:$12 sps:$4 sm:$0xff]  }
 0x3d9   : > { %v4639_v37 = vmul.f32 %v11509_v57, %v4063_v2  ;;  %v3913_v19 = vadd.f32 %v15908_v59, %v3696_v40  ;;  %v3697_v0 = vadd.f32 %v3642_v56, %v2763_v14  ;;  %4997 = vmatprep.mubr.bf16.mxu0 %v15842_v60  ;;  %5693 = vmatprep.subr.bf16.mxu1 %v11817_v44 }
 0x3db   : > { %v13688_v50 = vpack.c.bf16 %v4639_v37, %v4638_v27  ;;  %v3992_v18 = vadd.f32 %v13500_v11, %v3913_v19  ;;  %v3914_v39 = vadd.f32 %v15909_v48, %v3697_v0  ;;  %v2767_v29 = vpop.f32.mrb[56].mxu0  ;;  %v11815_v37 = vld [vmem:[%s15782_s4 + $0x60] ss:$12 sps:$4 sm:$0xff]  }
 0x3dc   : > { %v3551_v5 = vrot.slane %v2767_v29, 7  ;;  %v2769_v9 = vpop.f32.mrb[57].mxu0  ;;  %5694 = vmatpush1.bf16.msra.mxu1 %v11815_v37 }
 0x3dd   : > { %v4064_v43 = vmax.f32 %v3992_v18, 0.0  ;;  %v3993_v57 = vadd.f32 %v13500_v11, %v3914_v39  ;;  %v2771_v58 = vpop.f32.mrb[58].mxu0  ;;  %10311 = vmatprep.mubr.bf16.mxu1 %v13688_v50 }
 0x3de   : > { %v3641_v14 = vsel %vm3597_vm1, %v3550_v62, %v3551_v5  ;;  %v3552_v2 = vrot.slane %v2771_v58, 7  ;;  %v2773_v40 = vpop.f32.mrb[59].mxu0  ;;  %v15910_v62 = vld [vmem:[#allocation18_spill] sm:$0xff] }
 0x3df   : > { %v4065_v56 = vmax.f32 %v3993_v57, 0.0  ;;  %v3698_v27 = vadd.f32 %v3641_v14, %v2769_v9  ;;  %v4640_v59 = vmul.f32 %v11513_v42, %v4064_v43  ;;  %v15911_v9 = vld [vmem:[#allocation17_spill] sm:$0xff]  ;;  %v11517_v43 = vpop.permute.xlu0 %11516 }
 0x3e0   : > { %v3640_v19 = vsel %vm3597_vm1, %v3551_v5, %v3552_v2  ;;  %4998 = vmatmul.mubr.bf16.gmra.mrb[184].mxu0 %v13607_v6  ;;  %v11519_v14 = vunpack.i.h.bf16 %v11517_v43  ;;  %v11518_v6 = vunpack.i.l.bf16 %v11517_v43 }
 0x3e1   : > { %v4641_v0 = vmul.f32 %v11514_v25, %v4065_v56  ;;  %v3915_v18 = vadd.f32 %v15910_v62, %v3698_v27  ;;  %v3699_v48 = vadd.f32 %v3640_v19, %v2773_v40  ;;  %5007 = vmatprep.mubr.bf16.mxu0 %v15842_v60 }
 0x3e3   : > { %v13709_v39 = vpack.c.bf16 %v4641_v0, %v4640_v59  ;;  %v3994_v29 = vadd.f32 %v13500_v11, %v3915_v18  ;;  %v3916_v57 = vadd.f32 %v15911_v9, %v3699_v48  ;;  %v2777_v42 = vpop.f32.mrb[60].mxu0  ;;  %v15912_v48 = vld [vmem:[#allocation15_spill] sm:$0xff] }
 0x3e4   : > { %v3553_v58 = vrot.slane %v2777_v42, 7  ;;  %v2779_v5 = vpop.f32.mrb[61].mxu0  ;;  %v15913_v42 = vld [vmem:[#allocation22_spill] sm:$0xff] }
 0x3e5   : > { %v4066_v25 = vmax.f32 %v3994_v29, 0.0  ;;  %v3995_v56 = vadd.f32 %v13500_v11, %v3916_v57  ;;  %v2781_v40 = vpop.f32.mrb[62].mxu0  ;;  %10312 = vmatmul.mubr.bf16.gmra.mrb[92].mxu1 %v13709_v39 }
 0x3e6   : > { %v3639_v27 = vsel %vm3597_vm1, %v3552_v2, %v3553_v58  ;;  %v3554_v37 = vrot.slane %v2781_v40, 7  ;;  %v2783_v44 = vpop.f32.mrb[63].mxu0 }
 0x3e7   : > { %v4067_v59 = vmax.f32 %v3995_v56, 0.0  ;;  %v3700_v19 = vadd.f32 %v3639_v27, %v2779_v5  ;;  %v4642_v62 = vmul.f32 %v11518_v6, %v4066_v25  ;;  %v11523_v5 = vunpack.i.l.bf16 %v13443_v4 }
 0x3e8   : > { %v3638_v0 = vsel %vm3597_vm1, %v3553_v58, %v3554_v37  ;;  %5008 = vmatmul.mubr.bf16.gmra.mrb[188].mxu0 %v13620_v55  ;;  %v11524_v27 = vunpack.i.h.bf16 %v13443_v4  ;;  %v11820_v4 = vld [vmem:[%s15782_s4 + $0x7c] ss:$12 sps:$4 sm:$0xff]  }
 0x3e9   : > { %v4643_v18 = vmul.f32 %v11519_v14, %v4067_v59  ;;  %v3917_v29 = vadd.f32 %v15912_v48, %v3700_v19  ;;  %v3701_v9 = vadd.f32 %v3638_v0, %v2783_v44  ;;  %5017 = vmatprep.mubr.bf16.mxu0 %v15842_v60  ;;  %5695 = vmatprep.subr.bf16.mxu1 %v11820_v4 }
 0x3eb   : > { %v13722_v57 = vpack.c.bf16 %v4643_v18, %v4642_v62  ;;  %v3996_v2 = vadd.f32 %v13500_v11, %v3917_v29  ;;  %v3918_v43 = vadd.f32 %v15913_v42, %v3701_v9  ;;  %v2787_v56 = vpop.f32.mrb[64].mxu0  ;;  %v11818_v18 = vld [vmem:[%s15782_s4 + $0x78] ss:$12 sps:$4 sm:$0xff]  }
 0x3ec   : > { %v3555_v40 = vrot.slane %v2787_v56, 7  ;;  %v2789_v58 = vpop.f32.mrb[65].mxu0  ;;  %5696 = vmatpush1.bf16.msra.mxu1 %v11818_v18 }
 0x3ed   : > { %v4068_v6 = vmax.f32 %v3996_v2, 0.0  ;;  %v3997_v14 = vadd.f32 %v13500_v11, %v3918_v43  ;;  %v2791_v25 = vpop.f32.mrb[66].mxu0  ;;  %10315 = vmatprep.mubr.bf16.mxu1 %v13722_v57 }
 0x3ee   : > { %v3637_v44 = vsel %vm3597_vm1, %v3554_v37, %v3555_v40  ;;  %v3556_v59 = vrot.slane %v2791_v25, 7  ;;  %v2793_v19 = vpop.f32.mrb[67].mxu0  ;;  %v15914_v37 = vld [vmem:[#allocation26_spill] sm:$0xff] }
 0x3ef   : > { %v4069_v0 = vmax.f32 %v3997_v14, 0.0  ;;  %v3702_v62 = vadd.f32 %v3637_v44, %v2789_v58  ;;  %v4644_v48 = vmul.f32 %v11523_v5, %v4068_v6  ;;  %v15915_v58 = vld [vmem:[#allocation25_spill] sm:$0xff]  ;;  %v11527_v6 = vpop.permute.xlu0 %11526 }
 0x3f0   : > { %v3636_v29 = vsel %vm3597_vm1, %v3555_v40, %v3556_v59  ;;  %5018 = vmatmul.mubr.bf16.gmra.mrb[192].mxu0 %v13641_v23  ;;  %v11529_v44 = vunpack.i.h.bf16 %v11527_v6  ;;  %v11528_v23 = vunpack.i.l.bf16 %v11527_v6 }
 0x3f1   : > { %v4645_v9 = vmul.f32 %v11524_v27, %v4069_v0  ;;  %v3919_v2 = vadd.f32 %v15914_v37, %v3702_v62  ;;  %v3703_v42 = vadd.f32 %v3636_v29, %v2793_v19  ;;  %5027 = vmatprep.mubr.bf16.mxu0 %v15842_v60 }
 0x3f3   : > { %v13743_v43 = vpack.c.bf16 %v4645_v9, %v4644_v48  ;;  %v3998_v56 = vadd.f32 %v13500_v11, %v3919_v2  ;;  %v3920_v14 = vadd.f32 %v15915_v58, %v3703_v42  ;;  %v2797_v5 = vpop.f32.mrb[68].mxu0  ;;  %v15916_v42 = vld [vmem:[#allocation23_spill] sm:$0xff] }
 0x3f4   : > { %v3557_v25 = vrot.slane %v2797_v5, 7  ;;  %v2799_v40 = vpop.f32.mrb[69].mxu0  ;;  %v15917_v5 = vld [vmem:[#allocation30_spill] sm:$0xff] }
 0x3f5   : > { %v4070_v27 = vmax.f32 %v3998_v56, 0.0  ;;  %v3999_v0 = vadd.f32 %v13500_v11, %v3920_v14  ;;  %v2801_v19 = vpop.f32.mrb[70].mxu0  ;;  %10316 = vmatmul.mubr.bf16.gmra.mrb[96].mxu1 %v13743_v43 }
 0x3f6   : > { %v3635_v62 = vsel %vm3597_vm1, %v3556_v59, %v3557_v25  ;;  %v3558_v18 = vrot.slane %v2801_v19, 7  ;;  %v2803_v4 = vpop.f32.mrb[71].mxu0 }
 0x3f7   : > { %v4071_v48 = vmax.f32 %v3999_v0, 0.0  ;;  %v3704_v29 = vadd.f32 %v3635_v62, %v2799_v40  ;;  %v4646_v37 = vmul.f32 %v11528_v23, %v4070_v27  ;;  %v11533_v40 = vunpack.i.l.bf16 %v13447_v52 }
 0x3f8   : > { %v3634_v9 = vsel %vm3597_vm1, %v3557_v25, %v3558_v18  ;;  %5028 = vmatmul.mubr.bf16.gmra.mrb[196].mxu0 %v13654_v12  ;;  %v11534_v62 = vunpack.i.h.bf16 %v13447_v52  ;;  %v11823_v52 = vld [vmem:[%s15782_s4 + $0x94] ss:$12 sps:$4 sm:$0xff]  }
 0x3f9   : > { %v4647_v2 = vmul.f32 %v11529_v44, %v4071_v48  ;;  %v3921_v56 = vadd.f32 %v15916_v42, %v3704_v29  ;;  %v3705_v58 = vadd.f32 %v3634_v9, %v2803_v4  ;;  %5037 = vmatprep.mubr.bf16.mxu0 %v15842_v60  ;;  %5697 = vmatprep.subr.bf16.mxu1 %v11823_v52 }
 0x3fb   : > { %v13756_v14 = vpack.c.bf16 %v4647_v2, %v4646_v37  ;;  %v4000_v59 = vadd.f32 %v13500_v11, %v3921_v56  ;;  %v3922_v6 = vadd.f32 %v15917_v5, %v3705_v58  ;;  %v2807_v0 = vpop.f32.mrb[72].mxu0  ;;  %v11821_v2 = vld [vmem:[%s15782_s4 + $0x90] ss:$12 sps:$4 sm:$0xff]  }
 0x3fc   : > { %v3559_v19 = vrot.slane %v2807_v0, 7  ;;  %v2809_v25 = vpop.f32.mrb[73].mxu0  ;;  %5698 = vmatpush1.bf16.msra.mxu1 %v11821_v2 }
 0x3fd   : > { %v4072_v23 = vmax.f32 %v4000_v59, 0.0  ;;  %v4001_v44 = vadd.f32 %v13500_v11, %v3922_v6  ;;  %v2811_v27 = vpop.f32.mrb[74].mxu0  ;;  %10319 = vmatprep.mubr.bf16.mxu1 %v13756_v14 }
 0x3fe   : > { %v3633_v4 = vsel %vm3597_vm1, %v3558_v18, %v3559_v19  ;;  %v3560_v48 = vrot.slane %v2811_v27, 7  ;;  %v2813_v29 = vpop.f32.mrb[75].mxu0  ;;  %v15918_v18 = vld [vmem:[#allocation33_spill] sm:$0xff] }
 0x3ff   : > { %v4073_v9 = vmax.f32 %v4001_v44, 0.0  ;;  %v3706_v37 = vadd.f32 %v3633_v4, %v2809_v25  ;;  %v4648_v42 = vmul.f32 %v11533_v40, %v4072_v23  ;;  %v15919_v25 = vld [vmem:[#allocation32_spill] sm:$0xff]  ;;  %v11537_v23 = vpop.permute.xlu0 %11536 }
 0x400   : > { %v3632_v56 = vsel %vm3597_vm1, %v3559_v19, %v3560_v48  ;;  %5038 = vmatmul.mubr.bf16.gmra.mrb[200].mxu0 %v13675_v49  ;;  %v11539_v4 = vunpack.i.h.bf16 %v11537_v23  ;;  %v11538_v49 = vunpack.i.l.bf16 %v11537_v23 }
 0x401   : > { %v4649_v58 = vmul.f32 %v11534_v62, %v4073_v9  ;;  %v3923_v59 = vadd.f32 %v15918_v18, %v3706_v37  ;;  %v3707_v5 = vadd.f32 %v3632_v56, %v2813_v29  ;;  %5047 = vmatprep.mubr.bf16.mxu0 %v15842_v60 }
 0x403   : > { %v13777_v6 = vpack.c.bf16 %v4649_v58, %v4648_v42  ;;  %v4002_v0 = vadd.f32 %v13500_v11, %v3923_v59  ;;  %v3924_v44 = vadd.f32 %v15919_v25, %v3707_v5  ;;  %v2817_v40 = vpop.f32.mrb[76].mxu0  ;;  %v15920_v5 = vld [vmem:[#allocation31_spill] sm:$0xff] }
 0x404   : > { %v3561_v27 = vrot.slane %v2817_v40, 7  ;;  %v2819_v19 = vpop.f32.mrb[77].mxu0  ;;  %v15921_v40 = vld [vmem:[#allocation39_spill] sm:$0xff] }
 0x405   : > { %v4074_v62 = vmax.f32 %v4002_v0, 0.0  ;;  %v4003_v9 = vadd.f32 %v13500_v11, %v3924_v44  ;;  %v2821_v29 = vpop.f32.mrb[78].mxu0  ;;  %10320 = vmatmul.mubr.bf16.gmra.mrb[100].mxu1 %v13777_v6 }
 0x406   : > { %v3631_v37 = vsel %vm3597_vm1, %v3560_v48, %v3561_v27  ;;  %v3562_v2 = vrot.slane %v2821_v29, 7  ;;  %v2823_v52 = vpop.f32.mrb[79].mxu0 }
 0x407   : > { %v4075_v42 = vmax.f32 %v4003_v9, 0.0  ;;  %v3708_v56 = vadd.f32 %v3631_v37, %v2819_v19  ;;  %v4650_v18 = vmul.f32 %v11538_v49, %v4074_v62  ;;  %v11543_v37 = vunpack.i.l.bf16 %v13451_v53 }
 0x408   : > { %v3630_v58 = vsel %vm3597_vm1, %v3561_v27, %v3562_v2  ;;  %5048 = vmatmul.mubr.bf16.gmra.mrb[204].mxu0 %v13688_v50  ;;  %v11544_v27 = vunpack.i.h.bf16 %v13451_v53 }
 0x409   : > { %v4651_v59 = vmul.f32 %v11539_v4, %v4075_v42  ;;  %v3925_v0 = vadd.f32 %v15920_v5, %v3708_v56  ;;  %v3709_v25 = vadd.f32 %v3630_v58, %v2823_v52  ;;  %5057 = vmatprep.mubr.bf16.mxu0 %v15842_v60 }
 0x40b   : > { %v13790_v44 = vpack.c.bf16 %v4651_v59, %v4650_v18  ;;  %v4004_v48 = vadd.f32 %v13500_v11, %v3925_v0  ;;  %v3926_v23 = vadd.f32 %v15921_v40, %v3709_v25  ;;  %v2827_v9 = vpop.f32.mrb[80].mxu0 }
 0x40c   : > { %v3563_v19 = vrot.slane %v2827_v9, 7  ;;  %v2829_v29 = vpop.f32.mrb[81].mxu0 }
 0x40d   : > { %v4076_v49 = vmax.f32 %v4004_v48, 0.0  ;;  %v4005_v4 = vadd.f32 %v13500_v11, %v3926_v23  ;;  %v2831_v62 = vpop.f32.mrb[82].mxu0  ;;  %10323 = vmatprep.mubr.bf16.mxu1 %v13790_v44  ;;  %v11826_v48 = vld [vmem:[%s15782_s4 + $0xac] ss:$12 sps:$4 sm:$0xff]  }
 0x40e   : > { %v3629_v52 = vsel %vm3597_vm1, %v3562_v2, %v3563_v19  ;;  %v3564_v42 = vrot.slane %v2831_v62, 7  ;;  %v2833_v56 = vpop.f32.mrb[83].mxu0  ;;  %v11824_v2 = vld [vmem:[%s15782_s4 + $0xa8] ss:$12 sps:$4 sm:$0xff]   ;;  %5699 = vmatprep.subr.bf16.mxu1 %v11826_v48  ;;  %v11547_v62 = vpop.permute.xlu0 %11546  ;;  %v13835_v48 = vld [vmem:[%s15781_s3] ss:$0 sm:$0xff] }
 0x40f   : > { %v4077_v58 = vmax.f32 %v4005_v4, 0.0  ;;  %v3710_v18 = vadd.f32 %v3629_v52, %v2829_v29  ;;  %v4652_v5 = vmul.f32 %v11543_v37, %v4076_v49  ;;  %5700 = vmatpush1.bf16.msra.mxu1 %v11824_v2  ;;  %v13820_v4 = vld [vmem:[%s15782_s4 + $0x8] ss:$12 sps:$4 sm:$0xff]  }
 0x410   : > { %v3628_v59 = vsel %vm3597_vm1, %v3563_v19, %v3564_v42  ;;  %5058 = vmatmul.mubr.bf16.gmra.mrb[208].mxu0 %v13709_v39  ;;  %10355 = vmatprep.subr.bf16.mxu1 %v13820_v4 }
 0x411   : > { %v4653_v53 = vmul.f32 %v11544_v27, %v4077_v58  ;;  %v3927_v0 = vadd.f32 %v13167_v45, %v3710_v18  ;;  %v3711_v25 = vadd.f32 %v3628_v59, %v2833_v56  ;;  %5067 = vmatprep.mubr.bf16.mxu0 %v15842_v60  ;;  %v11549_v58 = vunpack.i.h.bf16 %v11547_v62 }
 0x412   : > { %v11548_v18 = vunpack.i.l.bf16 %v11547_v62 }
 0x413   : > { %v13811_v40 = vpack.c.bf16 %v4653_v53, %v4652_v5  ;;  %v4006_v23 = vadd.f32 %v13500_v11, %v3927_v0  ;;  %v3928_v9 = vadd.f32 %v13171_v47, %v3711_v25  ;;  %v2837_v19 = vpop.f32.mrb[84].mxu0 }
 0x414   : > { %v3565_v45 = vrot.slane %v2837_v19, 7  ;;  %v2839_v29 = vpop.f32.mrb[85].mxu0 }
 0x415   : > { %v4078_v27 = vmax.f32 %v4006_v23, 0.0  ;;  %v4007_v37 = vadd.f32 %v13500_v11, %v3928_v9  ;;  %v2841_v49 = vpop.f32.mrb[86].mxu0  ;;  %10324 = vmatmul.mubr.bf16.gmra.mrb[104].mxu1 %v13811_v40 }
 0x416   : > { %v3627_v47 = vsel %vm3597_vm1, %v3564_v42, %v3565_v45  ;;  %v3566_v52 = vrot.slane %v2841_v49, 7  ;;  %v2843_v56 = vpop.f32.mrb[87].mxu0 }
 0x417   : > { %v4079_v59 = vmax.f32 %v4007_v37, 0.0  ;;  %v3712_v5 = vadd.f32 %v3627_v47, %v2839_v29  ;;  %v4654_v53 = vmul.f32 %v11548_v18, %v4078_v27 }
 0x418   : > { %v3626_v11 = vsel %vm3597_vm1, %v3565_v45, %v3566_v52  ;;  %5068 = vmatmul.mubr.bf16.gmra.mrb[212].mxu0 %v13722_v57 }
 0x419   : > { %v4655_v0 = vmul.f32 %v11549_v58, %v4079_v59  ;;  %v3929_v25 = vadd.f32 %v13175_v3, %v3712_v5  ;;  %v3713_v2 = vadd.f32 %v3626_v11, %v2843_v56  ;;  %5077 = vmatprep.mubr.bf16.mxu0 %v15842_v60  ;;  %v11554_v56 = vunpack.i.h.bf16 %v13454_v7 }
 0x41a   : > { %v11553_v58 = vunpack.i.l.bf16 %v13454_v7 }
 0x41b   : > { %v13830_v42 = vpack.c.bf16 %v4655_v0, %v4654_v53  ;;  %v4008_v23 = vadd.f32 %v13835_v48, %v3929_v25  ;;  %v3930_v9 = vadd.f32 %v13179_v26, %v3713_v2  ;;  %v2847_v19 = vpop.f32.mrb[88].mxu0 }
 0x41c   : > { %v3567_v45 = vrot.slane %v2847_v19, 7  ;;  %v2849_v29 = vpop.f32.mrb[89].mxu0 }
 0x41d   : > { %v4080_v27 = vmax.f32 %v4008_v23, 0.0  ;;  %v4009_v3 = vadd.f32 %v13835_v48, %v3930_v9  ;;  %v2851_v37 = vpop.f32.mrb[90].mxu0  ;;  %10327 = vmatprep.mubr.bf16.mxu1 %v13830_v42 }
 0x41e   : > { %v3625_v49 = vsel %vm3597_vm1, %v3566_v52, %v3567_v45  ;;  %v3568_v62 = vrot.slane %v2851_v37, 7  ;;  %v2853_v47 = vpop.f32.mrb[91].mxu0 }
 0x41f   : > { %v4081_v18 = vmax.f32 %v4009_v3, 0.0  ;;  %v3714_v26 = vadd.f32 %v3625_v49, %v2849_v29  ;;  %v4656_v5 = vmul.f32 %v11553_v58, %v4080_v27  ;;  %v11557_v27 = vpop.permute.xlu0 %11556 }
 0x420   : > { %v3624_v59 = vsel %vm3597_vm1, %v3567_v45, %v3568_v62  ;;  %5078 = vmatmul.mubr.bf16.gmra.mrb[216].mxu0 %v13743_v43  ;;  %v11559_v49 = vunpack.i.h.bf16 %v11557_v27 }
 0x421   : > { %v4657_v11 = vmul.f32 %v11554_v56, %v4081_v18  ;;  %v3931_v53 = vadd.f32 %v13189_v34, %v3714_v26  ;;  %v3715_v0 = vadd.f32 %v3624_v59, %v2853_v47  ;;  %5087 = vmatprep.mubr.bf16.mxu0 %v15842_v60  ;;  %v11558_v47 = vunpack.i.l.bf16 %v11557_v27 }
 0x422   : > { %v11563_v27 = vunpack.i.l.bf16 %v13457_v54 }
 0x423   : > { %v13850_v52 = vpack.c.bf16 %v4657_v11, %v4656_v5  ;;  %v4010_v25 = vadd.f32 %v13835_v48, %v3931_v53  ;;  %v3932_v7 = vadd.f32 %v13193_v30, %v3715_v0  ;;  %v2857_v2 = vpop.f32.mrb[92].mxu0 }
 0x424   : > { %v3569_v23 = vrot.slane %v2857_v2, 7  ;;  %v2859_v9 = vpop.f32.mrb[93].mxu0 }
 0x425   : > { %v4082_v19 = vmax.f32 %v4010_v25, 0.0  ;;  %v4011_v45 = vadd.f32 %v13835_v48, %v3932_v7  ;;  %v2861_v29 = vpop.f32.mrb[94].mxu0  ;;  %10328 = vmatmul.mubr.bf16.gmra.mrb[108].mxu1 %v13850_v52 }
 0x426   : > { %v3623_v34 = vsel %vm3597_vm1, %v3568_v62, %v3569_v23  ;;  %v3570_v3 = vrot.slane %v2861_v29, 7  ;;  %v2863_v37 = vpop.f32.mrb[95].mxu0  ;;  %v11564_v29 = vunpack.i.h.bf16 %v13457_v54 }
 0x427   : > { %v4083_v56 = vmax.f32 %v4011_v45, 0.0  ;;  %v3716_v58 = vadd.f32 %v3623_v34, %v2859_v9  ;;  %v4658_v18 = vmul.f32 %v11558_v47, %v4082_v19 }
 0x428   : > { %v3622_v30 = vsel %vm3597_vm1, %v3569_v23, %v3570_v3  ;;  %5088 = vmatmul.mubr.bf16.gmra.mrb[220].mxu0 %v13756_v14 }
 0x429   : > { %v4659_v26 = vmul.f32 %v11559_v49, %v4083_v56  ;;  %v3933_v59 = vadd.f32 %v13197_v24, %v3716_v58  ;;  %v3717_v5 = vadd.f32 %v3622_v30, %v2863_v37  ;;  %5097 = vmatprep.mubr.bf16.mxu0 %v15842_v60 }
 0x42b   : > { %v13863_v11 = vpack.c.bf16 %v4659_v26, %v4658_v18  ;;  %v4012_v62 = vadd.f32 %v13835_v48, %v3933_v59  ;;  %v3934_v53 = vadd.f32 %v13201_v61, %v3717_v5  ;;  %v2867_v0 = vpop.f32.mrb[96].mxu0 }
 0x42c   : > { %v3571_v25 = vrot.slane %v2867_v0, 7  ;;  %v2869_v7 = vpop.f32.mrb[97].mxu0  ;;  %v11567_v0 = vpop.permute.xlu0 %11566 }
 0x42d   : > { %v4084_v2 = vmax.f32 %v4012_v62, 0.0  ;;  %v4013_v23 = vadd.f32 %v13835_v48, %v3934_v53  ;;  %v2871_v9 = vpop.f32.mrb[98].mxu0  ;;  %10331 = vmatprep.mubr.bf16.mxu1 %v13863_v11 }
 0x42e   : > { %v3621_v24 = vsel %vm3597_vm1, %v3570_v3, %v3571_v25  ;;  %v3572_v19 = vrot.slane %v2871_v9, 7  ;;  %v2873_v45 = vpop.f32.mrb[99].mxu0 }
 0x42f   : > { %v4085_v34 = vmax.f32 %v4013_v23, 0.0  ;;  %v3718_v61 = vadd.f32 %v3621_v24, %v2869_v7  ;;  %v4660_v49 = vmul.f32 %v11563_v27, %v4084_v2  ;;  %v11569_v2 = vunpack.i.h.bf16 %v11567_v0 }
 0x430   : > { %v3620_v37 = vsel %vm3597_vm1, %v3571_v25, %v3572_v19  ;;  %5098 = vmatmul.mubr.bf16.gmra.mrb[224].mxu0 %v13777_v6  ;;  %v11568_v23 = vunpack.i.l.bf16 %v11567_v0 }
 0x431   : > { %v4661_v47 = vmul.f32 %v11564_v29, %v4085_v34  ;;  %v3935_v56 = vadd.f32 %v13211_v16, %v3718_v61  ;;  %v3719_v58 = vadd.f32 %v3620_v37, %v2873_v45  ;;  %5107 = vmatprep.mubr.bf16.mxu0 %v15842_v60 }
 0x433   : > { %v13878_v3 = vpack.c.bf16 %v4661_v47, %v4660_v49  ;;  %v4014_v30 = vadd.f32 %v13835_v48, %v3935_v56  ;;  %v3936_v54 = vadd.f32 %v13215_v51, %v3719_v58  ;;  %v2877_v18 = vpop.f32.mrb[100].mxu0 }
 0x434   : > { %v3573_v26 = vrot.slane %v2877_v18, 7  ;;  %v2879_v59 = vpop.f32.mrb[101].mxu0 }
 0x435   : > { %v4086_v5 = vmax.f32 %v4014_v30, 0.0  ;;  %v4015_v62 = vadd.f32 %v13835_v48, %v3936_v54  ;;  %v2881_v53 = vpop.f32.mrb[102].mxu0  ;;  %10332 = vmatmul.mubr.bf16.gmra.mrb[112].mxu1 %v13878_v3 }
 0x436   : > { %v3619_v16 = vsel %vm3597_vm1, %v3572_v19, %v3573_v26  ;;  %v3574_v25 = vrot.slane %v2881_v53, 7  ;;  %v2883_v7 = vpop.f32.mrb[103].mxu0 }
 0x437   : > { %v4087_v9 = vmax.f32 %v4015_v62, 0.0  ;;  %v3720_v24 = vadd.f32 %v3619_v16, %v2879_v59  ;;  %v4662_v45 = vmul.f32 %v11568_v23, %v4086_v5  ;;  %v11574_v59 = vunpack.i.h.bf16 %v13461_v20 }
 0x438   : > { %v3618_v51 = vsel %vm3597_vm1, %v3573_v26, %v3574_v25  ;;  %5108 = vmatmul.mubr.bf16.gmra.mrb[228].mxu0 %v13790_v44  ;;  %v11573_v5 = vunpack.i.l.bf16 %v13461_v20 }
 0x439   : > { %v4663_v29 = vmul.f32 %v11569_v2, %v4087_v9  ;;  %v3937_v27 = vadd.f32 %v13219_v32, %v3720_v24  ;;  %v3721_v34 = vadd.f32 %v3618_v51, %v2883_v7  ;;  %5117 = vmatprep.mubr.bf16.mxu0 %v15842_v60 }
 0x43b   : > { %v13891_v61 = vpack.c.bf16 %v4663_v29, %v4662_v45  ;;  %v4016_v19 = vadd.f32 %v13835_v48, %v3937_v27  ;;  %v3938_v37 = vadd.f32 %v13223_v63, %v3721_v34  ;;  %v2887_v49 = vpop.f32.mrb[104].mxu0  ;;  %v11577_v34 = vpop.permute.xlu0 %11576 }
 0x43c   : > { %v3575_v47 = vrot.slane %v2887_v49, 7  ;;  %v2889_v56 = vpop.f32.mrb[105].mxu0  ;;  %v11579_v49 = vunpack.i.h.bf16 %v11577_v34 }
 0x43d   : > { %v4088_v58 = vmax.f32 %v4016_v19, 0.0  ;;  %v4017_v30 = vadd.f32 %v13835_v48, %v3938_v37  ;;  %v2891_v54 = vpop.f32.mrb[106].mxu0  ;;  %10335 = vmatprep.mubr.bf16.mxu1 %v13891_v61 }
 0x43e   : > { %v3617_v32 = vsel %vm3597_vm1, %v3574_v25, %v3575_v47  ;;  %v3576_v18 = vrot.slane %v2891_v54, 7  ;;  %v2893_v26 = vpop.f32.mrb[107].mxu0 }
 0x43f   : > { %v4089_v62 = vmax.f32 %v4017_v30, 0.0  ;;  %v3722_v63 = vadd.f32 %v3617_v32, %v2889_v56  ;;  %v4664_v0 = vmul.f32 %v11573_v5, %v4088_v58 }
 0x440   : > { %v3616_v53 = vsel %vm3597_vm1, %v3575_v47, %v3576_v18  ;;  %5118 = vmatmul.mubr.bf16.gmra.mrb[232].mxu0 %v13811_v40  ;;  %v11578_v47 = vunpack.i.l.bf16 %v11577_v34 }
 0x441   : > { %v4665_v16 = vmul.f32 %v11574_v59, %v4089_v62  ;;  %v3939_v7 = vadd.f32 %v13233_v38, %v3722_v63  ;;  %v3723_v2 = vadd.f32 %v3616_v53, %v2893_v26  ;;  %5127 = vmatprep.mubr.bf16.mxu0 %v15842_v60 }
 0x443   : > { %v13906_v25 = vpack.c.bf16 %v4665_v16, %v4664_v0  ;;  %v4018_v23 = vadd.f32 %v13835_v48, %v3939_v7  ;;  %v3940_v20 = vadd.f32 %v13237_v15, %v3723_v2  ;;  %v2897_v9 = vpop.f32.mrb[108].mxu0 }
 0x444   : > { %v3577_v24 = vrot.slane %v2897_v9, 7  ;;  %v2899_v51 = vpop.f32.mrb[109].mxu0  ;;  %v11583_v9 = vunpack.i.l.bf16 %v13465_v17 }
 0x445   : > { %v4090_v45 = vmax.f32 %v4018_v23, 0.0  ;;  %v4019_v29 = vadd.f32 %v13835_v48, %v3940_v20  ;;  %v2901_v27 = vpop.f32.mrb[110].mxu0  ;;  %10336 = vmatmul.mubr.bf16.gmra.mrb[116].mxu1 %v13906_v25  ;;  %v11584_v20 = vunpack.i.h.bf16 %v13465_v17 }
 0x446   : > { %v3615_v38 = vsel %vm3597_vm1, %v3576_v18, %v3577_v24  ;;  %v3578_v19 = vrot.slane %v2901_v27, 7  ;;  %v2903_v37 = vpop.f32.mrb[111].mxu0 }
 0x447   : > { %v4091_v56 = vmax.f32 %v4019_v29, 0.0  ;;  %v3724_v58 = vadd.f32 %v3615_v38, %v2899_v51  ;;  %v4666_v30 = vmul.f32 %v11578_v47, %v4090_v45 }
 0x448   : > { %v3614_v15 = vsel %vm3597_vm1, %v3577_v24, %v3578_v19  ;;  %5128 = vmatmul.mubr.bf16.gmra.mrb[236].mxu0 %v13830_v42 }
 0x449   : > { %v4667_v54 = vmul.f32 %v11579_v49, %v4091_v56  ;;  %v3941_v32 = vadd.f32 %v13241_v21, %v3724_v58  ;;  %v3725_v26 = vadd.f32 %v3614_v15, %v2903_v37  ;;  %5137 = vmatprep.mubr.bf16.mxu0 %v15842_v60 }
 0x44b   : > { %v13919_v59 = vpack.c.bf16 %v4667_v54, %v4666_v30  ;;  %v4020_v18 = vadd.f32 %v13835_v48, %v3941_v32  ;;  %v3942_v5 = vadd.f32 %v13245_v10, %v3725_v26  ;;  %v2907_v62 = vpop.f32.mrb[112].mxu0  ;;  %v11587_v30 = vpop.permute.xlu0 %11586 }
 0x44c   : > { %v3579_v63 = vrot.slane %v2907_v62, 7  ;;  %v2909_v53 = vpop.f32.mrb[113].mxu0  ;;  %v11589_v26 = vunpack.i.h.bf16 %v11587_v30 }
 0x44d   : > { %v4092_v0 = vmax.f32 %v4020_v18, 0.0  ;;  %v4021_v16 = vadd.f32 %v13835_v48, %v3942_v5  ;;  %v2911_v7 = vpop.f32.mrb[114].mxu0  ;;  %10339 = vmatprep.mubr.bf16.mxu1 %v13919_v59  ;;  %v11588_v18 = vunpack.i.l.bf16 %v11587_v30 }
 0x44e   : > { %v3613_v21 = vsel %vm3597_vm1, %v3578_v19, %v3579_v63  ;;  %v3580_v2 = vrot.slane %v2911_v7, 7  ;;  %v2913_v23 = vpop.f32.mrb[115].mxu0 }
 0x44f   : > { %v4093_v24 = vmax.f32 %v4021_v16, 0.0  ;;  %v3726_v10 = vadd.f32 %v3613_v21, %v2909_v53  ;;  %v4668_v45 = vmul.f32 %v11583_v9, %v4092_v0 }
 0x450   : > { %v3612_v51 = vsel %vm3597_vm1, %v3579_v63, %v3580_v2  ;;  %5138 = vmatmul.mubr.bf16.gmra.mrb[240].mxu0 %v13850_v52 }
 0x451   : > { %v4669_v29 = vmul.f32 %v11584_v20, %v4093_v24  ;;  %v3943_v27 = vadd.f32 %v13255_v46, %v3726_v10  ;;  %v3727_v34 = vadd.f32 %v3612_v51, %v2913_v23  ;;  %5147 = vmatprep.mubr.bf16.mxu0 %v15842_v60 }
 0x453   : > { %v13934_v38 = vpack.c.bf16 %v4669_v29, %v4668_v45  ;;  %v4022_v19 = vadd.f32 %v13835_v48, %v3943_v27  ;;  %v3944_v17 = vadd.f32 %v13259_v1, %v3727_v34  ;;  %v2917_v37 = vpop.f32.mrb[116].mxu0  ;;  %v11594_v27 = vunpack.i.h.bf16 %v13468_v8 }
 0x454   : > { %v3581_v49 = vrot.slane %v2917_v37, 7  ;;  %v2919_v47 = vpop.f32.mrb[117].mxu0  ;;  %v11593_v34 = vunpack.i.l.bf16 %v13468_v8 }
 0x455   : > { %v4094_v56 = vmax.f32 %v4022_v19, 0.0  ;;  %v4023_v58 = vadd.f32 %v13835_v48, %v3944_v17  ;;  %v2921_v15 = vpop.f32.mrb[118].mxu0  ;;  %10340 = vmatmul.mubr.bf16.gmra.mrb[120].mxu1 %v13934_v38 }
 0x456   : > { %v3611_v46 = vsel %vm3597_vm1, %v3580_v2, %v3581_v49  ;;  %v3582_v54 = vrot.slane %v2921_v15, 7  ;;  %v2923_v32 = vpop.f32.mrb[119].mxu0 }
 0x457   : > { %v4095_v5 = vmax.f32 %v4023_v58, 0.0  ;;  %v3728_v62 = vadd.f32 %v3611_v46, %v2919_v47  ;;  %v4670_v63 = vmul.f32 %v11588_v18, %v4094_v56 }
 0x458   : > { %v3610_v1 = vsel %vm3597_vm1, %v3581_v49, %v3582_v54  ;;  %5148 = vmatmul.mubr.bf16.gmra.mrb[244].mxu0 %v13863_v11 }
 0x459   : > { %v4671_v53 = vmul.f32 %v11589_v26, %v4095_v5  ;;  %v3945_v0 = vadd.f32 %v13263_v13, %v3728_v62  ;;  %v3729_v16 = vadd.f32 %v3610_v1, %v2923_v32  ;;  %5157 = vmatprep.mubr.bf16.mxu0 %v15842_v60  ;;  %v11597_v5 = vpop.permute.xlu0 %11596 }
 0x45b   : > { %v13947_v7 = vpack.c.bf16 %v4671_v53, %v4670_v63  ;;  %v4024_v21 = vadd.f32 %v13835_v48, %v3945_v0  ;;  %v3946_v2 = vadd.f32 %v13267_v36, %v3729_v16  ;;  %v2927_v23 = vpop.f32.mrb[120].mxu0  ;;  %v11599_v63 = vunpack.i.h.bf16 %v11597_v5 }
 0x45c   : > { %v3583_v20 = vrot.slane %v2927_v23, 7  ;;  %v2929_v9 = vpop.f32.mrb[121].mxu0  ;;  %v11598_v53 = vunpack.i.l.bf16 %v11597_v5  ;;  %v15922_v23 = vld [vmem:[#allocation43_spill] sm:$0xff] }
 0x45d   : > { %v4096_v24 = vmax.f32 %v4024_v21, 0.0  ;;  %v4025_v10 = vadd.f32 %v13835_v48, %v3946_v2  ;;  %v2931_v51 = vpop.f32.mrb[122].mxu0  ;;  %10343 = vmatprep.mubr.bf16.mxu1 %v13947_v7 }
 0x45e   : > { %v3609_v13 = vsel %vm3597_vm1, %v3582_v54, %v3583_v20  ;;  %v3584_v45 = vrot.slane %v2931_v51, 7  ;;  %v2933_v29 = vpop.f32.mrb[123].mxu0  ;;  %v15923_v51 = vld [vmem:[#allocation44_spill] sm:$0xff] }
 0x45f   : > { %v4097_v19 = vmax.f32 %v4025_v10, 0.0  ;;  %v3730_v36 = vadd.f32 %v3609_v13, %v2929_v9  ;;  %v4672_v37 = vmul.f32 %v11593_v34, %v4096_v24 }
 0x460   : > { %v3608_v17 = vsel %vm3597_vm1, %v3583_v20, %v3584_v45  ;;  %5158 = vmatmul.mubr.bf16.gmra.mrb[248].mxu0 %v13878_v3 }
 0x461   : > { %v4673_v49 = vmul.f32 %v11594_v27, %v4097_v19  ;;  %v3947_v47 = vadd.f32 %v13277_v35, %v3730_v36  ;;  %v3731_v56 = vadd.f32 %v3608_v17, %v2933_v29  ;;  %5167 = vmatprep.mubr.bf16.mxu0 %v15842_v60 }
 0x463   : > { %v13962_v58 = vpack.c.bf16 %v4673_v49, %v4672_v37  ;;  %v4026_v15 = vadd.f32 %v13835_v48, %v3947_v47  ;;  %v3948_v8 = vadd.f32 %v13281_v33, %v3731_v56  ;;  %v2937_v30 = vpop.f32.mrb[124].mxu0  ;;  %v15924_v47 = vld [vmem:[#allocation54_spill] sm:$0xff] }
 0x464   : > { %v3585_v46 = vrot.slane %v2937_v30, 7  ;;  %v2939_v54 = vpop.f32.mrb[125].mxu0  ;;  %v11604_v56 = vunpack.i.h.bf16 %v15924_v47 }
 0x465   : > { %v4098_v32 = vmax.f32 %v4026_v15, 0.0  ;;  %v4027_v26 = vadd.f32 %v13835_v48, %v3948_v8  ;;  %v2941_v18 = vpop.f32.mrb[126].mxu0  ;;  %10344 = vmatmul.mubr.bf16.gmra.mrb[124].mxu1 %v13962_v58  ;;  %v11603_v15 = vunpack.i.l.bf16 %v15924_v47  ;;  %v15928_v47 = vld [vmem:[#allocation48_spill] sm:$0xff] }
 0x466   : > { %v3607_v35 = vsel %vm3597_vm1, %v3584_v45, %v3585_v46  ;;  %v3586_v62 = vrot.slane %v2941_v18, 7  ;;  %v2943_v1 = vpop.f32.mrb[127].mxu0 }
 0x467   : > { %v4099_v0 = vmax.f32 %v4027_v26, 0.0  ;;  %v3732_v16 = vadd.f32 %v3607_v35, %v2939_v54  ;;  %v4674_v21 = vmul.f32 %v11598_v53, %v4098_v32  ;;  %v15925_v26 = vld [vmem:[#allocation45_spill] sm:$0xff] }
 0x468   : > { %v3606_v33 = vsel %vm3597_vm1, %v3585_v46, %v3586_v62  ;;  %5168 = vmatmul.mubr.bf16.gmra.mrb[252].mxu0 %v13891_v61 }
 0x469   : > { %v4675_v2 = vmul.f32 %v11599_v63, %v4099_v0  ;;  %v3949_v20 = vadd.f32 %v15922_v23, %v3732_v16  ;;  %v3733_v9 = vadd.f32 %v3606_v33, %v2943_v1  ;;  %5177 = vmatprep.mubr.bf16.mxu0 %v15842_v60  ;;  %v15926_v1 = vld [vmem:[#allocation46_spill] sm:$0xff]  ;;  %v11607_v23 = vpop.permute.xlu0 %11606 }
 0x46b   : > { %v13975_v24 = vpack.c.bf16 %v4675_v2, %v4674_v21  ;;  %v4028_v10 = vadd.f32 %v13835_v48, %v3949_v20  ;;  %v3950_v13 = vadd.f32 %v15923_v51, %v3733_v9  ;;  %v2947_v45 = vpop.f32.mrb[128].mxu0  ;;  %v11609_v51 = vunpack.i.h.bf16 %v11607_v23 }
 0x46c   : > { %v3587_v29 = vrot.slane %v2947_v45, 7  ;;  %v2949_v27 = vpop.f32.mrb[129].mxu0 }
 0x46d   : > { %v4100_v34 = vmax.f32 %v4028_v10, 0.0  ;;  %v4029_v19 = vadd.f32 %v13835_v48, %v3950_v13  ;;  %v2951_v36 = vpop.f32.mrb[130].mxu0  ;;  %10347 = vmatprep.mubr.bf16.mxu1 %v13975_v24  ;;  %v11608_v13 = vunpack.i.l.bf16 %v11607_v23 }
 0x46e   : > { %v3605_v17 = vsel %vm3597_vm1, %v3586_v62, %v3587_v29  ;;  %v3588_v37 = vrot.slane %v2951_v36, 7  ;;  %v2953_v49 = vpop.f32.mrb[131].mxu0  ;;  %v15927_v36 = vld [vmem:[#allocation47_spill] sm:$0xff] }
 0x46f   : > { %v4101_v8 = vmax.f32 %v4029_v19, 0.0  ;;  %v3734_v30 = vadd.f32 %v3605_v17, %v2949_v27  ;;  %v4676_v54 = vmul.f32 %v11603_v15, %v4100_v34 }
 0x470   : > { %v3604_v46 = vsel %vm3597_vm1, %v3587_v29, %v3588_v37  ;;  %5178 = vmatmul.mubr.bf16.gmra.mrb[144].mxu0 %v13906_v25 }
 0x471   : > { %v4677_v32 = vmul.f32 %v11604_v56, %v4101_v8  ;;  %v3951_v18 = vadd.f32 %v15925_v26, %v3734_v30  ;;  %v3735_v5 = vadd.f32 %v3604_v46, %v2953_v49  ;;  %5187 = vmatprep.mubr.bf16.mxu0 %v15842_v60 }
 0x473   : > { %v13990_v35 = vpack.c.bf16 %v4677_v32, %v4676_v54  ;;  %v4030_v62 = vadd.f32 %v13835_v48, %v3951_v18  ;;  %v3952_v63 = vadd.f32 %v15926_v1, %v3735_v5  ;;  %v2957_v53 = vpop.f32.mrb[132].mxu0  ;;  %v14011_v1 = vpop.permute.xlu0 %11616 }
 0x474   : > { %v3589_v0 = vrot.slane %v2957_v53, 7  ;;  %v2959_v16 = vpop.f32.mrb[133].mxu0 }
 0x475   : > { %v4102_v33 = vmax.f32 %v4030_v62, 0.0  ;;  %v4031_v21 = vadd.f32 %v13835_v48, %v3952_v63  ;;  %v2961_v2 = vpop.f32.mrb[134].mxu0  ;;  %10348 = vmatmul.mubr.bf16.gmra.mrb[128].mxu1 %v13990_v35  ;;  %v15929_v63 = vld [vmem:[#allocation56_spill] sm:$0xff] }
 0x476   : > { %v3603_v20 = vsel %vm3597_vm1, %v3588_v37, %v3589_v0  ;;  %v3590_v9 = vrot.slane %v2961_v2, 7  ;;  %v2963_v10 = vpop.f32.mrb[135].mxu0  ;;  %v11614_v53 = vunpack.i.h.bf16 %v15929_v63 }
 0x477   : > { %v4103_v45 = vmax.f32 %v4031_v21, 0.0  ;;  %v3736_v29 = vadd.f32 %v3603_v20, %v2959_v16  ;;  %v4678_v34 = vmul.f32 %v11608_v13, %v4102_v33  ;;  %v15930_v20 = vld [vmem:[#allocation49_spill] sm:$0xff] }
 0x478   : > { %v3602_v27 = vsel %vm3597_vm1, %v3589_v0, %v3590_v9  ;;  %5188 = vmatmul.mubr.bf16.gmra.mrb[148].mxu0 %v13919_v59  ;;  %v11613_v0 = vunpack.i.l.bf16 %v15929_v63 }
 0x479   : > { %v4679_v19 = vmul.f32 %v11609_v51, %v4103_v45  ;;  %v3953_v17 = vadd.f32 %v15927_v36, %v3736_v29  ;;  %v3737_v49 = vadd.f32 %v3602_v27, %v2963_v10  ;;  %5197 = vmatprep.mubr.bf16.mxu0 %v15842_v60  ;;  %v11627_v51 = vpop.permute.xlu0 %11626  ;;  %v15931_v45 = vld [vmem:[#allocation50_spill] sm:$0xff] }
 0x47b   : > { %v4032_v37 = vadd.f32 %v13835_v48, %v3953_v17  ;;  %v3954_v56 = vadd.f32 %v15928_v47, %v3737_v49  ;;  %v2967_v15 = vpop.f32.mrb[136].mxu0  ;;  %v14005_v8 = vpack.c.bf16 %v4679_v19, %v4678_v34  ;;  %v11628_v47 = vunpack.i.l.bf16 %v11627_v51 }
 0x47c   : > { %v3591_v30 = vrot.slane %v2967_v15, 7  ;;  %v2969_v46 = vpop.f32.mrb[137].mxu0 }
 0x47d   : > { %v4104_v54 = vmax.f32 %v4032_v37, 0.0  ;;  %v4033_v32 = vadd.f32 %v13835_v48, %v3954_v56  ;;  %v2971_v26 = vpop.f32.mrb[138].mxu0  ;;  %10351 = vmatprep.mubr.bf16.mxu1 %v14005_v8 }
 0x47e   : > { %v3601_v18 = vsel %vm3597_vm1, %v3590_v9, %v3591_v30  ;;  %v3592_v5 = vrot.slane %v2971_v26, 7  ;;  %v2973_v62 = vpop.f32.mrb[139].mxu0 }
 0x47f   : > { %v4105_v16 = vmax.f32 %v4033_v32, 0.0  ;;  %v3738_v33 = vadd.f32 %v3601_v18, %v2969_v46  ;;  %v4680_v2 = vmul.f32 %v11613_v0, %v4104_v54  ;;  %v15932_v46 = vld [vmem:[#allocation2_spill] sm:$0xff]  ;;  %v11629_v32 = vunpack.i.h.bf16 %v11627_v51  ;;  %v15934_v0 = vld [vmem:[#allocation52_spill] sm:$0xff]  ;;  %v15938_v51 = vld [vmem:[#allocation3_spill] sm:$0xff] }
 0x480   : > { %v3600_v21 = vsel %vm3597_vm1, %v3591_v30, %v3592_v5  ;;  %5198 = vmatmul.mubr.bf16.gmra.mrb[152].mxu0 %v13934_v38  ;;  %v3742_v54 = vrot.slane %v15932_v46, 1 }
 0x481   : > { %v4681_v23 = vmul.f32 %v11614_v53, %v4105_v16  ;;  %v3955_v10 = vadd.f32 %v15930_v20, %v3738_v33  ;;  %v3739_v9 = vadd.f32 %v3600_v21, %v2973_v62  ;;  %5207 = vmatprep.mubr.bf16.mxu0 %v15842_v60  ;;  %v15933_v62 = vld [vmem:[#allocation55_spill] sm:$0xff]  ;;  %v15935_v16 = vrot.slane %v15934_v0, 7  ;;  %v15937_v20 = vld [vmem:[#allocation53_spill] sm:$0xff] }
 0x482   : > { %v3967_v63 = vadd.f32 %v13835_v48, %v15933_v62  ;;  %v11618_v62 = vunpack.i.l.bf16 %v14011_v1 }
 0x483   : > { %v4034_v13 = vadd.f32 %v13835_v48, %v3955_v10  ;;  %v3956_v29 = vadd.f32 %v15931_v45, %v3739_v9  ;;  %v2977_v27 = vpop.f32.mrb[140].mxu0  ;;  %v14022_v34 = vpack.c.bf16 %v4681_v23, %v4680_v2  ;;  %v15936_v2 = vld [vmem:[#allocation51_spill] sm:$0xff] }
 0x484   : > { %v3593_v19 = vrot.slane %v2977_v27, 7  ;;  %v2979_v36 = vpop.f32.mrb[141].mxu0  ;;  %v4039_v46 = vmax.f32 %v3967_v63, 0.0 }
 0x485   : > { %v4106_v17 = vmax.f32 %v4034_v13, 0.0  ;;  %v4035_v49 = vadd.f32 %v13835_v48, %v3956_v29  ;;  %v2981_v37 = vpop.f32.mrb[142].mxu0  ;;  %10352 = vmatmul.mubr.bf16.gmra.mrb[132].mxu1 %v14022_v34  ;;  %v15939_v13 = vrot.slane %v15938_v51, 1  ;;  %v15940_v29 = vld [vmem:[#allocation40_spill] sm:$0xff] }
 0x486   : > { %v3599_v56 = vsel %vm3597_vm1, %v3592_v5, %v3593_v19  ;;  %v3594_v15 = vrot.slane %v2981_v37, 7  ;;  %v2983_v30 = vpop.f32.mrb[143].mxu0  ;;  %5717 = vmatprep.mubr.bf16.mxu1 %v15842_v60  ;;  %v15941_v27 = vrot.slane %v15940_v29, 1 }
 0x487   : > { %v4107_v26 = vmax.f32 %v4035_v49, 0.0  ;;  %v3740_v18 = vadd.f32 %v3599_v56, %v2979_v36  ;;  %v4682_v53 = vmul.f32 %v11628_v47, %v4106_v17  ;;  %v3885_v45 = vsel %vm3814_vm0, %v3742_v54, %v15939_v13 }
 0x488   : > { %v3669_v33 = vsel %vm3597_vm1, %v3594_v15, %v15935_v16  ;;  %v3598_v5 = vsel %vm3597_vm1, %v3593_v19, %v3594_v15  ;;  %5208 = vmatmul.mubr.bf16.gmra.mrb[156].mxu0 %v13947_v7  ;;  %v3886_v19 = vsel %vm3814_vm0, %v15941_v27, %v3742_v54  ;;  %v11619_v56 = vunpack.i.h.bf16 %v14011_v1  ;;  %v11632_v15 = vpop.permute.xlu1 %11631  ;;  %v11828_v1 = vld [vmem:[%s15782_s4 + $0x20] ss:$12 sps:$4 sm:$0xff]   ;;  %v11830_v27 = vld [vmem:[%s15782_s4 + $0x50] ss:$12 sps:$4 sm:$0xff]  }
 0x489   : > { %v4683_v21 = vmul.f32 %v11629_v32, %v4107_v26  ;;  %v3957_v23 = vadd.f32 %v15936_v2, %v3740_v18  ;;  %v3670_v10 = vadd.f32 %v3669_v33, %v15937_v20  ;;  %v3741_v9 = vadd.f32 %v3598_v5, %v2983_v30  ;;  %5217 = vmatprep.mubr.bf16.mxu0 %v15842_v60 }
 0x48a   : > { %v11634_v0 = vunpack.i.h.bf16 %v11632_v15  ;;  %v11633_v16 = vunpack.i.l.bf16 %v11632_v15 }
 0x48b   : > { %v14050_v36 = vpack.c.bf16 %v4683_v21, %v4682_v53  ;;  %v4036_v17 = vadd.f32 %v13835_v48, %v3957_v23  ;;  %v3887_v49 = vadd.f32 %v3885_v45, %v3670_v10  ;;  %v3958_v37 = vadd.f32 %v3886_v19, %v3741_v9  ;;  %v14053_v47 = vpop.f32.mrb[164].mxu0  ;;  %v11829_v45 = vld [vmem:[%s15782_s4 + $0x38] ss:$12 sps:$4 sm:$0xff]  }
 0x48c   : > { %v14056_v30 = vpop.f32.mrb[165].mxu0  ;;  %v4615_v21 = vmul.f32 %v11619_v56, %v4039_v46 }
 0x48d   : > { %v4108_v32 = vmax.f32 %v4036_v17, 0.0  ;;  %v3966_v26 = vadd.f32 %v13835_v48, %v3887_v49  ;;  %v4037_v18 = vadd.f32 %v13835_v48, %v3958_v37  ;;  %v14060_v54 = vpop.f32.mrb[166].mxu0  ;;  %v15943_v17 = vld [vmem:[#allocation12_spill] sm:$0xff] }
 0x48e   : > { %v14063_v53 = vpop.f32.mrb[167].mxu0  ;;  %v11831_v37 = vld [vmem:[%s15782_s4 + $0x68] ss:$12 sps:$4 sm:$0xff]  }
 0x48f   : > { %v4038_v33 = vmax.f32 %v3966_v26, 0.0  ;;  %v4109_v5 = vmax.f32 %v4037_v18, 0.0  ;;  %v4684_v2 = vmul.f32 %v11633_v16, %v4108_v32 }
 0x490   : > { %5218 = vmatmul.mubr.bf16.gmra.mrb[160].mxu0 %v13962_v58 }
 0x491   : > { %v4614_v63 = vmul.f32 %v11618_v62, %v4038_v33  ;;  %v4685_v23 = vmul.f32 %v11634_v0, %v4109_v5  ;;  %5227 = vmatprep.mubr.bf16.mxu0 %v15842_v60  ;;  %v15944_v0 = vld [vmem:[#allocation13_spill] sm:$0xff]  ;;  %v11916_v33 = vld [vmem:[%s12117_s26 + $0x20] sm:$0xff]  }
 0x493   : > { %v14067_v20 = vpack.c.bf16 %v4685_v23, %v4684_v2  ;;  %v14069_v48 = vpop.f32.mrb[168].mxu0  ;;  %v14071_v10 = vpack.c.bf16 %v4615_v21, %v4614_v63  ;;  %v11832_v63 = vld [vmem:[%s15782_s4 + $0x80] ss:$12 sps:$4 sm:$0xff]  }
 0x494   : > { %v14076_v9 = vpop.f32.mrb[169].mxu0 }
 0x495   : > { %15942 = vst [vmem:[#allocation21_spill] sm:$0xff] %v14067_v20  ;;  %v14078_v51 = vpop.f32.mrb[170].mxu0  ;;  %5718 = vmatmul.mubr.bf16.vlgmr.msra.gmra.mrb[136].mxu1 %v14071_v10 }
 0x496   : > { %v14081_v13 = vpop.f32.mrb[171].mxu0  ;;  %10356 = vmatpush3.bf16.msra.mxu1 %v13820_v4  ;;  %5727 = vmatprep.mubr.bf16.mxu1 %v15842_v60 }
 0x497   : > { %10357 = vmatprep.subr.bf16.mxu1 %v11828_v1 }
 0x498   : > { %5228 = vmatmul.mubr.bf16.gmra.mrb[0].mxu0 %v13975_v24 }
 0x499   : > { %5237 = vmatprep.mubr.bf16.mxu0 %v15842_v60 }
 0x49a   : > { %10358 = vmatpush3.bf16.msra.mxu1 %v11828_v1 }
 0x49b   : > { %v14090_v29 = vpop.f32.mrb[172].mxu0  ;;  %10359 = vmatprep.subr.bf16.mxu1 %v11829_v45 }
 0x49c   : > { %v14095_v4 = vpop.f32.mrb[173].mxu0 }
 0x49d   : > { %v14097_v19 = vpop.f32.mrb[174].mxu0  ;;  %5728 = vmatmul.mubr.bf16.gmra.mrb[140].mxu1 %v15943_v17 }
 0x49e   : > { %v14100_v49 = vpop.f32.mrb[175].mxu0  ;;  %5737 = vmatprep.mubr.bf16.mxu1 %v15842_v60  ;;  %10360 = vmatpush3.bf16.msra.mxu1 %v11829_v45 }
 0x49f   : > { %10361 = vmatprep.subr.bf16.mxu1 %v11830_v27 }
 0x4a0   : > { %5238 = vmatmul.mubr.bf16.gmra.mrb[4].mxu0 %v13990_v35 }
 0x4a1   : > { %5247 = vmatprep.mubr.bf16.mxu0 %v15842_v60 }
 0x4a2   : > { %10362 = vmatpush3.bf16.msra.mxu1 %v11830_v27 }
 0x4a3   : > { %v14108_v56 = vpop.f32.mrb[176].mxu0  ;;  %10363 = vmatprep.subr.bf16.mxu1 %v11831_v37 }
 0x4a4   : > { %v14110_v15 = vpop.f32.mrb[177].mxu0 }
 0x4a5   : > { %v14112_v46 = vpop.f32.mrb[178].mxu0  ;;  %5738 = vmatmul.mubr.bf16.gmra.mrb[144].mxu1 %v13526_v31 }
 0x4a6   : > { %v14115_v32 = vpop.f32.mrb[179].mxu0  ;;  %5747 = vmatprep.mubr.bf16.mxu1 %v15842_v60  ;;  %10364 = vmatpush3.bf16.msra.mxu1 %v11831_v37  ;;  %v15953_v37 = vld [vmem:[#allocation41_spill] sm:$0xff] }
 0x4a7   : > { %10365 = vmatprep.subr.bf16.mxu1 %v11832_v63 }
 0x4a8   : > { %5248 = vmatmul.mubr.bf16.gmra.mrb[8].mxu0 %v14005_v8 }
 0x4a9   : > { %5257 = vmatprep.mubr.bf16.mxu0 %v15842_v60 }
 0x4aa   : > { %10366 = vmatpush3.bf16.msra.mxu1 %v11832_v63 }
 0x4ab   : > { %v14120_v26 = vpop.f32.mrb[180].mxu0 }
 0x4ac   : > { %v14122_v18 = vpop.f32.mrb[181].mxu0 }
 0x4ad   : > { %v14124_v62 = vpop.f32.mrb[182].mxu0  ;;  %5748 = vmatmul.mubr.bf16.gmra.mrb[148].mxu1 %v15944_v0 }
 0x4ae   : > { %v14127_v16 = vpop.f32.mrb[183].mxu0  ;;  %5757 = vmatprep.mubr.bf16.mxu1 %v15842_v60 }
 0x4af   : > { %15945 = vst [vmem:[#allocation20_spill] sm:$0xff] %v14127_v16 }
 0x4b0   : > { %5258 = vmatmul.mubr.bf16.gmra.mrb[12].mxu0 %v14022_v34 }
 0x4b1   : > { %10531 = vmatprep.mubr.bf16.mxu0 %v11916_v33 }
 0x4b3   : > { %v14132_v5 = vpop.f32.mrb[184].mxu0 }
 0x4b4   : > { %15946 = vst [vmem:[#allocation19_spill] sm:$0xff] %v14132_v5  ;;  %v14134_v21 = vpop.f32.mrb[185].mxu0 }
 0x4b5   : > { %15947 = vst [vmem:[#allocation24_spill] sm:$0xff] %v14134_v21  ;;  %v14136_v2 = vpop.f32.mrb[186].mxu0  ;;  %5758 = vmatmul.mubr.bf16.gmra.mrb[152].mxu1 %v13552_v41 }
 0x4b6   : > { %15948 = vst [vmem:[#allocation29_spill] sm:$0xff] %v14136_v2  ;;  %v14142_v23 = vpop.f32.mrb[187].mxu0  ;;  %5767 = vmatprep.mubr.bf16.mxu1 %v15842_v60 }
 0x4b7   : > { %15949 = vst [vmem:[#allocation28_spill] sm:$0xff] %v14142_v23 }
 0x4bb   : > { %v14145_v1 = vpop.f32.mrb[188].mxu0 }
 0x4bc   : > { %15950 = vst [vmem:[#allocation27_spill] sm:$0xff] %v14145_v1  ;;  %v14147_v45 = vpop.f32.mrb[189].mxu0 }
 0x4bd   : > { %15951 = vst [vmem:[#allocation35_spill] sm:$0xff] %v14147_v45  ;;  %v14149_v27 = vpop.f32.mrb[190].mxu0  ;;  %5768 = vmatmul.mubr.bf16.gmra.mrb[156].mxu1 %v15953_v37 }
 0x4be   : > { %15952 = vst [vmem:[#allocation36_spill] sm:$0xff] %v14149_v27  ;;  %v14152_v33 = vpop.f32.mrb[191].mxu0  ;;  %5777 = vmatprep.mubr.bf16.mxu1 %v15842_v60 }
 0x4bf   : > { %15954 = vst [vmem:[#allocation37_spill] sm:$0xff] %v14152_v33  ;;  %v15962_v33 = vld [vmem:[#allocation11_spill] sm:$0xff] }
 0x4c3   : > { %v14155_v2 = vpop.f32.mrb[192].mxu0 }
 0x4c4   : > { %15955 = vst [vmem:[#allocation38_spill] sm:$0xff] %v14155_v2  ;;  %v14157_v21 = vpop.f32.mrb[193].mxu0 }
 0x4c5   : > { %15956 = vst [vmem:[#allocation34_spill] sm:$0xff] %v14157_v21  ;;  %v14159_v23 = vpop.f32.mrb[194].mxu0  ;;  %5778 = vmatmul.mubr.bf16.gmra.mrb[160].mxu1 %v13586_v28 }
 0x4c6   : > { %15957 = vst [vmem:[#allocation6_spill] sm:$0xff] %v14159_v23  ;;  %v14162_v63 = vpop.f32.mrb[195].mxu0  ;;  %5787 = vmatprep.mubr.bf16.mxu1 %v15842_v60 }
 0x4c7   : > { %15958 = vst [vmem:[#allocation5_spill] sm:$0xff] %v14162_v63 }
 0x4cb   : > { %v14165_v45 = vpop.f32.mrb[196].mxu0 }
 0x4cc   : > { %15959 = vst [vmem:[#allocation4_spill] sm:$0xff] %v14165_v45  ;;  %v14167_v27 = vpop.f32.mrb[197].mxu0 }
 0x4cd   : > { %15960 = vst [vmem:[#allocation7_spill] sm:$0xff] %v14167_v27  ;;  %v14169_v1 = vpop.f32.mrb[198].mxu0  ;;  %5788 = vmatmul.mubr.bf16.gmra.mrb[164].mxu1 %v15962_v33  ;;  %v11833_v27 = vld [vmem:[%s15782_s4 + $0x98] ss:$12 sps:$4 sm:$0xff]  }
 0x4ce   : > { %15961 = vst [vmem:[#allocation10_spill] sm:$0xff] %v14169_v1  ;;  %v14172_v5 = vpop.f32.mrb[199].mxu0  ;;  %5797 = vmatprep.mubr.bf16.mxu1 %v15842_v60  ;;  %10367 = vmatprep.subr.bf16.mxu1 %v11833_v27 }
 0x4cf   : > { %15963 = vst [vmem:[#allocation9_spill] sm:$0xff] %v14172_v5  ;;  %10368 = vmatpush3.bf16.msra.mxu1 %v11833_v27 }
 0x4d3   : > { %v14175_v21 = vpop.f32.mrb[200].mxu0 }
 0x4d4   : > { %15964 = vst [vmem:[#allocation8_spill] sm:$0xff] %v14175_v21  ;;  %v14177_v23 = vpop.f32.mrb[201].mxu0 }
 0x4d5   : > { %15965 = vst [vmem:[#allocation14_spill] sm:$0xff] %v14177_v23  ;;  %v14179_v2 = vpop.f32.mrb[202].mxu0  ;;  %5798 = vmatmul.mubr.bf16.gmra.mrb[168].mxu1 %v13620_v55  ;;  %v15971_v23 = vld [vmem:[#allocation16_spill] sm:$0xff] }
 0x4d6   : > { %15966 = vst [vmem:[#allocation18_spill] sm:$0xff] %v14179_v2  ;;  %v14185_v45 = vpop.f32.mrb[203].mxu0  ;;  %5807 = vmatprep.mubr.bf16.mxu1 %v15842_v60 }
 0x4d7   : > { %15967 = vst [vmem:[#allocation17_spill] sm:$0xff] %v14185_v45 }
 0x4db   : > { %v14188_v5 = vpop.f32.mrb[204].mxu0 }
 0x4dc   : > { %15968 = vst [vmem:[#allocation15_spill] sm:$0xff] %v14188_v5  ;;  %v14190_v1 = vpop.f32.mrb[205].mxu0 }
 0x4dd   : > { %15969 = vst [vmem:[#allocation22_spill] sm:$0xff] %v14190_v1  ;;  %v14192_v21 = vpop.f32.mrb[206].mxu0  ;;  %5808 = vmatmul.mubr.bf16.gmra.mrb[172].mxu1 %v15971_v23 }
 0x4de   : > { %15970 = vst [vmem:[#allocation26_spill] sm:$0xff] %v14192_v21  ;;  %v14195_v2 = vpop.f32.mrb[207].mxu0  ;;  %5817 = vmatprep.mubr.bf16.mxu1 %v15842_v60 }
 0x4df   : > { %15972 = vst [vmem:[#allocation25_spill] sm:$0xff] %v14195_v2  ;;  %v15980_v2 = vld [vmem:[#allocation42_spill] sm:$0xff] }
 0x4e3   : > { %v14198_v63 = vpop.f32.mrb[208].mxu0 }
 0x4e4   : > { %15973 = vst [vmem:[#allocation23_spill] sm:$0xff] %v14198_v63  ;;  %v14200_v20 = vpop.f32.mrb[209].mxu0 }
 0x4e5   : > { %15974 = vst [vmem:[#allocation30_spill] sm:$0xff] %v14200_v20  ;;  %v14202_v45 = vpop.f32.mrb[210].mxu0  ;;  %5818 = vmatmul.mubr.bf16.gmra.mrb[176].mxu1 %v13654_v12 }
 0x4e6   : > { %15975 = vst [vmem:[#allocation33_spill] sm:$0xff] %v14202_v45  ;;  %v14205_v27 = vpop.f32.mrb[211].mxu0  ;;  %5827 = vmatprep.mubr.bf16.mxu1 %v15842_v60 }
 0x4e7   : > { %15976 = vst [vmem:[#allocation32_spill] sm:$0xff] %v14205_v27 }
 0x4eb   : > { %v14208_v1 = vpop.f32.mrb[212].mxu0 }
 0x4ec   : > { %15977 = vst [vmem:[#allocation31_spill] sm:$0xff] %v14208_v1  ;;  %v14210_v21 = vpop.f32.mrb[213].mxu0 }
 0x4ed   : > { %15978 = vst [vmem:[#allocation39_spill] sm:$0xff] %v14210_v21  ;;  %v14212_v5 = vpop.f32.mrb[214].mxu0  ;;  %5828 = vmatmul.mubr.bf16.gmra.mrb[180].mxu1 %v15980_v2  ;;  %v11834_v21 = vld [vmem:[%s15782_s4 + $0xb0] ss:$12 sps:$4 sm:$0xff]  }
 0x4ee   : > { %15979 = vst [vmem:[#allocation43_spill] sm:$0xff] %v14212_v5  ;;  %v14215_v16 = vpop.f32.mrb[215].mxu0  ;;  %5837 = vmatprep.mubr.bf16.mxu1 %v15842_v60  ;;  %10369 = vmatprep.subr.bf16.mxu1 %v11834_v21 }
 0x4ef   : > { %15981 = vst [vmem:[#allocation44_spill] sm:$0xff] %v14215_v16  ;;  %10370 = vmatpush3.bf16.msra.mxu1 %v11834_v21 }
 0x4f3   : > { %v14218_v20 = vpop.f32.mrb[216].mxu0 }
 0x4f4   : > { %15982 = vst [vmem:[#allocation54_spill] sm:$0xff] %v14218_v20  ;;  %v14220_v45 = vpop.f32.mrb[217].mxu0 }
 0x4f5   : > { %15983 = vst [vmem:[#allocation45_spill] sm:$0xff] %v14220_v45  ;;  %v14222_v63 = vpop.f32.mrb[218].mxu0  ;;  %5838 = vmatmul.mubr.bf16.gmra.mrb[184].mxu1 %v13688_v50 }
 0x4f6   : > { %15984 = vst [vmem:[#allocation46_spill] sm:$0xff] %v14222_v63  ;;  %v14228_v1 = vpop.f32.mrb[219].mxu0  ;;  %5847 = vmatprep.mubr.bf16.mxu1 %v15842_v60 }
 0x4f7   : > { %15985 = vst [vmem:[#allocation47_spill] sm:$0xff] %v14228_v1 }
 0x4fb   : > { %v14231_v16 = vpop.f32.mrb[220].mxu0 }
 0x4fc   : > { %15986 = vst [vmem:[#allocation48_spill] sm:$0xff] %v14231_v16  ;;  %v14233_v5 = vpop.f32.mrb[221].mxu0 }
 0x4fd   : > { %15987 = vst [vmem:[#allocation56_spill] sm:$0xff] %v14233_v5  ;;  %v14235_v20 = vpop.f32.mrb[222].mxu0  ;;  %5848 = vmatmul.mubr.bf16.gmra.mrb[188].mxu1 %v13709_v39 }
 0x4fe   : > { %15988 = vst [vmem:[#allocation49_spill] sm:$0xff] %v14235_v20  ;;  %v14238_v63 = vpop.f32.mrb[223].mxu0  ;;  %5857 = vmatprep.mubr.bf16.mxu1 %v15842_v60 }
 0x4ff   : > { %15989 = vst [vmem:[#allocation50_spill] sm:$0xff] %v14238_v63 }
 0x503   : > { %v14241_v45 = vpop.f32.mrb[224].mxu0 }
 0x504   : > { %15990 = vst [vmem:[#allocation2_spill] sm:$0xff] %v14241_v45  ;;  %v14243_v27 = vpop.f32.mrb[225].mxu0 }
 0x505   : > { %15991 = vst [vmem:[#allocation55_spill] sm:$0xff] %v14243_v27  ;;  %v14245_v1 = vpop.f32.mrb[226].mxu0  ;;  %5858 = vmatmul.mubr.bf16.gmra.mrb[192].mxu1 %v13722_v57 }
 0x506   : > { %15992 = vst [vmem:[#allocation52_spill] sm:$0xff] %v14245_v1  ;;  %v14248_v21 = vpop.f32.mrb[227].mxu0  ;;  %5867 = vmatprep.mubr.bf16.mxu1 %v15842_v60 }
 0x507   : > { %15993 = vst [vmem:[#allocation51_spill] sm:$0xff] %v14248_v21 }
 0x50b   : > { %v14251_v5 = vpop.f32.mrb[228].mxu0 }
 0x50c   : > { %15994 = vst [vmem:[#allocation53_spill] sm:$0xff] %v14251_v5  ;;  %v14253_v20 = vpop.f32.mrb[229].mxu0 }
 0x50d   : > { %15995 = vst [vmem:[#allocation3_spill] sm:$0xff] %v14253_v20  ;;  %v14255_v16 = vpop.f32.mrb[230].mxu0  ;;  %5868 = vmatmul.mubr.bf16.gmra.mrb[196].mxu1 %v13743_v43  ;;  %v11837_v20 = vld [vmem:[%s15782_s4 + $0x184] ss:$12 sps:$4 sm:$0xff]  }
 0x50e   : > { %15996 = vst [vmem:[#allocation40_spill] sm:$0xff] %v14255_v16  ;;  %v14258_v63 = vpop.f32.mrb[231].mxu0  ;;  %5877 = vmatprep.mubr.bf16.mxu1 %v15842_v60  ;;  %6488 = vmatprep.subr.bf16.mxu1 %v11837_v20 }
 0x50f   : > { %15997 = vst [vmem:[#allocation12_spill] sm:$0xff] %v14258_v63 }
 0x513   : > { %v14261_v27 = vpop.f32.mrb[232].mxu0 }
 0x514   : > { %15998 = vst [vmem:[#allocation13_spill] sm:$0xff] %v14261_v27  ;;  %v14263_v1 = vpop.f32.mrb[233].mxu0 }
 0x515   : > { %15999 = vst [vmem:[#allocation41_spill] sm:$0xff] %v14263_v1  ;;  %v14265_v45 = vpop.f32.mrb[234].mxu0  ;;  %5878 = vmatmul.mubr.bf16.gmra.mrb[200].mxu1 %v13756_v14 }
 0x516   : > { %16000 = vst [vmem:[#allocation11_spill] sm:$0xff] %v14265_v45  ;;  %v14271_v5 = vpop.f32.mrb[235].mxu0  ;;  %5887 = vmatprep.mubr.bf16.mxu1 %v15842_v60 }
 0x517   : > { %16001 = vst [vmem:[#allocation16_spill] sm:$0xff] %v14271_v5 }
 0x51b   : > { %v14274_v63 = vpop.f32.mrb[236].mxu0 }
 0x51c   : > { %16002 = vst [vmem:[#allocation42_spill] sm:$0xff] %v14274_v63  ;;  %v14276_v16 = vpop.f32.mrb[237].mxu0 }
 0x51d   : > { %16003 = vst [vmem:[#allocation57_spill] sm:$0xff] %v14276_v16  ;;  %v14278_v27 = vpop.f32.mrb[238].mxu0  ;;  %5888 = vmatmul.mubr.bf16.gmra.mrb[204].mxu1 %v13777_v6 }
 0x51e   : > { %16004 = vst [vmem:[#allocation58_spill] sm:$0xff] %v14278_v27  ;;  %v14281_v45 = vpop.f32.mrb[239].mxu0  ;;  %5897 = vmatprep.mubr.bf16.mxu1 %v15842_v60 }
 0x51f   : > { %16005 = vst [vmem:[#allocation59_spill] sm:$0xff] %v14281_v45 }
 0x523   : > { %v14284_v1 = vpop.f32.mrb[240].mxu0 }
 0x524   : > { %16006 = vst [vmem:[#allocation60_spill] sm:$0xff] %v14284_v1  ;;  %v14286_v21 = vpop.f32.mrb[241].mxu0 }
 0x525   : > { %16007 = vst [vmem:[#allocation61_spill] sm:$0xff] %v14286_v21  ;;  %v14288_v5 = vpop.f32.mrb[242].mxu0  ;;  %5898 = vmatmul.mubr.bf16.gmra.mrb[208].mxu1 %v13790_v44 }
 0x526   : > { %16008 = vst [vmem:[#allocation62_spill] sm:$0xff] %v14288_v5  ;;  %v14291_v20 = vpop.f32.mrb[243].mxu0  ;;  %5907 = vmatprep.mubr.bf16.mxu1 %v15842_v60 }
 0x527   : > { %16009 = vst [vmem:[#allocation63_spill] sm:$0xff] %v14291_v20 }
 0x52b   : > { %v14294_v16 = vpop.f32.mrb[244].mxu0 }
 0x52c   : > { %16010 = vst [vmem:[#allocation64_spill] sm:$0xff] %v14294_v16  ;;  %v14296_v27 = vpop.f32.mrb[245].mxu0 }
 0x52d   : > { %16011 = vst [vmem:[#allocation65_spill] sm:$0xff] %v14296_v27  ;;  %v14298_v63 = vpop.f32.mrb[246].mxu0  ;;  %5908 = vmatmul.mubr.bf16.gmra.mrb[212].mxu1 %v13811_v40 }
 0x52e   : > { %16012 = vst [vmem:[#allocation66_spill] sm:$0xff] %v14298_v63  ;;  %v14301_v45 = vpop.f32.mrb[247].mxu0  ;;  %5917 = vmatprep.mubr.bf16.mxu1 %v15842_v60 }
 0x52f   : > { %16013 = vst [vmem:[#allocation67_spill] sm:$0xff] %v14301_v45 }
 0x533   : > { %v14304_v21 = vpop.f32.mrb[248].mxu0 }
 0x534   : > { %16014 = vst [vmem:[#allocation68_spill] sm:$0xff] %v14304_v21  ;;  %v14306_v5 = vpop.f32.mrb[249].mxu0 }
 0x535   : > { %16015 = vst [vmem:[#allocation69_spill] sm:$0xff] %v14306_v5  ;;  %v14308_v1 = vpop.f32.mrb[250].mxu0  ;;  %5918 = vmatmul.mubr.bf16.gmra.mrb[216].mxu1 %v13830_v42 }
 0x536   : > { %16016 = vst [vmem:[#allocation70_spill] sm:$0xff] %v14308_v1  ;;  %v14311_v20 = vpop.f32.mrb[251].mxu0  ;;  %5927 = vmatprep.mubr.bf16.mxu1 %v15842_v60 }
 0x537   : > { %16017 = vst [vmem:[#allocation71_spill] sm:$0xff] %v14311_v20 }
 0x53b   : > { %v14314_v27 = vpop.f32.mrb[252].mxu0 }
 0x53c   : > { %16018 = vst [vmem:[#allocation72_spill] sm:$0xff] %v14314_v27  ;;  %v14316_v63 = vpop.f32.mrb[253].mxu0 }
 0x53d   : > { %16019 = vst [vmem:[#allocation73_spill] sm:$0xff] %v14316_v63  ;;  %v14318_v16 = vpop.f32.mrb[254].mxu0  ;;  %5928 = vmatmul.mubr.bf16.gmra.mrb[220].mxu1 %v13850_v52 }
 0x53e   : > { %16020 = vst [vmem:[#allocation74_spill] sm:$0xff] %v14318_v16  ;;  %v14321_v45 = vpop.f32.mrb[255].mxu0  ;;  %5937 = vmatprep.mubr.bf16.mxu1 %v15842_v60 }
 0x53f   : > { %16021 = vst [vmem:[#allocation75_spill] sm:$0xff] %v14321_v45 }
 0x543   : > { %v14324_v5 = vpop.f32.mrb[144].mxu0 }
 0x544   : > { %16022 = vst [vmem:[#allocation76_spill] sm:$0xff] %v14324_v5  ;;  %v14326_v1 = vpop.f32.mrb[145].mxu0 }
 0x545   : > { %16023 = vst [vmem:[#allocation77_spill] sm:$0xff] %v14326_v1  ;;  %v14328_v21 = vpop.f32.mrb[146].mxu0  ;;  %5938 = vmatmul.mubr.bf16.gmra.mrb[224].mxu1 %v13863_v11 }
 0x546   : > { %16024 = vst [vmem:[#allocation78_spill] sm:$0xff] %v14328_v21  ;;  %v14331_v20 = vpop.f32.mrb[147].mxu0  ;;  %5947 = vmatprep.mubr.bf16.mxu1 %v15842_v60 }
 0x547   : > { %16025 = vst [vmem:[#allocation79_spill] sm:$0xff] %v14331_v20 }
 0x54b   : > { %v14334_v63 = vpop.f32.mrb[148].mxu0 }
 0x54c   : > { %16026 = vst [vmem:[#allocation80_spill] sm:$0xff] %v14334_v63  ;;  %v14336_v16 = vpop.f32.mrb[149].mxu0 }
 0x54d   : > { %16027 = vst [vmem:[#allocation81_spill] sm:$0xff] %v14336_v16  ;;  %v14338_v27 = vpop.f32.mrb[150].mxu0  ;;  %5948 = vmatmul.mubr.bf16.gmra.mrb[228].mxu1 %v13878_v3 }
 0x54e   : > { %16028 = vst [vmem:[#allocation82_spill] sm:$0xff] %v14338_v27  ;;  %v14341_v45 = vpop.f32.mrb[151].mxu0  ;;  %5957 = vmatprep.mubr.bf16.mxu1 %v15842_v60 }
 0x54f   : > { %16029 = vst [vmem:[#allocation83_spill] sm:$0xff] %v14341_v45 }
 0x553   : > { %v14344_v1 = vpop.f32.mrb[152].mxu0 }
 0x554   : > { %16030 = vst [vmem:[#allocation84_spill] sm:$0xff] %v14344_v1  ;;  %v14346_v21 = vpop.f32.mrb[153].mxu0 }
 0x555   : > { %16031 = vst [vmem:[#allocation85_spill] sm:$0xff] %v14346_v21  ;;  %v14348_v5 = vpop.f32.mrb[154].mxu0  ;;  %5958 = vmatmul.mubr.bf16.gmra.mrb[232].mxu1 %v13891_v61 }
 0x556   : > { %16032 = vst [vmem:[#allocation86_spill] sm:$0xff] %v14348_v5  ;;  %v14351_v20 = vpop.f32.mrb[155].mxu0  ;;  %5967 = vmatprep.mubr.bf16.mxu1 %v15842_v60 }
 0x557   : > { %16033 = vst [vmem:[#allocation87_spill] sm:$0xff] %v14351_v20 }
 0x55b   : > { %v14354_v16 = vpop.f32.mrb[156].mxu0 }
 0x55c   : > { %16034 = vst [vmem:[#allocation88_spill] sm:$0xff] %v14354_v16  ;;  %v14356_v27 = vpop.f32.mrb[157].mxu0 }
 0x55d   : > { %16035 = vst [vmem:[#allocation89_spill] sm:$0xff] %v14356_v27  ;;  %v14358_v63 = vpop.f32.mrb[158].mxu0  ;;  %5968 = vmatmul.mubr.bf16.gmra.mrb[236].mxu1 %v13906_v25 }
 0x55e   : > { %16036 = vst [vmem:[#allocation90_spill] sm:$0xff] %v14358_v63  ;;  %v14361_v45 = vpop.f32.mrb[159].mxu0  ;;  %5977 = vmatprep.mubr.bf16.mxu1 %v15842_v60 }
 0x55f   : > { %16037 = vst [vmem:[#allocation91_spill] sm:$0xff] %v14361_v45 }
 0x563   : > { %v14364_v21 = vpop.f32.mrb[160].mxu0 }
 0x564   : > { %16038 = vst [vmem:[#allocation92_spill] sm:$0xff] %v14364_v21  ;;  %v14366_v5 = vpop.f32.mrb[161].mxu0 }
 0x565   : > { %16039 = vst [vmem:[#allocation93_spill] sm:$0xff] %v14366_v5  ;;  %v14368_v1 = vpop.f32.mrb[162].mxu0  ;;  %5978 = vmatmul.mubr.bf16.gmra.mrb[240].mxu1 %v13919_v59 }
 0x566   : > { %16040 = vst [vmem:[#allocation94_spill] sm:$0xff] %v14368_v1  ;;  %v14371_v20 = vpop.f32.mrb[163].mxu0  ;;  %5987 = vmatprep.mubr.bf16.mxu1 %v15842_v60 }
 0x567   : > { %16041 = vst [vmem:[#allocation95_spill] sm:$0xff] %v14371_v20 }
 0x56b   : > { %v14374_v27 = vpop.f32.mrb[0].mxu0 }
 0x56c   : > { %16042 = vst [vmem:[#allocation96_spill] sm:$0xff] %v14374_v27  ;;  %v14376_v63 = vpop.f32.mrb[1].mxu0 }
 0x56d   : > { %16043 = vst [vmem:[#allocation97_spill] sm:$0xff] %v14376_v63  ;;  %v14378_v16 = vpop.f32.mrb[2].mxu0  ;;  %5988 = vmatmul.mubr.bf16.gmra.mrb[244].mxu1 %v13934_v38 }
 0x56e   : > { %16044 = vst [vmem:[#allocation98_spill] sm:$0xff] %v14378_v16  ;;  %v14381_v45 = vpop.f32.mrb[3].mxu0  ;;  %5997 = vmatprep.mubr.bf16.mxu1 %v15842_v60 }
 0x56f   : > { %16045 = vst [vmem:[#allocation99_spill] sm:$0xff] %v14381_v45 }
 0x573   : > { %v14384_v5 = vpop.f32.mrb[4].mxu0 }
 0x574   : > { %16046 = vst [vmem:[#allocation100_spill] sm:$0xff] %v14384_v5  ;;  %v14386_v1 = vpop.f32.mrb[5].mxu0 }
 0x575   : > { %16047 = vst [vmem:[#allocation101_spill] sm:$0xff] %v14386_v1  ;;  %v14388_v21 = vpop.f32.mrb[6].mxu0  ;;  %5998 = vmatmul.mubr.bf16.gmra.mrb[248].mxu1 %v13947_v7 }
 0x576   : > { %16048 = vst [vmem:[#allocation102_spill] sm:$0xff] %v14388_v21  ;;  %v14391_v20 = vpop.f32.mrb[7].mxu0  ;;  %6007 = vmatprep.mubr.bf16.mxu1 %v15842_v60 }
 0x577   : > { %16049 = vst [vmem:[#allocation103_spill] sm:$0xff] %v14391_v20 }
 0x57b   : > { %v14394_v63 = vpop.f32.mrb[8].mxu0 }
 0x57c   : > { %16050 = vst [vmem:[#allocation104_spill] sm:$0xff] %v14394_v63  ;;  %v14396_v16 = vpop.f32.mrb[9].mxu0 }
 0x57d   : > { %16051 = vst [vmem:[#allocation105_spill] sm:$0xff] %v14396_v16  ;;  %v14398_v27 = vpop.f32.mrb[10].mxu0  ;;  %6008 = vmatmul.mubr.bf16.gmra.mrb[252].mxu1 %v13962_v58 }
 0x57e   : > { %16052 = vst [vmem:[#allocation106_spill] sm:$0xff] %v14398_v27  ;;  %v14401_v45 = vpop.f32.mrb[11].mxu0  ;;  %6017 = vmatprep.mubr.bf16.mxu1 %v15842_v60 }
 0x57f   : > { %16053 = vst [vmem:[#allocation107_spill] sm:$0xff] %v14401_v45  ;;  %v11835_v45 = vld [vmem:[%s15782_s4 + $0x180] ss:$12 sps:$4 sm:$0xff]  }
 0x583   : > { %v14404_v1 = vpop.f32.mrb[12].mxu0 }
 0x584   : > { %16054 = vst [vmem:[#allocation108_spill] sm:$0xff] %v14404_v1  ;;  %v14406_v21 = vpop.f32.mrb[13].mxu0 }
 0x585   : > { %16055 = vst [vmem:[#allocation109_spill] sm:$0xff] %v14406_v21  ;;  %v14408_v5 = vpop.f32.mrb[14].mxu0  ;;  %6018 = vmatmul.mubr.bf16.gmra.mrb[52].mxu1 %v13975_v24  ;;  %v11840_v21 = vld [vmem:[%s15782_s4 + $0x19c] ss:$12 sps:$4 sm:$0xff]  }
 0x586   : > { %16056 = vst [vmem:[#allocation110_spill] sm:$0xff] %v14408_v5  ;;  %v14411_v20 = vpop.f32.mrb[15].mxu0  ;;  %6027 = vmatprep.mubr.bf16.mxu1 %v15842_v60  ;;  %v11843_v5 = vld [vmem:[%s15782_s4 + $0x1b4] ss:$12 sps:$4 sm:$0xff]  }
 0x587   : > { %16057 = vst [vmem:[#allocation111_spill] sm:$0xff] %v14411_v20  ;;  %v11838_v20 = vld [vmem:[%s15782_s4 + $0x198] ss:$12 sps:$4 sm:$0xff]  }
 0x58d   : > { %6028 = vmatmul.mubr.bf16.gmra.mrb[56].mxu1 %v13990_v35 }
 0x58e   : > { %10371 = vmatprep.mubr.bf16.mxu1 %v14071_v10  ;;  %v11860_v10 = vld [vmem:[%s15784_s6] sm:$0xff]  }
 0x58f   : > { %10515 = vmatprep.subr.bf16.mxu0 %v11860_v10 }
 0x590   : > { %10516 = vmatpush3.bf16.msra.mxu0 %v11860_v10  ;;  %v11855_v10 = vld [vmem:[%s15782_s4 + $0x214] ss:$12 sps:$4 sm:$0xff]  }
 0x595   : > { %10372 = vmatmul.mubr.bf16.vlgmr.msra.gmra.mrb[72].mxu1 %v15943_v17  ;;  %v11846_v17 = vld [vmem:[%s15782_s4 + $0x1cc] ss:$12 sps:$4 sm:$0xff]  }
 0x596   : > { %10375 = vmatprep.mubr.bf16.mxu1 %v13526_v31  ;;  %6489 = vmatpush1.bf16.msra.mxu1 %v11835_v45  ;;  %v11841_v31 = vld [vmem:[%s15782_s4 + $0x1b0] ss:$12 sps:$4 sm:$0xff]   ;;  %v11844_v45 = vld [vmem:[%s15782_s4 + $0x1c8] ss:$12 sps:$4 sm:$0xff]  }
 0x597   : > { %6490 = vmatprep.subr.bf16.mxu1 %v11840_v21  ;;  %v11849_v21 = vld [vmem:[%s15782_s4 + $0x1e4] ss:$12 sps:$4 sm:$0xff]  }
 0x59a   : > { %6491 = vmatpush1.bf16.msra.mxu1 %v11838_v20  ;;  %v11850_v20 = vld [vmem:[%s15782_s4 + $0x1f8] ss:$12 sps:$4 sm:$0xff]  }
 0x59b   : > { %6492 = vmatprep.subr.bf16.mxu1 %v11843_v5  ;;  %v11847_v5 = vld [vmem:[%s15782_s4 + $0x1e0] ss:$12 sps:$4 sm:$0xff]  }
 0x59d   : > { %10376 = vmatmul.mubr.bf16.gmra.mrb[76].mxu1 %v15944_v0  ;;  %v11852_v0 = vld [vmem:[%s15782_s4 + $0x1fc] ss:$12 sps:$4 sm:$0xff]  }
 0x59e   : > { %10379 = vmatprep.mubr.bf16.mxu1 %v13552_v41  ;;  %6493 = vmatpush1.bf16.msra.mxu1 %v11841_v31  ;;  %v11853_v31 = vld [vmem:[%s15782_s4 + $0x210] ss:$12 sps:$4 sm:$0xff]  }
 0x59f   : > { %6494 = vmatprep.subr.bf16.mxu1 %v11846_v17  ;;  %v11858_v17 = vld [vmem:[%s15782_s4 + $0x22c] ss:$12 sps:$4 sm:$0xff]  }
 0x5a2   : > { %6495 = vmatpush1.bf16.msra.mxu1 %v11844_v45  ;;  %v11856_v45 = vld [vmem:[%s15782_s4 + $0x228] ss:$12 sps:$4 sm:$0xff]  }
 0x5a3   : > { %6496 = vmatprep.subr.bf16.mxu1 %v11849_v21  ;;  %v11859_v21 = vld [vmem:[%s15782_s4 + $0x188] ss:$12 sps:$4 sm:$0xff]  }
 0x5a5   : > { %10380 = vmatmul.mubr.bf16.gmra.mrb[80].mxu1 %v15953_v37 }
 0x5a6   : > { %10383 = vmatprep.mubr.bf16.mxu1 %v13586_v28  ;;  %6497 = vmatpush1.bf16.msra.mxu1 %v11847_v5  ;;  %v11862_v5 = vld [vmem:[%s15784_s6 + $0x8] sm:$0xff]  }
 0x5a7   : > { %6498 = vmatprep.subr.bf16.mxu1 %v11852_v0  ;;  %10517 = vmatprep.subr.bf16.mxu0 %v11862_v5  ;;  %v11864_v0 = vld [vmem:[%s15784_s6 + $0x10] sm:$0xff]  }
 0x5a8   : > { %10518 = vmatpush3.bf16.msra.mxu0 %v11862_v5  ;;  %v11863_v5 = vld [vmem:[%s15782_s4 + $0x1b8] ss:$12 sps:$4 sm:$0xff]  }
 0x5a9   : > { %10519 = vmatprep.subr.bf16.mxu0 %v11864_v0 }
 0x5aa   : > { %6499 = vmatpush1.bf16.msra.mxu1 %v11850_v20  ;;  %v11866_v20 = vld [vmem:[%s15784_s6 + $0x18] sm:$0xff]  }
 0x5ab   : > { %6500 = vmatprep.subr.bf16.mxu1 %v11855_v10  ;;  %v11867_v10 = vld [vmem:[%s15784_s6 + $0x20] sm:$0xff]  }
 0x5ac   : > { %10520 = vmatpush3.bf16.msra.mxu0 %v11864_v0  ;;  %v11865_v0 = vld [vmem:[%s15782_s4 + $0x1d0] ss:$12 sps:$4 sm:$0xff]  }
 0x5ad   : > { %10384 = vmatmul.mubr.bf16.gmra.mrb[84].mxu1 %v15962_v33  ;;  %10521 = vmatprep.subr.bf16.mxu0 %v11866_v20 }
 0x5ae   : > { %10387 = vmatprep.mubr.bf16.mxu1 %v13620_v55  ;;  %6501 = vmatpush1.bf16.msra.mxu1 %v11853_v31  ;;  %v11861_v31 = vld [vmem:[%s15782_s4 + $0x1a0] ss:$12 sps:$4 sm:$0xff]  }
 0x5af   : > { %6502 = vmatprep.subr.bf16.mxu1 %v11858_v17  ;;  %v11869_v17 = vld [vmem:[%s15784_s6 + $0x28] sm:$0xff]  }
 0x5b0   : > { %10522 = vmatpush3.bf16.msra.mxu0 %v11866_v20  ;;  %v11868_v20 = vld [vmem:[%s15782_s4 + $0x1e8] ss:$12 sps:$4 sm:$0xff]  }
 0x5b1   : > { %10523 = vmatprep.subr.bf16.mxu0 %v11867_v10 }
 0x5b2   : > { %6503 = vmatpush1.bf16.msra.mxu1 %v11856_v45  ;;  %v11870_v45 = vld [vmem:[%s15784_s6 + $0x30] sm:$0xff]  }
 0x5b3   : > { %10435 = vmatprep.subr.bf16.mxu1 %v11859_v21 }
 0x5b4   : > { %10524 = vmatpush3.bf16.msra.mxu0 %v11867_v10  ;;  %v11917_v10 = vld [vmem:[%s12117_s26 + $0x28] sm:$0xff]  }
 0x5b5   : > { %10388 = vmatmul.mubr.bf16.gmra.mrb[88].mxu1 %v15971_v23  ;;  %10525 = vmatprep.subr.bf16.mxu0 %v11869_v17 }
 0x5b6   : > { %10391 = vmatprep.mubr.bf16.mxu1 %v13654_v12 }
 0x5b8   : > { %10526 = vmatpush3.bf16.msra.mxu0 %v11869_v17  ;;  %v11919_v17 = vld [vmem:[%s12117_s26 + $0x38] sm:$0xff]  }
 0x5b9   : > { %10527 = vmatprep.subr.bf16.mxu0 %v11870_v45 }
 0x5bc   : > { %10528 = vmatpush3.bf16.msra.mxu0 %v11870_v45  ;;  %v11920_v45 = vld [vmem:[%s12117_s26 + $0x40] sm:$0xff]  }
 0x5bd   : > { %10392 = vmatmul.mubr.bf16.gmra.mrb[92].mxu1 %v15980_v2 }
 0x5be   : > { %10395 = vmatprep.mubr.bf16.mxu1 %v13688_v50 }
 0x5c5   : > { %10396 = vmatmul.mubr.bf16.gmra.mrb[96].mxu1 %v13709_v39 }
 0x5c6   : > { %10399 = vmatprep.mubr.bf16.mxu1 %v13722_v57 }
 0x5cd   : > { %10400 = vmatmul.mubr.bf16.gmra.mrb[100].mxu1 %v13743_v43 }
 0x5ce   : > { %10403 = vmatprep.mubr.bf16.mxu1 %v13756_v14 }
 0x5d5   : > { %10404 = vmatmul.mubr.bf16.gmra.mrb[104].mxu1 %v13777_v6 }
 0x5d6   : > { %10407 = vmatprep.mubr.bf16.mxu1 %v13790_v44 }
 0x5dd   : > { %10408 = vmatmul.mubr.bf16.gmra.mrb[108].mxu1 %v13811_v40 }
 0x5de   : > { %10411 = vmatprep.mubr.bf16.mxu1 %v13830_v42 }
 0x5e5   : > { %10412 = vmatmul.mubr.bf16.gmra.mrb[112].mxu1 %v13850_v52 }
 0x5e6   : > { %10415 = vmatprep.mubr.bf16.mxu1 %v13863_v11 }
 0x5ed   : > { %10416 = vmatmul.mubr.bf16.gmra.mrb[116].mxu1 %v13878_v3 }
 0x5ee   : > { %10419 = vmatprep.mubr.bf16.mxu1 %v13891_v61 }
 0x5f5   : > { %10420 = vmatmul.mubr.bf16.gmra.mrb[120].mxu1 %v13906_v25 }
 0x5f6   : > { %10423 = vmatprep.mubr.bf16.mxu1 %v13919_v59 }
 0x5fd   : > { %10424 = vmatmul.mubr.bf16.gmra.mrb[124].mxu1 %v13934_v38 }
 0x5fe   : > { %10427 = vmatprep.mubr.bf16.mxu1 %v13947_v7 }
 0x605   : > { %10428 = vmatmul.mubr.bf16.gmra.mrb[128].mxu1 %v13962_v58 }
 0x606   : > { %10431 = vmatprep.mubr.bf16.mxu1 %v13975_v24 }
 0x60d   : > { %10432 = vmatmul.mubr.bf16.gmra.mrb[132].mxu1 %v13990_v35 }
 0x60e   : > { %6520 = vmatprep.mubr.bf16.mxu1 %v15842_v60 }
 0x615   : > { %6521 = vmatmul.mubr.bf16.vlgmr.msra.gmra.mrb[136].mxu1 %v13552_v41 }
 0x616   : > { %10436 = vmatpush3.bf16.msra.mxu1 %v11859_v21  ;;  %6530 = vmatprep.mubr.bf16.mxu1 %v15842_v60  ;;  %v11871_v21 = vld [vmem:[%s15784_s6 + $0x38] sm:$0xff]  }
 0x617   : > { %10437 = vmatprep.subr.bf16.mxu1 %v11861_v31  ;;  %10529 = vmatprep.subr.bf16.mxu0 %v11871_v21 }
 0x618   : > { %10530 = vmatpush3.bf16.msra.mxu0 %v11871_v21  ;;  %v11872_v21 = vld [vmem:[%s15782_s4 + $0x200] ss:$12 sps:$4 sm:$0xff]  }
 0x61a   : > { %10438 = vmatpush3.bf16.msra.mxu1 %v11861_v31  ;;  %v11918_v31 = vld [vmem:[%s12117_s26 + $0x30] sm:$0xff]  }
 0x61b   : > { %10439 = vmatprep.subr.bf16.mxu1 %v11863_v5  ;;  %10532 = vmatmul.mubr.bf16.vlgmr.msra.gmra.mrb[16].mxu0 %v11917_v10  ;;  %v11924_v10 = vld [vmem:[%s12117_s26 + $0x60] sm:$0xff]  }
 0x61c   : > { %10535 = vmatprep.mubr.bf16.mxu0 %v11918_v31  ;;  %v11925_v31 = vld [vmem:[%s12117_s26 + $0x68] sm:$0xff]  }
 0x61d   : > { %6531 = vmatmul.mubr.bf16.gmra.mrb[140].mxu1 %v15953_v37 }
 0x61e   : > { %6540 = vmatprep.mubr.bf16.mxu1 %v15842_v60  ;;  %10440 = vmatpush3.bf16.msra.mxu1 %v11863_v5  ;;  %v11921_v5 = vld [vmem:[%s12117_s26 + $0x48] sm:$0xff]  }
 0x61f   : > { %10441 = vmatprep.subr.bf16.mxu1 %v11865_v0 }
 0x622   : > { %10442 = vmatpush3.bf16.msra.mxu1 %v11865_v0  ;;  %v11922_v0 = vld [vmem:[%s12117_s26 + $0x50] sm:$0xff]  }
 0x623   : > { %10443 = vmatprep.subr.bf16.mxu1 %v11868_v20  ;;  %10536 = vmatmul.mubr.bf16.gmra.mrb[20].mxu0 %v11919_v17  ;;  %v11926_v17 = vld [vmem:[%s12117_s26 + $0x70] sm:$0xff]  }
 0x624   : > { %10539 = vmatprep.mubr.bf16.mxu0 %v11920_v45  ;;  %v11927_v45 = vld [vmem:[%s12117_s26 + $0x78] sm:$0xff]  }
 0x625   : > { %6541 = vmatmul.mubr.bf16.gmra.mrb[144].mxu1 %v13586_v28 }
 0x626   : > { %6550 = vmatprep.mubr.bf16.mxu1 %v15842_v60  ;;  %10444 = vmatpush3.bf16.msra.mxu1 %v11868_v20  ;;  %v11923_v20 = vld [vmem:[%s12117_s26 + $0x58] sm:$0xff]  }
 0x627   : > { %10445 = vmatprep.subr.bf16.mxu1 %v11872_v21 }
 0x62a   : > { %10446 = vmatpush3.bf16.msra.mxu1 %v11872_v21  ;;  %v11930_v21 = vld [vmem:[%s12117_s26 + $0x90] sm:$0xff]  }
 0x62b   : > { %10540 = vmatmul.mubr.bf16.gmra.mrb[24].mxu0 %v11921_v5  ;;  %v11928_v5 = vld [vmem:[%s12117_s26 + $0x80] sm:$0xff]  }
 0x62c   : > { %10543 = vmatprep.mubr.bf16.mxu0 %v11922_v0  ;;  %v11929_v0 = vld [vmem:[%s12117_s26 + $0x88] sm:$0xff]  }
 0x62d   : > { %6551 = vmatmul.mubr.bf16.gmra.mrb[148].mxu1 %v15962_v33 }
 0x62e   : > { %6560 = vmatprep.mubr.bf16.mxu1 %v15842_v60 }
 0x633   : > { %10544 = vmatmul.mubr.bf16.gmra.mrb[28].mxu0 %v11923_v20  ;;  %v11873_v20 = vld [vmem:[%s15782_s4 + $0x218] ss:$12 sps:$4 sm:$0xff]  }
 0x634   : > { %10547 = vmatprep.mubr.bf16.mxu0 %v11924_v10  ;;  %10447 = vmatprep.subr.bf16.mxu1 %v11873_v20  ;;  %v11931_v10 = vld [vmem:[%s12117_s26 + $0x98] sm:$0xff]  }
 0x635   : > { %6561 = vmatmul.mubr.bf16.gmra.mrb[152].mxu1 %v13620_v55 }
 0x636   : > { %6570 = vmatprep.mubr.bf16.mxu1 %v15842_v60  ;;  %10448 = vmatpush3.bf16.msra.mxu1 %v11873_v20  ;;  %v11938_v20 = vld [vmem:[%s12117_s26 + $0xd0] sm:$0xff]  }
 0x63b   : > { %10548 = vmatmul.mubr.bf16.gmra.mrb[32].mxu0 %v11925_v31  ;;  %v11932_v31 = vld [vmem:[%s12117_s26 + $0xa0] sm:$0xff]  }
 0x63c   : > { %10551 = vmatprep.mubr.bf16.mxu0 %v11926_v17  ;;  %v11933_v17 = vld [vmem:[%s12117_s26 + $0xa8] sm:$0xff]  }
 0x63d   : > { %6571 = vmatmul.mubr.bf16.gmra.mrb[156].mxu1 %v15971_v23 }
 0x63e   : > { %6580 = vmatprep.mubr.bf16.mxu1 %v15842_v60 }
 0x643   : > { %10552 = vmatmul.mubr.bf16.gmra.mrb[36].mxu0 %v11927_v45  ;;  %v11934_v45 = vld [vmem:[%s12117_s26 + $0xb0] sm:$0xff]  }
 0x644   : > { %10555 = vmatprep.mubr.bf16.mxu0 %v11928_v5  ;;  %v11935_v5 = vld [vmem:[%s12117_s26 + $0xb8] sm:$0xff]  }
 0x645   : > { %6581 = vmatmul.mubr.bf16.gmra.mrb[160].mxu1 %v13654_v12 }
 0x646   : > { %6590 = vmatprep.mubr.bf16.mxu1 %v15842_v60 }
 0x64b   : > { %10556 = vmatmul.mubr.bf16.gmra.mrb[40].mxu0 %v11929_v0  ;;  %v11936_v0 = vld [vmem:[%s12117_s26 + $0xc0] sm:$0xff]  }
 0x64c   : > { %10559 = vmatprep.mubr.bf16.mxu0 %v11930_v21  ;;  %v11937_v21 = vld [vmem:[%s12117_s26 + $0xc8] sm:$0xff]  }
 0x64d   : > { %6591 = vmatmul.mubr.bf16.gmra.mrb[164].mxu1 %v15980_v2 }
 0x64e   : > { %6600 = vmatprep.mubr.bf16.mxu1 %v15842_v60 }
 0x653   : > { %10560 = vmatmul.mubr.bf16.gmra.mrb[44].mxu0 %v11931_v10  ;;  %v11874_v10 = vld [vmem:[%s15782_s4 + $0x230] ss:$12 sps:$4 sm:$0xff]  }
 0x654   : > { %10563 = vmatprep.mubr.bf16.mxu0 %v11932_v31  ;;  %10449 = vmatprep.subr.bf16.mxu1 %v11874_v10  ;;  %v11939_v31 = vld [vmem:[%s12117_s26 + $0xd8] sm:$0xff]  }
 0x655   : > { %6601 = vmatmul.mubr.bf16.gmra.mrb[168].mxu1 %v13688_v50 }
 0x656   : > { %6610 = vmatprep.mubr.bf16.mxu1 %v15842_v60  ;;  %10450 = vmatpush3.bf16.msra.mxu1 %v11874_v10  ;;  %v11946_v10 = vld [vmem:[%s12117_s26 + $0x110] sm:$0xff]  }
 0x65b   : > { %10564 = vmatmul.mubr.bf16.gmra.mrb[48].mxu0 %v11933_v17  ;;  %v11940_v17 = vld [vmem:[%s12117_s26 + $0xe0] sm:$0xff]  }
 0x65c   : > { %10567 = vmatprep.mubr.bf16.mxu0 %v11934_v45  ;;  %v11941_v45 = vld [vmem:[%s12117_s26 + $0xe8] sm:$0xff]  }
 0x65d   : > { %6611 = vmatmul.mubr.bf16.gmra.mrb[172].mxu1 %v13709_v39 }
 0x65e   : > { %6620 = vmatprep.mubr.bf16.mxu1 %v15842_v60 }
 0x663   : > { %10568 = vmatmul.mubr.bf16.gmra.mrb[52].mxu0 %v11935_v5  ;;  %v11942_v5 = vld [vmem:[%s12117_s26 + $0xf0] sm:$0xff]  }
 0x664   : > { %10571 = vmatprep.mubr.bf16.mxu0 %v11936_v0  ;;  %v11943_v0 = vld [vmem:[%s12117_s26 + $0xf8] sm:$0xff]  }
 0x665   : > { %6621 = vmatmul.mubr.bf16.gmra.mrb[176].mxu1 %v13722_v57 }
 0x666   : > { %6630 = vmatprep.mubr.bf16.mxu1 %v15842_v60 }
 0x66b   : > { %10572 = vmatmul.mubr.bf16.gmra.mrb[56].mxu0 %v11937_v21  ;;  %v11944_v21 = vld [vmem:[%s12117_s26 + $0x100] sm:$0xff]  }
 0x66c   : > { %10575 = vmatprep.mubr.bf16.mxu0 %v11938_v20  ;;  %v11945_v20 = vld [vmem:[%s12117_s26 + $0x108] sm:$0xff]  }
 0x66d   : > { %6631 = vmatmul.mubr.bf16.gmra.mrb[180].mxu1 %v13743_v43 }
 0x66e   : > { %6640 = vmatprep.mubr.bf16.mxu1 %v15842_v60 }
 0x673   : > { %10576 = vmatmul.mubr.bf16.gmra.mrb[60].mxu0 %v11939_v31  ;;  %v11947_v31 = vld [vmem:[%s12117_s26 + $0x118] sm:$0xff]  }
 0x674   : > { %10579 = vmatprep.mubr.bf16.mxu0 %v11940_v17 }
 0x675   : > { %6641 = vmatmul.mubr.bf16.gmra.mrb[184].mxu1 %v13756_v14 }
 0x676   : > { %6650 = vmatprep.mubr.bf16.mxu1 %v15842_v60 }
 0x67b   : > { %10580 = vmatmul.mubr.bf16.gmra.mrb[64].mxu0 %v11941_v45 }
 0x67c   : > { %10583 = vmatprep.mubr.bf16.mxu0 %v11942_v5 }
 0x67d   : > { %6651 = vmatmul.mubr.bf16.gmra.mrb[188].mxu1 %v13777_v6 }
 0x67e   : > { %6660 = vmatprep.mubr.bf16.mxu1 %v15842_v60 }
 0x683   : > { %10584 = vmatmul.mubr.bf16.gmra.mrb[68].mxu0 %v11943_v0 }
 0x684   : > { %10587 = vmatprep.mubr.bf16.mxu0 %v11944_v21 }
 0x685   : > { %6661 = vmatmul.mubr.bf16.gmra.mrb[192].mxu1 %v13790_v44 }
 0x686   : > { %6670 = vmatprep.mubr.bf16.mxu1 %v15842_v60 }
 0x68b   : > { %10588 = vmatmul.mubr.bf16.gmra.mrb[72].mxu0 %v11945_v20 }
 0x68c   : > { %10591 = vmatprep.mubr.bf16.mxu0 %v11946_v10 }
 0x68d   : > { %6671 = vmatmul.mubr.bf16.gmra.mrb[196].mxu1 %v13811_v40 }
 0x68e   : > { %6680 = vmatprep.mubr.bf16.mxu1 %v15842_v60 }
 0x693   : > { %10592 = vmatmul.mubr.bf16.gmra.mrb[76].mxu0 %v11947_v31 }
 0x695   : > { %6681 = vmatmul.mubr.bf16.gmra.mrb[200].mxu1 %v13830_v42 }
 0x696   : > { %6690 = vmatprep.mubr.bf16.mxu1 %v15842_v60 }
 0x69d   : > { %6691 = vmatmul.mubr.bf16.gmra.mrb[204].mxu1 %v13850_v52 }
 0x69e   : > { %6700 = vmatprep.mubr.bf16.mxu1 %v15842_v60 }
 0x6a5   : > { %6701 = vmatmul.mubr.bf16.gmra.mrb[208].mxu1 %v13863_v11 }
 0x6a6   : > { %6710 = vmatprep.mubr.bf16.mxu1 %v15842_v60 }
 0x6ad   : > { %6711 = vmatmul.mubr.bf16.gmra.mrb[212].mxu1 %v13878_v3 }
 0x6ae   : > { %6720 = vmatprep.mubr.bf16.mxu1 %v15842_v60 }
 0x6b5   : > { %6721 = vmatmul.mubr.bf16.gmra.mrb[216].mxu1 %v13891_v61 }
 0x6b6   : > { %6730 = vmatprep.mubr.bf16.mxu1 %v15842_v60 }
 0x6bd   : > { %6731 = vmatmul.mubr.bf16.gmra.mrb[220].mxu1 %v13906_v25 }
 0x6be   : > { %6740 = vmatprep.mubr.bf16.mxu1 %v15842_v60 }
 0x6c5   : > { %6741 = vmatmul.mubr.bf16.gmra.mrb[224].mxu1 %v13919_v59 }
 0x6c6   : > { %6750 = vmatprep.mubr.bf16.mxu1 %v15842_v60 }
 0x6cd   : > { %6751 = vmatmul.mubr.bf16.gmra.mrb[228].mxu1 %v13934_v38 }
 0x6ce   : > { %6760 = vmatprep.mubr.bf16.mxu1 %v15842_v60 }
 0x6d5   : > { %6761 = vmatmul.mubr.bf16.gmra.mrb[232].mxu1 %v13947_v7 }
 0x6d6   : > { %6770 = vmatprep.mubr.bf16.mxu1 %v15842_v60 }
 0x6dd   : > { %6771 = vmatmul.mubr.bf16.gmra.mrb[236].mxu1 %v13962_v58 }
 0x6de   : > { %6780 = vmatprep.mubr.bf16.mxu1 %v15842_v60 }
 0x6e5   : > { %6781 = vmatmul.mubr.bf16.gmra.mrb[240].mxu1 %v13975_v24 }
 0x6e6   : > { %6790 = vmatprep.mubr.bf16.mxu1 %v15842_v60 }
 0x6e8   : > { %v6522_v17 = vpop.f32.mrb[136].mxu1 }
 0x6e9   : > { %v10631_v45 = vadd.f32 %v6522_v17, %v14053_v47  ;;  %v6524_v5 = vpop.f32.mrb[137].mxu1 }
 0x6ea   : > { %v14628_v0 = vadd.f32 %v6524_v5, %v14056_v30  ;;  %v6526_v21 = vpop.f32.mrb[138].mxu1 }
 0x6eb   : > { %v10633_v20 = vadd.f32 %v6526_v21, %v14060_v54  ;;  %v6528_v10 = vpop.f32.mrb[139].mxu1 }
 0x6ec   : > { %16058 = vst [vmem:[#allocation112_spill] sm:$0xff] %v14628_v0  ;;  %v10634_v31 = vadd.f32 %v6528_v10, %v14063_v53  ;;  %v15814_v1 = vrot.slane %v14628_v0, 1 }
 0x6ed   : > { %6791 = vmatmul.mubr.bf16.gmra.mrb[244].mxu1 %v13990_v35 }
 0x6ee   : > { %v7323_v27 = vrot.slane %v10634_v31, 1  ;;  %6800 = vmatprep.mubr.bf16.mxu1 %v15842_v60 }
 0x6f0   : > { %v7448_v47 = vsel %vm3814_vm0, %v15814_v1, %v7323_v27  ;;  %v6532_v30 = vpop.f32.mrb[140].mxu1 }
 0x6f1   : > { %v14639_v17 = vadd.f32 %v10631_v45, %v7448_v47  ;;  %v10635_v54 = vadd.f32 %v6532_v30, %v14069_v48  ;;  %v6534_v5 = vpop.f32.mrb[141].mxu1 }
 0x6f2   : > { %v10636_v53 = vadd.f32 %v6534_v5, %v14076_v9  ;;  %v6536_v21 = vpop.f32.mrb[142].mxu1 }
 0x6f3   : > { %v10637_v10 = vadd.f32 %v6536_v21, %v14078_v51  ;;  %v6538_v16 = vpop.f32.mrb[143].mxu1 }
 0x6f4   : > { %v7324_v31 = vrot.slane %v10636_v53, 1  ;;  %v10638_v63 = vadd.f32 %v6538_v16, %v14081_v13 }
 0x6f5   : > { %6801 = vmatmul.mubr.bf16.gmra.mrb[248].mxu1 %v14005_v8 }
 0x6f6   : > { %v7447_v1 = vsel %vm3814_vm0, %v7323_v27, %v7324_v31  ;;  %v7325_v0 = vrot.slane %v10638_v63, 1  ;;  %6810 = vmatprep.mubr.bf16.mxu1 %v15842_v60 }
 0x6f7   : > { %v14649_v45 = vadd.f32 %v10633_v20, %v7447_v1 }
 0x6f8   : > { %v7446_v48 = vsel %vm3814_vm0, %v7324_v31, %v7325_v0  ;;  %v6542_v9 = vpop.f32.mrb[144].mxu1 }
 0x6f9   : > { %v14653_v47 = vadd.f32 %v10635_v54, %v7446_v48  ;;  %v10639_v51 = vadd.f32 %v6542_v9, %v14090_v29  ;;  %v6544_v30 = vpop.f32.mrb[145].mxu1 }
 0x6fa   : > { %v10640_v13 = vadd.f32 %v6544_v30, %v14095_v4  ;;  %v6546_v16 = vpop.f32.mrb[146].mxu1 }
 0x6fb   : > { %v10641_v5 = vadd.f32 %v6546_v16, %v14097_v19  ;;  %v6548_v27 = vpop.f32.mrb[147].mxu1 }
 0x6fc   : > { %v7326_v63 = vrot.slane %v10640_v13, 1  ;;  %v10642_v53 = vadd.f32 %v6548_v27, %v14100_v49 }
 0x6fd   : > { %6811 = vmatmul.mubr.bf16.gmra.mrb[252].mxu1 %v14022_v34 }
 0x6fe   : > { %v7445_v1 = vsel %vm3814_vm0, %v7325_v0, %v7326_v63  ;;  %v7327_v20 = vrot.slane %v10642_v53, 1  ;;  %6820 = vmatprep.mubr.bf16.mxu1 %v15842_v60 }
 0x6ff   : > { %v14663_v54 = vadd.f32 %v10637_v10, %v7445_v1 }
 0x700   : > { %v7444_v29 = vsel %vm3814_vm0, %v7326_v63, %v7327_v20  ;;  %v6552_v4 = vpop.f32.mrb[148].mxu1 }
 0x701   : > { %v14667_v21 = vadd.f32 %v10639_v51, %v7444_v29  ;;  %v10643_v19 = vadd.f32 %v6552_v4, %v14108_v56  ;;  %v6554_v31 = vpop.f32.mrb[149].mxu1  ;;  %v16059_v4 = vld [vmem:[#allocation20_spill] sm:$0xff] }
 0x702   : > { %v10644_v49 = vadd.f32 %v6554_v31, %v14110_v15  ;;  %v6556_v48 = vpop.f32.mrb[150].mxu1 }
 0x703   : > { %v10645_v9 = vadd.f32 %v6556_v48, %v14112_v46  ;;  %v6558_v0 = vpop.f32.mrb[151].mxu1 }
 0x704   : > { %v7328_v30 = vrot.slane %v10644_v49, 1  ;;  %v10646_v13 = vadd.f32 %v6558_v0, %v14115_v32 }
 0x705   : > { %6821 = vmatmul.mubr.bf16.gmra.mrb[52].mxu1 %v14050_v36 }
 0x706   : > { %v7443_v10 = vsel %vm3814_vm0, %v7327_v20, %v7328_v30  ;;  %v7329_v16 = vrot.slane %v10646_v13, 1  ;;  %6830 = vmatprep.mubr.bf16.mxu1 %v15842_v60  ;;  %v16063_v13 = vld [vmem:[#allocation24_spill] sm:$0xff] }
 0x707   : > { %v14677_v51 = vadd.f32 %v10641_v5, %v7443_v10  ;;  %v16060_v5 = vld [vmem:[#allocation21_spill] sm:$0xff] }
 0x708   : > { %v7442_v56 = vsel %vm3814_vm0, %v7328_v30, %v7329_v16  ;;  %v6562_v15 = vpop.f32.mrb[152].mxu1 }
 0x709   : > { %v14681_v27 = vadd.f32 %v10643_v19, %v7442_v56  ;;  %v10647_v46 = vadd.f32 %v6562_v15, %v14120_v26  ;;  %v6564_v63 = vpop.f32.mrb[153].mxu1  ;;  %v16064_v15 = vld [vmem:[#allocation29_spill] sm:$0xff] }
 0x70a   : > { %v10648_v32 = vadd.f32 %v6564_v63, %v14122_v18  ;;  %v6566_v53 = vpop.f32.mrb[154].mxu1 }
 0x70b   : > { %v10649_v1 = vadd.f32 %v6566_v53, %v14124_v62  ;;  %v6568_v20 = vpop.f32.mrb[155].mxu1  ;;  %v16062_v62 = vld [vmem:[#allocation19_spill] sm:$0xff]  ;;  %v16065_v53 = vld [vmem:[#allocation28_spill] sm:$0xff] }
 0x70c   : > { %v7330_v29 = vrot.slane %v10648_v32, 1  ;;  %v10650_v60 = vadd.f32 %v6568_v20, %v16059_v4 }
 0x70d   : > { %6831 = vmatmul.mubr.bf16.gmra.mrb[56].mxu1 %v16060_v5 }
 0x70e   : > { %v7441_v31 = vsel %vm3814_vm0, %v7329_v16, %v7330_v29  ;;  %v7331_v49 = vrot.slane %v10650_v60, 1  ;;  %10451 = vmatprep.mubr.bf16.mxu1 %v13552_v41 }
 0x70f   : > { %v14691_v19 = vadd.f32 %v10645_v9, %v7441_v31  ;;  %v16068_v31 = vld [vmem:[#allocation27_spill] sm:$0xff] }
 0x710   : > { %v7440_v26 = vsel %vm3814_vm0, %v7330_v29, %v7331_v49  ;;  %v6572_v18 = vpop.f32.mrb[156].mxu1 }
 0x711   : > { %v14695_v48 = vadd.f32 %v10647_v46, %v7440_v26  ;;  %v10651_v0 = vadd.f32 %v6572_v18, %v16062_v62  ;;  %v6574_v30 = vpop.f32.mrb[157].mxu1  ;;  %v16069_v62 = vld [vmem:[#allocation35_spill] sm:$0xff] }
 0x712   : > { %v10652_v10 = vadd.f32 %v6574_v30, %v16063_v13  ;;  %v6576_v56 = vpop.f32.mrb[158].mxu1  ;;  %v16070_v13 = vld [vmem:[#allocation36_spill] sm:$0xff] }
 0x713   : > { %16061 = vst [vmem:[#allocation20_spill] sm:$0xff] %v14695_v48  ;;  %v10653_v63 = vadd.f32 %v6576_v56, %v16064_v15  ;;  %v6578_v16 = vpop.f32.mrb[159].mxu1  ;;  %v16071_v15 = vld [vmem:[#allocation37_spill] sm:$0xff] }
 0x714   : > { %v7332_v32 = vrot.slane %v10652_v10, 1  ;;  %v10654_v41 = vadd.f32 %v6578_v16, %v16065_v53 }
 0x715   : > { %10452 = vmatmul.mubr.bf16.vlgmr.msra.gmra.mrb[72].mxu1 %v15953_v37 }
 0x716   : > { %v7439_v9 = vsel %vm3814_vm0, %v7331_v49, %v7332_v32  ;;  %v7333_v20 = vrot.slane %v10654_v41, 1  ;;  %10455 = vmatprep.mubr.bf16.mxu1 %v13586_v28 }
 0x717   : > { %v14705_v46 = vadd.f32 %v10649_v1, %v7439_v9  ;;  %v16074_v9 = vld [vmem:[#allocation38_spill] sm:$0xff] }
 0x718   : > { %v7438_v29 = vsel %vm3814_vm0, %v7332_v32, %v7333_v20  ;;  %v6582_v4 = vpop.f32.mrb[160].mxu1 }
 0x719   : > { %16066 = vst [vmem:[#allocation21_spill] sm:$0xff] %v14705_v46  ;;  %v14709_v60 = vadd.f32 %v10651_v0, %v7438_v29  ;;  %v10655_v26 = vadd.f32 %v6582_v4, %v16068_v31  ;;  %v6584_v18 = vpop.f32.mrb[161].mxu1  ;;  %v16075_v31 = vld [vmem:[#allocation34_spill] sm:$0xff] }
 0x71a   : > { %v10656_v30 = vadd.f32 %v6584_v18, %v16069_v62  ;;  %v6586_v37 = vpop.f32.mrb[162].mxu1  ;;  %v16076_v62 = vld [vmem:[#allocation6_spill] sm:$0xff] }
 0x71b   : > { %16067 = vst [vmem:[#allocation19_spill] sm:$0xff] %v14709_v60  ;;  %v10657_v10 = vadd.f32 %v6586_v37, %v16070_v13  ;;  %v6588_v49 = vpop.f32.mrb[163].mxu1  ;;  %v16077_v13 = vld [vmem:[#allocation5_spill] sm:$0xff]  ;;  %v16101_v46 = vld [vmem:[#allocation30_spill] sm:$0xff] }
 0x71c   : > { %v7334_v56 = vrot.slane %v10656_v30, 1  ;;  %v10658_v28 = vadd.f32 %v6588_v49, %v16071_v15 }
 0x71d   : > { %10456 = vmatmul.mubr.bf16.gmra.mrb[76].mxu1 %v15962_v33 }
 0x71e   : > { %v7437_v1 = vsel %vm3814_vm0, %v7333_v20, %v7334_v56  ;;  %v7335_v16 = vrot.slane %v10658_v28, 1  ;;  %10459 = vmatprep.mubr.bf16.mxu1 %v13620_v55 }
 0x71f   : > { %v14719_v0 = vadd.f32 %v10653_v63, %v7437_v1  ;;  %v16080_v1 = vld [vmem:[#allocation4_spill] sm:$0xff] }
 0x720   : > { %v7436_v32 = vsel %vm3814_vm0, %v7334_v56, %v7335_v16  ;;  %v6592_v53 = vpop.f32.mrb[164].mxu1 }
 0x721   : > { %16072 = vst [vmem:[#allocation24_spill] sm:$0xff] %v14719_v0  ;;  %v14723_v41 = vadd.f32 %v10655_v26, %v7436_v32  ;;  %v10659_v29 = vadd.f32 %v6592_v53, %v16074_v9  ;;  %v6594_v4 = vpop.f32.mrb[165].mxu1  ;;  %v16081_v9 = vld [vmem:[#allocation7_spill] sm:$0xff] }
 0x722   : > { %v10660_v18 = vadd.f32 %v6594_v4, %v16075_v31  ;;  %v6596_v33 = vpop.f32.mrb[166].mxu1  ;;  %v16082_v31 = vld [vmem:[#allocation10_spill] sm:$0xff] }
 0x723   : > { %16073 = vst [vmem:[#allocation29_spill] sm:$0xff] %v14723_v41  ;;  %v10661_v30 = vadd.f32 %v6596_v33, %v16076_v62  ;;  %v6598_v20 = vpop.f32.mrb[167].mxu1  ;;  %v16083_v62 = vld [vmem:[#allocation9_spill] sm:$0xff] }
 0x724   : > { %v7336_v37 = vrot.slane %v10660_v18, 1  ;;  %v10662_v55 = vadd.f32 %v6598_v20, %v16077_v13 }
 0x725   : > { %10460 = vmatmul.mubr.bf16.gmra.mrb[80].mxu1 %v15971_v23 }
 0x726   : > { %v7435_v63 = vsel %vm3814_vm0, %v7335_v16, %v7336_v37  ;;  %v7337_v49 = vrot.slane %v10662_v55, 1  ;;  %10463 = vmatprep.mubr.bf16.mxu1 %v13654_v12 }
 0x727   : > { %v14733_v26 = vadd.f32 %v10657_v10, %v7435_v63  ;;  %v16086_v63 = vld [vmem:[#allocation8_spill] sm:$0xff] }
 0x728   : > { %v7434_v56 = vsel %vm3814_vm0, %v7336_v37, %v7337_v49  ;;  %v6602_v15 = vpop.f32.mrb[168].mxu1 }
 0x729   : > { %16078 = vst [vmem:[#allocation28_spill] sm:$0xff] %v14733_v26  ;;  %v14737_v28 = vadd.f32 %v10659_v29, %v7434_v56  ;;  %v10663_v32 = vadd.f32 %v6602_v15, %v16080_v1  ;;  %v6604_v53 = vpop.f32.mrb[169].mxu1  ;;  %v16087_v1 = vld [vmem:[#allocation14_spill] sm:$0xff] }
 0x72a   : > { %v10664_v4 = vadd.f32 %v6604_v53, %v16081_v9  ;;  %v6606_v23 = vpop.f32.mrb[170].mxu1  ;;  %v10533_v9 = vpop.f32.mrb[16].mxu0  ;;  %v16094_v26 = vld [vmem:[#allocation26_spill] sm:$0xff] }
 0x72b   : > { %16079 = vst [vmem:[#allocation27_spill] sm:$0xff] %v14737_v28  ;;  %v10665_v18 = vadd.f32 %v6606_v23, %v16082_v31  ;;  %v6608_v16 = vpop.f32.mrb[171].mxu1  ;;  %v14756_v31 = vpop.f32.mrb[17].mxu0 }
 0x72c   : > { %v7338_v33 = vrot.slane %v10664_v4, 1  ;;  %v10666_v12 = vadd.f32 %v6608_v16, %v16083_v62  ;;  %v16088_v4 = vld [vmem:[#allocation18_spill] sm:$0xff]  ;;  %v10534_v62 = vpop.f32.mrb[18].mxu0 }
 0x72d   : > { %10464 = vmatmul.mubr.bf16.gmra.mrb[84].mxu1 %v15980_v2 }
 0x72e   : > { %v7433_v10 = vsel %vm3814_vm0, %v7337_v49, %v7338_v33  ;;  %v7339_v20 = vrot.slane %v10666_v12, 1  ;;  %10467 = vmatprep.mubr.bf16.mxu1 %v13688_v50 }
 0x72f   : > { %v14747_v29 = vadd.f32 %v10661_v30, %v7433_v10  ;;  %v16089_v30 = vld [vmem:[#allocation17_spill] sm:$0xff] }
 0x730   : > { %v7432_v37 = vsel %vm3814_vm0, %v7338_v33, %v7339_v20  ;;  %v6612_v13 = vpop.f32.mrb[172].mxu1 }
 0x731   : > { %16084 = vst [vmem:[#allocation35_spill] sm:$0xff] %v14747_v29  ;;  %v14751_v55 = vadd.f32 %v10663_v32, %v7432_v37  ;;  %v10667_v56 = vadd.f32 %v6612_v13, %v16086_v63  ;;  %v6614_v15 = vpop.f32.mrb[173].mxu1  ;;  %v7943_v32 = vpop.f32.mrb[19].mxu0  ;;  %v8197_v13 = vrot.slane %v10533_v9, 1 }
 0x732   : > { %v10668_v53 = vadd.f32 %v6614_v15, %v16087_v1  ;;  %v6616_v2 = vpop.f32.mrb[174].mxu1  ;;  %v10537_v10 = vpop.f32.mrb[20].mxu0 }
 0x733   : > { %16085 = vst [vmem:[#allocation36_spill] sm:$0xff] %v14751_v55  ;;  %v10669_v49 = vadd.f32 %v6616_v2, %v16088_v4  ;;  %v6618_v23 = vpop.f32.mrb[175].mxu1  ;;  %v7956_v15 = vpop.f32.mrb[21].mxu0  ;;  %v16092_v4 = vld [vmem:[#allocation15_spill] sm:$0xff]  ;;  %v16093_v55 = vld [vmem:[#allocation22_spill] sm:$0xff]  ;;  %v8201_v9 = vrot.slane %v10537_v10, 1 }
 0x734   : > { %v7340_v50 = vrot.slane %v10668_v53, 1  ;;  %v10670_v16 = vadd.f32 %v6618_v23, %v16089_v30  ;;  %v10538_v2 = vpop.f32.mrb[22].mxu0  ;;  %v8198_v30 = vrot.slane %v10534_v62, 1  ;;  %v16095_v62 = vrot.slane %v14756_v31, 1 }
 0x735   : > { %10468 = vmatmul.mubr.bf16.gmra.mrb[88].mxu1 %v13709_v39  ;;  %v8202_v63 = vrot.slane %v10538_v2, 1 }
 0x736   : > { %v7431_v33 = vsel %vm3814_vm0, %v7339_v20, %v7340_v50  ;;  %v7341_v12 = vrot.slane %v10670_v16, 1  ;;  %10471 = vmatprep.mubr.bf16.mxu1 %v13722_v57  ;;  %v8196_v16 = vrot.slane %v7943_v32, 1  ;;  %v7959_v57 = vpop.f32.mrb[23].mxu0 }
 0x737   : > { %v14763_v37 = vadd.f32 %v10665_v18, %v7431_v33  ;;  %v10541_v29 = vpop.f32.mrb[24].mxu0  ;;  %v14794_v2 = vsel %vm3814_vm0, %v8201_v9, %v8202_v63 }
 0x738   : > { %v7430_v1 = vsel %vm3814_vm0, %v7340_v50, %v7341_v12  ;;  %v6622_v53 = vpop.f32.mrb[176].mxu1  ;;  %v7972_v32 = vpop.f32.mrb[25].mxu0 }
 0x739   : > { %16090 = vst [vmem:[#allocation37_spill] sm:$0xff] %v14763_v37  ;;  %v14768_v39 = vadd.f32 %v10667_v56, %v7430_v1  ;;  %v10671_v23 = vadd.f32 %v6622_v53, %v16092_v4  ;;  %v6624_v20 = vpop.f32.mrb[177].mxu1  ;;  %v8199_v37 = vrot.slane %v7956_v15, 1  ;;  %v14775_v56 = vsel %vm3814_vm0, %v8197_v13, %v8198_v30  ;;  %v16096_v15 = vld [vmem:[#allocation25_spill] sm:$0xff] }
 0x73a   : > { %v10672_v18 = vadd.f32 %v6624_v20, %v16093_v55  ;;  %v6626_v33 = vpop.f32.mrb[178].mxu1  ;;  %v14779_v1 = vsel %vm3814_vm0, %v8196_v16, %v8197_v13  ;;  %v14785_v55 = vsel %vm3814_vm0, %v16095_v62, %v8196_v16  ;;  %v10542_v13 = vpop.f32.mrb[26].mxu0  ;;  %v8200_v4 = vrot.slane %v7959_v57, 1 }
 0x73b   : > { %16091 = vst [vmem:[#allocation38_spill] sm:$0xff] %v14768_v39  ;;  %v10673_v41 = vadd.f32 %v6626_v33, %v16094_v26  ;;  %v6628_v50 = vpop.f32.mrb[179].mxu1  ;;  %v14790_v26 = vsel %vm3814_vm0, %v8198_v30, %v8199_v37  ;;  %v7975_v20 = vpop.f32.mrb[27].mxu0  ;;  %v8206_v28 = vrot.slane %v10542_v13, 1 }
 0x73c   : > { %v7342_v10 = vrot.slane %v10672_v18, 1  ;;  %v10674_v53 = vadd.f32 %v6628_v50, %v16096_v15  ;;  %v10545_v18 = vpop.f32.mrb[28].mxu0  ;;  %v14804_v30 = vsel %vm3814_vm0, %v8200_v4, %v8201_v9  ;;  %v14808_v62 = vsel %vm3814_vm0, %v8199_v37, %v8200_v4 }
 0x73d   : > { %10472 = vmatmul.mubr.bf16.gmra.mrb[92].mxu1 %v13743_v43  ;;  %16098 = vst [vmem:[#allocation6_spill] sm:$0xff] %v14804_v30  ;;  %v8205_v43 = vrot.slane %v10541_v29, 1  ;;  %v7988_v57 = vpop.f32.mrb[29].mxu0  ;;  %v8204_v9 = vrot.slane %v7975_v20, 1  ;;  %v8209_v4 = vrot.slane %v10545_v18, 1  ;;  %v16105_v18 = vld [vmem:[#allocation32_spill] sm:$0xff] }
 0x73e   : > { %v7429_v16 = vsel %vm3814_vm0, %v7341_v12, %v7342_v10  ;;  %v7343_v33 = vrot.slane %v10674_v53, 1  ;;  %10475 = vmatprep.mubr.bf16.mxu1 %v13756_v14  ;;  %v8203_v53 = vrot.slane %v7972_v32, 1  ;;  %v10546_v39 = vpop.f32.mrb[30].mxu0  ;;  %v16102_v32 = vld [vmem:[#allocation33_spill] sm:$0xff] }
 0x73f   : > { %v14800_v50 = vadd.f32 %v10669_v49, %v7429_v16  ;;  %v16100_v49 = vld [vmem:[#allocation23_spill] sm:$0xff]  ;;  %v7991_v0 = vpop.f32.mrb[31].mxu0  ;;  %v14827_v13 = vsel %vm3814_vm0, %v8204_v9, %v8205_v43 }
 0x740   : > { %v7428_v15 = vsel %vm3814_vm0, %v7342_v10, %v7343_v33  ;;  %v6632_v12 = vpop.f32.mrb[180].mxu1  ;;  %v14818_v29 = vsel %vm3814_vm0, %v8202_v63, %v8203_v53  ;;  %v8207_v10 = vrot.slane %v7988_v57, 1  ;;  %v10549_v60 = vpop.f32.mrb[32].mxu0  ;;  %16103 = vst [vmem:[#allocation4_spill] sm:$0xff] %v14827_v13 }
 0x741   : > { %16097 = vst [vmem:[#allocation34_spill] sm:$0xff] %v14800_v50  ;;  %v14812_v14 = vadd.f32 %v10671_v23, %v7428_v15  ;;  %v10675_v16 = vadd.f32 %v6632_v12, %v16100_v49  ;;  %v6634_v50 = vpop.f32.mrb[181].mxu1  ;;  %v14823_v15 = vsel %vm3814_vm0, %v8205_v43, %v8206_v28  ;;  %v8004_v63 = vpop.f32.mrb[33].mxu0  ;;  %v8210_v12 = vrot.slane %v10546_v39, 1 }
 0x742   : > { %v10676_v48 = vadd.f32 %v6634_v50, %v16101_v46  ;;  %v6636_v37 = vpop.f32.mrb[182].mxu1  ;;  %v14831_v46 = vsel %vm3814_vm0, %v8203_v53, %v8204_v9  ;;  %v14836_v57 = vsel %vm3814_vm0, %v8206_v28, %v8207_v10  ;;  %v10550_v49 = vpop.f32.mrb[34].mxu0 }
 0x743   : > { %16099 = vst [vmem:[#allocation5_spill] sm:$0xff] %v14812_v14  ;;  %v10677_v30 = vadd.f32 %v6636_v37, %v16102_v32  ;;  %v6638_v23 = vpop.f32.mrb[183].mxu1  ;;  %16104 = vst [vmem:[#allocation7_spill] sm:$0xff] %v14831_v46  ;;  %v8208_v37 = vrot.slane %v7991_v0, 1  ;;  %v8007_v32 = vpop.f32.mrb[35].mxu0  ;;  %v8213_v0 = vrot.slane %v10549_v60, 1 }
 0x744   : > { %v7344_v20 = vrot.slane %v10676_v48, 1  ;;  %v10678_v50 = vadd.f32 %v6638_v23, %v16105_v18  ;;  %16106 = vst [vmem:[#allocation10_spill] sm:$0xff] %v14836_v57  ;;  %v14844_v48 = vsel %vm3814_vm0, %v8209_v4, %v8210_v12  ;;  %v10553_v53 = vpop.f32.mrb[36].mxu0  ;;  %v8211_v23 = vrot.slane %v8004_v63, 1  ;;  %v16113_v57 = vld [vmem:[#allocation39_spill] sm:$0xff] }
 0x745   : > { %10476 = vmatmul.mubr.bf16.gmra.mrb[96].mxu1 %v13777_v6  ;;  %16107 = vst [vmem:[#allocation9_spill] sm:$0xff] %v14844_v48  ;;  %v14850_v28 = vsel %vm3814_vm0, %v8208_v37, %v8209_v4  ;;  %v14854_v6 = vsel %vm3814_vm0, %v8207_v10, %v8208_v37  ;;  %v8020_v39 = vpop.f32.mrb[37].mxu0  ;;  %v8214_v48 = vrot.slane %v10550_v49, 1  ;;  %v8212_v4 = vrot.slane %v8007_v32, 1  ;;  %v16114_v63 = vld [vmem:[#allocation43_spill] sm:$0xff] }
 0x746   : > { %v7427_v43 = vsel %vm3814_vm0, %v7343_v33, %v7344_v20  ;;  %v7345_v14 = vrot.slane %v10678_v50, 1  ;;  %10479 = vmatprep.mubr.bf16.mxu1 %v13790_v44  ;;  %16109 = vst [vmem:[#allocation14_spill] sm:$0xff] %v14850_v28  ;;  %16110 = vst [vmem:[#allocation18_spill] sm:$0xff] %v14854_v6  ;;  %v10554_v18 = vpop.f32.mrb[38].mxu0  ;;  %v14864_v60 = vsel %vm3814_vm0, %v8210_v12, %v8211_v23  ;;  %v8217_v37 = vrot.slane %v10553_v53, 1  ;;  %v16117_v53 = vld [vmem:[#allocation44_spill] sm:$0xff] }
 0x747   : > { %v14846_v9 = vadd.f32 %v10673_v41, %v7427_v43  ;;  %v16112_v41 = vld [vmem:[#allocation31_spill] sm:$0xff]  ;;  %v8023_v28 = vpop.f32.mrb[39].mxu0  ;;  %v14873_v49 = vsel %vm3814_vm0, %v8212_v4, %v8213_v0 }
 0x748   : > { %v7426_v44 = vsel %vm3814_vm0, %v7344_v20, %v7345_v14  ;;  %v6642_v33 = vpop.f32.mrb[184].mxu1  ;;  %v8215_v20 = vrot.slane %v8020_v39, 1  ;;  %v10557_v6 = vpop.f32.mrb[40].mxu0  ;;  %16115 = vst [vmem:[#allocation15_spill] sm:$0xff] %v14873_v49 }
 0x749   : > { %16108 = vst [vmem:[#allocation8_spill] sm:$0xff] %v14846_v9  ;;  %v14858_v50 = vadd.f32 %v10675_v16, %v7426_v44  ;;  %v10679_v43 = vadd.f32 %v6642_v33, %v16112_v41  ;;  %v6644_v9 = vpop.f32.mrb[185].mxu1  ;;  %v14869_v44 = vsel %vm3814_vm0, %v8213_v0, %v8214_v48  ;;  %v8036_v12 = vpop.f32.mrb[41].mxu0  ;;  %v8218_v33 = vrot.slane %v10554_v18, 1 }
 0x74a   : > { %v10680_v13 = vadd.f32 %v6644_v9, %v16113_v57  ;;  %v6646_v10 = vpop.f32.mrb[186].mxu1  ;;  %v14877_v57 = vsel %vm3814_vm0, %v8211_v23, %v8212_v4  ;;  %v14882_v39 = vsel %vm3814_vm0, %v8214_v48, %v8215_v20  ;;  %v10558_v41 = vpop.f32.mrb[42].mxu0 }
 0x74b   : > { %16111 = vst [vmem:[#allocation17_spill] sm:$0xff] %v14858_v50  ;;  %v10681_v46 = vadd.f32 %v6646_v10, %v16114_v63  ;;  %v6648_v16 = vpop.f32.mrb[187].mxu1  ;;  %16116 = vst [vmem:[#allocation22_spill] sm:$0xff] %v14877_v57  ;;  %v8216_v10 = vrot.slane %v8023_v28, 1  ;;  %v8039_v63 = vpop.f32.mrb[43].mxu0  ;;  %v8221_v28 = vrot.slane %v10557_v6, 1 }
 0x74c   : > { %v7346_v32 = vrot.slane %v10680_v13, 1  ;;  %v10682_v9 = vadd.f32 %v6648_v16, %v16117_v53  ;;  %16118 = vst [vmem:[#allocation26_spill] sm:$0xff] %v14882_v39  ;;  %v14890_v13 = vsel %vm3814_vm0, %v8217_v37, %v8218_v33  ;;  %v10561_v23 = vpop.f32.mrb[44].mxu0  ;;  %v8219_v16 = vrot.slane %v8036_v12, 1  ;;  %v16124_v39 = vld [vmem:[#allocation45_spill] sm:$0xff]  ;;  %v16126_v12 = vld [vmem:[#allocation46_spill] sm:$0xff] }
 0x74d   : > { %10480 = vmatmul.mubr.bf16.gmra.mrb[100].mxu1 %v13811_v40  ;;  %16119 = vst [vmem:[#allocation25_spill] sm:$0xff] %v14890_v13  ;;  %v14896_v48 = vsel %vm3814_vm0, %v8216_v10, %v8217_v37  ;;  %v14900_v40 = vsel %vm3814_vm0, %v8215_v20, %v8216_v10  ;;  %v8222_v13 = vrot.slane %v10558_v41, 1  ;;  %v8220_v37 = vrot.slane %v8039_v63, 1 }
 0x74e   : > { %v7425_v0 = vsel %vm3814_vm0, %v7345_v14, %v7346_v32  ;;  %v7347_v49 = vrot.slane %v10682_v9, 1  ;;  %10483 = vmatprep.mubr.bf16.mxu1 %v13830_v42  ;;  %16121 = vst [vmem:[#allocation30_spill] sm:$0xff] %v14896_v48  ;;  %16122 = vst [vmem:[#allocation33_spill] sm:$0xff] %v14900_v40  ;;  %v8052_v14 = vpop.f32.mrb[45].mxu0  ;;  %v14910_v6 = vsel %vm3814_vm0, %v8218_v33, %v8219_v16  ;;  %v8225_v10 = vrot.slane %v10561_v23, 1  ;;  %v16130_v23 = vld [vmem:[#allocation47_spill] sm:$0xff] }
 0x74f   : > { %v14892_v4 = vadd.f32 %v10677_v30, %v7425_v0  ;;  %v10562_v53 = vpop.f32.mrb[46].mxu0  ;;  %v16123_v30 = vld [vmem:[#allocation54_spill] sm:$0xff]  ;;  %16125 = vst [vmem:[#allocation32_spill] sm:$0xff] %v14910_v6  ;;  %v14919_v41 = vsel %vm3814_vm0, %v8220_v37, %v8221_v28 }
 0x750   : > { %v7424_v42 = vsel %vm3814_vm0, %v7346_v32, %v7347_v49  ;;  %v6652_v18 = vpop.f32.mrb[188].mxu1  ;;  %v8055_v48 = vpop.f32.mrb[47].mxu0  ;;  %v8223_v32 = vrot.slane %v8052_v14, 1  ;;  %16128 = vst [vmem:[#allocation39_spill] sm:$0xff] %v14919_v41 }
 0x751   : > { %16120 = vst [vmem:[#allocation23_spill] sm:$0xff] %v14892_v4  ;;  %v14904_v9 = vadd.f32 %v10679_v43, %v7424_v42  ;;  %v10683_v0 = vadd.f32 %v6652_v18, %v16123_v30  ;;  %v6654_v4 = vpop.f32.mrb[189].mxu1  ;;  %v10565_v40 = vpop.f32.mrb[48].mxu0  ;;  %v14915_v42 = vsel %vm3814_vm0, %v8221_v28, %v8222_v13  ;;  %v8226_v18 = vrot.slane %v10562_v53, 1 }
 0x752   : > { %v10684_v50 = vadd.f32 %v6654_v4, %v16124_v39  ;;  %v6656_v20 = vpop.f32.mrb[190].mxu1  ;;  %16127 = vst [vmem:[#allocation31_spill] sm:$0xff] %v14915_v42  ;;  %v14923_v39 = vsel %vm3814_vm0, %v8219_v16, %v8220_v37  ;;  %v8068_v33 = vpop.f32.mrb[49].mxu0  ;;  %v14928_v14 = vsel %vm3814_vm0, %v8222_v13, %v8223_v32 }
 0x753   : > { %v10685_v57 = vadd.f32 %v6656_v20, %v16126_v12  ;;  %v6658_v43 = vpop.f32.mrb[191].mxu1  ;;  %16129 = vst [vmem:[#allocation43_spill] sm:$0xff] %v14923_v39  ;;  %16131 = vst [vmem:[#allocation44_spill] sm:$0xff] %v14928_v14  ;;  %v10566_v30 = vpop.f32.mrb[50].mxu0  ;;  %v8224_v20 = vrot.slane %v8055_v48, 1  ;;  %v8229_v48 = vrot.slane %v10565_v40, 1 }
 0x754   : > { %v7348_v63 = vrot.slane %v10684_v50, 1  ;;  %v10686_v4 = vadd.f32 %v6658_v43, %v16130_v23  ;;  %v8071_v12 = vpop.f32.mrb[51].mxu0  ;;  %v14936_v50 = vsel %vm3814_vm0, %v8225_v10, %v8226_v18  ;;  %v8227_v43 = vrot.slane %v8068_v33, 1  ;;  %v16136_v39 = vld [vmem:[#allocation56_spill] sm:$0xff]  ;;  %v16138_v33 = vld [vmem:[#allocation49_spill] sm:$0xff] }
 0x755   : > { %10484 = vmatmul.mubr.bf16.gmra.mrb[104].mxu1 %v13850_v52  ;;  %16132 = vst [vmem:[#allocation54_spill] sm:$0xff] %v14936_v50  ;;  %v10569_v16 = vpop.f32.mrb[52].mxu0  ;;  %v14942_v13 = vsel %vm3814_vm0, %v8224_v20, %v8225_v10  ;;  %v14946_v52 = vsel %vm3814_vm0, %v8223_v32, %v8224_v20  ;;  %v8230_v14 = vrot.slane %v10566_v30, 1  ;;  %v8228_v10 = vrot.slane %v8071_v12, 1 }
 0x756   : > { %v7423_v28 = vsel %vm3814_vm0, %v7347_v49, %v7348_v63  ;;  %v7349_v41 = vrot.slane %v10686_v4, 1  ;;  %10487 = vmatprep.mubr.bf16.mxu1 %v13863_v11  ;;  %16133 = vst [vmem:[#allocation45_spill] sm:$0xff] %v14942_v13  ;;  %16134 = vst [vmem:[#allocation46_spill] sm:$0xff] %v14946_v52  ;;  %v8084_v49 = vpop.f32.mrb[53].mxu0  ;;  %v14956_v40 = vsel %vm3814_vm0, %v8226_v18, %v8227_v43  ;;  %v8233_v20 = vrot.slane %v10569_v16, 1 }
 0x757   : > { %v14938_v37 = vadd.f32 %v10681_v46, %v7423_v28  ;;  %v10570_v23 = vpop.f32.mrb[54].mxu0  ;;  %v16135_v46 = vld [vmem:[#allocation48_spill] sm:$0xff]  ;;  %16137 = vst [vmem:[#allocation47_spill] sm:$0xff] %v14956_v40  ;;  %v14965_v30 = vsel %vm3814_vm0, %v8228_v10, %v8229_v48 }
 0x758   : > { %v7422_v11 = vsel %vm3814_vm0, %v7348_v63, %v7349_v41  ;;  %v6662_v53 = vpop.f32.mrb[192].mxu1  ;;  %v8087_v13 = vpop.f32.mrb[55].mxu0  ;;  %v8231_v63 = vrot.slane %v8084_v49, 1  ;;  %16140 = vst [vmem:[#allocation56_spill] sm:$0xff] %v14965_v30 }
 0x759   : > { %v14950_v4 = vadd.f32 %v10683_v0, %v7422_v11  ;;  %v10687_v28 = vadd.f32 %v6662_v53, %v16135_v46  ;;  %v6664_v50 = vpop.f32.mrb[193].mxu1  ;;  %v10573_v52 = vpop.f32.mrb[56].mxu0  ;;  %v14961_v11 = vsel %vm3814_vm0, %v8229_v48, %v8230_v14  ;;  %v8234_v53 = vrot.slane %v10570_v23, 1 }
 0x75a   : > { %v10688_v42 = vadd.f32 %v6664_v50, %v16136_v39  ;;  %v6666_v32 = vpop.f32.mrb[194].mxu1  ;;  %16139 = vst [vmem:[#allocation48_spill] sm:$0xff] %v14961_v11  ;;  %v14969_v39 = vsel %vm3814_vm0, %v8227_v43, %v8228_v10  ;;  %v8100_v18 = vpop.f32.mrb[57].mxu0  ;;  %v16142_v50 = vld [vmem:[#allocation50_spill] sm:$0xff]  ;;  %v14974_v49 = vsel %vm3814_vm0, %v8230_v14, %v8231_v63 }
 0x75b   : > { %v10689_v6 = vadd.f32 %v6666_v32, %v16138_v33  ;;  %v6668_v0 = vpop.f32.mrb[195].mxu1  ;;  %16141 = vst [vmem:[#allocation49_spill] sm:$0xff] %v14969_v39  ;;  %16143 = vst [vmem:[#allocation50_spill] sm:$0xff] %v14974_v49  ;;  %v10574_v46 = vpop.f32.mrb[58].mxu0  ;;  %v8232_v32 = vrot.slane %v8087_v13, 1  ;;  %v8237_v13 = vrot.slane %v10573_v52, 1 }
 0x75c   : > { %v7350_v12 = vrot.slane %v10688_v42, 1  ;;  %v10690_v16 = vadd.f32 %v6668_v0, %v16142_v50  ;;  %v8103_v33 = vpop.f32.mrb[59].mxu0  ;;  %v14982_v42 = vsel %vm3814_vm0, %v8233_v20, %v8234_v53  ;;  %v8235_v0 = vrot.slane %v8100_v18, 1  ;;  %v16148_v39 = vld [vmem:[#allocation55_spill] sm:$0xff]  ;;  %v16149_v18 = vld [vmem:[#allocation52_spill] sm:$0xff] }
 0x75d   : > { %10488 = vmatmul.mubr.bf16.gmra.mrb[108].mxu1 %v13878_v3  ;;  %16144 = vst [vmem:[#allocation113_spill] sm:$0xff] %v14982_v42  ;;  %v10577_v43 = vpop.f32.mrb[60].mxu0  ;;  %v14988_v14 = vsel %vm3814_vm0, %v8232_v32, %v8233_v20  ;;  %v14992_v3 = vsel %vm3814_vm0, %v8231_v63, %v8232_v32  ;;  %v8238_v49 = vrot.slane %v10574_v46, 1  ;;  %v8236_v20 = vrot.slane %v8103_v33, 1 }
 0x75e   : > { %v7421_v48 = vsel %vm3814_vm0, %v7349_v41, %v7350_v12  ;;  %v7351_v30 = vrot.slane %v10690_v16, 1  ;;  %10491 = vmatprep.mubr.bf16.mxu1 %v13891_v61  ;;  %16145 = vst [vmem:[#allocation114_spill] sm:$0xff] %v14988_v14  ;;  %16146 = vst [vmem:[#allocation115_spill] sm:$0xff] %v14992_v3  ;;  %v8116_v41 = vpop.f32.mrb[61].mxu0  ;;  %v15002_v52 = vsel %vm3814_vm0, %v8234_v53, %v8235_v0  ;;  %v8241_v32 = vrot.slane %v10577_v43, 1 }
 0x75f   : > { %v14984_v10 = vadd.f32 %v10685_v57, %v7421_v48  ;;  %v10578_v50 = vpop.f32.mrb[62].mxu0  ;;  %v16147_v57 = vld [vmem:[#allocation2_spill] sm:$0xff]  ;;  %v15011_v46 = vsel %vm3814_vm0, %v8236_v20, %v8237_v13 }
 0x760   : > { %v7420_v61 = vsel %vm3814_vm0, %v7350_v12, %v7351_v30  ;;  %v6672_v23 = vpop.f32.mrb[196].mxu1  ;;  %v8119_v14 = vpop.f32.mrb[63].mxu0  ;;  %v8239_v12 = vrot.slane %v8116_v41, 1  ;;  %16151 = vst [vmem:[#allocation55_spill] sm:$0xff] %v15011_v46 }
 0x761   : > { %v14996_v16 = vadd.f32 %v10687_v28, %v7420_v61  ;;  %v10691_v48 = vadd.f32 %v6672_v23, %v16147_v57  ;;  %v6674_v42 = vpop.f32.mrb[197].mxu1  ;;  %v10581_v3 = vpop.f32.mrb[64].mxu0  ;;  %v15007_v61 = vsel %vm3814_vm0, %v8237_v13, %v8238_v49  ;;  %v8242_v23 = vrot.slane %v10578_v50, 1 }
 0x762   : > { %v10692_v11 = vadd.f32 %v6674_v42, %v16148_v39  ;;  %v6676_v63 = vpop.f32.mrb[198].mxu1  ;;  %16150 = vst [vmem:[#allocation2_spill] sm:$0xff] %v15007_v61  ;;  %v15015_v39 = vsel %vm3814_vm0, %v8235_v0, %v8236_v20  ;;  %v8132_v53 = vpop.f32.mrb[65].mxu0  ;;  %v16153_v42 = vld [vmem:[#allocation51_spill] sm:$0xff]  ;;  %v15020_v41 = vsel %vm3814_vm0, %v8238_v49, %v8239_v12 }
 0x763   : > { %v10693_v40 = vadd.f32 %v6676_v63, %v16149_v18  ;;  %v6678_v28 = vpop.f32.mrb[199].mxu1  ;;  %16152 = vst [vmem:[#allocation52_spill] sm:$0xff] %v15015_v39  ;;  %16154 = vst [vmem:[#allocation51_spill] sm:$0xff] %v15020_v41  ;;  %v10582_v57 = vpop.f32.mrb[66].mxu0  ;;  %v8240_v63 = vrot.slane %v8119_v14, 1  ;;  %v8245_v14 = vrot.slane %v10581_v3, 1 }
 0x764   : > { %v7352_v33 = vrot.slane %v10692_v11, 1  ;;  %v10694_v43 = vadd.f32 %v6678_v28, %v16153_v42  ;;  %v8135_v18 = vpop.f32.mrb[67].mxu0  ;;  %v15028_v11 = vsel %vm3814_vm0, %v8241_v32, %v8242_v23  ;;  %v8243_v28 = vrot.slane %v8132_v53, 1  ;;  %v16159_v39 = vld [vmem:[#allocation3_spill] sm:$0xff]  ;;  %v16161_v53 = vld [vmem:[#allocation40_spill] sm:$0xff] }
 0x765   : > { %10492 = vmatmul.mubr.bf16.gmra.mrb[112].mxu1 %v13906_v25  ;;  %16155 = vst [vmem:[#allocation116_spill] sm:$0xff] %v15028_v11  ;;  %v10585_v0 = vpop.f32.mrb[68].mxu0  ;;  %v15034_v49 = vsel %vm3814_vm0, %v8240_v63, %v8241_v32  ;;  %v15038_v25 = vsel %vm3814_vm0, %v8239_v12, %v8240_v63  ;;  %v8246_v41 = vrot.slane %v10582_v57, 1  ;;  %v8244_v32 = vrot.slane %v8135_v18, 1 }
 0x766   : > { %v7419_v13 = vsel %vm3814_vm0, %v7351_v30, %v7352_v33  ;;  %v7353_v46 = vrot.slane %v10694_v43, 1  ;;  %10495 = vmatprep.mubr.bf16.mxu1 %v13919_v59  ;;  %16156 = vst [vmem:[#allocation117_spill] sm:$0xff] %v15034_v49  ;;  %16157 = vst [vmem:[#allocation118_spill] sm:$0xff] %v15038_v25  ;;  %v8148_v30 = vpop.f32.mrb[69].mxu0  ;;  %v15048_v3 = vsel %vm3814_vm0, %v8242_v23, %v8243_v28  ;;  %v8249_v63 = vrot.slane %v10585_v0, 1 }
 0x767   : > { %v15030_v20 = vadd.f32 %v10689_v6, %v7419_v13  ;;  %v10586_v42 = vpop.f32.mrb[70].mxu0  ;;  %v16158_v6 = vld [vmem:[#allocation53_spill] sm:$0xff]  ;;  %v15059_v57 = vsel %vm3814_vm0, %v8244_v32, %v8245_v14 }
 0x768   : > { %v7418_v59 = vsel %vm3814_vm0, %v7352_v33, %v7353_v46  ;;  %v6682_v50 = vpop.f32.mrb[200].mxu1  ;;  %v8151_v49 = vpop.f32.mrb[71].mxu0  ;;  %16160 = vst [vmem:[#allocation53_spill] sm:$0xff] %v15048_v3  ;;  %v8247_v33 = vrot.slane %v8148_v30, 1  ;;  %16163 = vst [vmem:[#allocation40_spill] sm:$0xff] %v15059_v57  ;;  %v16175_v3 = vld [vmem:[#allocation16_spill] sm:$0xff] }
 0x769   : > { %v15042_v43 = vadd.f32 %v10691_v48, %v7418_v59  ;;  %v10695_v13 = vadd.f32 %v6682_v50, %v16158_v6  ;;  %v6684_v11 = vpop.f32.mrb[201].mxu1  ;;  %v15050_v25 = vpop.f32.mrb[72].mxu0  ;;  %v15055_v50 = vsel %vm3814_vm0, %v8245_v14, %v8246_v41  ;;  %v8250_v6 = vrot.slane %v10586_v42, 1 }
 0x76a   : > { %v10696_v61 = vadd.f32 %v6684_v11, %v16159_v39  ;;  %v6686_v12 = vpop.f32.mrb[202].mxu1  ;;  %16162 = vst [vmem:[#allocation3_spill] sm:$0xff] %v15055_v50  ;;  %v15063_v39 = vsel %vm3814_vm0, %v8243_v28, %v8244_v32  ;;  %v8164_v23 = vpop.f32.mrb[73].mxu0  ;;  %v16165_v11 = vld [vmem:[#allocation12_spill] sm:$0xff]  ;;  %v15068_v30 = vsel %vm3814_vm0, %v8246_v41, %v8247_v33 }
 0x76b   : > { %v10697_v48 = vadd.f32 %v6686_v12, %v16161_v53  ;;  %v6688_v59 = vpop.f32.mrb[203].mxu1  ;;  %16164 = vst [vmem:[#allocation119_spill] sm:$0xff] %v15063_v39  ;;  %16166 = vst [vmem:[#allocation12_spill] sm:$0xff] %v15068_v30  ;;  %v10590_v12 = vpop.f32.mrb[74].mxu0  ;;  %v8248_v53 = vrot.slane %v8151_v49, 1  ;;  %v16172_v30 = vld [vmem:[#allocation11_spill] sm:$0xff] }
 0x76c   : > { %v7354_v18 = vrot.slane %v10696_v61, 1  ;;  %v10698_v0 = vadd.f32 %v6688_v59, %v16165_v11  ;;  %v8167_v50 = vpop.f32.mrb[75].mxu0  ;;  %v15076_v61 = vsel %vm3814_vm0, %v8249_v63, %v8250_v6  ;;  %v16170_v11 = vld [vmem:[#allocation13_spill] sm:$0xff] }
 0x76d   : > { %10496 = vmatmul.mubr.bf16.gmra.mrb[116].mxu1 %v13934_v38  ;;  %16167 = vst [vmem:[#allocation120_spill] sm:$0xff] %v15076_v61  ;;  %v15078_v28 = vpop.f32.mrb[76].mxu0  ;;  %v15084_v42 = vsel %vm3814_vm0, %v8248_v53, %v8249_v63  ;;  %v15088_v38 = vsel %vm3814_vm0, %v8247_v33, %v8248_v53  ;;  %v16171_v61 = vld [vmem:[#allocation41_spill] sm:$0xff]  ;;  %v16173_v53 = vrot.slane %v14756_v31, 1 }
 0x76e   : > { %v7417_v14 = vsel %vm3814_vm0, %v7353_v46, %v7354_v18  ;;  %v7355_v57 = vrot.slane %v10698_v0, 1  ;;  %10499 = vmatprep.mubr.bf16.mxu1 %v13947_v7  ;;  %16168 = vst [vmem:[#allocation121_spill] sm:$0xff] %v15084_v42  ;;  %16169 = vst [vmem:[#allocation122_spill] sm:$0xff] %v15088_v38  ;;  %v15090_v46 = vpop.f32.mrb[77].mxu0 }
 0x76f   : > { %v15080_v41 = vadd.f32 %v10693_v40, %v7417_v14  ;;  %v10594_v32 = vpop.f32.mrb[78].mxu0 }
 0x770   : > { %v7416_v7 = vsel %vm3814_vm0, %v7354_v18, %v7355_v57  ;;  %v6692_v49 = vpop.f32.mrb[204].mxu1  ;;  %v8258_v14 = vrot.slane %v10594_v32, 1 }
 0x771   : > { %v15094_v59 = vadd.f32 %v10695_v13, %v7416_v7  ;;  %v10699_v40 = vadd.f32 %v6692_v49, %v16170_v11  ;;  %v6694_v0 = vpop.f32.mrb[205].mxu1 }
 0x772   : > { %v10700_v63 = vadd.f32 %v6694_v0, %v16171_v61  ;;  %v6696_v42 = vpop.f32.mrb[206].mxu1  ;;  %v15103_v38 = vsel %vm3814_vm0, %v8258_v14, %v16173_v53  ;;  %v8251_v61 = vrot.slane %v8164_v23, 1 }
 0x773   : > { %v10701_v39 = vadd.f32 %v6696_v42, %v16172_v30  ;;  %v6698_v33 = vpop.f32.mrb[207].mxu1  ;;  %16174 = vst [vmem:[#allocation13_spill] sm:$0xff] %v15103_v38 }
 0x774   : > { %v7356_v18 = vrot.slane %v10700_v63, 1  ;;  %v10702_v13 = vadd.f32 %v6698_v33, %v16175_v3  ;;  %v15116_v32 = vsel %vm3814_vm0, %v8250_v6, %v8251_v61  ;;  %v16178_v63 = vld [vmem:[#allocation57_spill] sm:$0xff]  ;;  %v16180_v6 = vld [vmem:[#allocation59_spill] sm:$0xff] }
 0x775   : > { %10500 = vmatmul.mubr.bf16.gmra.mrb[120].mxu1 %v13962_v58  ;;  %16176 = vst [vmem:[#allocation41_spill] sm:$0xff] %v15116_v32  ;;  %v16177_v58 = vld [vmem:[#allocation42_spill] sm:$0xff] }
 0x776   : > { %v7415_v7 = vsel %vm3814_vm0, %v7355_v57, %v7356_v18  ;;  %v7357_v49 = vrot.slane %v10702_v13, 1  ;;  %10503 = vmatprep.mubr.bf16.mxu1 %v13975_v24  ;;  %v8253_v57 = vrot.slane %v15050_v25, 1  ;;  %v8254_v13 = vrot.slane %v10590_v12, 1 }
 0x777   : > { %v15110_v30 = vadd.f32 %v10697_v48, %v7415_v7  ;;  %v16179_v48 = vld [vmem:[#allocation58_spill] sm:$0xff]  ;;  %v15817_v7 = vrot.slane %v15078_v28, 1 }
 0x778   : > { %v7414_v31 = vsel %vm3814_vm0, %v7356_v18, %v7357_v49  ;;  %v6702_v42 = vpop.f32.mrb[208].mxu1  ;;  %v8252_v18 = vrot.slane %v8167_v50, 1  ;;  %v15130_v25 = vsel %vm3814_vm0, %v8253_v57, %v8254_v13 }
 0x779   : > { %v15118_v3 = vadd.f32 %v10699_v40, %v7414_v31  ;;  %v10703_v11 = vadd.f32 %v6702_v42, %v16177_v58  ;;  %v6704_v0 = vpop.f32.mrb[209].mxu1  ;;  %v15816_v40 = vrot.slane %v15090_v46, 1  ;;  %16181 = vst [vmem:[#allocation11_spill] sm:$0xff] %v15130_v25  ;;  %v15144_v12 = vsel %vm3814_vm0, %v15817_v7, %v8258_v14  ;;  %v16211_v25 = vld [vmem:[#allocation82_spill] sm:$0xff] }
 0x77a   : > { %v10704_v24 = vadd.f32 %v6704_v0, %v16178_v63  ;;  %v6706_v23 = vpop.f32.mrb[210].mxu1  ;;  %v15134_v31 = vsel %vm3814_vm0, %v8252_v18, %v8253_v57  ;;  %v15138_v50 = vsel %vm3814_vm0, %v8251_v61, %v8252_v18  ;;  %16184 = vst [vmem:[#allocation57_spill] sm:$0xff] %v15144_v12  ;;  %v16186_v63 = vld [vmem:[#allocation60_spill] sm:$0xff]  ;;  %v16200_v12 = vld [vmem:[#allocation74_spill] sm:$0xff] }
 0x77b   : > { %v10705_v33 = vadd.f32 %v6706_v23, %v16179_v48  ;;  %v6708_v53 = vpop.f32.mrb[211].mxu1  ;;  %16182 = vst [vmem:[#allocation16_spill] sm:$0xff] %v15134_v31  ;;  %16183 = vst [vmem:[#allocation42_spill] sm:$0xff] %v15138_v50  ;;  %v15153_v58 = vsel %vm3814_vm0, %v8254_v13, %v15816_v40  ;;  %v16188_v48 = vld [vmem:[#allocation62_spill] sm:$0xff]  ;;  %v16189_v13 = vld [vmem:[#allocation63_spill] sm:$0xff] }
 0x77c   : > { %v7358_v38 = vrot.slane %v10704_v24, 1  ;;  %v10706_v32 = vadd.f32 %v6708_v53, %v16180_v6  ;;  %16185 = vst [vmem:[#allocation58_spill] sm:$0xff] %v15153_v58  ;;  %v16205_v31 = vld [vmem:[#allocation78_spill] sm:$0xff] }
 0x77d   : > { %10504 = vmatmul.mubr.bf16.gmra.mrb[124].mxu1 %v13990_v35 }
 0x77e   : > { %v7413_v35 = vsel %vm3814_vm0, %v7357_v49, %v7358_v38  ;;  %v7359_v42 = vrot.slane %v10706_v32, 1  ;;  %10507 = vmatprep.mubr.bf16.mxu1 %v14005_v8  ;;  %v16187_v32 = vld [vmem:[#allocation61_spill] sm:$0xff] }
 0x77f   : > { %v15155_v61 = vadd.f32 %v10701_v39, %v7413_v35 }
 0x780   : > { %v7412_v0 = vsel %vm3814_vm0, %v7358_v38, %v7359_v42  ;;  %v6712_v57 = vpop.f32.mrb[212].mxu1 }
 0x781   : > { %v15159_v14 = vadd.f32 %v10703_v11, %v7412_v0  ;;  %v10707_v24 = vadd.f32 %v6712_v57, %v16186_v63  ;;  %v6714_v49 = vpop.f32.mrb[213].mxu1  ;;  %v16190_v63 = vld [vmem:[#allocation64_spill] sm:$0xff] }
 0x782   : > { %v10708_v23 = vadd.f32 %v6714_v49, %v16187_v32  ;;  %v6716_v8 = vpop.f32.mrb[214].mxu1 }
 0x783   : > { %v10709_v53 = vadd.f32 %v6716_v8, %v16188_v48  ;;  %v6718_v18 = vpop.f32.mrb[215].mxu1  ;;  %v16192_v48 = vld [vmem:[#allocation66_spill] sm:$0xff] }
 0x784   : > { %v7360_v6 = vrot.slane %v10708_v23, 1  ;;  %v10710_v40 = vadd.f32 %v6718_v18, %v16189_v13  ;;  %v16191_v23 = vld [vmem:[#allocation65_spill] sm:$0xff]  ;;  %v16193_v13 = vld [vmem:[#allocation67_spill] sm:$0xff] }
 0x785   : > { %10508 = vmatmul.mubr.bf16.gmra.mrb[128].mxu1 %v14022_v34 }
 0x786   : > { %v7411_v39 = vsel %vm3814_vm0, %v7359_v42, %v7360_v6  ;;  %v7361_v38 = vrot.slane %v10710_v40, 1  ;;  %10511 = vmatprep.mubr.bf16.mxu1 %v14050_v36 }
 0x787   : > { %v15169_v11 = vadd.f32 %v10705_v33, %v7411_v39 }
 0x788   : > { %v7410_v35 = vsel %vm3814_vm0, %v7360_v6, %v7361_v38  ;;  %v6722_v0 = vpop.f32.mrb[216].mxu1 }
 0x789   : > { %v15173_v57 = vadd.f32 %v10707_v24, %v7410_v35  ;;  %v10711_v49 = vadd.f32 %v6722_v0, %v16190_v63  ;;  %v6724_v32 = vpop.f32.mrb[217].mxu1  ;;  %v16194_v63 = vld [vmem:[#allocation68_spill] sm:$0xff] }
 0x78a   : > { %v10712_v8 = vadd.f32 %v6724_v32, %v16191_v23  ;;  %v6726_v34 = vpop.f32.mrb[218].mxu1 }
 0x78b   : > { %v10713_v18 = vadd.f32 %v6726_v34, %v16192_v48  ;;  %v6728_v42 = vpop.f32.mrb[219].mxu1 }
 0x78c   : > { %v7362_v40 = vrot.slane %v10712_v8, 1  ;;  %v10714_v36 = vadd.f32 %v6728_v42, %v16193_v13  ;;  %v16195_v8 = vld [vmem:[#allocation69_spill] sm:$0xff]  ;;  %v16196_v42 = vld [vmem:[#allocation70_spill] sm:$0xff] }
 0x78d   : > { %10512 = vmatmul.mubr.bf16.gmra.mrb[132].mxu1 %v16060_v5 }
 0x78e   : > { %v7409_v33 = vsel %vm3814_vm0, %v7361_v38, %v7362_v40  ;;  %v7363_v6 = vrot.slane %v10714_v36, 1  ;;  %v16197_v38 = vld [vmem:[#allocation71_spill] sm:$0xff] }
 0x78f   : > { %v15182_v24 = vadd.f32 %v10709_v53, %v7409_v33 }
 0x790   : > { %v7408_v39 = vsel %vm3814_vm0, %v7362_v40, %v7363_v6  ;;  %v6732_v35 = vpop.f32.mrb[220].mxu1 }
 0x791   : > { %v15186_v0 = vadd.f32 %v10711_v49, %v7408_v39  ;;  %v10715_v32 = vadd.f32 %v6732_v35, %v16194_v63  ;;  %v6734_v23 = vpop.f32.mrb[221].mxu1  ;;  %v16198_v63 = vld [vmem:[#allocation72_spill] sm:$0xff] }
 0x792   : > { %v10716_v34 = vadd.f32 %v6734_v23, %v16195_v8  ;;  %v6736_v48 = vpop.f32.mrb[222].mxu1 }
 0x793   : > { %v10717_v5 = vadd.f32 %v6736_v48, %v16196_v42  ;;  %v6738_v13 = vpop.f32.mrb[223].mxu1  ;;  %v16199_v48 = vld [vmem:[#allocation73_spill] sm:$0xff] }
 0x794   : > { %v7364_v7 = vrot.slane %v10716_v34, 1  ;;  %v10718_v36 = vadd.f32 %v6738_v13, %v16197_v38 }
 0x796   : > { %v7407_v53 = vsel %vm3814_vm0, %v7363_v6, %v7364_v7  ;;  %v7365_v33 = vrot.slane %v10718_v36, 1  ;;  %v16201_v6 = vld [vmem:[#allocation75_spill] sm:$0xff] }
 0x797   : > { %v15194_v40 = vadd.f32 %v10713_v18, %v7407_v53 }
 0x798   : > { %v7406_v49 = vsel %vm3814_vm0, %v7364_v7, %v7365_v33  ;;  %v6742_v39 = vpop.f32.mrb[224].mxu1 }
 0x799   : > { %v15198_v35 = vadd.f32 %v10715_v32, %v7406_v49  ;;  %v10719_v23 = vadd.f32 %v6742_v39, %v16198_v63  ;;  %v6744_v8 = vpop.f32.mrb[225].mxu1  ;;  %v16203_v63 = vld [vmem:[#allocation76_spill] sm:$0xff] }
 0x79a   : > { %v10720_v42 = vadd.f32 %v6744_v8, %v16199_v48  ;;  %v6746_v34 = vpop.f32.mrb[226].mxu1 }
 0x79b   : > { %v10721_v13 = vadd.f32 %v6746_v34, %v16200_v12  ;;  %v6748_v38 = vpop.f32.mrb[227].mxu1  ;;  %v16204_v12 = vld [vmem:[#allocation77_spill] sm:$0xff] }
 0x79c   : > { %v7366_v58 = vrot.slane %v10720_v42, 1  ;;  %v10722_v36 = vadd.f32 %v6748_v38, %v16201_v6 }
 0x79e   : > { %v7405_v18 = vsel %vm3814_vm0, %v7365_v33, %v7366_v58  ;;  %v7367_v53 = vrot.slane %v10722_v36, 1  ;;  %v16206_v33 = vld [vmem:[#allocation79_spill] sm:$0xff] }
 0x79f   : > { %v15206_v7 = vadd.f32 %v10717_v5, %v7405_v18 }
 0x7a0   : > { %v7404_v32 = vsel %vm3814_vm0, %v7366_v58, %v7367_v53  ;;  %v6752_v49 = vpop.f32.mrb[228].mxu1 }
 0x7a1   : > { %v15210_v39 = vadd.f32 %v10719_v23, %v7404_v32  ;;  %v10723_v8 = vadd.f32 %v6752_v49, %v16203_v63  ;;  %v6754_v48 = vpop.f32.mrb[229].mxu1  ;;  %v16209_v63 = vld [vmem:[#allocation80_spill] sm:$0xff] }
 0x7a2   : > { %v10724_v34 = vadd.f32 %v6754_v48, %v16204_v12  ;;  %v6756_v42 = vpop.f32.mrb[230].mxu1 }
 0x7a3   : > { %16202 = vst [vmem:[#allocation59_spill] sm:$0xff] %v15210_v39  ;;  %v10725_v38 = vadd.f32 %v6756_v42, %v16205_v31  ;;  %v6758_v6 = vpop.f32.mrb[231].mxu1  ;;  %v16210_v31 = vld [vmem:[#allocation81_spill] sm:$0xff] }
 0x7a4   : > { %v7368_v50 = vrot.slane %v10724_v34, 1  ;;  %v10726_v36 = vadd.f32 %v6758_v6, %v16206_v33 }
 0x7a6   : > { %v7403_v5 = vsel %vm3814_vm0, %v7367_v53, %v7368_v50  ;;  %v7369_v18 = vrot.slane %v10726_v36, 1  ;;  %v16212_v53 = vld [vmem:[#allocation83_spill] sm:$0xff] }
 0x7a7   : > { %v15218_v58 = vadd.f32 %v10721_v13, %v7403_v5 }
 0x7a8   : > { %v7402_v23 = vsel %vm3814_vm0, %v7368_v50, %v7369_v18  ;;  %v6762_v32 = vpop.f32.mrb[232].mxu1 }
 0x7a9   : > { %16207 = vst [vmem:[#allocation60_spill] sm:$0xff] %v15218_v58  ;;  %v15222_v49 = vadd.f32 %v10723_v8, %v7402_v23  ;;  %v10727_v48 = vadd.f32 %v6762_v32, %v16209_v63  ;;  %v6764_v12 = vpop.f32.mrb[233].mxu1  ;;  %v16215_v63 = vld [vmem:[#allocation84_spill] sm:$0xff]  ;;  %v16217_v58 = vld [vmem:[#allocation86_spill] sm:$0xff] }
 0x7aa   : > { %v10728_v42 = vadd.f32 %v6764_v12, %v16210_v31  ;;  %v6766_v34 = vpop.f32.mrb[234].mxu1 }
 0x7ab   : > { %16208 = vst [vmem:[#allocation61_spill] sm:$0xff] %v15222_v49  ;;  %v10729_v6 = vadd.f32 %v6766_v34, %v16211_v25  ;;  %v6768_v33 = vpop.f32.mrb[235].mxu1  ;;  %v16216_v25 = vld [vmem:[#allocation85_spill] sm:$0xff] }
 0x7ac   : > { %v7370_v39 = vrot.slane %v10728_v42, 1  ;;  %v10730_v36 = vadd.f32 %v6768_v33, %v16212_v53 }
 0x7ae   : > { %v7401_v13 = vsel %vm3814_vm0, %v7369_v18, %v7370_v39  ;;  %v7371_v5 = vrot.slane %v10730_v36, 1  ;;  %v16218_v18 = vld [vmem:[#allocation87_spill] sm:$0xff] }
 0x7af   : > { %v15230_v50 = vadd.f32 %v10725_v38, %v7401_v13 }
 0x7b0   : > { %v7400_v8 = vsel %vm3814_vm0, %v7370_v39, %v7371_v5  ;;  %v6772_v23 = vpop.f32.mrb[236].mxu1 }
 0x7b1   : > { %16213 = vst [vmem:[#allocation62_spill] sm:$0xff] %v15230_v50  ;;  %v15234_v32 = vadd.f32 %v10727_v48, %v7400_v8  ;;  %v10731_v12 = vadd.f32 %v6772_v23, %v16215_v63  ;;  %v6774_v31 = vpop.f32.mrb[237].mxu1  ;;  %v16221_v63 = vld [vmem:[#allocation88_spill] sm:$0xff] }
 0x7b2   : > { %v10732_v34 = vadd.f32 %v6774_v31, %v16216_v25  ;;  %v6776_v42 = vpop.f32.mrb[238].mxu1 }
 0x7b3   : > { %16214 = vst [vmem:[#allocation63_spill] sm:$0xff] %v15234_v32  ;;  %v10733_v33 = vadd.f32 %v6776_v42, %v16217_v58  ;;  %v6778_v53 = vpop.f32.mrb[239].mxu1  ;;  %v16222_v58 = vld [vmem:[#allocation89_spill] sm:$0xff]  ;;  %v16223_v32 = vld [vmem:[#allocation90_spill] sm:$0xff] }
 0x7b4   : > { %v7372_v49 = vrot.slane %v10732_v34, 1  ;;  %v10734_v36 = vadd.f32 %v6778_v53, %v16218_v18 }
 0x7b6   : > { %v7399_v38 = vsel %vm3814_vm0, %v7371_v5, %v7372_v49  ;;  %v7373_v13 = vrot.slane %v10734_v36, 1  ;;  %v16224_v5 = vld [vmem:[#allocation91_spill] sm:$0xff] }
 0x7b7   : > { %v15242_v39 = vadd.f32 %v10729_v6, %v7399_v38 }
 0x7b8   : > { %v7398_v48 = vsel %vm3814_vm0, %v7372_v49, %v7373_v13  ;;  %v6782_v8 = vpop.f32.mrb[240].mxu1 }
 0x7b9   : > { %16219 = vst [vmem:[#allocation64_spill] sm:$0xff] %v15242_v39  ;;  %v15246_v23 = vadd.f32 %v10731_v12, %v7398_v48  ;;  %v10735_v31 = vadd.f32 %v6782_v8, %v16221_v63  ;;  %v6784_v25 = vpop.f32.mrb[241].mxu1  ;;  %v16227_v63 = vld [vmem:[#allocation92_spill] sm:$0xff]  ;;  %v16229_v39 = vld [vmem:[#allocation94_spill] sm:$0xff] }
 0x7ba   : > { %v10736_v42 = vadd.f32 %v6784_v25, %v16222_v58  ;;  %v6786_v34 = vpop.f32.mrb[242].mxu1 }
 0x7bb   : > { %16220 = vst [vmem:[#allocation65_spill] sm:$0xff] %v15246_v23  ;;  %v10737_v53 = vadd.f32 %v6786_v34, %v16223_v32  ;;  %v6788_v18 = vpop.f32.mrb[243].mxu1  ;;  %v16228_v32 = vld [vmem:[#allocation93_spill] sm:$0xff] }
 0x7bc   : > { %v7374_v50 = vrot.slane %v10736_v42, 1  ;;  %v10738_v36 = vadd.f32 %v6788_v18, %v16224_v5 }
 0x7be   : > { %v7397_v6 = vsel %vm3814_vm0, %v7373_v13, %v7374_v50  ;;  %v7375_v38 = vrot.slane %v10738_v36, 1  ;;  %v16230_v13 = vld [vmem:[#allocation95_spill] sm:$0xff] }
 0x7bf   : > { %v15254_v49 = vadd.f32 %v10733_v33, %v7397_v6 }
 0x7c0   : > { %v7396_v12 = vsel %vm3814_vm0, %v7374_v50, %v7375_v38  ;;  %v6792_v48 = vpop.f32.mrb[244].mxu1 }
 0x7c1   : > { %16225 = vst [vmem:[#allocation66_spill] sm:$0xff] %v15254_v49  ;;  %v15258_v8 = vadd.f32 %v10735_v31, %v7396_v12  ;;  %v10739_v25 = vadd.f32 %v6792_v48, %v16227_v63  ;;  %v6794_v58 = vpop.f32.mrb[245].mxu1  ;;  %v16233_v63 = vld [vmem:[#allocation96_spill] sm:$0xff] }
 0x7c2   : > { %v10740_v34 = vadd.f32 %v6794_v58, %v16228_v32  ;;  %v6796_v42 = vpop.f32.mrb[246].mxu1 }
 0x7c3   : > { %16226 = vst [vmem:[#allocation67_spill] sm:$0xff] %v15258_v8  ;;  %v10741_v18 = vadd.f32 %v6796_v42, %v16229_v39  ;;  %v6798_v5 = vpop.f32.mrb[247].mxu1  ;;  %v16234_v39 = vld [vmem:[#allocation97_spill] sm:$0xff]  ;;  %v16235_v8 = vld [vmem:[#allocation98_spill] sm:$0xff] }
 0x7c4   : > { %v7376_v23 = vrot.slane %v10740_v34, 1  ;;  %v10742_v36 = vadd.f32 %v6798_v5, %v16230_v13 }
 0x7c6   : > { %v7395_v33 = vsel %vm3814_vm0, %v7375_v38, %v7376_v23  ;;  %v7377_v6 = vrot.slane %v10742_v36, 1  ;;  %v16236_v38 = vld [vmem:[#allocation99_spill] sm:$0xff] }
 0x7c7   : > { %v15266_v50 = vadd.f32 %v10737_v53, %v7395_v33 }
 0x7c8   : > { %v7394_v31 = vsel %vm3814_vm0, %v7376_v23, %v7377_v6  ;;  %v6802_v12 = vpop.f32.mrb[248].mxu1 }
 0x7c9   : > { %16231 = vst [vmem:[#allocation68_spill] sm:$0xff] %v15266_v50  ;;  %v15270_v48 = vadd.f32 %v10739_v25, %v7394_v31  ;;  %v10743_v58 = vadd.f32 %v6802_v12, %v16233_v63  ;;  %v6804_v32 = vpop.f32.mrb[249].mxu1  ;;  %v16239_v63 = vld [vmem:[#allocation100_spill] sm:$0xff]  ;;  %v16241_v50 = vld [vmem:[#allocation102_spill] sm:$0xff] }
 0x7ca   : > { %v10744_v42 = vadd.f32 %v6804_v32, %v16234_v39  ;;  %v6806_v34 = vpop.f32.mrb[250].mxu1 }
 0x7cb   : > { %16232 = vst [vmem:[#allocation69_spill] sm:$0xff] %v15270_v48  ;;  %v10745_v5 = vadd.f32 %v6806_v34, %v16235_v8  ;;  %v6808_v13 = vpop.f32.mrb[251].mxu1  ;;  %v16240_v8 = vld [vmem:[#allocation101_spill] sm:$0xff] }
 0x7cc   : > { %v7378_v49 = vrot.slane %v10744_v42, 1  ;;  %v10746_v36 = vadd.f32 %v6808_v13, %v16236_v38 }
 0x7ce   : > { %v7393_v53 = vsel %vm3814_vm0, %v7377_v6, %v7378_v49  ;;  %v7379_v33 = vrot.slane %v10746_v36, 1  ;;  %v16242_v6 = vld [vmem:[#allocation103_spill] sm:$0xff] }
 0x7cf   : > { %v15278_v23 = vadd.f32 %v10741_v18, %v7393_v53 }
 0x7d0   : > { %v7392_v25 = vsel %vm3814_vm0, %v7378_v49, %v7379_v33  ;;  %v6812_v31 = vpop.f32.mrb[252].mxu1 }
 0x7d1   : > { %16237 = vst [vmem:[#allocation70_spill] sm:$0xff] %v15278_v23  ;;  %v15282_v12 = vadd.f32 %v10743_v58, %v7392_v25  ;;  %v10747_v32 = vadd.f32 %v6812_v31, %v16239_v63  ;;  %v6814_v39 = vpop.f32.mrb[253].mxu1  ;;  %v16245_v63 = vld [vmem:[#allocation104_spill] sm:$0xff] }
 0x7d2   : > { %v10748_v34 = vadd.f32 %v6814_v39, %v16240_v8  ;;  %v6816_v42 = vpop.f32.mrb[254].mxu1 }
 0x7d3   : > { %16238 = vst [vmem:[#allocation71_spill] sm:$0xff] %v15282_v12  ;;  %v10749_v13 = vadd.f32 %v6816_v42, %v16241_v50  ;;  %v6818_v38 = vpop.f32.mrb[255].mxu1  ;;  %v16246_v50 = vld [vmem:[#allocation105_spill] sm:$0xff]  ;;  %v16247_v12 = vld [vmem:[#allocation106_spill] sm:$0xff] }
 0x7d4   : > { %v7380_v48 = vrot.slane %v10748_v34, 1  ;;  %v10750_v36 = vadd.f32 %v6818_v38, %v16242_v6 }
 0x7d6   : > { %v7391_v18 = vsel %vm3814_vm0, %v7379_v33, %v7380_v48  ;;  %v7381_v53 = vrot.slane %v10750_v36, 1  ;;  %v16248_v33 = vld [vmem:[#allocation107_spill] sm:$0xff] }
 0x7d7   : > { %v15290_v49 = vadd.f32 %v10745_v5, %v7391_v18 }
 0x7d8   : > { %v7390_v58 = vsel %vm3814_vm0, %v7380_v48, %v7381_v53  ;;  %v6822_v25 = vpop.f32.mrb[52].mxu1 }
 0x7d9   : > { %16243 = vst [vmem:[#allocation72_spill] sm:$0xff] %v15290_v49  ;;  %v15294_v31 = vadd.f32 %v10747_v32, %v7390_v58  ;;  %v10751_v39 = vadd.f32 %v6822_v25, %v16245_v63  ;;  %v6824_v8 = vpop.f32.mrb[53].mxu1  ;;  %v16249_v63 = vld [vmem:[#allocation108_spill] sm:$0xff]  ;;  %v16251_v49 = vld [vmem:[#allocation110_spill] sm:$0xff] }
 0x7da   : > { %v10752_v42 = vadd.f32 %v6824_v8, %v16246_v50  ;;  %v6826_v34 = vpop.f32.mrb[54].mxu1 }
 0x7db   : > { %16244 = vst [vmem:[#allocation73_spill] sm:$0xff] %v15294_v31  ;;  %v10753_v38 = vadd.f32 %v6826_v34, %v16247_v12  ;;  %v6828_v6 = vpop.f32.mrb[55].mxu1  ;;  %v16250_v12 = vld [vmem:[#allocation109_spill] sm:$0xff] }
 0x7dc   : > { %v7382_v23 = vrot.slane %v10752_v42, 1  ;;  %v10754_v36 = vadd.f32 %v6828_v6, %v16248_v33 }
 0x7de   : > { %v7389_v5 = vsel %vm3814_vm0, %v7381_v53, %v7382_v23  ;;  %v7383_v18 = vrot.slane %v10754_v36, 1  ;;  %v16252_v53 = vld [vmem:[#allocation111_spill] sm:$0xff] }
 0x7df   : > { %v15302_v48 = vadd.f32 %v10749_v13, %v7389_v5 }
 0x7e0   : > { %v7388_v32 = vsel %vm3814_vm0, %v7382_v23, %v7383_v18  ;;  %v6832_v58 = vpop.f32.mrb[56].mxu1 }
 0x7e1   : > { %v15306_v25 = vadd.f32 %v10751_v39, %v7388_v32  ;;  %v10755_v8 = vadd.f32 %v6832_v58, %v16249_v63  ;;  %v6834_v50 = vpop.f32.mrb[57].mxu1  ;;  %v16254_v32 = vld [vmem:[#allocation112_spill] sm:$0xff] }
 0x7e2   : > { %v10756_v34 = vadd.f32 %v6834_v50, %v16250_v12  ;;  %v6836_v42 = vpop.f32.mrb[58].mxu1  ;;  %v16255_v58 = vrot.slane %v16254_v32, 1 }
 0x7e3   : > { %v10757_v6 = vadd.f32 %v6836_v42, %v16251_v49  ;;  %v6838_v33 = vpop.f32.mrb[59].mxu1  ;;  %v8183_v42 = vpop.f32.mrb[79].mxu0 }
 0x7e4   : > { %v7384_v31 = vrot.slane %v10756_v34, 1  ;;  %v10758_v36 = vadd.f32 %v6838_v33, %v16252_v53 }
 0x7e6   : > { %v7387_v13 = vsel %vm3814_vm0, %v7383_v18, %v7384_v31  ;;  %v7385_v5 = vrot.slane %v10758_v36, 1 }
 0x7e7   : > { %v15314_v23 = vadd.f32 %v10753_v38, %v7387_v13  ;;  %v8256_v38 = vrot.slane %v8183_v42, 1 }
 0x7e8   : > { %v7386_v39 = vsel %vm3814_vm0, %v7384_v31, %v7385_v5  ;;  %v7449_v63 = vsel %vm3814_vm0, %v7385_v5, %v16255_v58  ;;  %v10453_v50 = vpop.f32.mrb[72].mxu1  ;;  %v16256_v5 = vrot.slane %v15078_v28, 1  ;;  %v15347_v58 = vld [vmem:[%s15783_s5] ss:$0 sm:$0xff] }
 0x7e9   : > { %16253 = vst [vmem:[#allocation74_spill] sm:$0xff] %v15314_v23  ;;  %v15322_v49 = vadd.f32 %v10755_v8, %v7386_v39  ;;  %v15324_v12 = vadd.f32 %v10757_v6, %v7449_v63  ;;  %v15326_v34 = vpop.f32.mrb[73].mxu1  ;;  %v7516_v33 = vrot.slane %v10453_v50, 2  ;;  %v16258_v6 = vrot.slane %v15090_v46, 1 }
 0x7ea   : > { %v10454_v18 = vpop.f32.mrb[74].mxu1  ;;  %v15818_v36 = vrot.slane %v15326_v34, 2  ;;  %v15334_v8 = vsel %vm3814_vm0, %v8256_v38, %v16256_v5 }
 0x7eb   : > { %v7517_v53 = vrot.slane %v10454_v18, 2  ;;  %v6878_v31 = vpop.f32.mrb[75].mxu1  ;;  %16257 = vst [vmem:[#allocation75_spill] sm:$0xff] %v15334_v8  ;;  %v15340_v39 = vsel %vm3814_vm0, %v16258_v6, %v8256_v38 }
 0x7ec   : > { %v7515_v13 = vrot.slane %v6878_v31, 2  ;;  %16259 = vst [vmem:[#allocation76_spill] sm:$0xff] %v15340_v39 }
 0x7ed   : > { %v7639_v32 = vsel %vm7578_vm2, %v7516_v33, %v7517_v53 }
 0x7ee   : > { %v7645_v28 = vadd.f32 %v7639_v32, %v14653_v47  ;;  %v7640_v63 = vsel %vm7578_vm2, %v7515_v13, %v7516_v33  ;;  %v7641_v46 = vsel %vm7578_vm2, %v15818_v36, %v7515_v13 }
 0x7ef   : > { %v7643_v50 = vadd.f32 %v7641_v46, %v14639_v17  ;;  %v7644_v42 = vadd.f32 %v7640_v63, %v14649_v45  ;;  %v15365_v45 = vld [vmem:[%s15785_s7] ss:$0 sm:$0xff] }
 0x7f0   : > { %v7716_v18 = vadd.f32 %v15347_v58, %v7645_v28  ;;  %v10457_v38 = vpop.f32.mrb[76].mxu1 }
 0x7f1   : > { %v7714_v31 = vadd.f32 %v15347_v58, %v7643_v50  ;;  %v7715_v47 = vadd.f32 %v15347_v58, %v7644_v42  ;;  %v6891_v5 = vpop.f32.mrb[77].mxu1  ;;  %v7520_v23 = vrot.slane %v10457_v38, 2 }
 0x7f2   : > { %v7780_v6 = vmax.f32 %v7716_v18, 0.0  ;;  %v7518_v33 = vrot.slane %v6891_v5, 2  ;;  %v10458_v32 = vpop.f32.mrb[78].mxu1 }
 0x7f3   : > { %v7778_v8 = vmax.f32 %v7714_v31, 0.0  ;;  %v7779_v39 = vmax.f32 %v7715_v47, 0.0  ;;  %v7521_v13 = vrot.slane %v10458_v32, 2  ;;  %v6894_v36 = vpop.f32.mrb[79].mxu1 }
 0x7f4   : > { %v8325_v17 = vadd.f32 %v14775_v56, %v7780_v6  ;;  %v7638_v28 = vsel %vm7578_vm2, %v7517_v53, %v7518_v33  ;;  %v7519_v63 = vrot.slane %v6894_v36, 2 }
 0x7f5   : > { %v8323_v46 = vadd.f32 %v14785_v55, %v7778_v8  ;;  %v8324_v50 = vadd.f32 %v14779_v1, %v7779_v39  ;;  %v7646_v42 = vadd.f32 %v7638_v28, %v14663_v54  ;;  %v7635_v18 = vsel %vm7578_vm2, %v7520_v23, %v7521_v13 }
 0x7f6   : > { %v7649_v56 = vadd.f32 %v7635_v18, %v14681_v27  ;;  %v7636_v38 = vsel %vm7578_vm2, %v7519_v63, %v7520_v23  ;;  %v7637_v31 = vsel %vm7578_vm2, %v7518_v33, %v7519_v63  ;;  %v8396_v6 = vadd.f32 %v15365_v45, %v8325_v17 }
 0x7f7   : > { %v8394_v53 = vadd.f32 %v15365_v45, %v8323_v46  ;;  %v8395_v36 = vadd.f32 %v15365_v45, %v8324_v50  ;;  %v7717_v55 = vadd.f32 %v15347_v58, %v7646_v42  ;;  %v7647_v1 = vadd.f32 %v7637_v31, %v14667_v21 }
 0x7f8   : > { %v7720_v54 = vadd.f32 %v15347_v58, %v7649_v56  ;;  %v7648_v27 = vadd.f32 %v7636_v38, %v14677_v51  ;;  %v10461_v23 = vpop.f32.mrb[80].mxu1 }
 0x7f9   : > { %v9496_v8 = vpack.c.bf16 %v8395_v36, %v8394_v53  ;;  %v7781_v39 = vmax.f32 %v7717_v55, 0.0  ;;  %v7718_v47 = vadd.f32 %v15347_v58, %v7647_v1  ;;  %v6907_v5 = vpop.f32.mrb[81].mxu1  ;;  %v7524_v50 = vrot.slane %v10461_v23, 2  ;;  %v16260_v55 = vld [vmem:[#allocation6_spill] sm:$0xff] }
 0x7fa   : > { %v7784_v33 = vmax.f32 %v7720_v54, 0.0  ;;  %v7719_v21 = vadd.f32 %v15347_v58, %v7648_v27  ;;  %v7522_v32 = vrot.slane %v6907_v5, 2  ;;  %v10462_v28 = vpop.f32.mrb[82].mxu1  ;;  %v16261_v54 = vld [vmem:[#allocation19_spill] sm:$0xff] }
 0x7fb   : > { %9497 = vst [vmem:[%s15387_s22] sm:$0xff] %v9496_v8   ;;  %v8326_v63 = vadd.f32 %v14790_v26, %v7781_v39  ;;  %v7782_v46 = vmax.f32 %v7718_v47, 0.0  ;;  %v7525_v42 = vrot.slane %v10462_v28, 2  ;;  %v6910_v51 = vpop.f32.mrb[83].mxu1  ;;  %v16262_v47 = vld [vmem:[#allocation20_spill] sm:$0xff] }
 0x7fc   : > { %v8329_v18 = vadd.f32 %v14794_v2, %v7784_v33  ;;  %v7783_v56 = vmax.f32 %v7719_v21, 0.0  ;;  %v7634_v38 = vsel %vm7578_vm2, %v7521_v13, %v7522_v32  ;;  %v7523_v31 = vrot.slane %v6910_v51, 2  ;;  %v16263_v33 = vld [vmem:[#allocation21_spill] sm:$0xff] }
 0x7fd   : > { %v8397_v17 = vadd.f32 %v15365_v45, %v8326_v63  ;;  %v8327_v53 = vadd.f32 %v14808_v62, %v7782_v46  ;;  %v7650_v36 = vadd.f32 %v7634_v38, %v14691_v19  ;;  %v7631_v26 = vsel %vm7578_vm2, %v7524_v50, %v7525_v42 }
 0x7fe   : > { %v8328_v1 = vadd.f32 %v16260_v55, %v7783_v56  ;;  %v7653_v27 = vadd.f32 %v7631_v26, %v16261_v54  ;;  %v7632_v2 = vsel %vm7578_vm2, %v7523_v31, %v7524_v50  ;;  %v7633_v62 = vsel %vm7578_vm2, %v7522_v32, %v7523_v31 }
 0x7ff   : > { %v9501_v23 = vpack.c.bf16 %v8397_v17, %v8396_v6  ;;  %v8398_v13 = vadd.f32 %v15365_v45, %v8327_v53  ;;  %v7721_v8 = vadd.f32 %v15347_v58, %v7650_v36  ;;  %v7651_v5 = vadd.f32 %v7633_v62, %v16262_v47  ;;  %v16265_v62 = vld [vmem:[#allocation4_spill] sm:$0xff] }
 0x800   : > { %v8399_v19 = vadd.f32 %v15365_v45, %v8328_v1  ;;  %v7724_v39 = vadd.f32 %v15347_v58, %v7653_v27  ;;  %v7652_v21 = vadd.f32 %v7632_v2, %v16263_v33  ;;  %v10465_v28 = vpop.f32.mrb[84].mxu1  ;;  %v8400_v27 = vadd.f32 %v15365_v45, %v8329_v18 }
 0x801   : > { %9688 = vst [vmem:[%s15387_s22 + $0x8] sm:$0xff] %v9501_v23   ;;  %v7785_v63 = vmax.f32 %v7721_v8, 0.0  ;;  %v6923_v6 = vpop.f32.mrb[85].mxu1  ;;  %v7722_v51 = vadd.f32 %v15347_v58, %v7651_v5  ;;  %v7528_v31 = vrot.slane %v10465_v28, 2  ;;  %v16267_v5 = vld [vmem:[#allocation27_spill] sm:$0xff] }
 0x802   : > { %v9506_v46 = vpack.c.bf16 %v8399_v19, %v8398_v13  ;;  %v7788_v50 = vmax.f32 %v7724_v39, 0.0  ;;  %v7723_v56 = vadd.f32 %v15347_v58, %v7652_v21  ;;  %v10466_v32 = vpop.f32.mrb[86].mxu1  ;;  %v7526_v17 = vrot.slane %v6923_v6, 2  ;;  %v16264_v13 = vld [vmem:[#allocation7_spill] sm:$0xff]  ;;  %v16266_v39 = vld [vmem:[#allocation24_spill] sm:$0xff]  ;;  %v16268_v6 = vld [vmem:[#allocation29_spill] sm:$0xff] }
 0x803   : > { %v8330_v38 = vadd.f32 %v14818_v29, %v7785_v63  ;;  %v7529_v53 = vrot.slane %v10466_v32, 2  ;;  %v6926_v36 = vpop.f32.mrb[87].mxu1  ;;  %v7786_v55 = vmax.f32 %v7722_v51, 0.0  ;;  %v16269_v32 = vld [vmem:[#allocation28_spill] sm:$0xff] }
 0x804   : > { %9689 = vst [vmem:[%s15387_s22 + $0x10] sm:$0xff] %v9506_v46   ;;  %v8333_v26 = vadd.f32 %v14823_v15, %v7788_v50  ;;  %v7787_v1 = vmax.f32 %v7723_v56, 0.0  ;;  %v7527_v54 = vrot.slane %v6926_v36, 2  ;;  %v7630_v23 = vsel %vm7578_vm2, %v7525_v42, %v7526_v17 }
 0x805   : > { %v8401_v2 = vadd.f32 %v15365_v45, %v8330_v38  ;;  %v7627_v29 = vsel %vm7578_vm2, %v7528_v31, %v7529_v53  ;;  %v8331_v8 = vadd.f32 %v16264_v13, %v7786_v55  ;;  %v7654_v15 = vadd.f32 %v7630_v23, %v16266_v39 }
 0x806   : > { %v8332_v19 = vadd.f32 %v16265_v62, %v7787_v1  ;;  %v7657_v33 = vadd.f32 %v7627_v29, %v16267_v5  ;;  %v7628_v18 = vsel %vm7578_vm2, %v7527_v54, %v7528_v31  ;;  %v7629_v21 = vsel %vm7578_vm2, %v7526_v17, %v7527_v54 }
 0x807   : > { %v9511_v47 = vpack.c.bf16 %v8401_v2, %v8400_v27  ;;  %v8402_v42 = vadd.f32 %v15365_v45, %v8331_v8  ;;  %v7725_v63 = vadd.f32 %v15347_v58, %v7654_v15  ;;  %v7655_v46 = vadd.f32 %v7629_v21, %v16268_v6  ;;  %v16270_v8 = vld [vmem:[#allocation10_spill] sm:$0xff]  ;;  %v16271_v15 = vld [vmem:[#allocation9_spill] sm:$0xff] }
 0x808   : > { %v8403_v28 = vadd.f32 %v15365_v45, %v8332_v19  ;;  %v10469_v50 = vpop.f32.mrb[88].mxu1  ;;  %v8404_v51 = vadd.f32 %v15365_v45, %v8333_v26  ;;  %v7728_v56 = vadd.f32 %v15347_v58, %v7657_v33  ;;  %v7656_v38 = vadd.f32 %v7628_v18, %v16269_v32  ;;  %v16272_v33 = vld [vmem:[#allocation35_spill] sm:$0xff]  ;;  %v16274_v6 = vld [vmem:[#allocation38_spill] sm:$0xff] }
 0x809   : > { %9690 = vst [vmem:[%s15387_s22 + $0x18] sm:$0xff] %v9511_v47   ;;  %v6939_v31 = vpop.f32.mrb[89].mxu1  ;;  %v7789_v17 = vmax.f32 %v7725_v63, 0.0  ;;  %v7726_v55 = vadd.f32 %v15347_v58, %v7655_v46  ;;  %v7532_v23 = vrot.slane %v10469_v50, 2 }
 0x80a   : > { %v9516_v36 = vpack.c.bf16 %v8403_v28, %v8402_v42  ;;  %v7530_v1 = vrot.slane %v6939_v31, 2  ;;  %v10470_v54 = vpop.f32.mrb[90].mxu1  ;;  %v7792_v27 = vmax.f32 %v7728_v56, 0.0  ;;  %v7727_v2 = vadd.f32 %v15347_v58, %v7656_v38  ;;  %v16273_v28 = vld [vmem:[#allocation18_spill] sm:$0xff] }
 0x80b   : > { %v7533_v29 = vrot.slane %v10470_v54, 2  ;;  %v6942_v13 = vpop.f32.mrb[91].mxu1  ;;  %v8334_v26 = vadd.f32 %v16270_v8, %v7789_v17  ;;  %v7790_v62 = vmax.f32 %v7726_v55, 0.0  ;;  %v16276_v55 = vld [vmem:[#allocation36_spill] sm:$0xff]  ;;  %v16277_v8 = vld [vmem:[#allocation37_spill] sm:$0xff] }
 0x80c   : > { %9691 = vst [vmem:[%s15387_s22 + $0x20] sm:$0xff] %v9516_v36   ;;  %v7626_v19 = vsel %vm7578_vm2, %v7529_v53, %v7530_v1  ;;  %v7531_v39 = vrot.slane %v6942_v13, 2  ;;  %v8337_v47 = vadd.f32 %v16271_v15, %v7792_v27  ;;  %v7791_v5 = vmax.f32 %v7727_v2, 0.0  ;;  %v16275_v53 = vld [vmem:[#allocation14_spill] sm:$0xff] }
 0x80d   : > { %v7658_v18 = vadd.f32 %v7626_v19, %v16272_v33  ;;  %v7623_v21 = vsel %vm7578_vm2, %v7532_v23, %v7533_v29  ;;  %v8405_v42 = vadd.f32 %v15365_v45, %v8334_v26  ;;  %v8335_v63 = vadd.f32 %v16273_v28, %v7790_v62 }
 0x80e   : > { %v7661_v46 = vadd.f32 %v7623_v21, %v16274_v6  ;;  %v7624_v50 = vsel %vm7578_vm2, %v7531_v39, %v7532_v23  ;;  %v8336_v56 = vadd.f32 %v16275_v53, %v7791_v5  ;;  %v7625_v38 = vsel %vm7578_vm2, %v7530_v1, %v7531_v39  ;;  %v16278_v53 = vld [vmem:[#allocation34_spill] sm:$0xff] }
 0x80f   : > { %v7729_v32 = vadd.f32 %v15347_v58, %v7658_v18  ;;  %v9521_v31 = vpack.c.bf16 %v8405_v42, %v8404_v51  ;;  %v8406_v36 = vadd.f32 %v15365_v45, %v8335_v63  ;;  %v7659_v54 = vadd.f32 %v7625_v38, %v16276_v55 }
 0x810   : > { %v7732_v17 = vadd.f32 %v15347_v58, %v7661_v46  ;;  %v10473_v27 = vpop.f32.mrb[92].mxu1  ;;  %v8408_v2 = vadd.f32 %v15365_v45, %v8337_v47  ;;  %v8407_v13 = vadd.f32 %v15365_v45, %v8336_v56  ;;  %v7660_v26 = vadd.f32 %v7624_v50, %v16277_v8  ;;  %v16282_v8 = vld [vmem:[#allocation5_spill] sm:$0xff] }
 0x811   : > { %v7793_v23 = vmax.f32 %v7729_v32, 0.0  ;;  %v6955_v62 = vpop.f32.mrb[93].mxu1  ;;  %9692 = vst [vmem:[%s15387_s22 + $0x28] sm:$0xff] %v9521_v31   ;;  %v7730_v51 = vadd.f32 %v15347_v58, %v7659_v54  ;;  %v7536_v1 = vrot.slane %v10473_v27, 2  ;;  %v16279_v32 = vld [vmem:[#allocation22_spill] sm:$0xff]  ;;  %v16280_v31 = vld [vmem:[#allocation17_spill] sm:$0xff] }
 0x812   : > { %v7796_v19 = vmax.f32 %v7732_v17, 0.0  ;;  %v7534_v39 = vrot.slane %v6955_v62, 2  ;;  %v10474_v15 = vpop.f32.mrb[94].mxu1  ;;  %v9526_v5 = vpack.c.bf16 %v8407_v13, %v8406_v36  ;;  %v7731_v18 = vadd.f32 %v15347_v58, %v7660_v26  ;;  %v16283_v62 = vld [vmem:[#allocation8_spill] sm:$0xff] }
 0x813   : > { %v8338_v33 = vadd.f32 %v14864_v60, %v7793_v23  ;;  %v7537_v47 = vrot.slane %v10474_v15, 2  ;;  %v6958_v21 = vpop.f32.mrb[95].mxu1  ;;  %v7794_v28 = vmax.f32 %v7730_v51, 0.0 }
 0x814   : > { %v8341_v42 = vadd.f32 %v14869_v44, %v7796_v19  ;;  %v7622_v63 = vsel %vm7578_vm2, %v7533_v29, %v7534_v39  ;;  %v7535_v6 = vrot.slane %v6958_v21, 2  ;;  %9693 = vst [vmem:[%s15387_s22 + $0x30] sm:$0xff] %v9526_v5   ;;  %v7795_v50 = vmax.f32 %v7731_v18, 0.0  ;;  %v16281_v29 = vld [vmem:[#allocation15_spill] sm:$0xff] }
 0x815   : > { %v8409_v46 = vadd.f32 %v15365_v45, %v8338_v33  ;;  %v7662_v56 = vadd.f32 %v7622_v63, %v16278_v53  ;;  %v7619_v60 = vsel %vm7578_vm2, %v7536_v1, %v7537_v47  ;;  %v8339_v38 = vadd.f32 %v16279_v32, %v7794_v28 }
 0x816   : > { %v7665_v36 = vadd.f32 %v7619_v60, %v16280_v31  ;;  %v7620_v44 = vsel %vm7578_vm2, %v7535_v6, %v7536_v1  ;;  %v8340_v55 = vadd.f32 %v16281_v29, %v7795_v50  ;;  %v7621_v27 = vsel %vm7578_vm2, %v7534_v39, %v7535_v6  ;;  %v16284_v6 = vld [vmem:[#allocation26_spill] sm:$0xff]  ;;  %v16285_v60 = vld [vmem:[#allocation25_spill] sm:$0xff] }
 0x817   : > { %v9531_v17 = vpack.c.bf16 %v8409_v46, %v8408_v2  ;;  %v7733_v54 = vadd.f32 %v15347_v58, %v7662_v56  ;;  %v8410_v13 = vadd.f32 %v15365_v45, %v8339_v38  ;;  %v7663_v26 = vadd.f32 %v7621_v27, %v16282_v8 }
 0x818   : > { %v7736_v23 = vadd.f32 %v15347_v58, %v7665_v36  ;;  %v7664_v19 = vadd.f32 %v7620_v44, %v16283_v62  ;;  %v10477_v51 = vpop.f32.mrb[96].mxu1  ;;  %v8412_v1 = vadd.f32 %v15365_v45, %v8341_v42  ;;  %v8411_v2 = vadd.f32 %v15365_v45, %v8340_v55  ;;  %v16286_v44 = vld [vmem:[#allocation23_spill] sm:$0xff] }
 0x819   : > { %9694 = vst [vmem:[%s15387_s22 + $0x38] sm:$0xff] %v9531_v17   ;;  %v7797_v15 = vmax.f32 %v7733_v54, 0.0  ;;  %v6971_v5 = vpop.f32.mrb[97].mxu1  ;;  %v7734_v39 = vadd.f32 %v15347_v58, %v7663_v26  ;;  %v7540_v50 = vrot.slane %v10477_v51, 2  ;;  %v16287_v54 = vld [vmem:[#allocation33_spill] sm:$0xff] }
 0x81a   : > { %v7800_v33 = vmax.f32 %v7736_v23, 0.0  ;;  %v7735_v18 = vadd.f32 %v15347_v58, %v7664_v19  ;;  %v7538_v21 = vrot.slane %v6971_v5, 2  ;;  %v10478_v28 = vpop.f32.mrb[98].mxu1  ;;  %v9536_v63 = vpack.c.bf16 %v8411_v2, %v8410_v13  ;;  %v16288_v13 = vld [vmem:[#allocation30_spill] sm:$0xff] }
 0x81b   : > { %v8342_v46 = vadd.f32 %v16284_v6, %v7797_v15  ;;  %v7541_v53 = vrot.slane %v10478_v28, 2  ;;  %v6974_v56 = vpop.f32.mrb[99].mxu1  ;;  %v7798_v32 = vmax.f32 %v7734_v39, 0.0 }
 0x81c   : > { %v8345_v42 = vadd.f32 %v16285_v60, %v7800_v33  ;;  %v7799_v38 = vmax.f32 %v7735_v18, 0.0  ;;  %v7618_v31 = vsel %vm7578_vm2, %v7537_v47, %v7538_v21  ;;  %9695 = vst [vmem:[%s15387_s22 + $0x40] sm:$0xff] %v9536_v63   ;;  %v7539_v55 = vrot.slane %v6974_v56, 2 }
 0x81d   : > { %v8413_v36 = vadd.f32 %v15365_v45, %v8342_v46  ;;  %v7666_v17 = vadd.f32 %v7618_v31, %v16286_v44  ;;  %v7615_v29 = vsel %vm7578_vm2, %v7540_v50, %v7541_v53  ;;  %v8343_v27 = vadd.f32 %v16287_v54, %v7798_v32  ;;  %v16290_v31 = vld [vmem:[#allocation31_spill] sm:$0xff] }
 0x81e   : > { %v8344_v23 = vadd.f32 %v16288_v13, %v7799_v38  ;;  %v7669_v8 = vadd.f32 %v7615_v29, %v14950_v4  ;;  %v7616_v47 = vsel %vm7578_vm2, %v7539_v55, %v7540_v50  ;;  %v7617_v19 = vsel %vm7578_vm2, %v7538_v21, %v7539_v55  ;;  %v16289_v50 = vld [vmem:[#allocation32_spill] sm:$0xff] }
 0x81f   : > { %v9541_v26 = vpack.c.bf16 %v8413_v36, %v8412_v1  ;;  %v7737_v62 = vadd.f32 %v15347_v58, %v7666_v17  ;;  %v8414_v51 = vadd.f32 %v15365_v45, %v8343_v27  ;;  %v7667_v5 = vadd.f32 %v7617_v19, %v14904_v9  ;;  %v16291_v27 = vld [vmem:[#allocation43_spill] sm:$0xff] }
 0x820   : > { %v8415_v2 = vadd.f32 %v15365_v45, %v8344_v23  ;;  %v7740_v15 = vadd.f32 %v15347_v58, %v7669_v8  ;;  %v10481_v33 = vpop.f32.mrb[100].mxu1  ;;  %v8416_v4 = vadd.f32 %v15365_v45, %v8345_v42  ;;  %v7668_v39 = vadd.f32 %v7616_v47, %v14938_v37 }
 0x821   : > { %9696 = vst [vmem:[%s15387_s22 + $0x48] sm:$0xff] %v9541_v26   ;;  %v7801_v1 = vmax.f32 %v7737_v62, 0.0  ;;  %v6987_v18 = vpop.f32.mrb[101].mxu1  ;;  %v7738_v21 = vadd.f32 %v15347_v58, %v7667_v5  ;;  %v7544_v9 = vrot.slane %v10481_v33, 2  ;;  %v16292_v62 = vld [vmem:[#allocation39_spill] sm:$0xff] }
 0x822   : > { %v9546_v28 = vpack.c.bf16 %v8415_v2, %v8414_v51  ;;  %v7804_v63 = vmax.f32 %v7740_v15, 0.0  ;;  %v7542_v6 = vrot.slane %v6987_v18, 2  ;;  %v10482_v46 = vpop.f32.mrb[102].mxu1  ;;  %v7739_v60 = vadd.f32 %v15347_v58, %v7668_v39 }
 0x823   : > { %v8346_v56 = vadd.f32 %v16289_v50, %v7801_v1  ;;  %v7545_v32 = vrot.slane %v10482_v46, 2  ;;  %v6990_v38 = vpop.f32.mrb[103].mxu1  ;;  %v7802_v36 = vmax.f32 %v7738_v21, 0.0 }
 0x824   : > { %9697 = vst [vmem:[%s15387_s22 + $0x50] sm:$0xff] %v9546_v28   ;;  %v8349_v42 = vadd.f32 %v16290_v31, %v7804_v63  ;;  %v7614_v37 = vsel %vm7578_vm2, %v7541_v53, %v7542_v6  ;;  %v7543_v44 = vrot.slane %v6990_v38, 2  ;;  %v7803_v29 = vmax.f32 %v7739_v60, 0.0  ;;  %v16294_v60 = vld [vmem:[#allocation54_spill] sm:$0xff] }
 0x825   : > { %v8417_v17 = vadd.f32 %v15365_v45, %v8346_v56  ;;  %v7670_v55 = vadd.f32 %v7614_v37, %v14984_v10  ;;  %v7611_v54 = vsel %vm7578_vm2, %v7544_v9, %v7545_v32  ;;  %v8347_v13 = vadd.f32 %v16291_v27, %v7802_v36 }
 0x826   : > { %v7673_v23 = vadd.f32 %v7611_v54, %v15042_v43  ;;  %v7612_v8 = vsel %vm7578_vm2, %v7543_v44, %v7544_v9  ;;  %v8348_v53 = vadd.f32 %v16292_v62, %v7803_v29  ;;  %v7613_v19 = vsel %vm7578_vm2, %v7542_v6, %v7543_v44  ;;  %v16295_v29 = vld [vmem:[#allocation46_spill] sm:$0xff]  ;;  %v16296_v54 = vld [vmem:[#allocation45_spill] sm:$0xff] }
 0x827   : > { %v9551_v26 = vpack.c.bf16 %v8417_v17, %v8416_v4  ;;  %v7741_v47 = vadd.f32 %v15347_v58, %v7670_v55  ;;  %v8418_v10 = vadd.f32 %v15365_v45, %v8347_v13  ;;  %v7671_v2 = vadd.f32 %v7613_v19, %v14996_v16  ;;  %v16293_v16 = vld [vmem:[#allocation44_spill] sm:$0xff] }
 0x828   : > { %v7744_v51 = vadd.f32 %v15347_v58, %v7673_v23  ;;  %v7672_v15 = vadd.f32 %v7612_v8, %v15030_v20  ;;  %v10485_v43 = vpop.f32.mrb[104].mxu1  ;;  %v8420_v5 = vadd.f32 %v15365_v45, %v8349_v42  ;;  %v8419_v33 = vadd.f32 %v15365_v45, %v8348_v53 }
 0x829   : > { %9698 = vst [vmem:[%s15387_s22 + $0x58] sm:$0xff] %v9551_v26   ;;  %v7805_v4 = vmax.f32 %v7741_v47, 0.0  ;;  %v7003_v1 = vpop.f32.mrb[105].mxu1  ;;  %v7742_v18 = vadd.f32 %v15347_v58, %v7671_v2  ;;  %v7548_v20 = vrot.slane %v10485_v43, 2 }
 0x82a   : > { %v7808_v39 = vmax.f32 %v7744_v51, 0.0  ;;  %v7743_v28 = vadd.f32 %v15347_v58, %v7672_v15  ;;  %v7546_v63 = vrot.slane %v7003_v1, 2  ;;  %v10486_v21 = vpop.f32.mrb[106].mxu1  ;;  %v9556_v6 = vpack.c.bf16 %v8419_v33, %v8418_v10  ;;  %v16297_v1 = vld [vmem:[#allocation47_spill] sm:$0xff] }
 0x82b   : > { %v8350_v46 = vadd.f32 %v16293_v16, %v7805_v4  ;;  %v7549_v50 = vrot.slane %v10486_v21, 2  ;;  %v7006_v56 = vpop.f32.mrb[107].mxu1  ;;  %v7806_v38 = vmax.f32 %v7742_v18, 0.0  ;;  %v16298_v21 = vld [vmem:[#allocation48_spill] sm:$0xff] }
 0x82c   : > { %v8353_v9 = vadd.f32 %v16294_v60, %v7808_v39  ;;  %v7807_v31 = vmax.f32 %v7743_v28, 0.0  ;;  %v7610_v42 = vsel %vm7578_vm2, %v7545_v32, %v7546_v63  ;;  %9699 = vst [vmem:[%s15387_s22 + $0x60] sm:$0xff] %v9556_v6   ;;  %v7547_v17 = vrot.slane %v7006_v56, 2 }
 0x82d   : > { %v8421_v36 = vadd.f32 %v15365_v45, %v8350_v46  ;;  %v7674_v37 = vadd.f32 %v7610_v42, %v15080_v41  ;;  %v7607_v44 = vsel %vm7578_vm2, %v7548_v20, %v7549_v50  ;;  %v8351_v55 = vadd.f32 %v16295_v29, %v7806_v38  ;;  %v16299_v38 = vld [vmem:[#allocation49_spill] sm:$0xff] }
 0x82e   : > { %v8352_v27 = vadd.f32 %v16296_v54, %v7807_v31  ;;  %v7677_v13 = vadd.f32 %v7607_v44, %v15118_v3  ;;  %v7608_v32 = vsel %vm7578_vm2, %v7547_v17, %v7548_v20  ;;  %v7609_v26 = vsel %vm7578_vm2, %v7546_v63, %v7547_v17  ;;  %v16300_v44 = vld [vmem:[#allocation56_spill] sm:$0xff] }
 0x82f   : > { %v9561_v23 = vpack.c.bf16 %v8421_v36, %v8420_v5  ;;  %v7745_v8 = vadd.f32 %v15347_v58, %v7674_v37  ;;  %v8422_v41 = vadd.f32 %v15365_v45, %v8351_v55  ;;  %v7675_v47 = vadd.f32 %v7609_v26, %v15094_v59 }
 0x830   : > { %v8423_v62 = vadd.f32 %v15365_v45, %v8352_v27  ;;  %v7748_v53 = vadd.f32 %v15347_v58, %v7677_v13  ;;  %v10489_v19 = vpop.f32.mrb[108].mxu1  ;;  %v8424_v3 = vadd.f32 %v15365_v45, %v8353_v9  ;;  %v7676_v51 = vadd.f32 %v7608_v32, %v15110_v30 }
 0x831   : > { %9700 = vst [vmem:[%s15387_s22 + $0x68] sm:$0xff] %v9561_v23   ;;  %v7809_v10 = vmax.f32 %v7745_v8, 0.0  ;;  %v7019_v2 = vpop.f32.mrb[109].mxu1  ;;  %v7746_v5 = vadd.f32 %v15347_v58, %v7675_v47  ;;  %v7552_v59 = vrot.slane %v10489_v19, 2 }
 0x832   : > { %v9566_v15 = vpack.c.bf16 %v8423_v62, %v8422_v41  ;;  %v7812_v43 = vmax.f32 %v7748_v53, 0.0  ;;  %v7550_v33 = vrot.slane %v7019_v2, 2  ;;  %v10490_v4 = vpop.f32.mrb[110].mxu1  ;;  %v7747_v18 = vadd.f32 %v15347_v58, %v7676_v51  ;;  %v16302_v2 = vld [vmem:[#allocation113_spill] sm:$0xff] }
 0x833   : > { %v8354_v39 = vadd.f32 %v16297_v1, %v7809_v10  ;;  %v7553_v28 = vrot.slane %v10490_v4, 2  ;;  %v7022_v63 = vpop.f32.mrb[111].mxu1  ;;  %v7810_v16 = vmax.f32 %v7746_v5, 0.0 }
 0x834   : > { %9701 = vst [vmem:[%s15387_s22 + $0x70] sm:$0xff] %v9566_v15   ;;  %v8357_v6 = vadd.f32 %v16298_v21, %v7812_v43  ;;  %v7606_v30 = vsel %vm7578_vm2, %v7549_v50, %v7550_v33  ;;  %v7551_v46 = vrot.slane %v7022_v63, 2  ;;  %v7811_v56 = vmax.f32 %v7747_v18, 0.0  ;;  %v16304_v21 = vld [vmem:[#allocation114_spill] sm:$0xff] }
 0x835   : > { %v8425_v20 = vadd.f32 %v15365_v45, %v8354_v39  ;;  %v7678_v60 = vadd.f32 %v7606_v30, %v15155_v61  ;;  %v7603_v9 = vsel %vm7578_vm2, %v7552_v59, %v7553_v28  ;;  %v8355_v31 = vadd.f32 %v16299_v38, %v7810_v16 }
 0x836   : > { %v7681_v42 = vadd.f32 %v7603_v9, %v15173_v57  ;;  %v7604_v36 = vsel %vm7578_vm2, %v7551_v46, %v7552_v59  ;;  %v8356_v50 = vadd.f32 %v16300_v44, %v7811_v56  ;;  %v7605_v29 = vsel %vm7578_vm2, %v7550_v33, %v7551_v46  ;;  %v16303_v59 = vld [vmem:[#allocation115_spill] sm:$0xff] }
 0x837   : > { %v9571_v37 = vpack.c.bf16 %v8425_v20, %v8424_v3  ;;  %v7749_v17 = vadd.f32 %v15347_v58, %v7678_v60  ;;  %v8426_v61 = vadd.f32 %v15365_v45, %v8355_v31  ;;  %v7679_v54 = vadd.f32 %v7605_v29, %v15159_v14  ;;  %v16301_v14 = vld [vmem:[#allocation50_spill] sm:$0xff] }
 0x838   : > { %v7752_v55 = vadd.f32 %v15347_v58, %v7681_v42  ;;  %v7680_v27 = vadd.f32 %v7604_v36, %v15169_v11  ;;  %v10493_v57 = vpop.f32.mrb[112].mxu1  ;;  %v8428_v13 = vadd.f32 %v15365_v45, %v8357_v6  ;;  %v8427_v23 = vadd.f32 %v15365_v45, %v8356_v50 }
 0x839   : > { %9702 = vst [vmem:[%s15387_s22 + $0x78] sm:$0xff] %v9571_v37   ;;  %v7813_v8 = vmax.f32 %v7749_v17, 0.0  ;;  %v7035_v32 = vpop.f32.mrb[113].mxu1  ;;  %v7750_v41 = vadd.f32 %v15347_v58, %v7679_v54  ;;  %v7556_v11 = vrot.slane %v10493_v57, 2  ;;  %v16305_v57 = vld [vmem:[#allocation2_spill] sm:$0xff] }
 0x83a   : > { %v7816_v26 = vmax.f32 %v7752_v55, 0.0  ;;  %v7751_v62 = vadd.f32 %v15347_v58, %v7680_v27  ;;  %v7554_v53 = vrot.slane %v7035_v32, 2  ;;  %v10494_v47 = vpop.f32.mrb[114].mxu1  ;;  %v9576_v19 = vpack.c.bf16 %v8427_v23, %v8426_v61 }
 0x83b   : > { %v8358_v3 = vadd.f32 %v16301_v14, %v7813_v8  ;;  %v7557_v10 = vrot.slane %v10494_v47, 2  ;;  %v7038_v51 = vpop.f32.mrb[115].mxu1  ;;  %v7814_v43 = vmax.f32 %v7750_v41, 0.0  ;;  %v16307_v47 = vld [vmem:[#allocation61_spill] sm:$0xff] }
 0x83c   : > { %v8361_v15 = vadd.f32 %v16302_v2, %v7816_v26  ;;  %v7815_v5 = vmax.f32 %v7751_v62, 0.0  ;;  %v7602_v33 = vsel %vm7578_vm2, %v7553_v28, %v7554_v53  ;;  %9703 = vst [vmem:[%s15387_s22 + $0x80] sm:$0xff] %v9576_v19   ;;  %v7555_v18 = vrot.slane %v7038_v51, 2  ;;  %v16306_v62 = vld [vmem:[#allocation52_spill] sm:$0xff] }
 0x83d   : > { %v8429_v4 = vadd.f32 %v15365_v45, %v8358_v3  ;;  %v7682_v1 = vadd.f32 %v7602_v33, %v15182_v24  ;;  %v7599_v39 = vsel %vm7578_vm2, %v7556_v11, %v7557_v10  ;;  %v8359_v63 = vadd.f32 %v16303_v59, %v7814_v43  ;;  %v16309_v43 = vld [vmem:[#allocation59_spill] sm:$0xff]  ;;  %v16310_v33 = vld [vmem:[#allocation60_spill] sm:$0xff] }
 0x83e   : > { %v8360_v6 = vadd.f32 %v16304_v21, %v7815_v5  ;;  %v7685_v16 = vadd.f32 %v7599_v39, %v15198_v35  ;;  %v7600_v28 = vsel %vm7578_vm2, %v7555_v18, %v7556_v11  ;;  %v7601_v20 = vsel %vm7578_vm2, %v7554_v53, %v7555_v18  ;;  %v16308_v11 = vld [vmem:[#allocation55_spill] sm:$0xff] }
 0x83f   : > { %v9581_v30 = vpack.c.bf16 %v8429_v4, %v8428_v13  ;;  %v7753_v46 = vadd.f32 %v15347_v58, %v7682_v1  ;;  %v8430_v24 = vadd.f32 %v15365_v45, %v8359_v63  ;;  %v7683_v9 = vadd.f32 %v7601_v20, %v15186_v0  ;;  %v16311_v20 = vld [vmem:[#allocation51_spill] sm:$0xff] }
 0x840   : > { %v8431_v56 = vadd.f32 %v15365_v45, %v8360_v6  ;;  %v7756_v60 = vadd.f32 %v15347_v58, %v7685_v16  ;;  %v10497_v38 = vpop.f32.mrb[116].mxu1  ;;  %v8432_v35 = vadd.f32 %v15365_v45, %v8361_v15  ;;  %v7684_v42 = vadd.f32 %v7600_v28, %v15194_v40 }
 0x841   : > { %9704 = vst [vmem:[%s15387_s22 + $0x88] sm:$0xff] %v9581_v30   ;;  %v7817_v31 = vmax.f32 %v7753_v46, 0.0  ;;  %v7051_v36 = vpop.f32.mrb[117].mxu1  ;;  %v7754_v50 = vadd.f32 %v15347_v58, %v7683_v9  ;;  %v7560_v0 = vrot.slane %v10497_v38, 2  ;;  %v16312_v38 = vld [vmem:[#allocation116_spill] sm:$0xff] }
 0x842   : > { %v9586_v37 = vpack.c.bf16 %v8431_v56, %v8430_v24  ;;  %v7820_v44 = vmax.f32 %v7756_v60, 0.0  ;;  %v7558_v17 = vrot.slane %v7051_v36, 2  ;;  %v10498_v29 = vpop.f32.mrb[118].mxu1  ;;  %v7755_v55 = vadd.f32 %v15347_v58, %v7684_v42 }
 0x843   : > { %v8362_v61 = vadd.f32 %v15002_v52, %v7817_v31  ;;  %v7561_v54 = vrot.slane %v10498_v29, 2  ;;  %v7054_v27 = vpop.f32.mrb[119].mxu1  ;;  %v7818_v23 = vmax.f32 %v7754_v50, 0.0 }
 0x844   : > { %9705 = vst [vmem:[%s15387_s22 + $0x90] sm:$0xff] %v9586_v37   ;;  %v8365_v13 = vadd.f32 %v16305_v57, %v7820_v44  ;;  %v7598_v40 = vsel %vm7578_vm2, %v7557_v10, %v7558_v17  ;;  %v7559_v8 = vrot.slane %v7054_v27, 2  ;;  %v7819_v26 = vmax.f32 %v7755_v55, 0.0  ;;  %v16313_v44 = vld [vmem:[#allocation62_spill] sm:$0xff]  ;;  %v16316_v57 = vld [vmem:[#allocation65_spill] sm:$0xff] }
 0x845   : > { %v8433_v32 = vadd.f32 %v15365_v45, %v8362_v61  ;;  %v7686_v41 = vadd.f32 %v7598_v40, %v15206_v7  ;;  %v7595_v52 = vsel %vm7578_vm2, %v7560_v0, %v7561_v54  ;;  %v8363_v53 = vadd.f32 %v16306_v62, %v7818_v23  ;;  %v16314_v61 = vld [vmem:[#allocation118_spill] sm:$0xff] }
 0x846   : > { %v7689_v19 = vadd.f32 %v7595_v52, %v16307_v47  ;;  %v7596_v14 = vsel %vm7578_vm2, %v7559_v8, %v7560_v0  ;;  %v8364_v10 = vadd.f32 %v16308_v11, %v7819_v26  ;;  %v7597_v2 = vsel %vm7578_vm2, %v7558_v17, %v7559_v8  ;;  %v16315_v0 = vld [vmem:[#allocation117_spill] sm:$0xff]  ;;  %v16317_v52 = vld [vmem:[#allocation63_spill] sm:$0xff] }
 0x847   : > { %v9591_v3 = vpack.c.bf16 %v8433_v32, %v8432_v35  ;;  %v7757_v51 = vadd.f32 %v15347_v58, %v7686_v41  ;;  %v8434_v7 = vadd.f32 %v15365_v45, %v8363_v53  ;;  %v7687_v5 = vadd.f32 %v7597_v2, %v16309_v43  ;;  %v16319_v43 = vld [vmem:[#allocation53_spill] sm:$0xff] }
 0x848   : > { %v7760_v15 = vadd.f32 %v15347_v58, %v7689_v19  ;;  %v7688_v4 = vadd.f32 %v7596_v14, %v16310_v33  ;;  %v10501_v1 = vpop.f32.mrb[120].mxu1  ;;  %v8436_v39 = vadd.f32 %v15365_v45, %v8365_v13  ;;  %v8435_v18 = vadd.f32 %v15365_v45, %v8364_v10  ;;  %v16318_v14 = vld [vmem:[#allocation64_spill] sm:$0xff] }
 0x849   : > { %9706 = vst [vmem:[%s15387_s22 + $0x98] sm:$0xff] %v9591_v3   ;;  %v7821_v59 = vmax.f32 %v7757_v51, 0.0  ;;  %v7067_v63 = vpop.f32.mrb[121].mxu1  ;;  %v7758_v6 = vadd.f32 %v15347_v58, %v7687_v5  ;;  %v7564_v56 = vrot.slane %v10501_v1, 2 }
 0x84a   : > { %v7824_v21 = vmax.f32 %v7760_v15, 0.0  ;;  %v7759_v16 = vadd.f32 %v15347_v58, %v7688_v4  ;;  %v7562_v30 = vrot.slane %v7067_v63, 2  ;;  %v10502_v46 = vpop.f32.mrb[122].mxu1  ;;  %v9596_v28 = vpack.c.bf16 %v8435_v18, %v8434_v7  ;;  %v16320_v18 = vld [vmem:[#allocation3_spill] sm:$0xff] }
 0x84b   : > { %v8366_v24 = vadd.f32 %v16311_v20, %v7821_v59  ;;  %v7565_v60 = vrot.slane %v10502_v46, 2  ;;  %v7070_v9 = vpop.f32.mrb[123].mxu1  ;;  %v7822_v31 = vmax.f32 %v7758_v6, 0.0  ;;  %v16321_v46 = vld [vmem:[#allocation66_spill] sm:$0xff] }
 0x84c   : > { %v8369_v35 = vadd.f32 %v16312_v38, %v7824_v21  ;;  %v7823_v42 = vmax.f32 %v7759_v16, 0.0  ;;  %v7594_v36 = vsel %vm7578_vm2, %v7561_v54, %v7562_v30  ;;  %9707 = vst [vmem:[%s15387_s22 + $0xa0] sm:$0xff] %v9596_v28   ;;  %v7563_v29 = vrot.slane %v7070_v9, 2  ;;  %v16323_v9 = vld [vmem:[#allocation69_spill] sm:$0xff] }
 0x84d   : > { %v8437_v37 = vadd.f32 %v15365_v45, %v8366_v24  ;;  %v7690_v50 = vadd.f32 %v7594_v36, %v16313_v44  ;;  %v7591_v17 = vsel %vm7578_vm2, %v7564_v56, %v7565_v60  ;;  %v8367_v55 = vadd.f32 %v16314_v61, %v7822_v31  ;;  %v16322_v24 = vld [vmem:[#allocation119_spill] sm:$0xff]  ;;  %v16326_v61 = vld [vmem:[#allocation68_spill] sm:$0xff] }
 0x84e   : > { %v8368_v27 = vadd.f32 %v16315_v0, %v7823_v42  ;;  %v7693_v13 = vadd.f32 %v7591_v17, %v16316_v57  ;;  %v7592_v54 = vsel %vm7578_vm2, %v7563_v29, %v7564_v56  ;;  %v7593_v8 = vsel %vm7578_vm2, %v7562_v30, %v7563_v29  ;;  %v16324_v42 = vld [vmem:[#allocation40_spill] sm:$0xff]  ;;  %v16325_v17 = vld [vmem:[#allocation67_spill] sm:$0xff] }
 0x84f   : > { %v9601_v23 = vpack.c.bf16 %v8437_v37, %v8436_v39  ;;  %v7761_v40 = vadd.f32 %v15347_v58, %v7690_v50  ;;  %v8438_v32 = vadd.f32 %v15365_v45, %v8367_v55  ;;  %v7691_v62 = vadd.f32 %v7593_v8, %v16317_v52  ;;  %v16327_v52 = vld [vmem:[#allocation12_spill] sm:$0xff] }
 0x850   : > { %v8439_v26 = vadd.f32 %v15365_v45, %v8368_v27  ;;  %v7764_v41 = vadd.f32 %v15347_v58, %v7693_v13  ;;  %v10505_v53 = vpop.f32.mrb[124].mxu1  ;;  %v8440_v47 = vadd.f32 %v15365_v45, %v8369_v35  ;;  %v7692_v3 = vadd.f32 %v7592_v54, %v16318_v14  ;;  %v16328_v14 = vld [vmem:[#allocation120_spill] sm:$0xff] }
 0x851   : > { %9708 = vst [vmem:[%s15387_s22 + $0xa8] sm:$0xff] %v9601_v23   ;;  %v7825_v19 = vmax.f32 %v7761_v40, 0.0  ;;  %v7083_v11 = vpop.f32.mrb[125].mxu1  ;;  %v7762_v2 = vadd.f32 %v15347_v58, %v7691_v62  ;;  %v7568_v4 = vrot.slane %v10505_v53, 2 }
 0x852   : > { %v9606_v10 = vpack.c.bf16 %v8439_v26, %v8438_v32  ;;  %v7828_v51 = vmax.f32 %v7764_v41, 0.0  ;;  %v7566_v7 = vrot.slane %v7083_v11, 2  ;;  %v10506_v15 = vpop.f32.mrb[126].mxu1  ;;  %v7763_v33 = vadd.f32 %v15347_v58, %v7692_v3 }
 0x853   : > { %v8370_v5 = vadd.f32 %v16319_v43, %v7825_v19  ;;  %v7569_v1 = vrot.slane %v10506_v15, 2  ;;  %v7086_v39 = vpop.f32.mrb[127].mxu1  ;;  %v7826_v63 = vmax.f32 %v7762_v2, 0.0 }
 0x854   : > { %9709 = vst [vmem:[%s15387_s22 + $0xb0] sm:$0xff] %v9606_v10   ;;  %v8373_v59 = vadd.f32 %v16320_v18, %v7828_v51  ;;  %v7590_v21 = vsel %vm7578_vm2, %v7565_v60, %v7566_v7  ;;  %v7567_v6 = vrot.slane %v7086_v39, 2  ;;  %v7827_v30 = vmax.f32 %v7763_v33, 0.0  ;;  %v16330_v33 = vld [vmem:[#allocation122_spill] sm:$0xff]  ;;  %v16331_v39 = vld [vmem:[#allocation121_spill] sm:$0xff] }
 0x855   : > { %v8441_v16 = vadd.f32 %v15365_v45, %v8370_v5  ;;  %v7694_v28 = vadd.f32 %v7590_v21, %v16321_v46  ;;  %v7587_v20 = vsel %vm7578_vm2, %v7568_v4, %v7569_v1  ;;  %v8371_v56 = vadd.f32 %v16322_v24, %v7826_v63 }
 0x856   : > { %v7697_v38 = vadd.f32 %v7587_v20, %v16323_v9  ;;  %v7588_v35 = vsel %vm7578_vm2, %v7567_v6, %v7568_v4  ;;  %v8372_v60 = vadd.f32 %v16324_v42, %v7827_v30  ;;  %v7589_v37 = vsel %vm7578_vm2, %v7566_v7, %v7567_v6  ;;  %v16329_v7 = vld [vmem:[#allocation70_spill] sm:$0xff]  ;;  %v16333_v20 = vld [vmem:[#allocation71_spill] sm:$0xff] }
 0x857   : > { %v9611_v31 = vpack.c.bf16 %v8441_v16, %v8440_v47  ;;  %v7765_v36 = vadd.f32 %v15347_v58, %v7694_v28  ;;  %v8442_v44 = vadd.f32 %v15365_v45, %v8371_v56  ;;  %v7695_v29 = vadd.f32 %v7589_v37, %v16325_v17  ;;  %v11948_v37 = vld [vmem:[%s15783_s5] ss:$0 sm:$0xff]  ;;  %v16335_v17 = vld [vmem:[#allocation41_spill] sm:$0xff] }
 0x858   : > { %v7768_v50 = vadd.f32 %v15347_v58, %v7697_v38  ;;  %v7696_v55 = vadd.f32 %v7588_v35, %v16326_v61  ;;  %v10509_v0 = vpop.f32.mrb[128].mxu1  ;;  %v8444_v27 = vadd.f32 %v15365_v45, %v8373_v59  ;;  %v8443_v57 = vadd.f32 %v15365_v45, %v8372_v60  ;;  %v16332_v59 = vld [vmem:[#allocation73_spill] sm:$0xff]  ;;  %v16334_v35 = vld [vmem:[#allocation72_spill] sm:$0xff] }
 0x859   : > { %9710 = vst [vmem:[%s15387_s22 + $0xb8] sm:$0xff] %v9611_v31   ;;  %v7829_v13 = vmax.f32 %v7765_v36, 0.0  ;;  %v7099_v23 = vpop.f32.mrb[129].mxu1  ;;  %v7766_v54 = vadd.f32 %v15347_v58, %v7695_v29  ;;  %v7572_v53 = vrot.slane %v10509_v0, 2 }
 0x85a   : > { %v7832_v40 = vmax.f32 %v7768_v50, 0.0  ;;  %v7767_v8 = vadd.f32 %v15347_v58, %v7696_v55  ;;  %v7570_v32 = vrot.slane %v7099_v23, 2  ;;  %v10510_v26 = vpop.f32.mrb[130].mxu1  ;;  %v9616_v41 = vpack.c.bf16 %v8443_v57, %v8442_v44  ;;  %v16336_v57 = vld [vmem:[#allocation11_spill] sm:$0xff] }
 0x85b   : > { %v8374_v62 = vadd.f32 %v16327_v52, %v7829_v13  ;;  %v7573_v47 = vrot.slane %v10510_v26, 2  ;;  %v7102_v19 = vpop.f32.mrb[131].mxu1  ;;  %v7830_v11 = vmax.f32 %v7766_v54, 0.0  ;;  %v16337_v52 = vld [vmem:[#allocation42_spill] sm:$0xff] }
 0x85c   : > { %v8377_v3 = vadd.f32 %v16328_v14, %v7832_v40  ;;  %v7831_v10 = vmax.f32 %v7767_v8, 0.0  ;;  %v7586_v51 = vsel %vm7578_vm2, %v7569_v1, %v7570_v32  ;;  %9711 = vst [vmem:[%s15387_s22 + $0xc0] sm:$0xff] %v9616_v41   ;;  %v7571_v5 = vrot.slane %v7102_v19, 2 }
 0x85d   : > { %v8445_v2 = vadd.f32 %v15365_v45, %v8374_v62  ;;  %v7698_v15 = vadd.f32 %v7586_v51, %v16329_v7  ;;  %v7583_v43 = vsel %vm7578_vm2, %v7572_v53, %v7573_v47  ;;  %v8375_v4 = vadd.f32 %v16330_v33, %v7830_v11  ;;  %v16340_v33 = vld [vmem:[#allocation74_spill] sm:$0xff] }
 0x85e   : > { %v8376_v18 = vadd.f32 %v16331_v39, %v7831_v10  ;;  %v7701_v63 = vadd.f32 %v7583_v43, %v16332_v59  ;;  %v7584_v1 = vsel %vm7578_vm2, %v7571_v5, %v7572_v53  ;;  %v7585_v16 = vsel %vm7578_vm2, %v7570_v32, %v7571_v5 }
 0x85f   : > { %v9621_v21 = vpack.c.bf16 %v8445_v2, %v8444_v27  ;;  %v7769_v6 = vadd.f32 %v15347_v58, %v7698_v15  ;;  %v8446_v30 = vadd.f32 %v15365_v45, %v8375_v4  ;;  %v7699_v24 = vadd.f32 %v7585_v16, %v16333_v20 }
 0x860   : > { %v8447_v46 = vadd.f32 %v15365_v45, %v8376_v18  ;;  %v7772_v28 = vadd.f32 %v15347_v58, %v7701_v63  ;;  %v10513_v56 = vpop.f32.mrb[132].mxu1  ;;  %v8448_v9 = vadd.f32 %v15365_v45, %v8377_v3  ;;  %v7700_v31 = vadd.f32 %v7584_v1, %v16334_v35  ;;  %v16339_v3 = vld [vmem:[#allocation16_spill] sm:$0xff]  ;;  %v16341_v18 = vld [vmem:[#allocation58_spill] sm:$0xff] }
 0x861   : > { %9712 = vst [vmem:[%s15387_s22 + $0xc8] sm:$0xff] %v9621_v21   ;;  %v7833_v38 = vmax.f32 %v7769_v6, 0.0  ;;  %v7115_v42 = vpop.f32.mrb[133].mxu1  ;;  %v7770_v44 = vadd.f32 %v11948_v37, %v7699_v24  ;;  %v7576_v55 = vrot.slane %v10513_v56, 2  ;;  %v16338_v53 = vrot.slane %v15326_v34, 2  ;;  %v16342_v6 = vld [vmem:[#allocation57_spill] sm:$0xff] }
 0x862   : > { %v9626_v60 = vpack.c.bf16 %v8447_v46, %v8446_v30  ;;  %v7836_v36 = vmax.f32 %v7772_v28, 0.0  ;;  %v7574_v50 = vrot.slane %v7115_v42, 2  ;;  %v10514_v58 = vpop.f32.mrb[134].mxu1  ;;  %v7771_v61 = vadd.f32 %v11948_v37, %v7700_v31  ;;  %v16343_v46 = vld [vmem:[#allocation13_spill] sm:$0xff]  ;;  %v16345_v31 = vld [vmem:[#allocation75_spill] sm:$0xff] }
 0x863   : > { %v8378_v29 = vadd.f32 %v16335_v17, %v7833_v38  ;;  %v7577_v0 = vrot.slane %v10514_v58, 2  ;;  %v7118_v27 = vpop.f32.mrb[135].mxu1  ;;  %v7834_v23 = vmax.f32 %v7770_v44, 0.0  ;;  %v16344_v38 = vld [vmem:[#allocation76_spill] sm:$0xff] }
 0x864   : > { %9713 = vst [vmem:[%s15387_s22 + $0xd0] sm:$0xff] %v9626_v60   ;;  %v8381_v13 = vadd.f32 %v16336_v57, %v7836_v36  ;;  %v7582_v40 = vsel %vm7578_vm2, %v7573_v47, %v7574_v50  ;;  %v7575_v54 = vrot.slane %v7118_v27, 2  ;;  %v7835_v32 = vmax.f32 %v7771_v61, 0.0 }
 0x865   : > { %v8449_v8 = vadd.f32 %v15365_v45, %v8378_v29  ;;  %v7702_v26 = vadd.f32 %v7582_v40, %v15302_v48  ;;  %v7579_v41 = vsel %vm7578_vm2, %v7576_v55, %v7577_v0  ;;  %v8379_v62 = vadd.f32 %v16337_v52, %v7834_v23  ;;  %v11949_v48 = vld [vmem:[%s15785_s7] ss:$0 sm:$0xff] }
 0x866   : > { %v7642_v19 = vsel %vm7578_vm2, %v7577_v0, %v16338_v53  ;;  %v7705_v14 = vadd.f32 %v7579_v41, %v15322_v49  ;;  %v8380_v11 = vadd.f32 %v16339_v3, %v7835_v32  ;;  %v7580_v34 = vsel %vm7578_vm2, %v7575_v54, %v7576_v55 }
 0x867   : > { %v9631_v47 = vpack.c.bf16 %v8449_v8, %v8448_v9  ;;  %v7773_v45 = vadd.f32 %v11948_v37, %v7702_v26  ;;  %v7706_v10 = vadd.f32 %v7642_v19, %v15324_v12  ;;  %v8450_v51 = vadd.f32 %v11949_v48, %v8379_v62 }
 0x868   : > { %v7776_v2 = vadd.f32 %v11948_v37, %v7705_v14  ;;  %v7581_v7 = vsel %vm7578_vm2, %v7574_v50, %v7575_v54  ;;  %v8451_v49 = vadd.f32 %v11949_v48, %v8380_v11  ;;  %v7704_v4 = vadd.f32 %v7580_v34, %v16340_v33 }
 0x869   : > { %9714 = vst [vmem:[%s15387_s22 + $0xd8] sm:$0xff] %v9631_v47   ;;  %v7837_v15 = vmax.f32 %v7773_v45, 0.0  ;;  %v7777_v43 = vadd.f32 %v11948_v37, %v7706_v10  ;;  %v7703_v5 = vadd.f32 %v7581_v7, %v15306_v25  ;;  %v8452_v16 = vadd.f32 %v11949_v48, %v8381_v13 }
 0x86a   : > { %v7840_v12 = vmax.f32 %v7776_v2, 0.0  ;;  %v9636_v39 = vpack.c.bf16 %v8451_v49, %v8450_v51  ;;  %v7775_v22 = vadd.f32 %v11948_v37, %v7704_v4 }
 0x86b   : > { %v8382_v59 = vadd.f32 %v16341_v18, %v7837_v15  ;;  %v7841_v63 = vmax.f32 %v7777_v43, 0.0  ;;  %v7774_v21 = vadd.f32 %v11948_v37, %v7703_v5 }
 0x86c   : > { %v8385_v1 = vadd.f32 %v16342_v6, %v7840_v12  ;;  %9715 = vst [vmem:[%s15387_s22 + $0xe0] sm:$0xff] %v9636_v39   ;;  %v7839_v24 = vmax.f32 %v7775_v22, 0.0 }
 0x86d   : > { %v8453_v30 = vadd.f32 %v11949_v48, %v8382_v59  ;;  %v8386_v28 = vadd.f32 %v16343_v46, %v7841_v63  ;;  %v7838_v25 = vmax.f32 %v7774_v21, 0.0 }
 0x86e   : > { %v8456_v20 = vadd.f32 %v11949_v48, %v8385_v1  ;;  %v8384_v42 = vadd.f32 %v16345_v31, %v7839_v24 }
 0x86f   : > { %v9641_v56 = vpack.c.bf16 %v8453_v30, %v8452_v16  ;;  %v8457_v9 = vadd.f32 %v11949_v48, %v8386_v28  ;;  %v8383_v35 = vadd.f32 %v16344_v38, %v7838_v25 }
 0x870   : > { %v8455_v37 = vadd.f32 %v11949_v48, %v8384_v42 }
 0x871   : > { %9716 = vst [vmem:[%s15387_s22 + $0xe8] sm:$0xff] %v9641_v56   ;;  %v9651_v60 = vpack.c.bf16 %v8457_v9, %v8456_v20  ;;  %v8454_v36 = vadd.f32 %v11949_v48, %v8383_v35 }
 0x873   : > { %9718 = vst [vmem:[%s15387_s22 + $0xf8] sm:$0xff] %v9651_v60   ;;  %v9646_v44 = vpack.c.bf16 %v8455_v37, %v8454_v36 }
 0x875   : > { %9717 = vst [vmem:[%s15387_s22 + $0xf0] sm:$0xff] %v9646_v44  }
 0x876 PF: > { %s18_s29 = sadd.s32 1, %s11972_s29   ;;  %s16346_s27 = smov %s11968_s28 }
 0x877   : > { %p15_p5 = scmp.ge.s32.totalorder %s18_s29, 4   ;;  %s16347_s28 = smov %s16349_s30 }
 0x879   :  { %17 = sbr.rel (!%p15_p5) target bundleno = 2 (0x2), region = 89 }

</bundles_post_ra>
